<compile_context>
chip_gen: v6e
topology: v6e:2x2x1
jax: 0.10.0
libtpu: 0.0.40
codegen_flags: <defaults>
</compile_context>

<pallas_src>
import functools

import jax
import jax.numpy as jnp
from jax.experimental import pallas as pl
from jax.experimental.pallas import tpu as pltpu


# --------------------------------------------------------------------------- #
# Small helpers
# --------------------------------------------------------------------------- #
@functools.lru_cache(maxsize=None)
def _vmem_cap():
    """3/4 of physical per-core VMEM (v7x only has 64 MiB)."""
    try:
        cap = int(pltpu.get_tpu_info().vmem_capacity_bytes)
    except Exception:
        cap = 64 * 1024 * 1024
    return cap * 3 // 4


def _bytes(shape, dtype):
    n = 1
    for d in shape:
        n *= int(d)
    return n * jnp.dtype(dtype).itemsize


def _mk_params(sem, block_bytes, scratch_bytes=0):
    """CompilerParams with a vmem limit derived from the actual working set
    (double-buffered blocks + scratch + headroom), not a blanket 96 MiB."""
    limit = 3 * int(block_bytes) + int(scratch_bytes) + (8 << 20)
    limit = max(16 << 20, min(limit, _vmem_cap()))
    return pltpu.CompilerParams(dimension_semantics=sem,
                                vmem_limit_bytes=limit)


def _tile(dim, target, align=128):
    """Largest `align`-multiple divisor of `dim` that is <= target (else full)."""
    if dim <= target:
        return dim
    best = None
    for t in range(align, target + 1, align):
        if dim % t == 0:
            best = t
    if best is None:
        # TODO(synk): pad-and-mask fallback; a full-dim block can exceed VMEM
        # for adversarial sizes (flagged in review).
        return dim
    return best


def _tile_m(dim, target):
    """M-axis tile: prefer 128-aligned (full MXU rows), then 16-aligned
    (bf16 sublane pack), then 8-aligned divisors."""
    if dim <= target:
        return dim
    for align in (128, 16, 8):
        best = None
        for t in range(align, target + 1, align):
            if dim % t == 0:
                best = t
        if best is not None:
            return best
    return dim


def _apply_act(y, act):
    if act == "relu":
        return jnp.maximum(y, 0.0)
    if act == "tanh":
        return jnp.tanh(y)
    if act == "tanh_scaled":              # Tanh followed by out*0.5 + 0.5
        return jnp.tanh(y) * 0.5 + 0.5
    return y


def _dot(a, b):
    # bf16 operands: native MXU pass.  f32 operands (validation path): force
    # full precision so the f32 kernels match an f32 reference tightly.
    prec = jax.lax.Precision.HIGHEST if a.dtype == jnp.float32 else None
    return jnp.dot(a, b, preferred_element_type=jnp.float32, precision=prec)


# --------------------------------------------------------------------------- #
# Pallas kernels
# --------------------------------------------------------------------------- #
def _mm_bias_act_kernel(x_ref, w_ref, b_ref, o_ref, acc_ref, *, act):
    @pl.when(pl.program_id(2) == 0)
    def _():
        acc_ref[...] = jnp.broadcast_to(b_ref[...], acc_ref.shape)  # bias init

    acc_ref[...] += _dot(x_ref[...], w_ref[...])

    @pl.when(pl.program_id(2) == pl.num_programs(2) - 1)
    def _():
        o_ref[...] = _apply_act(acc_ref[...], act).astype(o_ref.dtype)


def _mm_bias_bn_relu_kernel(x_ref, w_ref, b_ref, o_ref, acc_ref, *, eps):
    """Full-M blocks (M = batch): BN over axis 0 fused into the epilogue."""
    @pl.when(pl.program_id(1) == 0)
    def _():
        acc_ref[...] = jnp.broadcast_to(b_ref[...], acc_ref.shape)

    acc_ref[...] += _dot(x_ref[...], w_ref[...])

    @pl.when(pl.program_id(1) == pl.num_programs(1) - 1)
    def _():
        y = acc_ref[...]
        mean = jnp.mean(y, axis=0, keepdims=True)
        var = jnp.mean(jnp.square(y - mean), axis=0, keepdims=True)
        yn = (y - mean) * jax.lax.rsqrt(var + eps)
        o_ref[...] = jnp.maximum(yn, 0.0).astype(o_ref.dtype)


def _mm_bias_stats_kernel(x_ref, w_ref, b_ref, y_ref, stats_ref, acc_ref):
    """Tiled matmul + bias; epilogue also emits per-column sum / sum-of-squares
    for this M-tile (partial BN statistics)."""
    @pl.when(pl.program_id(2) == 0)
    def _():
        acc_ref[...] = jnp.broadcast_to(b_ref[...], acc_ref.shape)

    acc_ref[...] += _dot(x_ref[...], w_ref[...])

    @pl.when(pl.program_id(2) == pl.num_programs(2) - 1)
    def _():
        y = acc_ref[...]
        y_ref[...] = y.astype(y_ref.dtype)
        s = jnp.sum(y, axis=0, keepdims=True)                 # (1, tn)
        ss = jnp.sum(y * y, axis=0, keepdims=True)            # (1, tn)
        stats_ref[...] = jnp.concatenate([s, ss], axis=0)[None]   # (1, 2, tn)


def _bn_relu_apply_kernel(y_ref, mean_ref, inv_ref, o_ref):
    y = y_ref[...].astype(jnp.float32)
    o_ref[...] = jnp.maximum((y - mean_ref[...]) * inv_ref[...],
                             0.0).astype(o_ref.dtype)


def _mm_rowbias_act_kernel(a_ref, b_ref, bias_ref, o_ref, *, act):
    acc = _dot(a_ref[...], b_ref[...]) + bias_ref[...]
    o_ref[...] = _apply_act(acc, act).astype(o_ref.dtype)


# --------------------------------------------------------------------------- #
# Pallas wrappers
# --------------------------------------------------------------------------- #
def matmul_bias_act(x, w, b, *, act="none", out_dtype=jnp.float32,
                    mm_dtype=jnp.bfloat16):
    """(M,K)@(K,N) + bias(N) + activation.  Tiled, pipelined, f32 accumulation."""
    M, K = x.shape
    K2, N = w.shape
    assert K == K2
    tm = _tile_m(M, 512)
    tn = _tile(N, 256, 128)
    tk = _tile(K, 1024, 128)
    b2 = b.reshape(1, N).astype(jnp.float32)
    blocks = (_bytes((tm, tk), mm_dtype) + _bytes((tk, tn), mm_dtype)
              + _bytes((1, tn), jnp.float32) + _bytes((tm, tn), out_dtype))
    return pl.pallas_call(
        functools.partial(_mm_bias_act_kernel, act=act),
        out_shape=jax.ShapeDtypeStruct((M, N), out_dtype),
        grid=(M // tm, N // tn, K // tk),
        in_specs=[
            pl.BlockSpec((tm, tk), lambda i, j, k: (i, k)),
            pl.BlockSpec((tk, tn), lambda i, j, k: (k, j)),
            pl.BlockSpec((1, tn), lambda i, j, k: (0, j)),
        ],
        out_specs=pl.BlockSpec((tm, tn), lambda i, j, k: (i, j)),
        scratch_shapes=[pltpu.VMEM((tm, tn), jnp.float32)],
        compiler_params=_mk_params(("parallel", "parallel", "arbitrary"),
                                   blocks, _bytes((tm, tn), jnp.float32)),
    )(x.astype(mm_dtype), w.astype(mm_dtype), b2)


def matmul_bias_bn_relu(x, w, b, *, eps=1e-5, out_dtype=jnp.float32,
                        mm_dtype=jnp.bfloat16):
    """FC layer: (M,K)@(K,N)+bias -> batch-stat BatchNorm1d (gamma=1,beta=0) ->
    ReLU, BN fused into the matmul epilogue.  M = batch stays whole (small);
    N/K use large weight-streaming tiles; N is the parallel axis."""
    M, K = x.shape
    K2, N = w.shape
    assert K == K2
    tn = _tile(N, 512, 128)
    tk = _tile(K, 1024, 128)
    b2 = b.reshape(1, N).astype(jnp.float32)
    blocks = (_bytes((M, tk), mm_dtype) + _bytes((tk, tn), mm_dtype)
              + _bytes((1, tn), jnp.float32) + _bytes((M, tn), out_dtype))
    return pl.pallas_call(
        functools.partial(_mm_bias_bn_relu_kernel, eps=eps),
        out_shape=jax.ShapeDtypeStruct((M, N), out_dtype),
        grid=(N // tn, K // tk),
        in_specs=[
            pl.BlockSpec((M, tk), lambda j, k: (0, k)),
            pl.BlockSpec((tk, tn), lambda j, k: (k, j)),
            pl.BlockSpec((1, tn), lambda j, k: (0, j)),
        ],
        out_specs=pl.BlockSpec((M, tn), lambda j, k: (0, j)),
        scratch_shapes=[pltpu.VMEM((M, tn), jnp.float32)],
        compiler_params=_mk_params(("parallel", "arbitrary"), blocks,
                                   _bytes((M, tn), jnp.float32)),
    )(x.astype(mm_dtype), w.astype(mm_dtype), b2)


def matmul_bias_bn_relu_spatial(x, w, b, *, phases=1, eps=1e-5,
                                out_dtype=jnp.float32, mm_dtype=jnp.bfloat16):
    """Conv-style layer: (M,K)@(K,N)+bias -> batch-stat BatchNorm2d -> ReLU,
    where M = B*H*W.  Two Pallas passes:
      1. tiled matmul whose epilogue emits per-(M-tile, column) sum / sumsq
         (the O(M*N) stats reduction stays fused in the MXU kernel);
      2. tiny elementwise normalize+ReLU kernel.
    M and N are both tiled (both v7x TensorCores busy) and VMEM use is
    independent of batch.  `phases` > 1 pools groups of N//phases columns
    (sub-pixel deconv phases, phase-major column order) to reproduce
    BatchNorm2d per-channel statistics; the O(N) cross-tile reduction and
    phase pooling run in XLA on a few-KB array between the two calls."""
    M, K = x.shape
    K2, N = w.shape
    assert K == K2 and N % phases == 0
    tm = _tile_m(M, 256)
    tn = _tile(N, 128, 128)
    tk = _tile(K, 512, 128)
    mt = M // tm
    b2 = b.reshape(1, N).astype(jnp.float32)
    xq = x.astype(mm_dtype)
    wq = w.astype(mm_dtype)

    blocks1 = (_bytes((tm, tk), mm_dtype) + _bytes((tk, tn), mm_dtype)
               + _bytes((1, tn), jnp.float32) + _bytes((tm, tn), out_dtype)
               + _bytes((1, 2, tn), jnp.float32))
    y, stats = pl.pallas_call(
        _mm_bias_stats_kernel,
        out_shape=(jax.ShapeDtypeStruct((M, N), out_dtype),
                   jax.ShapeDtypeStruct((mt, 2, N), jnp.float32)),
        grid=(mt, N // tn, K // tk),
        in_specs=[
            pl.BlockSpec((tm, tk), lambda i, j, k: (i, k)),
            pl.BlockSpec((tk, tn), lambda i, j, k: (k, j)),
            pl.BlockSpec((1, tn), lambda i, j, k: (0, j)),
        ],
        out_specs=(pl.BlockSpec((tm, tn), lambda i, j, k: (i, j)),
                   pl.BlockSpec((1, 2, tn), lambda i, j, k: (i, 0, j))),
        scratch_shapes=[pltpu.VMEM((tm, tn), jnp.float32)],
        compiler_params=_mk_params(("parallel", "parallel", "arbitrary"),
                                   blocks1, _bytes((tm, tn), jnp.float32)),
    )(xq, wq, b2)

    # Tiny O(N) finalization of the statistics (XLA; heavy reduction already
    # happened in the matmul epilogue).  Columns are phase-major (a, b, co).
    s = jnp.sum(stats, axis=0)                                  # (2, N)
    if phases > 1:
        cout = N // phases
        s = jnp.tile(s.reshape(2, phases, cout).mean(axis=1), (1, phases))
    mean = s[0] / float(M)
    var = s[1] / float(M) - jnp.square(mean)
    inv = jax.lax.rsqrt(var + eps)
    mean2 = mean.reshape(1, N).astype(jnp.float32)
    inv2 = inv.reshape(1, N).astype(jnp.float32)

    tm2 = _tile_m(M, 1024)
    tn2 = _tile(N, 512, 128)
    blocks2 = (2 * _bytes((tm2, tn2), out_dtype)
               + 2 * _bytes((1, tn2), jnp.float32))
    return pl.pallas_call(
        _bn_relu_apply_kernel,
        out_shape=jax.ShapeDtypeStruct((M, N), out_dtype),
        grid=(M // tm2, N // tn2),
        in_specs=[
            pl.BlockSpec((tm2, tn2), lambda i, j: (i, j)),
            pl.BlockSpec((1, tn2), lambda i, j: (0, j)),
            pl.BlockSpec((1, tn2), lambda i, j: (0, j)),
        ],
        out_specs=pl.BlockSpec((tm2, tn2), lambda i, j: (i, j)),
        compiler_params=_mk_params(("parallel", "parallel"), blocks2),
    )(y, mean2, inv2)


def matmul_rowbias_act(a, b, bias_rows, *, act="none", out_dtype=jnp.float32,
                       mm_dtype=jnp.bfloat16):
    """(M,K)@(K,N) + per-row bias (M,1) + activation, N (lane axis) tiled.
    Used for the transposed final deconv so the B*H*W axis is lane-dense."""
    M, K = a.shape
    K2, N = b.shape
    assert K == K2
    tn = _tile(N, 512, 128)
    blocks = (_bytes((M, K), mm_dtype) + _bytes((K, tn), mm_dtype)
              + _bytes((M, 1), jnp.float32) + _bytes((M, tn), out_dtype))
    return pl.pallas_call(
        functools.partial(_mm_rowbias_act_kernel, act=act),
        out_shape=jax.ShapeDtypeStruct((M, N), out_dtype),
        grid=(N // tn,),
        in_specs=[
            pl.BlockSpec((M, K), lambda j: (0, 0)),
            pl.BlockSpec((K, tn), lambda j: (0, j)),
            pl.BlockSpec((M, 1), lambda j: (0, 0)),
        ],
        out_specs=pl.BlockSpec((M, tn), lambda j: (0, j)),
        compiler_params=_mk_params(("parallel",), blocks),
    )(a.astype(mm_dtype), b.astype(mm_dtype), bias_rows.astype(jnp.float32))


# --------------------------------------------------------------------------- #
# im2col / sub-pixel deconv glue (XLA side: patch extraction / shuffles only)
# --------------------------------------------------------------------------- #
def im2col_nhwc(x, k, stride, pad):
    """x: (B, H, W, C) -> (B*Ho*Wo, k*k*C), column order (ki, kj, c)."""
    B, H, W, C = x.shape
    xp = jnp.pad(x, ((0, 0), (pad, pad), (pad, pad), (0, 0)))
    Ho = (H + 2 * pad - k) // stride + 1
    Wo = (W + 2 * pad - k) // stride + 1
    patches = []
    for i in range(k):
        for j in range(k):
            patches.append(
                xp[:, i:i + stride * Ho:stride, j:j + stride * Wo:stride, :])
    p = jnp.stack(patches, axis=3)                       # (B, Ho, Wo, k*k, C)
    return p.reshape(B * Ho * Wo, k * k * C), Ho, Wo


def im2col_nhwc_T(x, k, stride, pad):
    """Transposed im2col built directly: (k*k*C, B*Ho*Wo), rows (ki, kj, c).
    Avoids materializing cols followed by a separate full HBM transpose."""
    B, H, W, C = x.shape
    xp = jnp.pad(x, ((0, 0), (pad, pad), (pad, pad), (0, 0)))
    Ho = (H + 2 * pad - k) // stride + 1
    Wo = (W + 2 * pad - k) // stride + 1
    rows = []
    for i in range(k):
        for j in range(k):
            p = xp[:, i:i + stride * Ho:stride, j:j + stride * Wo:stride, :]
            rows.append(p.transpose(3, 0, 1, 2).reshape(C, B * Ho * Wo))
    return jnp.concatenate(rows, axis=0), Ho, Wo


def pixel_shuffle_nhwc(y, B, H, W, cout):
    """y: (B*H*W, 4*cout), columns ordered (a, b, co) -> (B, 2H, 2W, cout)."""
    y = y.reshape(B, H, W, 2, 2, cout)
    y = y.transpose(0, 1, 3, 2, 4, 5)                    # (B, m, a, n, b, co)
    return y.reshape(B, 2 * H, 2 * W, cout)


def deconv_subpixel_weight(w):
    """ConvTranspose2d(k=4, stride=2, pad=1) weight (Cin, Cout, 4, 4) -> the
    weight of an equivalent 3x3 / stride-1 / pad-1 conv on the *undilated*
    input producing 4 interleaved output phases: shape (9*Cin, 4*Cout).
    Rows are (ki, kj, ci) matching im2col(k=3); cols are (a, b, co)."""
    cin, cout, k, _ = w.shape
    assert k == 4
    W = jnp.zeros((3, 3, cin, 2, 2, cout), w.dtype)
    for a in range(2):
        for b in range(2):
            for pi in range(3):
                ky = 3 + a - 2 * pi
                if not 0 <= ky < 4:
                    continue
                for pj in range(3):
                    kx = 3 + b - 2 * pj
                    if not 0 <= kx < 4:
                        continue
                    W = W.at[pi, pj, :, a, b, :].set(w[:, :, ky, kx])
    return W.reshape(9 * cin, 4 * cout)


# --------------------------------------------------------------------------- #
# Parameters (PyTorch layouts; initialize_weights: W ~ N(0, 0.02), bias = 0)
# --------------------------------------------------------------------------- #
def init_params(key, nc, image_size, nz):
    s4 = image_size // 4
    feat = 128 * s4 * s4
    ks = jax.random.split(key, 8)
    std = 0.02
    return {
        "conv1_w": std * jax.random.normal(ks[0], (64, nc, 4, 4), jnp.float32),
        "conv1_b": jnp.zeros((64,), jnp.float32),
        "conv2_w": std * jax.random.normal(ks[1], (128, 64, 4, 4), jnp.float32),
        "conv2_b": jnp.zeros((128,), jnp.float32),
        "efc1_w": std * jax.random.normal(ks[2], (1024, feat), jnp.float32),
        "efc1_b": jnp.zeros((1024,), jnp.float32),
        "efc2_w": std * jax.random.normal(ks[3], (nz, 1024), jnp.float32),
        "efc2_b": jnp.zeros((nz,), jnp.float32),
        "dfc1_w": std * jax.random.normal(ks[4], (1024, nz), jnp.float32),
        "dfc1_b": jnp.zeros((1024,), jnp.float32),
        "dfc2_w": std * jax.random.normal(ks[5], (feat, 1024), jnp.float32),
        "dfc2_b": jnp.zeros((feat,), jnp.float32),
        "dconv1_w": std * jax.random.normal(ks[6], (128, 64, 4, 4), jnp.float32),
        "dconv1_b": jnp.zeros((64,), jnp.float32),
        "dconv2_w": std * jax.random.normal(ks[7], (64, nc, 4, 4), jnp.float32),
        "dconv2_b": jnp.zeros((nc,), jnp.float32),
    }


def prepare_params(p, nc, image_size, mm_dtype=jnp.bfloat16):
    """One-time weight prep: matmul layouts, NHWC feature permutations, sub-pixel
    deconv weights, phase-replicated deconv biases, dtype cast to mm_dtype."""
    s4 = image_size // 4
    feat = 128 * s4 * s4
    prep = {
        # Conv2d (Cout, Cin, k, k) -> (k*k*Cin, Cout) matching NHWC im2col.
        "conv1_w": p["conv1_w"].transpose(2, 3, 1, 0).reshape(16 * nc, 64),
        "conv1_b": p["conv1_b"],
        "conv2_w": p["conv2_w"].transpose(2, 3, 1, 0).reshape(16 * 64, 128),
        "conv2_b": p["conv2_b"],
        # efc1 consumes the NHWC-flattened conv output -> permute in-features
        # from PyTorch's (c, h, w) order to (h, w, c).
        "efc1_w": (p["efc1_w"].reshape(1024, 128, s4, s4)
                   .transpose(2, 3, 1, 0).reshape(feat, 1024)),
        "efc1_b": p["efc1_b"],
        "efc2_w": p["efc2_w"].T,
        "efc2_b": p["efc2_b"],
        "dfc1_w": p["dfc1_w"].T,
        "dfc1_b": p["dfc1_b"],
        # dfc2 produces the deconv input -> permute out-features to (h, w, c).
        "dfc2_w": (p["dfc2_w"].reshape(128, s4, s4, 1024)
                   .transpose(1, 2, 0, 3).reshape(feat, 1024).T),
        "dfc2_b": (p["dfc2_b"].reshape(128, s4, s4)
                   .transpose(1, 2, 0).reshape(feat)),
        # Sub-pixel deconv weights / phase-replicated biases (phase-major cols).
        "dconv1_w": deconv_subpixel_weight(p["dconv1_w"]),        # (9*128, 4*64)
        "dconv1_b": jnp.tile(p["dconv1_b"], 4),                   # (4*64,)
        "dconv2_wT": deconv_subpixel_weight(p["dconv2_w"]).T,     # (4*nc, 9*64)
        "dconv2_b": jnp.tile(p["dconv2_b"], 4).reshape(4 * nc, 1),
    }
    for name in prep:
        if name.endswith("_w") or name.endswith("_wT"):
            prep[name] = prep[name].astype(mm_dtype)
    return prep


# --------------------------------------------------------------------------- #
# Forward pass
# --------------------------------------------------------------------------- #
def conv_ae_forward(prep, x, *, nc, image_size, nz, loss_type="MSE",
                    mm_dtype=jnp.bfloat16):
    """ConvAE.forward: returns (decoded (B, nc, H, W) f32, z (B, nz) f32)."""
    B = x.shape[0]
    s4 = image_size // 4
    act_dt = mm_dtype                     # inter-layer activations

    # -------- encode --------
    h = x.transpose(0, 2, 3, 1).astype(mm_dtype)              # NCHW -> NHWC
    cols, H1, W1 = im2col_nhwc(h, 4, 2, 1)
    h = matmul_bias_act(cols, prep["conv1_w"], prep["conv1_b"], act="relu",
                        out_dtype=act_dt, mm_dtype=mm_dtype)
    h = h.reshape(B, H1, W1, 64)

    cols, H2, W2 = im2col_nhwc(h, 4, 2, 1)
    h = matmul_bias_bn_relu_spatial(cols, prep["conv2_w"], prep["conv2_b"],
                                    out_dtype=act_dt, mm_dtype=mm_dtype)
    h = h.reshape(B, H2 * W2 * 128)                           # NHWC flatten

    h = matmul_bias_bn_relu(h, prep["efc1_w"], prep["efc1_b"],
                            out_dtype=act_dt, mm_dtype=mm_dtype)
    z = matmul_bias_act(h, prep["efc2_w"], prep["efc2_b"], act="none",
                        out_dtype=jnp.float32, mm_dtype=mm_dtype)

    # -------- decode --------
    d = matmul_bias_bn_relu(z, prep["dfc1_w"], prep["dfc1_b"],
                            out_dtype=act_dt, mm_dtype=mm_dtype)
    d = matmul_bias_bn_relu(d, prep["dfc2_w"], prep["dfc2_b"],
                            out_dtype=act_dt, mm_dtype=mm_dtype)
    d = d.reshape(B, s4, s4, 128)

    # ConvTranspose2d(128, 64) + BatchNorm2d + ReLU (sub-pixel; BN pools phases)
    cols, _, _ = im2col_nhwc(d, 3, 1, 1)
    d = matmul_bias_bn_relu_spatial(cols, prep["dconv1_w"], prep["dconv1_b"],
                                    phases=4, out_dtype=act_dt,
                                    mm_dtype=mm_dtype)
    d = pixel_shuffle_nhwc(d, B, s4, s4, 64)                  # (B, 2s4, 2s4, 64)

    # ConvTranspose2d(64, nc) + Tanh (+ *0.5+0.5 unless Perceptual loss),
    # computed transposed so the lane axis is B*H*W (lane-dense output).
    colsT, Hd, Wd = im2col_nhwc_T(d, 3, 1, 1)                 # (9*64, B*Hd*Wd)
    act = "tanh" if loss_type == "Perceptual" else "tanh_scaled"
    out_t = matmul_rowbias_act(prep["dconv2_wT"], colsT, prep["dconv2_b"],
                               act=act, out_dtype=jnp.float32, mm_dtype=mm_dtype)
    out = out_t.reshape(2, 2, nc, B, Hd, Wd).transpose(3, 2, 4, 0, 5, 1)
    decoded = out.reshape(B, nc, 2 * Hd, 2 * Wd)              # NCHW, like PyTorch
    return decoded, z


# --------------------------------------------------------------------------- #
# Pure-JAX f32 reference (validation only)
# --------------------------------------------------------------------------- #
def reference_forward(p, x, *, nc, image_size, nz, loss_type="MSE"):
    B = x.shape[0]
    s4 = image_size // 4
    feat = 128 * s4 * s4
    eps = 1e-5
    hi = jax.lax.Precision.HIGHEST

    def conv(x, w, b, stride, pad):
        y = jax.lax.conv_general_dilated(
            x, w, window_strides=(stride, stride),
            padding=((pad, pad), (pad, pad)),
            dimension_numbers=("NCHW", "OIHW", "NCHW"), precision=hi)
        return y + b.reshape(1, -1, 1, 1)

    def conv_t(x, w, b, stride, pad):
        k = w.shape[-1]
        w_oihw = jnp.flip(w, (2, 3)).transpose(1, 0, 2, 3)
        y = jax.lax.conv_general_dilated(
            x, w_oihw, window_strides=(1, 1),
            padding=((k - 1 - pad,) * 2, (k - 1 - pad,) * 2),
            lhs_dilation=(stride, stride),
            dimension_numbers=("NCHW", "OIHW", "NCHW"), precision=hi)
        return y + b.reshape(1, -1, 1, 1)

    def bn1d(h):
        m = h.mean(0, keepdims=True)
        v = jnp.square(h - m).mean(0, keepdims=True)
        return (h - m) / jnp.sqrt(v + eps)

    def bn2d(h):
        m = h.mean((0, 2, 3), keepdims=True)
        v = jnp.square(h - m).mean((0, 2, 3), keepdims=True)
        return (h - m) / jnp.sqrt(v + eps)

    h = jax.nn.relu(conv(x, p["conv1_w"], p["conv1_b"], 2, 1))
    h = jax.nn.relu(bn2d(conv(h, p["conv2_w"], p["conv2_b"], 2, 1)))
    h = h.reshape(B, feat)
    h = jax.nn.relu(bn1d(jnp.dot(h, p["efc1_w"].T, precision=hi) + p["efc1_b"]))
    z = jnp.dot(h, p["efc2_w"].T, precision=hi) + p["efc2_b"]
    d = jax.nn.relu(bn1d(jnp.dot(z, p["dfc1_w"].T, precision=hi) + p["dfc1_b"]))
    d = jax.nn.relu(bn1d(jnp.dot(d, p["dfc2_w"].T, precision=hi) + p["dfc2_b"]))
    d = d.reshape(B, 128, s4, s4)
    d = jax.nn.relu(bn2d(conv_t(d, p["dconv1_w"], p["dconv1_b"], 2, 1)))
    d = jnp.tanh(conv_t(d, p["dconv2_w"], p["dconv2_b"], 2, 1))
    if loss_type != "Perceptual":
        d = d * 0.5 + 0.5
    return d, z


# --------------------------------------------------------------------------- #
if __name__ == "__main__":
    nc, image_size, nz, B = 1, 16, 32, 2      # mnist-like: nc=1, num_latent=32
    key = jax.random.PRNGKey(0)
    kp, kx = jax.random.split(key)
    raw = init_params(kp, nc, image_size, nz)
    x = jax.random.normal(kx, (B, nc, image_size, image_size), jnp.float32)

    # Performance (bf16-operand) path.
    prep_bf16 = prepare_params(raw, nc, image_size, mm_dtype=jnp.bfloat16)
    fwd = jax.jit(functools.partial(conv_ae_forward, nc=nc,
                                    image_size=image_size, nz=nz,
                                    mm_dtype=jnp.bfloat16))
    decoded, z = fwd(prep_bf16, x)
    jax.block_until_ready((decoded, z))
    assert decoded.shape == (B, nc, image_size, image_size)
    assert z.shape == (B, nz)
    assert bool(jnp.isfinite(decoded).all()) and bool(jnp.isfinite(z).all())

    # Structural validation: same kernels in f32 vs a pure-JAX f32 reference.
    # (bf16 path is checked only for shape/finiteness: batch-stat BN with B=2
    # is sign-flip sensitive, so a tight bf16-vs-f32 bound is not meaningful.)
    prep_f32 = prepare_params(raw, nc, image_size, mm_dtype=jnp.float32)
    fwd32 = jax.jit(functools.partial(conv_ae_forward, nc=nc,
                                      image_size=image_size, nz=nz,
                                      mm_dtype=jnp.float32))
    dec32, z32 = fwd32(prep_f32, x)
    ref_dec, ref_z = jax.jit(functools.partial(reference_forward, nc=nc,
                                               image_size=image_size,
                                               nz=nz))(raw, x)
    jax.block_until_ready((dec32, z32, ref_dec, ref_z))
    assert float(jnp.max(jnp.abs(z32 - ref_z))) < 2e-2
    assert float(jnp.max(jnp.abs(dec32 - ref_dec))) < 2e-2

    print("KERNEL_OK")
</pallas_src>

<mosaic_0001>
module attributes {stable_mosaic.version = 11 : i64} {
  func.func @_mm_bias_act_kernel(%arg0: i32, %arg1: i32, %arg2: i32, %arg3: memref<128x16xbf16, #tpu.memory_space<vmem>>, %arg4: memref<16x64xbf16, #tpu.memory_space<vmem>>, %arg5: memref<1x64xf32, #tpu.memory_space<vmem>>, %arg6: memref<128x64xbf16, #tpu.memory_space<vmem>>, %arg7: memref<128x64xf32, #tpu.memory_space<vmem>>) attributes {dimension_semantics = [#tpu.dimension_semantics<parallel>, #tpu.dimension_semantics<parallel>, #tpu.dimension_semantics<arbitrary>], iteration_bounds = array<i64: 1, 1, 1>, scalar_prefetch = 0 : i64, scratch_operands = 1 : i64, tpu.core_type = #tpu.core_type<tc>, window_params = [{transform_indices = @transform_0, window_bounds = array<i64: 128, 16>}, {transform_indices = @transform_1, window_bounds = array<i64: 16, 64>}, {transform_indices = @transform_2, window_bounds = array<i64: 1, 64>}, {transform_indices = @transform_3, window_bounds = array<i64: 128, 64>}]} {
    %c0_i32 = arith.constant 0 : i32
    %0 = arith.cmpi eq, %arg2, %c0_i32 : i32
    %1 = arith.extui %0 : i1 to i32
    %c0_i32_0 = arith.constant 0 : i32
    %2 = arith.cmpi ne, %1, %c0_i32_0 : i32
    scf.if %2 {
      %c0_10 = arith.constant 0 : index
      %c0_11 = arith.constant 0 : index
      %12 = vector.load %arg5[%c0_10, %c0_11] : memref<1x64xf32, #tpu.memory_space<vmem>>, vector<1x64xf32>
      %13 = vector.shape_cast %12 : vector<1x64xf32> to vector<1x64xf32>
      %14 = vector.broadcast %13 : vector<1x64xf32> to vector<128x64xf32>
      %c0_12 = arith.constant 0 : index
      %c0_13 = arith.constant 0 : index
      %15 = vector.load %arg7[%c0_12, %c0_13] : memref<128x64xf32, #tpu.memory_space<vmem>>, vector<128x64xf32>
      tpu.vector_store %arg7[%c0_12, %c0_13], %14 {strides = array<i32>} : memref<128x64xf32, #tpu.memory_space<vmem>>, vector<128x64xf32>,
    } else {
    }
    %c0 = arith.constant 0 : index
    %c0_1 = arith.constant 0 : index
    %3 = vector.load %arg7[%c0, %c0_1] : memref<128x64xf32, #tpu.memory_space<vmem>>, vector<128x64xf32>
    %c0_2 = arith.constant 0 : index
    %c0_3 = arith.constant 0 : index
    %4 = vector.load %arg3[%c0_2, %c0_3] : memref<128x16xbf16, #tpu.memory_space<vmem>>, vector<128x16xbf16>
    %c0_4 = arith.constant 0 : index
    %c0_5 = arith.constant 0 : index
    %5 = vector.load %arg4[%c0_4, %c0_5] : memref<16x64xbf16, #tpu.memory_space<vmem>>, vector<16x64xbf16>
    %cst = arith.constant dense<0.000000e+00> : vector<128x64xf32>
    %6 = tpu.matmul %4, %5, %cst {dimension_numbers = #tpu.dot_dimension_numbers<[1], [0], [0], [1], [0, 0, 1, 1], [], []>} : vector<128x16xbf16>, vector<16x64xbf16>, vector<128x64xf32> -> vector<128x64xf32>
    %7 = arith.addf %3, %6 : vector<128x64xf32>
    %c0_6 = arith.constant 0 : index
    %c0_7 = arith.constant 0 : index
    %8 = vector.load %arg7[%c0_6, %c0_7] : memref<128x64xf32, #tpu.memory_space<vmem>>, vector<128x64xf32>
    tpu.vector_store %arg7[%c0_6, %c0_7], %7 {strides = array<i32>} : memref<128x64xf32, #tpu.memory_space<vmem>>, vector<128x64xf32>,
    %c0_i32_8 = arith.constant 0 : i32
    %9 = arith.cmpi eq, %arg2, %c0_i32_8 : i32
    %10 = arith.extui %9 : i1 to i32
    %c0_i32_9 = arith.constant 0 : i32
    %11 = arith.cmpi ne, %10, %c0_i32_9 : i32
    scf.if %11 {
      %c0_10 = arith.constant 0 : index
      %c0_11 = arith.constant 0 : index
      %12 = vector.load %arg7[%c0_10, %c0_11] : memref<128x64xf32, #tpu.memory_space<vmem>>, vector<128x64xf32>
      %cst_12 = arith.constant 0.000000e+00 : f32
      %13 = vector.broadcast %cst_12 : f32 to vector<128x64xf32>
      %14 = arith.maximumf %12, %13 : vector<128x64xf32>
      %15 = arith.truncf %14 : vector<128x64xf32> to vector<128x64xbf16>
      %c0_13 = arith.constant 0 : index
      %c0_14 = arith.constant 0 : index
      %16 = vector.load %arg6[%c0_13, %c0_14] : memref<128x64xbf16, #tpu.memory_space<vmem>>, vector<128x64xbf16>
      tpu.vector_store %arg6[%c0_13, %c0_14], %15 {strides = array<i32>} : memref<128x64xbf16, #tpu.memory_space<vmem>>, vector<128x64xbf16>,
    } else {
    }
    return
  }
  func.func @transform_0(%arg0: i32, %arg1: i32, %arg2: i32) -> (i32, i32) {
    %c0_i32 = arith.constant 0 : i32
    return %arg0, %arg2 : i32, i32
  }
  func.func @transform_1(%arg0: i32, %arg1: i32, %arg2: i32) -> (i32, i32) {
    %c0_i32 = arith.constant 0 : i32
    return %arg2, %arg1 : i32, i32
  }
  func.func @transform_2(%arg0: i32, %arg1: i32, %arg2: i32) -> (i32, i32) {
    %c0_i32 = arith.constant 0 : i32
    %c0_i32_0 = arith.constant 0 : i32
    return %c0_i32, %arg1 : i32, i32
  }
  func.func @transform_3(%arg0: i32, %arg1: i32, %arg2: i32) -> (i32, i32) {
    %c0_i32 = arith.constant 0 : i32
    return %arg0, %arg1 : i32, i32
  }
}

module attributes {stable_mosaic.version = 11 : i64} {
  func.func @_bn_relu_apply_kernel(%arg0: i32, %arg1: i32, %arg2: memref<32x128xbf16, #tpu.memory_space<vmem>>, %arg3: memref<1x128xf32, #tpu.memory_space<vmem>>, %arg4: memref<1x128xf32, #tpu.memory_space<vmem>>, %arg5: memref<32x128xbf16, #tpu.memory_space<vmem>>) attributes {dimension_semantics = [#tpu.dimension_semantics<parallel>, #tpu.dimension_semantics<parallel>], iteration_bounds = array<i64: 1, 1>, scalar_prefetch = 0 : i64, scratch_operands = 0 : i64, tpu.core_type = #tpu.core_type<tc>, window_params = [{transform_indices = @transform_0, window_bounds = array<i64: 32, 128>}, {transform_indices = @transform_1, window_bounds = array<i64: 1, 128>}, {transform_indices = @transform_2, window_bounds = array<i64: 1, 128>}, {transform_indices = @transform_3, window_bounds = array<i64: 32, 128>}]} {
    %c0 = arith.constant 0 : index
    %c0_0 = arith.constant 0 : index
    %0 = vector.load %arg2[%c0, %c0_0] : memref<32x128xbf16, #tpu.memory_space<vmem>>, vector<32x128xbf16>
    %1 = arith.extf %0 : vector<32x128xbf16> to vector<32x128xf32>
    %c0_1 = arith.constant 0 : index
    %c0_2 = arith.constant 0 : index
    %2 = vector.load %arg3[%c0_1, %c0_2] : memref<1x128xf32, #tpu.memory_space<vmem>>, vector<1x128xf32>
    %3 = vector.broadcast %2 : vector<1x128xf32> to vector<32x128xf32>
    %4 = arith.subf %1, %3 : vector<32x128xf32>
    %c0_3 = arith.constant 0 : index
    %c0_4 = arith.constant 0 : index
    %5 = vector.load %arg4[%c0_3, %c0_4] : memref<1x128xf32, #tpu.memory_space<vmem>>, vector<1x128xf32>
    %6 = vector.broadcast %5 : vector<1x128xf32> to vector<32x128xf32>
    %7 = arith.mulf %4, %6 : vector<32x128xf32>
    %cst = arith.constant 0.000000e+00 : f32
    %8 = vector.broadcast %cst : f32 to vector<32x128xf32>
    %9 = arith.maximumf %7, %8 : vector<32x128xf32>
    %10 = arith.truncf %9 : vector<32x128xf32> to vector<32x128xbf16>
    %c0_5 = arith.constant 0 : index
    %c0_6 = arith.constant 0 : index
    %11 = vector.load %arg5[%c0_5, %c0_6] : memref<32x128xbf16, #tpu.memory_space<vmem>>, vector<32x128xbf16>
    tpu.vector_store %arg5[%c0_5, %c0_6], %10 {strides = array<i32>} : memref<32x128xbf16, #tpu.memory_space<vmem>>, vector<32x128xbf16>,
    return
  }
  func.func @transform_0(%arg0: i32, %arg1: i32) -> (i32, i32) {
    %c0_i32 = arith.constant 0 : i32
    return %arg0, %arg1 : i32, i32
  }
  func.func @transform_1(%arg0: i32, %arg1: i32) -> (i32, i32) {
    %c0_i32 = arith.constant 0 : i32
    %c0_i32_0 = arith.constant 0 : i32
    return %c0_i32, %arg1 : i32, i32
  }
  func.func @transform_2(%arg0: i32, %arg1: i32) -> (i32, i32) {
    %c0_i32 = arith.constant 0 : i32
    %c0_i32_0 = arith.constant 0 : i32
    return %c0_i32, %arg1 : i32, i32
  }
  func.func @transform_3(%arg0: i32, %arg1: i32) -> (i32, i32) {
    %c0_i32 = arith.constant 0 : i32
    return %arg0, %arg1 : i32, i32
  }
}

module attributes {stable_mosaic.version = 11 : i64} {
  func.func @_mm_bias_stats_kernel(%arg0: i32, %arg1: i32, %arg2: i32, %arg3: memref<32x512xbf16, #tpu.memory_space<vmem>>, %arg4: memref<512x128xbf16, #tpu.memory_space<vmem>>, %arg5: memref<1x128xf32, #tpu.memory_space<vmem>>, %arg6: memref<32x128xbf16, #tpu.memory_space<vmem>>, %arg7: memref<1x2x128xf32, #tpu.memory_space<vmem>>, %arg8: memref<32x128xf32, #tpu.memory_space<vmem>>) attributes {dimension_semantics = [#tpu.dimension_semantics<parallel>, #tpu.dimension_semantics<parallel>, #tpu.dimension_semantics<arbitrary>], iteration_bounds = array<i64: 1, 1, 2>, scalar_prefetch = 0 : i64, scratch_operands = 1 : i64, tpu.core_type = #tpu.core_type<tc>, window_params = [{transform_indices = @transform_0, window_bounds = array<i64: 32, 512>}, {transform_indices = @transform_1, window_bounds = array<i64: 512, 128>}, {transform_indices = @transform_2, window_bounds = array<i64: 1, 128>}, {transform_indices = @transform_3, window_bounds = array<i64: 32, 128>}, {transform_indices = @transform_4, window_bounds = array<i64: 1, 2, 128>}]} {
    %c0_i32 = arith.constant 0 : i32
    %0 = arith.cmpi eq, %arg2, %c0_i32 : i32
    %1 = arith.extui %0 : i1 to i32
    %c0_i32_0 = arith.constant 0 : i32
    %2 = arith.cmpi ne, %1, %c0_i32_0 : i32
    scf.if %2 {
      %c0_9 = arith.constant 0 : index
      %c0_10 = arith.constant 0 : index
      %12 = vector.load %arg5[%c0_9, %c0_10] : memref<1x128xf32, #tpu.memory_space<vmem>>, vector<1x128xf32>
      %13 = vector.shape_cast %12 : vector<1x128xf32> to vector<1x128xf32>
      %14 = vector.broadcast %13 : vector<1x128xf32> to vector<32x128xf32>
      %c0_11 = arith.constant 0 : index
      %c0_12 = arith.constant 0 : index
      %15 = vector.load %arg8[%c0_11, %c0_12] : memref<32x128xf32, #tpu.memory_space<vmem>>, vector<32x128xf32>
      tpu.vector_store %arg8[%c0_11, %c0_12], %14 {strides = array<i32>} : memref<32x128xf32, #tpu.memory_space<vmem>>, vector<32x128xf32>,
    } else {
    }
    %c0 = arith.constant 0 : index
    %c0_1 = arith.constant 0 : index
    %3 = vector.load %arg8[%c0, %c0_1] : memref<32x128xf32, #tpu.memory_space<vmem>>, vector<32x128xf32>
    %c0_2 = arith.constant 0 : index
    %c0_3 = arith.constant 0 : index
    %4 = vector.load %arg3[%c0_2, %c0_3] : memref<32x512xbf16, #tpu.memory_space<vmem>>, vector<32x512xbf16>
    %c0_4 = arith.constant 0 : index
    %c0_5 = arith.constant 0 : index
    %5 = vector.load %arg4[%c0_4, %c0_5] : memref<512x128xbf16, #tpu.memory_space<vmem>>, vector<512x128xbf16>
    %cst = arith.constant dense<0.000000e+00> : vector<32x128xf32>
    %6 = tpu.matmul %4, %5, %cst {dimension_numbers = #tpu.dot_dimension_numbers<[1], [0], [0], [1], [0, 0, 1, 1], [], []>} : vector<32x512xbf16>, vector<512x128xbf16>, vector<32x128xf32> -> vector<32x128xf32>
    %7 = arith.addf %3, %6 : vector<32x128xf32>
    %c0_6 = arith.constant 0 : index
    %c0_7 = arith.constant 0 : index
    %8 = vector.load %arg8[%c0_6, %c0_7] : memref<32x128xf32, #tpu.memory_space<vmem>>, vector<32x128xf32>
    tpu.vector_store %arg8[%c0_6, %c0_7], %7 {strides = array<i32>} : memref<32x128xf32, #tpu.memory_space<vmem>>, vector<32x128xf32>,
    %c1_i32 = arith.constant 1 : i32
    %9 = arith.cmpi eq, %arg2, %c1_i32 : i32
    %10 = arith.extui %9 : i1 to i32
    %c0_i32_8 = arith.constant 0 : i32
    %11 = arith.cmpi ne, %10, %c0_i32_8 : i32
    scf.if %11 {
      %c0_9 = arith.constant 0 : index
      %c0_10 = arith.constant 0 : index
      %12 = vector.load %arg8[%c0_9, %c0_10] : memref<32x128xf32, #tpu.memory_space<vmem>>, vector<32x128xf32>
      %13 = arith.truncf %12 : vector<32x128xf32> to vector<32x128xbf16>
      %c0_11 = arith.constant 0 : index
      %c0_12 = arith.constant 0 : index
      %14 = vector.load %arg6[%c0_11, %c0_12] : memref<32x128xbf16, #tpu.memory_space<vmem>>, vector<32x128xbf16>
      tpu.vector_store %arg6[%c0_11, %c0_12], %13 {strides = array<i32>} : memref<32x128xbf16, #tpu.memory_space<vmem>>, vector<32x128xbf16>,
      %cst_13 = arith.constant dense<0.000000e+00> : vector<128xf32>
      %15 = vector.multi_reduction <add>, %12, %cst_13 [0] : vector<32x128xf32> to vector<128xf32>
      %16 = vector.shape_cast %15 : vector<128xf32> to vector<1x128xf32>
      %17 = arith.mulf %12, %12 : vector<32x128xf32>
      %cst_14 = arith.constant dense<0.000000e+00> : vector<128xf32>
      %18 = vector.multi_reduction <add>, %17, %cst_14 [0] : vector<32x128xf32> to vector<128xf32>
      %19 = vector.shape_cast %18 : vector<128xf32> to vector<1x128xf32>
      %20 = tpu.concatenate %16, %19 in 0 : vector<1x128xf32>, vector<1x128xf32> -> vector<2x128xf32>
      %21 = vector.shape_cast %20 : vector<2x128xf32> to vector<1x2x128xf32>
      %c0_15 = arith.constant 0 : index
      %c0_16 = arith.constant 0 : index
      %c0_17 = arith.constant 0 : index
      %22 = vector.load %arg7[%c0_15, %c0_16, %c0_17] : memref<1x2x128xf32, #tpu.memory_space<vmem>>, vector<1x2x128xf32>
      tpu.vector_store %arg7[%c0_15, %c0_16, %c0_17], %21 {strides = array<i32>} : memref<1x2x128xf32, #tpu.memory_space<vmem>>, vector<1x2x128xf32>,
    } else {
    }
    return
  }
  func.func @transform_0(%arg0: i32, %arg1: i32, %arg2: i32) -> (i32, i32) {
    %c0_i32 = arith.constant 0 : i32
    return %arg0, %arg2 : i32, i32
  }
  func.func @transform_1(%arg0: i32, %arg1: i32, %arg2: i32) -> (i32, i32) {
    %c0_i32 = arith.constant 0 : i32
    return %arg2, %arg1 : i32, i32
  }
  func.func @transform_2(%arg0: i32, %arg1: i32, %arg2: i32) -> (i32, i32) {
    %c0_i32 = arith.constant 0 : i32
    %c0_i32_0 = arith.constant 0 : i32
    return %c0_i32, %arg1 : i32, i32
  }
  func.func @transform_3(%arg0: i32, %arg1: i32, %arg2: i32) -> (i32, i32) {
    %c0_i32 = arith.constant 0 : i32
    return %arg0, %arg1 : i32, i32
  }
  func.func @transform_4(%arg0: i32, %arg1: i32, %arg2: i32) -> (i32, i32, i32) {
    %c0_i32 = arith.constant 0 : i32
    %c0_i32_0 = arith.constant 0 : i32
    return %arg0, %c0_i32, %arg1 : i32, i32, i32
  }
}

module attributes {stable_mosaic.version = 11 : i64} {
  func.func @_mm_bias_bn_relu_kernel(%arg0: i32, %arg1: i32, %arg2: memref<2x1024xbf16, #tpu.memory_space<vmem>>, %arg3: memref<1024x512xbf16, #tpu.memory_space<vmem>>, %arg4: memref<1x512xf32, #tpu.memory_space<vmem>>, %arg5: memref<2x512xbf16, #tpu.memory_space<vmem>>, %arg6: memref<2x512xf32, #tpu.memory_space<vmem>>) attributes {dimension_semantics = [#tpu.dimension_semantics<parallel>, #tpu.dimension_semantics<arbitrary>], iteration_bounds = array<i64: 2, 2>, scalar_prefetch = 0 : i64, scratch_operands = 1 : i64, tpu.core_type = #tpu.core_type<tc>, window_params = [{transform_indices = @transform_0, window_bounds = array<i64: 2, 1024>}, {transform_indices = @transform_1, window_bounds = array<i64: 1024, 512>}, {transform_indices = @transform_2, window_bounds = array<i64: 1, 512>}, {transform_indices = @transform_3, window_bounds = array<i64: 2, 512>}]} {
    %c0_i32 = arith.constant 0 : i32
    %0 = arith.cmpi eq, %arg1, %c0_i32 : i32
    %1 = arith.extui %0 : i1 to i32
    %c0_i32_0 = arith.constant 0 : i32
    %2 = arith.cmpi ne, %1, %c0_i32_0 : i32
    scf.if %2 {
      %c0_9 = arith.constant 0 : index
      %c0_10 = arith.constant 0 : index
      %12 = vector.load %arg4[%c0_9, %c0_10] : memref<1x512xf32, #tpu.memory_space<vmem>>, vector<1x512xf32>
      %13 = vector.shape_cast %12 : vector<1x512xf32> to vector<1x512xf32>
      %14 = vector.broadcast %13 : vector<1x512xf32> to vector<2x512xf32>
      %c0_11 = arith.constant 0 : index
      %c0_12 = arith.constant 0 : index
      %15 = vector.load %arg6[%c0_11, %c0_12] : memref<2x512xf32, #tpu.memory_space<vmem>>, vector<2x512xf32>
      tpu.vector_store %arg6[%c0_11, %c0_12], %14 {strides = array<i32>} : memref<2x512xf32, #tpu.memory_space<vmem>>, vector<2x512xf32>,
    } else {
    }
    %c0 = arith.constant 0 : index
    %c0_1 = arith.constant 0 : index
    %3 = vector.load %arg6[%c0, %c0_1] : memref<2x512xf32, #tpu.memory_space<vmem>>, vector<2x512xf32>
    %c0_2 = arith.constant 0 : index
    %c0_3 = arith.constant 0 : index
    %4 = vector.load %arg2[%c0_2, %c0_3] : memref<2x1024xbf16, #tpu.memory_space<vmem>>, vector<2x1024xbf16>
    %c0_4 = arith.constant 0 : index
    %c0_5 = arith.constant 0 : index
    %5 = vector.load %arg3[%c0_4, %c0_5] : memref<1024x512xbf16, #tpu.memory_space<vmem>>, vector<1024x512xbf16>
    %cst = arith.constant dense<0.000000e+00> : vector<2x512xf32>
    %6 = tpu.matmul %4, %5, %cst {dimension_numbers = #tpu.dot_dimension_numbers<[1], [0], [0], [1], [0, 0, 1, 1], [], []>} : vector<2x1024xbf16>, vector<1024x512xbf16>, vector<2x512xf32> -> vector<2x512xf32>
    %7 = arith.addf %3, %6 : vector<2x512xf32>
    %c0_6 = arith.constant 0 : index
    %c0_7 = arith.constant 0 : index
    %8 = vector.load %arg6[%c0_6, %c0_7] : memref<2x512xf32, #tpu.memory_space<vmem>>, vector<2x512xf32>
    tpu.vector_store %arg6[%c0_6, %c0_7], %7 {strides = array<i32>} : memref<2x512xf32, #tpu.memory_space<vmem>>, vector<2x512xf32>,
    %c1_i32 = arith.constant 1 : i32
    %9 = arith.cmpi eq, %arg1, %c1_i32 : i32
    %10 = arith.extui %9 : i1 to i32
    %c0_i32_8 = arith.constant 0 : i32
    %11 = arith.cmpi ne, %10, %c0_i32_8 : i32
    scf.if %11 {
      %c0_9 = arith.constant 0 : index
      %c0_10 = arith.constant 0 : index
      %12 = vector.load %arg6[%c0_9, %c0_10] : memref<2x512xf32, #tpu.memory_space<vmem>>, vector<2x512xf32>
      %cst_11 = arith.constant dense<0.000000e+00> : vector<512xf32>
      %13 = vector.multi_reduction <add>, %12, %cst_11 [0] : vector<2x512xf32> to vector<512xf32>
      %14 = vector.shape_cast %13 : vector<512xf32> to vector<1x512xf32>
      %cst_12 = arith.constant 2.000000e+00 : f32
      %15 = vector.broadcast %cst_12 : f32 to vector<1x512xf32>
      %16 = arith.divf %14, %15 : vector<1x512xf32>
      %17 = vector.broadcast %16 : vector<1x512xf32> to vector<2x512xf32>
      %18 = arith.subf %12, %17 : vector<2x512xf32>
      %19 = arith.mulf %18, %18 : vector<2x512xf32>
      %cst_13 = arith.constant dense<0.000000e+00> : vector<512xf32>
      %20 = vector.multi_reduction <add>, %19, %cst_13 [0] : vector<2x512xf32> to vector<512xf32>
      %21 = vector.shape_cast %20 : vector<512xf32> to vector<1x512xf32>
      %cst_14 = arith.constant 2.000000e+00 : f32
      %22 = vector.broadcast %cst_14 : f32 to vector<1x512xf32>
      %23 = arith.divf %21, %22 : vector<1x512xf32>
      %24 = vector.broadcast %16 : vector<1x512xf32> to vector<2x512xf32>
      %25 = arith.subf %12, %24 : vector<2x512xf32>
      %cst_15 = arith.constant 9.99999974E-6 : f32
      %26 = vector.broadcast %cst_15 : f32 to vector<1x512xf32>
      %27 = arith.addf %23, %26 : vector<1x512xf32>
      %28 = math.rsqrt %27 : vector<1x512xf32>
      %29 = vector.broadcast %28 : vector<1x512xf32> to vector<2x512xf32>
      %30 = arith.mulf %25, %29 : vector<2x512xf32>
      %cst_16 = arith.constant 0.000000e+00 : f32
      %31 = vector.broadcast %cst_16 : f32 to vector<2x512xf32>
      %32 = arith.maximumf %30, %31 : vector<2x512xf32>
      %33 = arith.truncf %32 : vector<2x512xf32> to vector<2x512xbf16>
      %c0_17 = arith.constant 0 : index
      %c0_18 = arith.constant 0 : index
      %34 = vector.load %arg5[%c0_17, %c0_18] : memref<2x512xbf16, #tpu.memory_space<vmem>>, vector<2x512xbf16>
      tpu.vector_store %arg5[%c0_17, %c0_18], %33 {strides = array<i32>} : memref<2x512xbf16, #tpu.memory_space<vmem>>, vector<2x512xbf16>,
    } else {
    }
    return
  }
  func.func @transform_0(%arg0: i32, %arg1: i32) -> (i32, i32) {
    %c0_i32 = arith.constant 0 : i32
    %c0_i32_0 = arith.constant 0 : i32
    return %c0_i32, %arg1 : i32, i32
  }
  func.func @transform_1(%arg0: i32, %arg1: i32) -> (i32, i32) {
    %c0_i32 = arith.constant 0 : i32
    return %arg1, %arg0 : i32, i32
  }
  func.func @transform_2(%arg0: i32, %arg1: i32) -> (i32, i32) {
    %c0_i32 = arith.constant 0 : i32
    %c0_i32_0 = arith.constant 0 : i32
    return %c0_i32, %arg0 : i32, i32
  }
  func.func @transform_3(%arg0: i32, %arg1: i32) -> (i32, i32) {
    %c0_i32 = arith.constant 0 : i32
    %c0_i32_0 = arith.constant 0 : i32
    return %c0_i32, %arg0 : i32, i32
  }
}

module attributes {stable_mosaic.version = 11 : i64} {
  func.func @_mm_bias_act_kernel(%arg0: i32, %arg1: i32, %arg2: i32, %arg3: memref<2x1024xbf16, #tpu.memory_space<vmem>>, %arg4: memref<1024x32xbf16, #tpu.memory_space<vmem>>, %arg5: memref<1x32xf32, #tpu.memory_space<vmem>>, %arg6: memref<2x32xf32, #tpu.memory_space<vmem>>, %arg7: memref<2x32xf32, #tpu.memory_space<vmem>>) attributes {dimension_semantics = [#tpu.dimension_semantics<parallel>, #tpu.dimension_semantics<parallel>, #tpu.dimension_semantics<arbitrary>], iteration_bounds = array<i64: 1, 1, 1>, scalar_prefetch = 0 : i64, scratch_operands = 1 : i64, tpu.core_type = #tpu.core_type<tc>, window_params = [{transform_indices = @transform_0, window_bounds = array<i64: 2, 1024>}, {transform_indices = @transform_1, window_bounds = array<i64: 1024, 32>}, {transform_indices = @transform_2, window_bounds = array<i64: 1, 32>}, {transform_indices = @transform_3, window_bounds = array<i64: 2, 32>}]} {
    %c0_i32 = arith.constant 0 : i32
    %0 = arith.cmpi eq, %arg2, %c0_i32 : i32
    %1 = arith.extui %0 : i1 to i32
    %c0_i32_0 = arith.constant 0 : i32
    %2 = arith.cmpi ne, %1, %c0_i32_0 : i32
    scf.if %2 {
      %c0_10 = arith.constant 0 : index
      %c0_11 = arith.constant 0 : index
      %12 = vector.load %arg5[%c0_10, %c0_11] : memref<1x32xf32, #tpu.memory_space<vmem>>, vector<1x32xf32>
      %13 = vector.shape_cast %12 : vector<1x32xf32> to vector<1x32xf32>
      %14 = vector.broadcast %13 : vector<1x32xf32> to vector<2x32xf32>
      %c0_12 = arith.constant 0 : index
      %c0_13 = arith.constant 0 : index
      %15 = vector.load %arg7[%c0_12, %c0_13] : memref<2x32xf32, #tpu.memory_space<vmem>>, vector<2x32xf32>
      tpu.vector_store %arg7[%c0_12, %c0_13], %14 {strides = array<i32>} : memref<2x32xf32, #tpu.memory_space<vmem>>, vector<2x32xf32>,
    } else {
    }
    %c0 = arith.constant 0 : index
    %c0_1 = arith.constant 0 : index
    %3 = vector.load %arg7[%c0, %c0_1] : memref<2x32xf32, #tpu.memory_space<vmem>>, vector<2x32xf32>
    %c0_2 = arith.constant 0 : index
    %c0_3 = arith.constant 0 : index
    %4 = vector.load %arg3[%c0_2, %c0_3] : memref<2x1024xbf16, #tpu.memory_space<vmem>>, vector<2x1024xbf16>
    %c0_4 = arith.constant 0 : index
    %c0_5 = arith.constant 0 : index
    %5 = vector.load %arg4[%c0_4, %c0_5] : memref<1024x32xbf16, #tpu.memory_space<vmem>>, vector<1024x32xbf16>
    %cst = arith.constant dense<0.000000e+00> : vector<2x32xf32>
    %6 = tpu.matmul %4, %5, %cst {dimension_numbers = #tpu.dot_dimension_numbers<[1], [0], [0], [1], [0, 0, 1, 1], [], []>} : vector<2x1024xbf16>, vector<1024x32xbf16>, vector<2x32xf32> -> vector<2x32xf32>
    %7 = arith.addf %3, %6 : vector<2x32xf32>
    %c0_6 = arith.constant 0 : index
    %c0_7 = arith.constant 0 : index
    %8 = vector.load %arg7[%c0_6, %c0_7] : memref<2x32xf32, #tpu.memory_space<vmem>>, vector<2x32xf32>
    tpu.vector_store %arg7[%c0_6, %c0_7], %7 {strides = array<i32>} : memref<2x32xf32, #tpu.memory_space<vmem>>, vector<2x32xf32>,
    %c0_i32_8 = arith.constant 0 : i32
    %9 = arith.cmpi eq, %arg2, %c0_i32_8 : i32
    %10 = arith.extui %9 : i1 to i32
    %c0_i32_9 = arith.constant 0 : i32
    %11 = arith.cmpi ne, %10, %c0_i32_9 : i32
    scf.if %11 {
      %c0_10 = arith.constant 0 : index
      %c0_11 = arith.constant 0 : index
      %12 = vector.load %arg7[%c0_10, %c0_11] : memref<2x32xf32, #tpu.memory_space<vmem>>, vector<2x32xf32>
      %c0_12 = arith.constant 0 : index
      %c0_13 = arith.constant 0 : index
      %13 = vector.load %arg6[%c0_12, %c0_13] : memref<2x32xf32, #tpu.memory_space<vmem>>, vector<2x32xf32>
      tpu.vector_store %arg6[%c0_12, %c0_13], %12 {strides = array<i32>} : memref<2x32xf32, #tpu.memory_space<vmem>>, vector<2x32xf32>,
    } else {
    }
    return
  }
  func.func @transform_0(%arg0: i32, %arg1: i32, %arg2: i32) -> (i32, i32) {
    %c0_i32 = arith.constant 0 : i32
    return %arg0, %arg2 : i32, i32
  }
  func.func @transform_1(%arg0: i32, %arg1: i32, %arg2: i32) -> (i32, i32) {
    %c0_i32 = arith.constant 0 : i32
    return %arg2, %arg1 : i32, i32
  }
  func.func @transform_2(%arg0: i32, %arg1: i32, %arg2: i32) -> (i32, i32) {
    %c0_i32 = arith.constant 0 : i32
    %c0_i32_0 = arith.constant 0 : i32
    return %c0_i32, %arg1 : i32, i32
  }
  func.func @transform_3(%arg0: i32, %arg1: i32, %arg2: i32) -> (i32, i32) {
    %c0_i32 = arith.constant 0 : i32
    return %arg0, %arg1 : i32, i32
  }
}

module attributes {stable_mosaic.version = 11 : i64} {
  func.func @_mm_bias_bn_relu_kernel(%arg0: i32, %arg1: i32, %arg2: memref<2x32xbf16, #tpu.memory_space<vmem>>, %arg3: memref<32x512xbf16, #tpu.memory_space<vmem>>, %arg4: memref<1x512xf32, #tpu.memory_space<vmem>>, %arg5: memref<2x512xbf16, #tpu.memory_space<vmem>>, %arg6: memref<2x512xf32, #tpu.memory_space<vmem>>) attributes {dimension_semantics = [#tpu.dimension_semantics<parallel>, #tpu.dimension_semantics<arbitrary>], iteration_bounds = array<i64: 2, 1>, scalar_prefetch = 0 : i64, scratch_operands = 1 : i64, tpu.core_type = #tpu.core_type<tc>, window_params = [{transform_indices = @transform_0, window_bounds = array<i64: 2, 32>}, {transform_indices = @transform_1, window_bounds = array<i64: 32, 512>}, {transform_indices = @transform_2, window_bounds = array<i64: 1, 512>}, {transform_indices = @transform_3, window_bounds = array<i64: 2, 512>}]} {
    %c0_i32 = arith.constant 0 : i32
    %0 = arith.cmpi eq, %arg1, %c0_i32 : i32
    %1 = arith.extui %0 : i1 to i32
    %c0_i32_0 = arith.constant 0 : i32
    %2 = arith.cmpi ne, %1, %c0_i32_0 : i32
    scf.if %2 {
      %c0_10 = arith.constant 0 : index
      %c0_11 = arith.constant 0 : index
      %12 = vector.load %arg4[%c0_10, %c0_11] : memref<1x512xf32, #tpu.memory_space<vmem>>, vector<1x512xf32>
      %13 = vector.shape_cast %12 : vector<1x512xf32> to vector<1x512xf32>
      %14 = vector.broadcast %13 : vector<1x512xf32> to vector<2x512xf32>
      %c0_12 = arith.constant 0 : index
      %c0_13 = arith.constant 0 : index
      %15 = vector.load %arg6[%c0_12, %c0_13] : memref<2x512xf32, #tpu.memory_space<vmem>>, vector<2x512xf32>
      tpu.vector_store %arg6[%c0_12, %c0_13], %14 {strides = array<i32>} : memref<2x512xf32, #tpu.memory_space<vmem>>, vector<2x512xf32>,
    } else {
    }
    %c0 = arith.constant 0 : index
    %c0_1 = arith.constant 0 : index
    %3 = vector.load %arg6[%c0, %c0_1] : memref<2x512xf32, #tpu.memory_space<vmem>>, vector<2x512xf32>
    %c0_2 = arith.constant 0 : index
    %c0_3 = arith.constant 0 : index
    %4 = vector.load %arg2[%c0_2, %c0_3] : memref<2x32xbf16, #tpu.memory_space<vmem>>, vector<2x32xbf16>
    %c0_4 = arith.constant 0 : index
    %c0_5 = arith.constant 0 : index
    %5 = vector.load %arg3[%c0_4, %c0_5] : memref<32x512xbf16, #tpu.memory_space<vmem>>, vector<32x512xbf16>
    %cst = arith.constant dense<0.000000e+00> : vector<2x512xf32>
    %6 = tpu.matmul %4, %5, %cst {dimension_numbers = #tpu.dot_dimension_numbers<[1], [0], [0], [1], [0, 0, 1, 1], [], []>} : vector<2x32xbf16>, vector<32x512xbf16>, vector<2x512xf32> -> vector<2x512xf32>
    %7 = arith.addf %3, %6 : vector<2x512xf32>
    %c0_6 = arith.constant 0 : index
    %c0_7 = arith.constant 0 : index
    %8 = vector.load %arg6[%c0_6, %c0_7] : memref<2x512xf32, #tpu.memory_space<vmem>>, vector<2x512xf32>
    tpu.vector_store %arg6[%c0_6, %c0_7], %7 {strides = array<i32>} : memref<2x512xf32, #tpu.memory_space<vmem>>, vector<2x512xf32>,
    %c0_i32_8 = arith.constant 0 : i32
    %9 = arith.cmpi eq, %arg1, %c0_i32_8 : i32
    %10 = arith.extui %9 : i1 to i32
    %c0_i32_9 = arith.constant 0 : i32
    %11 = arith.cmpi ne, %10, %c0_i32_9 : i32
    scf.if %11 {
      %c0_10 = arith.constant 0 : index
      %c0_11 = arith.constant 0 : index
      %12 = vector.load %arg6[%c0_10, %c0_11] : memref<2x512xf32, #tpu.memory_space<vmem>>, vector<2x512xf32>
      %cst_12 = arith.constant dense<0.000000e+00> : vector<512xf32>
      %13 = vector.multi_reduction <add>, %12, %cst_12 [0] : vector<2x512xf32> to vector<512xf32>
      %14 = vector.shape_cast %13 : vector<512xf32> to vector<1x512xf32>
      %cst_13 = arith.constant 2.000000e+00 : f32
      %15 = vector.broadcast %cst_13 : f32 to vector<1x512xf32>
      %16 = arith.divf %14, %15 : vector<1x512xf32>
      %17 = vector.broadcast %16 : vector<1x512xf32> to vector<2x512xf32>
      %18 = arith.subf %12, %17 : vector<2x512xf32>
      %19 = arith.mulf %18, %18 : vector<2x512xf32>
      %cst_14 = arith.constant dense<0.000000e+00> : vector<512xf32>
      %20 = vector.multi_reduction <add>, %19, %cst_14 [0] : vector<2x512xf32> to vector<512xf32>
      %21 = vector.shape_cast %20 : vector<512xf32> to vector<1x512xf32>
      %cst_15 = arith.constant 2.000000e+00 : f32
      %22 = vector.broadcast %cst_15 : f32 to vector<1x512xf32>
      %23 = arith.divf %21, %22 : vector<1x512xf32>
      %24 = vector.broadcast %16 : vector<1x512xf32> to vector<2x512xf32>
      %25 = arith.subf %12, %24 : vector<2x512xf32>
      %cst_16 = arith.constant 9.99999974E-6 : f32
      %26 = vector.broadcast %cst_16 : f32 to vector<1x512xf32>
      %27 = arith.addf %23, %26 : vector<1x512xf32>
      %28 = math.rsqrt %27 : vector<1x512xf32>
      %29 = vector.broadcast %28 : vector<1x512xf32> to vector<2x512xf32>
      %30 = arith.mulf %25, %29 : vector<2x512xf32>
      %cst_17 = arith.constant 0.000000e+00 : f32
      %31 = vector.broadcast %cst_17 : f32 to vector<2x512xf32>
      %32 = arith.maximumf %30, %31 : vector<2x512xf32>
      %33 = arith.truncf %32 : vector<2x512xf32> to vector<2x512xbf16>
      %c0_18 = arith.constant 0 : index
      %c0_19 = arith.constant 0 : index
      %34 = vector.load %arg5[%c0_18, %c0_19] : memref<2x512xbf16, #tpu.memory_space<vmem>>, vector<2x512xbf16>
      tpu.vector_store %arg5[%c0_18, %c0_19], %33 {strides = array<i32>} : memref<2x512xbf16, #tpu.memory_space<vmem>>, vector<2x512xbf16>,
    } else {
    }
    return
  }
  func.func @transform_0(%arg0: i32, %arg1: i32) -> (i32, i32) {
    %c0_i32 = arith.constant 0 : i32
    %c0_i32_0 = arith.constant 0 : i32
    return %c0_i32, %arg1 : i32, i32
  }
  func.func @transform_1(%arg0: i32, %arg1: i32) -> (i32, i32) {
    %c0_i32 = arith.constant 0 : i32
    return %arg1, %arg0 : i32, i32
  }
  func.func @transform_2(%arg0: i32, %arg1: i32) -> (i32, i32) {
    %c0_i32 = arith.constant 0 : i32
    %c0_i32_0 = arith.constant 0 : i32
    return %c0_i32, %arg0 : i32, i32
  }
  func.func @transform_3(%arg0: i32, %arg1: i32) -> (i32, i32) {
    %c0_i32 = arith.constant 0 : i32
    %c0_i32_0 = arith.constant 0 : i32
    return %c0_i32, %arg0 : i32, i32
  }
}

module attributes {stable_mosaic.version = 11 : i64} {
  func.func @_mm_bias_bn_relu_kernel(%arg0: i32, %arg1: i32, %arg2: memref<2x1024xbf16, #tpu.memory_space<vmem>>, %arg3: memref<1024x512xbf16, #tpu.memory_space<vmem>>, %arg4: memref<1x512xf32, #tpu.memory_space<vmem>>, %arg5: memref<2x512xbf16, #tpu.memory_space<vmem>>, %arg6: memref<2x512xf32, #tpu.memory_space<vmem>>) attributes {dimension_semantics = [#tpu.dimension_semantics<parallel>, #tpu.dimension_semantics<arbitrary>], iteration_bounds = array<i64: 4, 1>, scalar_prefetch = 0 : i64, scratch_operands = 1 : i64, tpu.core_type = #tpu.core_type<tc>, window_params = [{transform_indices = @transform_0, window_bounds = array<i64: 2, 1024>}, {transform_indices = @transform_1, window_bounds = array<i64: 1024, 512>}, {transform_indices = @transform_2, window_bounds = array<i64: 1, 512>}, {transform_indices = @transform_3, window_bounds = array<i64: 2, 512>}]} {
    %c0_i32 = arith.constant 0 : i32
    %0 = arith.cmpi eq, %arg1, %c0_i32 : i32
    %1 = arith.extui %0 : i1 to i32
    %c0_i32_0 = arith.constant 0 : i32
    %2 = arith.cmpi ne, %1, %c0_i32_0 : i32
    scf.if %2 {
      %c0_10 = arith.constant 0 : index
      %c0_11 = arith.constant 0 : index
      %12 = vector.load %arg4[%c0_10, %c0_11] : memref<1x512xf32, #tpu.memory_space<vmem>>, vector<1x512xf32>
      %13 = vector.shape_cast %12 : vector<1x512xf32> to vector<1x512xf32>
      %14 = vector.broadcast %13 : vector<1x512xf32> to vector<2x512xf32>
      %c0_12 = arith.constant 0 : index
      %c0_13 = arith.constant 0 : index
      %15 = vector.load %arg6[%c0_12, %c0_13] : memref<2x512xf32, #tpu.memory_space<vmem>>, vector<2x512xf32>
      tpu.vector_store %arg6[%c0_12, %c0_13], %14 {strides = array<i32>} : memref<2x512xf32, #tpu.memory_space<vmem>>, vector<2x512xf32>,
    } else {
    }
    %c0 = arith.constant 0 : index
    %c0_1 = arith.constant 0 : index
    %3 = vector.load %arg6[%c0, %c0_1] : memref<2x512xf32, #tpu.memory_space<vmem>>, vector<2x512xf32>
    %c0_2 = arith.constant 0 : index
    %c0_3 = arith.constant 0 : index
    %4 = vector.load %arg2[%c0_2, %c0_3] : memref<2x1024xbf16, #tpu.memory_space<vmem>>, vector<2x1024xbf16>
    %c0_4 = arith.constant 0 : index
    %c0_5 = arith.constant 0 : index
    %5 = vector.load %arg3[%c0_4, %c0_5] : memref<1024x512xbf16, #tpu.memory_space<vmem>>, vector<1024x512xbf16>
    %cst = arith.constant dense<0.000000e+00> : vector<2x512xf32>
    %6 = tpu.matmul %4, %5, %cst {dimension_numbers = #tpu.dot_dimension_numbers<[1], [0], [0], [1], [0, 0, 1, 1], [], []>} : vector<2x1024xbf16>, vector<1024x512xbf16>, vector<2x512xf32> -> vector<2x512xf32>
    %7 = arith.addf %3, %6 : vector<2x512xf32>
    %c0_6 = arith.constant 0 : index
    %c0_7 = arith.constant 0 : index
    %8 = vector.load %arg6[%c0_6, %c0_7] : memref<2x512xf32, #tpu.memory_space<vmem>>, vector<2x512xf32>
    tpu.vector_store %arg6[%c0_6, %c0_7], %7 {strides = array<i32>} : memref<2x512xf32, #tpu.memory_space<vmem>>, vector<2x512xf32>,
    %c0_i32_8 = arith.constant 0 : i32
    %9 = arith.cmpi eq, %arg1, %c0_i32_8 : i32
    %10 = arith.extui %9 : i1 to i32
    %c0_i32_9 = arith.constant 0 : i32
    %11 = arith.cmpi ne, %10, %c0_i32_9 : i32
    scf.if %11 {
      %c0_10 = arith.constant 0 : index
      %c0_11 = arith.constant 0 : index
      %12 = vector.load %arg6[%c0_10, %c0_11] : memref<2x512xf32, #tpu.memory_space<vmem>>, vector<2x512xf32>
      %cst_12 = arith.constant dense<0.000000e+00> : vector<512xf32>
      %13 = vector.multi_reduction <add>, %12, %cst_12 [0] : vector<2x512xf32> to vector<512xf32>
      %14 = vector.shape_cast %13 : vector<512xf32> to vector<1x512xf32>
      %cst_13 = arith.constant 2.000000e+00 : f32
      %15 = vector.broadcast %cst_13 : f32 to vector<1x512xf32>
      %16 = arith.divf %14, %15 : vector<1x512xf32>
      %17 = vector.broadcast %16 : vector<1x512xf32> to vector<2x512xf32>
      %18 = arith.subf %12, %17 : vector<2x512xf32>
      %19 = arith.mulf %18, %18 : vector<2x512xf32>
      %cst_14 = arith.constant dense<0.000000e+00> : vector<512xf32>
      %20 = vector.multi_reduction <add>, %19, %cst_14 [0] : vector<2x512xf32> to vector<512xf32>
      %21 = vector.shape_cast %20 : vector<512xf32> to vector<1x512xf32>
      %cst_15 = arith.constant 2.000000e+00 : f32
      %22 = vector.broadcast %cst_15 : f32 to vector<1x512xf32>
      %23 = arith.divf %21, %22 : vector<1x512xf32>
      %24 = vector.broadcast %16 : vector<1x512xf32> to vector<2x512xf32>
      %25 = arith.subf %12, %24 : vector<2x512xf32>
      %cst_16 = arith.constant 9.99999974E-6 : f32
      %26 = vector.broadcast %cst_16 : f32 to vector<1x512xf32>
      %27 = arith.addf %23, %26 : vector<1x512xf32>
      %28 = math.rsqrt %27 : vector<1x512xf32>
      %29 = vector.broadcast %28 : vector<1x512xf32> to vector<2x512xf32>
      %30 = arith.mulf %25, %29 : vector<2x512xf32>
      %cst_17 = arith.constant 0.000000e+00 : f32
      %31 = vector.broadcast %cst_17 : f32 to vector<2x512xf32>
      %32 = arith.maximumf %30, %31 : vector<2x512xf32>
      %33 = arith.truncf %32 : vector<2x512xf32> to vector<2x512xbf16>
      %c0_18 = arith.constant 0 : index
      %c0_19 = arith.constant 0 : index
      %34 = vector.load %arg5[%c0_18, %c0_19] : memref<2x512xbf16, #tpu.memory_space<vmem>>, vector<2x512xbf16>
      tpu.vector_store %arg5[%c0_18, %c0_19], %33 {strides = array<i32>} : memref<2x512xbf16, #tpu.memory_space<vmem>>, vector<2x512xbf16>,
    } else {
    }
    return
  }
  func.func @transform_0(%arg0: i32, %arg1: i32) -> (i32, i32) {
    %c0_i32 = arith.constant 0 : i32
    %c0_i32_0 = arith.constant 0 : i32
    return %c0_i32, %arg1 : i32, i32
  }
  func.func @transform_1(%arg0: i32, %arg1: i32) -> (i32, i32) {
    %c0_i32 = arith.constant 0 : i32
    return %arg1, %arg0 : i32, i32
  }
  func.func @transform_2(%arg0: i32, %arg1: i32) -> (i32, i32) {
    %c0_i32 = arith.constant 0 : i32
    %c0_i32_0 = arith.constant 0 : i32
    return %c0_i32, %arg0 : i32, i32
  }
  func.func @transform_3(%arg0: i32, %arg1: i32) -> (i32, i32) {
    %c0_i32 = arith.constant 0 : i32
    %c0_i32_0 = arith.constant 0 : i32
    return %c0_i32, %arg0 : i32, i32
  }
}

module attributes {stable_mosaic.version = 11 : i64} {
  func.func @_mm_bias_stats_kernel(%arg0: i32, %arg1: i32, %arg2: i32, %arg3: memref<32x384xbf16, #tpu.memory_space<vmem>>, %arg4: memref<384x128xbf16, #tpu.memory_space<vmem>>, %arg5: memref<1x128xf32, #tpu.memory_space<vmem>>, %arg6: memref<32x128xbf16, #tpu.memory_space<vmem>>, %arg7: memref<1x2x128xf32, #tpu.memory_space<vmem>>, %arg8: memref<32x128xf32, #tpu.memory_space<vmem>>) attributes {dimension_semantics = [#tpu.dimension_semantics<parallel>, #tpu.dimension_semantics<parallel>, #tpu.dimension_semantics<arbitrary>], iteration_bounds = array<i64: 1, 2, 3>, scalar_prefetch = 0 : i64, scratch_operands = 1 : i64, tpu.core_type = #tpu.core_type<tc>, window_params = [{transform_indices = @transform_0, window_bounds = array<i64: 32, 384>}, {transform_indices = @transform_1, window_bounds = array<i64: 384, 128>}, {transform_indices = @transform_2, window_bounds = array<i64: 1, 128>}, {transform_indices = @transform_3, window_bounds = array<i64: 32, 128>}, {transform_indices = @transform_4, window_bounds = array<i64: 1, 2, 128>}]} {
    %c0_i32 = arith.constant 0 : i32
    %0 = arith.cmpi eq, %arg2, %c0_i32 : i32
    %1 = arith.extui %0 : i1 to i32
    %c0_i32_0 = arith.constant 0 : i32
    %2 = arith.cmpi ne, %1, %c0_i32_0 : i32
    scf.if %2 {
      %c0_9 = arith.constant 0 : index
      %c0_10 = arith.constant 0 : index
      %12 = vector.load %arg5[%c0_9, %c0_10] : memref<1x128xf32, #tpu.memory_space<vmem>>, vector<1x128xf32>
      %13 = vector.shape_cast %12 : vector<1x128xf32> to vector<1x128xf32>
      %14 = vector.broadcast %13 : vector<1x128xf32> to vector<32x128xf32>
      %c0_11 = arith.constant 0 : index
      %c0_12 = arith.constant 0 : index
      %15 = vector.load %arg8[%c0_11, %c0_12] : memref<32x128xf32, #tpu.memory_space<vmem>>, vector<32x128xf32>
      tpu.vector_store %arg8[%c0_11, %c0_12], %14 {strides = array<i32>} : memref<32x128xf32, #tpu.memory_space<vmem>>, vector<32x128xf32>,
    } else {
    }
    %c0 = arith.constant 0 : index
    %c0_1 = arith.constant 0 : index
    %3 = vector.load %arg8[%c0, %c0_1] : memref<32x128xf32, #tpu.memory_space<vmem>>, vector<32x128xf32>
    %c0_2 = arith.constant 0 : index
    %c0_3 = arith.constant 0 : index
    %4 = vector.load %arg3[%c0_2, %c0_3] : memref<32x384xbf16, #tpu.memory_space<vmem>>, vector<32x384xbf16>
    %c0_4 = arith.constant 0 : index
    %c0_5 = arith.constant 0 : index
    %5 = vector.load %arg4[%c0_4, %c0_5] : memref<384x128xbf16, #tpu.memory_space<vmem>>, vector<384x128xbf16>
    %cst = arith.constant dense<0.000000e+00> : vector<32x128xf32>
    %6 = tpu.matmul %4, %5, %cst {dimension_numbers = #tpu.dot_dimension_numbers<[1], [0], [0], [1], [0, 0, 1, 1], [], []>} : vector<32x384xbf16>, vector<384x128xbf16>, vector<32x128xf32> -> vector<32x128xf32>
    %7 = arith.addf %3, %6 : vector<32x128xf32>
    %c0_6 = arith.constant 0 : index
    %c0_7 = arith.constant 0 : index
    %8 = vector.load %arg8[%c0_6, %c0_7] : memref<32x128xf32, #tpu.memory_space<vmem>>, vector<32x128xf32>
    tpu.vector_store %arg8[%c0_6, %c0_7], %7 {strides = array<i32>} : memref<32x128xf32, #tpu.memory_space<vmem>>, vector<32x128xf32>,
    %c2_i32 = arith.constant 2 : i32
    %9 = arith.cmpi eq, %arg2, %c2_i32 : i32
    %10 = arith.extui %9 : i1 to i32
    %c0_i32_8 = arith.constant 0 : i32
    %11 = arith.cmpi ne, %10, %c0_i32_8 : i32
    scf.if %11 {
      %c0_9 = arith.constant 0 : index
      %c0_10 = arith.constant 0 : index
      %12 = vector.load %arg8[%c0_9, %c0_10] : memref<32x128xf32, #tpu.memory_space<vmem>>, vector<32x128xf32>
      %13 = arith.truncf %12 : vector<32x128xf32> to vector<32x128xbf16>
      %c0_11 = arith.constant 0 : index
      %c0_12 = arith.constant 0 : index
      %14 = vector.load %arg6[%c0_11, %c0_12] : memref<32x128xbf16, #tpu.memory_space<vmem>>, vector<32x128xbf16>
      tpu.vector_store %arg6[%c0_11, %c0_12], %13 {strides = array<i32>} : memref<32x128xbf16, #tpu.memory_space<vmem>>, vector<32x128xbf16>,
      %cst_13 = arith.constant dense<0.000000e+00> : vector<128xf32>
      %15 = vector.multi_reduction <add>, %12, %cst_13 [0] : vector<32x128xf32> to vector<128xf32>
      %16 = vector.shape_cast %15 : vector<128xf32> to vector<1x128xf32>
      %17 = arith.mulf %12, %12 : vector<32x128xf32>
      %cst_14 = arith.constant dense<0.000000e+00> : vector<128xf32>
      %18 = vector.multi_reduction <add>, %17, %cst_14 [0] : vector<32x128xf32> to vector<128xf32>
      %19 = vector.shape_cast %18 : vector<128xf32> to vector<1x128xf32>
      %20 = tpu.concatenate %16, %19 in 0 : vector<1x128xf32>, vector<1x128xf32> -> vector<2x128xf32>
      %21 = vector.shape_cast %20 : vector<2x128xf32> to vector<1x2x128xf32>
      %c0_15 = arith.constant 0 : index
      %c0_16 = arith.constant 0 : index
      %c0_17 = arith.constant 0 : index
      %22 = vector.load %arg7[%c0_15, %c0_16, %c0_17] : memref<1x2x128xf32, #tpu.memory_space<vmem>>, vector<1x2x128xf32>
      tpu.vector_store %arg7[%c0_15, %c0_16, %c0_17], %21 {strides = array<i32>} : memref<1x2x128xf32, #tpu.memory_space<vmem>>, vector<1x2x128xf32>,
    } else {
    }
    return
  }
  func.func @transform_0(%arg0: i32, %arg1: i32, %arg2: i32) -> (i32, i32) {
    %c0_i32 = arith.constant 0 : i32
    return %arg0, %arg2 : i32, i32
  }
  func.func @transform_1(%arg0: i32, %arg1: i32, %arg2: i32) -> (i32, i32) {
    %c0_i32 = arith.constant 0 : i32
    return %arg2, %arg1 : i32, i32
  }
  func.func @transform_2(%arg0: i32, %arg1: i32, %arg2: i32) -> (i32, i32) {
    %c0_i32 = arith.constant 0 : i32
    %c0_i32_0 = arith.constant 0 : i32
    return %c0_i32, %arg1 : i32, i32
  }
  func.func @transform_3(%arg0: i32, %arg1: i32, %arg2: i32) -> (i32, i32) {
    %c0_i32 = arith.constant 0 : i32
    return %arg0, %arg1 : i32, i32
  }
  func.func @transform_4(%arg0: i32, %arg1: i32, %arg2: i32) -> (i32, i32, i32) {
    %c0_i32 = arith.constant 0 : i32
    %c0_i32_0 = arith.constant 0 : i32
    return %arg0, %c0_i32, %arg1 : i32, i32, i32
  }
}

module attributes {stable_mosaic.version = 11 : i64} {
  func.func @_bn_relu_apply_kernel(%arg0: i32, %arg1: i32, %arg2: memref<32x256xbf16, #tpu.memory_space<vmem>>, %arg3: memref<1x256xf32, #tpu.memory_space<vmem>>, %arg4: memref<1x256xf32, #tpu.memory_space<vmem>>, %arg5: memref<32x256xbf16, #tpu.memory_space<vmem>>) attributes {dimension_semantics = [#tpu.dimension_semantics<parallel>, #tpu.dimension_semantics<parallel>], iteration_bounds = array<i64: 1, 1>, scalar_prefetch = 0 : i64, scratch_operands = 0 : i64, tpu.core_type = #tpu.core_type<tc>, window_params = [{transform_indices = @transform_0, window_bounds = array<i64: 32, 256>}, {transform_indices = @transform_1, window_bounds = array<i64: 1, 256>}, {transform_indices = @transform_2, window_bounds = array<i64: 1, 256>}, {transform_indices = @transform_3, window_bounds = array<i64: 32, 256>}]} {
    %c0 = arith.constant 0 : index
    %c0_0 = arith.constant 0 : index
    %0 = vector.load %arg2[%c0, %c0_0] : memref<32x256xbf16, #tpu.memory_space<vmem>>, vector<32x256xbf16>
    %1 = arith.extf %0 : vector<32x256xbf16> to vector<32x256xf32>
    %c0_1 = arith.constant 0 : index
    %c0_2 = arith.constant 0 : index
    %2 = vector.load %arg3[%c0_1, %c0_2] : memref<1x256xf32, #tpu.memory_space<vmem>>, vector<1x256xf32>
    %3 = vector.broadcast %2 : vector<1x256xf32> to vector<32x256xf32>
    %4 = arith.subf %1, %3 : vector<32x256xf32>
    %c0_3 = arith.constant 0 : index
    %c0_4 = arith.constant 0 : index
    %5 = vector.load %arg4[%c0_3, %c0_4] : memref<1x256xf32, #tpu.memory_space<vmem>>, vector<1x256xf32>
    %6 = vector.broadcast %5 : vector<1x256xf32> to vector<32x256xf32>
    %7 = arith.mulf %4, %6 : vector<32x256xf32>
    %cst = arith.constant 0.000000e+00 : f32
    %8 = vector.broadcast %cst : f32 to vector<32x256xf32>
    %9 = arith.maximumf %7, %8 : vector<32x256xf32>
    %10 = arith.truncf %9 : vector<32x256xf32> to vector<32x256xbf16>
    %c0_5 = arith.constant 0 : index
    %c0_6 = arith.constant 0 : index
    %11 = vector.load %arg5[%c0_5, %c0_6] : memref<32x256xbf16, #tpu.memory_space<vmem>>, vector<32x256xbf16>
    tpu.vector_store %arg5[%c0_5, %c0_6], %10 {strides = array<i32>} : memref<32x256xbf16, #tpu.memory_space<vmem>>, vector<32x256xbf16>,
    return
  }
  func.func @transform_0(%arg0: i32, %arg1: i32) -> (i32, i32) {
    %c0_i32 = arith.constant 0 : i32
    return %arg0, %arg1 : i32, i32
  }
  func.func @transform_1(%arg0: i32, %arg1: i32) -> (i32, i32) {
    %c0_i32 = arith.constant 0 : i32
    %c0_i32_0 = arith.constant 0 : i32
    return %c0_i32, %arg1 : i32, i32
  }
  func.func @transform_2(%arg0: i32, %arg1: i32) -> (i32, i32) {
    %c0_i32 = arith.constant 0 : i32
    %c0_i32_0 = arith.constant 0 : i32
    return %c0_i32, %arg1 : i32, i32
  }
  func.func @transform_3(%arg0: i32, %arg1: i32) -> (i32, i32) {
    %c0_i32 = arith.constant 0 : i32
    return %arg0, %arg1 : i32, i32
  }
}

module attributes {stable_mosaic.version = 11 : i64} {
  func.func @_mm_rowbias_act_kernel(%arg0: i32, %arg1: memref<4x576xbf16, #tpu.memory_space<vmem>>, %arg2: memref<576x128xbf16, #tpu.memory_space<vmem>>, %arg3: memref<4x1xf32, #tpu.memory_space<vmem>>, %arg4: memref<4x128xf32, #tpu.memory_space<vmem>>) attributes {dimension_semantics = [#tpu.dimension_semantics<parallel>], iteration_bounds = array<i64: 1>, scalar_prefetch = 0 : i64, scratch_operands = 0 : i64, tpu.core_type = #tpu.core_type<tc>, window_params = [{pipeline_mode = #tpu.pipeline_mode<synchronous>, transform_indices = @transform_0, window_bounds = array<i64: 4, 576>}, {transform_indices = @transform_1, window_bounds = array<i64: 576, 128>}, {pipeline_mode = #tpu.pipeline_mode<synchronous>, transform_indices = @transform_2, window_bounds = array<i64: 4, 1>}, {transform_indices = @transform_3, window_bounds = array<i64: 4, 128>}]} {
    %c0 = arith.constant 0 : index
    %c0_0 = arith.constant 0 : index
    %0 = vector.load %arg1[%c0, %c0_0] : memref<4x576xbf16, #tpu.memory_space<vmem>>, vector<4x576xbf16>
    %c0_1 = arith.constant 0 : index
    %c0_2 = arith.constant 0 : index
    %1 = vector.load %arg2[%c0_1, %c0_2] : memref<576x128xbf16, #tpu.memory_space<vmem>>, vector<576x128xbf16>
    %cst = arith.constant dense<0.000000e+00> : vector<4x128xf32>
    %2 = tpu.matmul %0, %1, %cst {dimension_numbers = #tpu.dot_dimension_numbers<[1], [0], [0], [1], [0, 0, 1, 1], [], []>} : vector<4x576xbf16>, vector<576x128xbf16>, vector<4x128xf32> -> vector<4x128xf32>
    %c0_3 = arith.constant 0 : index
    %c0_4 = arith.constant 0 : index
    %3 = vector.load %arg3[%c0_3, %c0_4] : memref<4x1xf32, #tpu.memory_space<vmem>>, vector<4x1xf32>
    %4 = vector.broadcast %3 : vector<4x1xf32> to vector<4x128xf32>
    %5 = arith.addf %2, %4 : vector<4x128xf32>
    %6 = math.tanh %5 : vector<4x128xf32>
    %cst_5 = arith.constant 5.000000e-01 : f32
    %7 = vector.broadcast %cst_5 : f32 to vector<4x128xf32>
    %8 = arith.mulf %6, %7 : vector<4x128xf32>
    %cst_6 = arith.constant 5.000000e-01 : f32
    %9 = vector.broadcast %cst_6 : f32 to vector<4x128xf32>
    %10 = arith.addf %8, %9 : vector<4x128xf32>
    %c0_7 = arith.constant 0 : index
    %c0_8 = arith.constant 0 : index
    %11 = vector.load %arg4[%c0_7, %c0_8] : memref<4x128xf32, #tpu.memory_space<vmem>>, vector<4x128xf32>
    tpu.vector_store %arg4[%c0_7, %c0_8], %10 {strides = array<i32>} : memref<4x128xf32, #tpu.memory_space<vmem>>, vector<4x128xf32>,
    return
  }
  func.func @transform_0(%arg0: i32) -> (i32, i32) {
    %c0_i32 = arith.constant 0 : i32
    %c0_i32_0 = arith.constant 0 : i32
    %c0_i32_1 = arith.constant 0 : i32
    return %c0_i32, %c0_i32_0 : i32, i32
  }
  func.func @transform_1(%arg0: i32) -> (i32, i32) {
    %c0_i32 = arith.constant 0 : i32
    %c0_i32_0 = arith.constant 0 : i32
    return %c0_i32, %arg0 : i32, i32
  }
  func.func @transform_2(%arg0: i32) -> (i32, i32) {
    %c0_i32 = arith.constant 0 : i32
    %c0_i32_0 = arith.constant 0 : i32
    %c0_i32_1 = arith.constant 0 : i32
    return %c0_i32, %c0_i32_0 : i32, i32
  }
  func.func @transform_3(%arg0: i32) -> (i32, i32) {
    %c0_i32 = arith.constant 0 : i32
    %c0_i32_0 = arith.constant 0 : i32
    return %c0_i32, %arg0 : i32, i32
  }
}

</mosaic_0001>

<bundles_post_ra>
// kernel: conv_ae_forward.10
= control target key start
LH: loop header
LB: loop body
LE: loop exit
PB: predicated region body
PF: predicated region fallthrough
CT: control target
= control target key end

     0   :  { %8 = vsyncpa [#allocation4], 0  ;;  %s720_s0 = inlined_call_operand.vmem [shape: bf16[128,16], index: 0, kind: input, shape index: {}]   ;;  %s721_s1 = inlined_call_operand.hbm [shape: bf16[16,64], index: 1, kind: input, shape index: {}]   ;;  %s722_s2 = inlined_call_operand.hbm [shape: f32[1,64], index: 2, kind: input, shape index: {}]   ;;  %s723_s3 = inlined_call_operand.vmem [shape: bf16[128,64], index: 3, kind: output, shape index: {}]  }
   0x1   :  { %9 = vsyncpa [#allocation6], 0  ;;  %s562_s12 = smov [#allocation3]  }
   0x2   :  { %s17_s13 = sshll.u32 %s562_s12, 4  ;;  %s18_s13 = int_to_ptr.vmem [resolvable:$true] %s17_s13 }
   0x3   :  { %s526_s14 = scalar_lea.vmem %s18_s13, 128  ;;  %p531_p1 = scmp.lt.s32.totalorder %s18_s13, %s18_s13 }
   0x4   :  { %p527_p0 = scmp.ne.s32.totalorder %s18_s13, %s526_s14  ;;  %p532_p2 = scmp.lt.s32.totalorder %s526_s14, %s526_s14 }
   0x6   :  { %p533_p3 = por %p532_p2, %p531_p1 }
   0x8   :  { %p534_p4 = pnand %p533_p3, %p527_p0 }
   0xa   :  { %537 = shalt.err (!%p534_p4)
}
   0xb   :  { %s563_s15 = smov 64   ;;  %s564_s16 = smov 4  }
   0xc   :  { %23 = dma.hbm_to_vmem [thread:$0]  %s721_s1, 128, %s18_s13, [#allocation4], %s563_s15, %s563_s15, %s564_s16  }
   0xd   :  { %s565_s19 = smov [#allocation5]  }
   0xe   :  { %s30_s20 = sshll.u32 %s565_s19, 4  ;;  %s31_s20 = int_to_ptr.vmem [resolvable:$true] %s30_s20 }
   0xf   :  { %s546_s21 = scalar_lea.vmem %s31_s20, 16  ;;  %s550_s22 = scalar_lea.vmem %s31_s20, 32 }
  0x10   :  { %p547_p5 = scmp.ne.s32.totalorder %s31_s20, %s546_s21  ;;  %p551_p6 = scmp.lt.s32.totalorder %s31_s20, %s31_s20 }
  0x11   :  { %p552_p7 = scmp.lt.s32.totalorder %s550_s22, %s546_s21 }
  0x13   :  { %p553_p8 = por %p552_p7, %p551_p6 }
  0x15   :  { %p554_p9 = pnand %p553_p8, %p547_p5 }
  0x17   :  { %557 = shalt.err (!%p554_p9)
}
  0x18   :  { %33 = dma.hbm_to_vmem [thread:$0]  %s722_s2, 16, %s31_s20, [#allocation6]  }
  0x19   :  { %558 = dma.done.wait [#allocation4], 128  }
  0x1a   :  { %559 = vsyncadd [#allocation4], 4294967168 }
  0x1b   :  { %560 = dma.done.wait [#allocation6], 16  }
  0x1c   :  { %561 = vsyncadd [#allocation6], 4294967280  ;;  %v509_v0 = vld [vmem:[#allocation3] sm:$0xff]   ;;  %vm149_vm0 = vcmask 130048   ;;  %v512_v3 = vld [vmem:[%s720_s0 + $0x8] sm:$0xff]   ;;  %vm52_vm1 = vcmask 523264  }
  0x1d   :  { %v510_v1 = vld [vmem:[%s720_s0] sm:$0xff]   ;;  %485 = vmatprep.subr.bf16.mxu0 %v509_v0  ;;  %503 = vmatprep.subr.bf16.mxu1 %v509_v0  ;;  %v513_v4 = vld [vmem:[%s720_s0 + $0x28] sm:$0xff]   ;;  %v514_v5 = vld [vmem:[%s720_s0 + $0x10] sm:$0xff]   ;;  %vm403_vm2 = vcmask 519168  }
  0x1e   :  { %v511_v2 = vld [vmem:[%s720_s0 + $0x20] sm:$0xff]   ;;  %486 = vmatpush3.bf16.msra.mxu0 %v509_v0  ;;  %504 = vmatpush3.bf16.msra.mxu1 %v509_v0  ;;  %v515_v6 = vld [vmem:[%s720_s0 + $0x30] sm:$0xff]   ;;  %v426_v7 = vld [vmem:[#allocation5] ss:$0 sm:$0xff] }
  0x1f   :  { %487 = vmatprep.mubr.msk.bf16.mxu0 %vm149_vm0, %v510_v1  ;;  %495 = vmatprep.mubr.msk.bf16.mxu1 %vm149_vm0, %v511_v2  ;;  %v516_v8 = vld [vmem:[%s720_s0 + $0x18] sm:$0xff]   ;;  %55 = vst.msk [vmem:[#allocation2 + $0x10] sm:$0xff] %vm52_vm1, %v426_v7  ;;  %53 = vst.msk [vmem:[#allocation2] sm:$0xff] %vm52_vm1, %v426_v7 }
  0x20   :  { %v517_v9 = vld [vmem:[%s720_s0 + $0x38] sm:$0xff]   ;;  %54 = vst.msk [vmem:[#allocation2 + $0x8] sm:$0xff] %vm52_vm1, %v426_v7  ;;  %56 = vst.msk [vmem:[#allocation2 + $0x18] sm:$0xff] %vm52_vm1, %v426_v7 }
  0x21   :  { %488 = vmatmul.mubr.msk.bf16.vlgmr.msra.gmra.mxu0 %vm149_vm0, %v512_v3  ;;  %496 = vmatmul.mubr.msk.bf16.vlgmr.msra.gmra.mxu1 %vm149_vm0, %v513_v4  ;;  %57 = vst.msk [vmem:[#allocation2 + $0x20] sm:$0xff] %vm52_vm1, %v426_v7  ;;  %58 = vst.msk [vmem:[#allocation2 + $0x28] sm:$0xff] %vm52_vm1, %v426_v7 }
  0x22   :  { %491 = vmatprep.mubr.msk.bf16.mxu0 %vm149_vm0, %v514_v5  ;;  %499 = vmatprep.mubr.msk.bf16.mxu1 %vm149_vm0, %v515_v6  ;;  %59 = vst.msk [vmem:[#allocation2 + $0x30] sm:$0xff] %vm52_vm1, %v426_v7  ;;  %60 = vst.msk [vmem:[#allocation2 + $0x38] sm:$0xff] %vm52_vm1, %v426_v7 }
  0x23   :  { %61 = vst.msk [vmem:[#allocation2 + $0x40] sm:$0xff] %vm52_vm1, %v426_v7  ;;  %62 = vst.msk [vmem:[#allocation2 + $0x48] sm:$0xff] %vm52_vm1, %v426_v7 }
  0x24   :  { %63 = vst.msk [vmem:[#allocation2 + $0x50] sm:$0xff] %vm52_vm1, %v426_v7  ;;  %64 = vst.msk [vmem:[#allocation2 + $0x58] sm:$0xff] %vm52_vm1, %v426_v7 }
  0x25   :  { %65 = vst.msk [vmem:[#allocation2 + $0x60] sm:$0xff] %vm52_vm1, %v426_v7  ;;  %66 = vst.msk [vmem:[#allocation2 + $0x68] sm:$0xff] %vm52_vm1, %v426_v7 }
  0x26   :  { %67 = vst.msk [vmem:[#allocation2 + $0x70] sm:$0xff] %vm52_vm1, %v426_v7  ;;  %68 = vst.msk [vmem:[#allocation2 + $0x78] sm:$0xff] %vm52_vm1, %v426_v7  ;;  %v71_v10 = vld [vmem:[#allocation2 + $0x10] sm:$0xff]  ;;  %v69_v14 = vld [vmem:[#allocation2] sm:$0xff] }
  0x27   :  { %v72_v20 = vld [vmem:[#allocation2 + $0x18] sm:$0xff]  ;;  %v70_v26 = vld [vmem:[#allocation2 + $0x8] sm:$0xff] }
  0x28   :  { %v73_v38 = vld [vmem:[#allocation2 + $0x20] sm:$0xff]  ;;  %v74_v60 = vld [vmem:[#allocation2 + $0x28] sm:$0xff] }
  0x29   :  { %492 = vmatmul.mubr.msk.bf16.gmra.mxu0 %vm149_vm0, %v516_v8  ;;  %500 = vmatmul.mubr.msk.bf16.gmra.mxu1 %vm149_vm0, %v517_v9  ;;  %v75_v32 = vld [vmem:[#allocation2 + $0x30] sm:$0xff]  ;;  %v76_v50 = vld [vmem:[#allocation2 + $0x38] sm:$0xff] }
  0x2a   :  { %v77_v15 = vld [vmem:[#allocation2 + $0x40] sm:$0xff]  ;;  %v78_v27 = vld [vmem:[#allocation2 + $0x48] sm:$0xff] }
  0x2b   :  { %v79_v11 = vld [vmem:[#allocation2 + $0x50] sm:$0xff]  ;;  %v80_v21 = vld [vmem:[#allocation2 + $0x58] sm:$0xff] }
  0x2c   :  { %v81_v39 = vld [vmem:[#allocation2 + $0x60] sm:$0xff]  ;;  %v82_v61 = vld [vmem:[#allocation2 + $0x68] sm:$0xff] }
  0x2d   :  { %v83_v33 = vld [vmem:[#allocation2 + $0x70] sm:$0xff]  ;;  %v84_v51 = vld [vmem:[#allocation2 + $0x78] sm:$0xff] }
  0xe1   :  { %v489_v12 = vpop.f32.mrf.mxu0  ;;  %v497_v13 = vpop.f32.mrf.mxu1 }
  0xe2   :  { %v273_v16 = vadd.f32 %v489_v12, %v71_v10  ;;  %v281_v17 = vadd.f32 %v497_v13, %v79_v11 }
  0xe3   :  { %v208_v18 = vpop.f32.mrf.mxu0  ;;  %v240_v19 = vpop.f32.mrf.mxu1 }
  0xe4   :  { %290 = vst.msk [vmem:[#allocation2 + $0x10] sm:$0xff] %vm52_vm1, %v273_v16  ;;  %298 = vst.msk [vmem:[#allocation2 + $0x50] sm:$0xff] %vm52_vm1, %v281_v17  ;;  %v271_v22 = vadd.f32 %v208_v18, %v69_v14  ;;  %v279_v23 = vadd.f32 %v240_v19, %v77_v15 }
  0xe5   :  { %v490_v24 = vpop.f32.mrf.mxu0  ;;  %v498_v25 = vpop.f32.mrf.mxu1 }
  0xe6   :  { %288 = vst.msk [vmem:[#allocation2] sm:$0xff] %vm52_vm1, %v271_v22  ;;  %296 = vst.msk [vmem:[#allocation2 + $0x40] sm:$0xff] %vm52_vm1, %v279_v23  ;;  %v274_v28 = vadd.f32 %v490_v24, %v72_v20  ;;  %v282_v29 = vadd.f32 %v498_v25, %v80_v21 }
  0xe7   :  { %v211_v30 = vpop.f32.mrf.mxu0  ;;  %v243_v31 = vpop.f32.mrf.mxu1 }
  0xe8   :  { %291 = vst.msk [vmem:[#allocation2 + $0x18] sm:$0xff] %vm52_vm1, %v274_v28  ;;  %299 = vst.msk [vmem:[#allocation2 + $0x58] sm:$0xff] %vm52_vm1, %v282_v29  ;;  %v272_v34 = vadd.f32 %v211_v30, %v70_v26  ;;  %v280_v35 = vadd.f32 %v243_v31, %v78_v27 }
  0xe9   :  { %v493_v36 = vpop.f32.mrf.mxu0  ;;  %v501_v37 = vpop.f32.mrf.mxu1 }
  0xea   :  { %289 = vst.msk [vmem:[#allocation2 + $0x8] sm:$0xff] %vm52_vm1, %v272_v34  ;;  %297 = vst.msk [vmem:[#allocation2 + $0x48] sm:$0xff] %vm52_vm1, %v280_v35  ;;  %v277_v40 = vadd.f32 %v493_v36, %v75_v32  ;;  %v285_v41 = vadd.f32 %v501_v37, %v83_v33 }
  0xeb   :  { %v309_v42 = vld [vmem:[#allocation2 + $0x10] sm:$0xff]  ;;  %v224_v44 = vpop.f32.mrf.mxu0  ;;  %v256_v45 = vpop.f32.mrf.mxu1 }
  0xec   :  { %v317_v43 = vld [vmem:[#allocation2 + $0x50] sm:$0xff]  ;;  %v325_v46 = vmax.f32 %v309_v42, 0.0  ;;  %294 = vst.msk [vmem:[#allocation2 + $0x30] sm:$0xff] %vm52_vm1, %v277_v40  ;;  %302 = vst.msk [vmem:[#allocation2 + $0x70] sm:$0xff] %vm52_vm1, %v285_v41  ;;  %v275_v48 = vadd.f32 %v224_v44, %v73_v38  ;;  %v283_v49 = vadd.f32 %v256_v45, %v81_v39 }
  0xed   :  { %v333_v47 = vmax.f32 %v317_v43, 0.0  ;;  %v307_v52 = vld [vmem:[#allocation2] sm:$0xff]  ;;  %v494_v54 = vpop.f32.mrf.mxu0  ;;  %v502_v55 = vpop.f32.mrf.mxu1 }
  0xee   :  { %v315_v53 = vld [vmem:[#allocation2 + $0x40] sm:$0xff]  ;;  %v462_v56 = vpack.c.bf16 %v325_v46, %v325_v46  ;;  %v323_v58 = vmax.f32 %v307_v52, 0.0  ;;  %292 = vst.msk [vmem:[#allocation2 + $0x20] sm:$0xff] %vm52_vm1, %v275_v48  ;;  %300 = vst.msk [vmem:[#allocation2 + $0x60] sm:$0xff] %vm52_vm1, %v283_v49  ;;  %v278_v0 = vadd.f32 %v494_v54, %v76_v50  ;;  %v286_v1 = vadd.f32 %v502_v55, %v84_v51 }
  0xef   :  { %v470_v57 = vpack.c.bf16 %v333_v47, %v333_v47  ;;  %v331_v59 = vmax.f32 %v315_v53, 0.0  ;;  %v310_v62 = vld [vmem:[#allocation2 + $0x18] sm:$0xff]  ;;  %v227_v2 = vpop.f32.mrf.mxu0  ;;  %v259_v3 = vpop.f32.mrf.mxu1 }
  0xf0   :  { %v318_v63 = vld [vmem:[#allocation2 + $0x58] sm:$0xff]  ;;  %406 = vst.msk [vmem:[%s723_s3 + $0x8] sm:$0xf] %vm403_vm2, %v462_v56  ;;  %v460_v4 = vpack.c.bf16 %v323_v58, %v323_v58  ;;  %v326_v6 = vmax.f32 %v310_v62, 0.0  ;;  %v276_v10 = vadd.f32 %v227_v2, %v74_v60  ;;  %v284_v11 = vadd.f32 %v259_v3, %v82_v61 }
  0xf1   :  { %414 = vst.msk [vmem:[%s723_s3 + $0x28] sm:$0xf] %vm403_vm2, %v470_v57  ;;  %v468_v5 = vpack.c.bf16 %v331_v59, %v331_v59  ;;  %v334_v7 = vmax.f32 %v318_v63, 0.0  ;;  %v308_v8 = vld [vmem:[#allocation2 + $0x8] sm:$0xff] }
  0xf2   :  { %v316_v9 = vld [vmem:[#allocation2 + $0x48] sm:$0xff]  ;;  %295 = vst.msk [vmem:[#allocation2 + $0x38] sm:$0xff] %vm52_vm1, %v278_v0  ;;  %303 = vst.msk [vmem:[#allocation2 + $0x78] sm:$0xff] %vm52_vm1, %v286_v1  ;;  %v463_v12 = vpack.c.bf16 %v326_v6, %v326_v6  ;;  %v324_v14 = vmax.f32 %v308_v8, 0.0 }
  0xf3   :  { %404 = vst.msk [vmem:[%s723_s3] sm:$0xf] %vm403_vm2, %v460_v4  ;;  %412 = vst.msk [vmem:[%s723_s3 + $0x20] sm:$0xf] %vm403_vm2, %v468_v5  ;;  %v471_v13 = vpack.c.bf16 %v334_v7, %v334_v7  ;;  %v332_v15 = vmax.f32 %v316_v9, 0.0  ;;  %v313_v16 = vld [vmem:[#allocation2 + $0x30] sm:$0xff] }
  0xf4   :  { %v321_v17 = vld [vmem:[#allocation2 + $0x70] sm:$0xff]  ;;  %293 = vst.msk [vmem:[#allocation2 + $0x28] sm:$0xff] %vm52_vm1, %v276_v10  ;;  %301 = vst.msk [vmem:[#allocation2 + $0x68] sm:$0xff] %vm52_vm1, %v284_v11  ;;  %v461_v18 = vpack.c.bf16 %v324_v14, %v324_v14  ;;  %v329_v20 = vmax.f32 %v313_v16, 0.0 }
  0xf5   :  { %407 = vst.msk [vmem:[%s723_s3 + $0xc] sm:$0xf] %vm403_vm2, %v463_v12  ;;  %415 = vst.msk [vmem:[%s723_s3 + $0x2c] sm:$0xf] %vm403_vm2, %v471_v13  ;;  %v469_v19 = vpack.c.bf16 %v332_v15, %v332_v15  ;;  %v337_v21 = vmax.f32 %v321_v17, 0.0  ;;  %v311_v22 = vld [vmem:[#allocation2 + $0x20] sm:$0xff] }
  0xf6   :  { %v319_v23 = vld [vmem:[#allocation2 + $0x60] sm:$0xff]  ;;  %405 = vst.msk [vmem:[%s723_s3 + $0x4] sm:$0xf] %vm403_vm2, %v461_v18  ;;  %v466_v24 = vpack.c.bf16 %v329_v20, %v329_v20  ;;  %v327_v26 = vmax.f32 %v311_v22, 0.0 }
  0xf7   :  { %413 = vst.msk [vmem:[%s723_s3 + $0x24] sm:$0xf] %vm403_vm2, %v469_v19  ;;  %v474_v25 = vpack.c.bf16 %v337_v21, %v337_v21  ;;  %v335_v27 = vmax.f32 %v319_v23, 0.0 }
  0xf8   :  { %410 = vst.msk [vmem:[%s723_s3 + $0x18] sm:$0xf] %vm403_vm2, %v466_v24  ;;  %v464_v28 = vpack.c.bf16 %v327_v26, %v327_v26 }
  0xf9   :  { %418 = vst.msk [vmem:[%s723_s3 + $0x38] sm:$0xf] %vm403_vm2, %v474_v25  ;;  %v472_v29 = vpack.c.bf16 %v335_v27, %v335_v27  ;;  %v314_v30 = vld [vmem:[#allocation2 + $0x38] sm:$0xff] }
  0xfa   :  { %v322_v31 = vld [vmem:[#allocation2 + $0x78] sm:$0xff]  ;;  %v330_v32 = vmax.f32 %v314_v30, 0.0  ;;  %408 = vst.msk [vmem:[%s723_s3 + $0x10] sm:$0xf] %vm403_vm2, %v464_v28 }
  0xfb   :  { %v338_v33 = vmax.f32 %v322_v31, 0.0  ;;  %416 = vst.msk [vmem:[%s723_s3 + $0x30] sm:$0xf] %vm403_vm2, %v472_v29  ;;  %v312_v34 = vld [vmem:[#allocation2 + $0x28] sm:$0xff] }
  0xfc   :  { %v320_v35 = vld [vmem:[#allocation2 + $0x68] sm:$0xff]  ;;  %v467_v36 = vpack.c.bf16 %v330_v32, %v330_v32  ;;  %v328_v38 = vmax.f32 %v312_v34, 0.0 }
  0xfd   :  { %v475_v37 = vpack.c.bf16 %v338_v33, %v338_v33  ;;  %v336_v39 = vmax.f32 %v320_v35, 0.0 }
  0xfe   :  { %411 = vst.msk [vmem:[%s723_s3 + $0x1c] sm:$0xf] %vm403_vm2, %v467_v36  ;;  %v465_v40 = vpack.c.bf16 %v328_v38, %v328_v38 }
  0xff   :  { %419 = vst.msk [vmem:[%s723_s3 + $0x3c] sm:$0xf] %vm403_vm2, %v475_v37  ;;  %v473_v41 = vpack.c.bf16 %v336_v39, %v336_v39 }
 0x100   :  { %409 = vst.msk [vmem:[%s723_s3 + $0x14] sm:$0xf] %vm403_vm2, %v465_v40 }
 0x101   :  { %417 = vst.msk [vmem:[%s723_s3 + $0x34] sm:$0xf] %vm403_vm2, %v473_v41 }
 0x102   :  { %424 = vsyncpa [#allocation4], 1 }
 0x103   :  { %425 = vsyncpa [#allocation6], 1 }

// kernel: conv_ae_forward.12
= control target key start
LH: loop header
LB: loop body
LE: loop exit
PB: predicated region body
PF: predicated region fallthrough
CT: control target
= control target key end

     0   :  { %s140_s0 = inlined_call_operand.vmem [shape: bf16[32,128], index: 0, kind: input, shape index: {}]   ;;  %s141_s1 = inlined_call_operand.vmem [shape: f32[1,128], index: 1, kind: input, shape index: {}]   ;;  %s142_s2 = inlined_call_operand.vmem [shape: f32[1,128], index: 2, kind: input, shape index: {}]   ;;  %s143_s3 = inlined_call_operand.vmem [shape: bf16[32,128], index: 3, kind: output, shape index: {}]  }
   0x1   :  { %v83_v0 = vld [vmem:[%s140_s0] sm:$0xff]   ;;  %v100_v4 = vld [vmem:[%s140_s0 + $0x8] sm:$0xff]  }
   0x2   :  { %v72_v1 = vld [vmem:[%s141_s1] ss:$0 sm:$0xff]  ;;  %v84_v2 = vunpack.c.l.bf16 %v83_v0  ;;  %v85_v3 = vunpack.c.h.bf16 %v83_v0  ;;  %v88_v6 = vunpack.c.l.bf16 %v100_v4  ;;  %v89_v7 = vunpack.c.h.bf16 %v100_v4 }
   0x3   :  { %v73_v5 = vld [vmem:[%s142_s2] ss:$0 sm:$0xff] }
   0x4   :  { %v29_v8 = vsub.f32 %v84_v2, %v72_v1  ;;  %v30_v9 = vsub.f32 %v85_v3, %v72_v1  ;;  %v31_v10 = vsub.f32 %v88_v6, %v72_v1  ;;  %v32_v11 = vsub.f32 %v89_v7, %v72_v1 }
   0x6   :  { %v40_v12 = vmul.f32 %v73_v5, %v29_v8  ;;  %v41_v13 = vmul.f32 %v73_v5, %v30_v9  ;;  %v42_v14 = vmul.f32 %v73_v5, %v31_v10  ;;  %v43_v15 = vmul.f32 %v73_v5, %v32_v11 }
   0x8   :  { %v44_v16 = vmax.f32 %v40_v12, 0.0  ;;  %v45_v17 = vmax.f32 %v41_v13, 0.0  ;;  %v46_v18 = vmax.f32 %v42_v14, 0.0  ;;  %v47_v19 = vmax.f32 %v43_v15, 0.0 }
   0xa   :  { %v93_v20 = vpack.c.bf16 %v45_v17, %v44_v16  ;;  %v98_v21 = vpack.c.bf16 %v47_v19, %v46_v18 }
   0xc   :  { %94 = vst [vmem:[%s143_s3] sm:$0xff] %v93_v20   ;;  %101 = vst [vmem:[%s143_s3 + $0x8] sm:$0xff] %v98_v21  }

// kernel: conv_ae_forward.11
= control target key start
LH: loop header
LB: loop body
LE: loop exit
PB: predicated region body
PF: predicated region fallthrough
CT: control target
= control target key end

     0   :  { %10 = vsyncpa [#allocation5], 0  ;;  %s1545_s0 = inlined_call_operand.vmem [shape: bf16[32,1024], index: 0, kind: input, shape index: {}]   ;;  %s1546_s1 = inlined_call_operand.hbm [shape: bf16[1024,128], index: 1, kind: input, shape index: {}]   ;;  %s1547_s2 = inlined_call_operand.hbm [shape: f32[1,128], index: 2, kind: input, shape index: {}]   ;;  %s1548_s3 = inlined_call_operand.vmem [shape: bf16[32,128], index: 3, kind: output, shape index: {0}]   ;;  %s1549_s4 = inlined_call_operand.vmem [shape: f32[1,2,128], index: 4, kind: output, shape index: {1}]  }
   0x1   :  { %12 = vsyncpa [#allocation5 + $0x1], 0 }
   0x2   :  { %13 = vsyncpa [#allocation7], 0  ;;  %s1375_s15 = smov 0   ;;  %s1377_s16 = smov 0  }
   0x3   :  { %s1379_s17 = smov 0   ;;  %s1381_s18 = smov 0  }
   0x4   :  { %s1383_s19 = smov 0   ;;  %s1385_s20 = smov 0  }
   0x5 LB: > { %s992_s21 = sadd.s32 4294967295, %s1344_s20   ;;  %s31_s22 = sadd.s32 1, %s1340_s19  ;;  %s1344_s20 = sphi %s1385_s20, %s19_s20   ;;  %s1340_s19 = sphi %s1383_s19, %s1560_s19   ;;  %s1336_s18 = sphi %s1381_s18, %s1559_s18   ;;  %s1332_s17 = sphi %s1379_s17, %s1558_s17   ;;  %s1328_s16 = sphi %s1377_s16, %s1557_s16   ;;  %s1324_s15 = sphi %s1375_s15, %s1556_s15  }
   0x6   : > { %p32_p0 = scmp.ge.s32.totalorder %s31_s22, 2  ;;  %s47_s23 = sadd.s32 1, %s1332_s17 }
   0x7   : > { %p54_p1 = scmp.ne.s32.totalorder %s1332_s17, %s1328_s16  ;;  %p55_p2 = scmp.eq.s32.totalorder %s1344_s20, 0 }
   0x8   : > { %s1562_s22 = smov (%p32_p0, %s31_s22), 0  ;;  %p88_p4 = scmp.ne.s32.totalorder %s1328_s16, %s1324_s15 }
   0x9   : > { %p1411_p3 = por %p55_p2, %p54_p1  ;;  %s43_s25 = ssub.s32 %s1340_s19, %s1562_s22 }
   0xa   : > { %p1418_p5 = scmp.eq.s32.totalorder %s992_s21, 0  ;;  %p45_p6 = scmp.eq.s32.totalorder %s43_s25, 0 }
   0xb   : > { %p993_p7 = scmp.ge.s32.totalorder %s1344_s20, 1  ;;  %p181_p9 = scmp.lt.s32.totalorder %s1344_s20, 3 }
   0xc   : > { %p1425_p8 = por %p1418_p5, %p88_p4  ;;  %s1346_s30 = smov [#allocation6]  }
   0xd   : > { %s1431_s28 = scalar_select %p45_p6, %s1332_s17, %s47_s23  }
   0xe   : > { %s1553_s27 = scalar_select %p1425_p8, 1, 0 }
   0xf   : > { %p1433_p10 = pnand %p993_p7, %p181_p9  ;;  %s196_s5 = sshll.u32 %s1346_s30, 4  ;;  %s197_s5 = int_to_ptr.vmem [resolvable:$true] %s196_s5 }
  0x10   : > { %s1249_s6 = scalar_lea.vmem %s197_s5, 16  ;;  %s1256_s7 = scalar_lea.vmem %s197_s5, 32 }
  0x11   : > { %p1137_p11 = pneg %p1433_p10  ;;  %p1250_p0 = scmp.ne.s32.totalorder %s197_s5, %s1249_s6 }
  0x12   : > { %p1257_p4 = scmp.lt.s32.totalorder %s197_s5, %s197_s5  ;;  %p1258_p6 = scmp.lt.s32.totalorder %s1256_s7, %s1249_s6 }
  0x13   : > { %p1138_p12 = pnand %p1137_p11, %p1418_p5 }
  0x14   : > { %p1259_p7 = por %p1258_p6, %p1257_p4 }
  0x15   : > { %p1240_p13 = pneg %p1138_p12 }
  0x17   : > { %p1252_p1 = pnand %p1250_p0, %p1240_p13 }
  0x19   : > { %p1253_p2 = pneg %p1252_p1 }
  0x1b   : > { %p1260_p9 = pnand %p1259_p7, %p1253_p2 }
  0x1d   : > { %1263 = shalt.err (!%p1260_p9)
}
  0x1e   : > { %1140 = dma.hbm_to_vmem [thread:$0]  (!%p1138_p12), %s1547_s2, 16, %s197_s5, [#allocation7]  }
  0x1f   : > { %p995_p8 = scmp.ge.s32.totalorder %s1344_s20, 2 }
  0x21   : > { %203 = sbr.rel (%p995_p8) target bundleno = 62 (0x3e), region = 20 }
  0x26   : > { %206 = sbr.rel (!%p1411_p3) target bundleno = 46 (0x2e), region = 24  ;;  %s208_s10 = sand.u32 (%p1411_p3), 1, %s1332_s17  }
  0x27   : > { %s1058_s11 = sshll.u32 (%p1411_p3), %s1340_s19, 4  ;;  %s996_s12 = sshll.u32 (%p1411_p3), %s208_s10, 6 }
  0x28   : > { %s216_s15 = scalar_lea.vmem (%p1411_p3), %s1545_s0, %s1058_s11  ;;  %s210_s21 = scalar_lea.vmem (%p1411_p3), [#allocation3], %s996_s12 }
  0x29   : > { %v229_v0 = vld [vmem:[%s216_s15] sm:$0xff] (%p1411_p3)  ;;  %v231_v1 = vld [vmem:[%s216_s15 + $0x8] sm:$0xff] (%p1411_p3) }
  0x2a   : > { %v233_v2 = vld [vmem:[%s216_s15 + $0x20] sm:$0xff] (%p1411_p3)  ;;  %230 = vst [vmem:[%s210_s21] sm:$0xff] (%p1411_p3), %v229_v0  ;;  %232 = vst [vmem:[%s210_s21 + $0x8] sm:$0xff] (%p1411_p3), %v231_v1  ;;  %v235_v3 = vld [vmem:[%s216_s15 + $0x28] sm:$0xff] (%p1411_p3) }
  0x2b   : > { %234 = vst [vmem:[%s210_s21 + $0x10] sm:$0xff] %v233_v2  ;;  %v237_v4 = vld [vmem:[%s216_s15 + $0x40] sm:$0xff]  ;;  %v239_v5 = vld [vmem:[%s216_s15 + $0x48] sm:$0xff]  ;;  %236 = vst [vmem:[%s210_s21 + $0x18] sm:$0xff] %v235_v3 }
  0x2c   : > { %238 = vst [vmem:[%s210_s21 + $0x20] sm:$0xff] %v237_v4  ;;  %240 = vst [vmem:[%s210_s21 + $0x28] sm:$0xff] %v239_v5  ;;  %v241_v6 = vld [vmem:[%s216_s15 + $0x60] sm:$0xff]  ;;  %v243_v7 = vld [vmem:[%s216_s15 + $0x68] sm:$0xff] }
  0x2d   : > { %242 = vst [vmem:[%s210_s21 + $0x30] sm:$0xff] %v241_v6  ;;  %244 = vst [vmem:[%s210_s21 + $0x38] sm:$0xff] %v243_v7 }
  0x2e PF: > { %s251_s23 = sand.u32 1, %s1332_s17   ;;  %s1059_s25 = sshll.u32 %s1340_s19, 12 }
  0x2f   : > { %s999_s30 = sshll.u32 %s251_s23, 8  ;;  %s262_s7 = scalar_lea.hbm %s1546_s1, %s1059_s25 }
  0x30   : > { %s255_s8 = scalar_lea.vmem [#allocation4], %s999_s30  ;;  %s252_s10 = scalar_lea.sflag [#allocation5], %s251_s23 }
  0x31   : > { %s263_s9 = sshll.u32 %s255_s8, 4  ;;  %s1347_s12 = smov [#allocation4]   ;;  %s264_s9 = int_to_ptr.vmem [resolvable:$true] %s263_s9 }
  0x32   : > { %s1276_s11 = scalar_lea.vmem %s264_s9, 4096  ;;  %s1280_s13 = sshll.u32 %s1347_s12, 4  ;;  %s1281_s13 = int_to_ptr.vmem [resolvable:$false] %s1280_s13 }
  0x33   : > { %p1277_p8 = scmp.ne.s32.totalorder %s264_s9, %s1276_s11  ;;  %s1282_s14 = scalar_lea.vmem %s1281_s13, 8192 }
  0x34   : > { %p1283_p13 = scmp.lt.s32.totalorder %s264_s9, %s1281_s13  ;;  %p1284_p0 = scmp.lt.s32.totalorder %s1282_s14, %s1276_s11 }
  0x35   : > { %p1278_p11 = pnand %p1277_p8, %p1411_p3 }
  0x36   : > { %p1285_p1 = por %p1284_p0, %p1283_p13 }
  0x37   : > { %p1279_p12 = pneg %p1278_p11 }
  0x39   : > { %p1286_p2 = pnand %p1285_p1, %p1279_p12 }
  0x3b   : > { %1289 = shalt.err (!%p1286_p2)
}
  0x3c   : > { %s1348_s15 = smov 64   ;;  %s1349_s21 = smov 4  }
  0x3d   : > { %1133 = dma.hbm_to_vmem [thread:$0]  (%p1411_p3), %s262_s7, 4096, %s264_s9, %s252_s10, %s1348_s15, %s1348_s15, %s1349_s21  }
  0x3e PF: > { %275 = sbr.rel (%p1433_p10) target bundleno = 354 (0x162), region = 51  ;;  %s278_s23 = sand.u32 (!%p1433_p10), 1, %s1328_s16  }
  0x3f   : > { %s1003_s25 = sshll.u32 (!%p1433_p10), %s278_s23, 6  ;;  %s1004_s30 = sshll.u32 (!%p1433_p10), %s278_s23, 8 }
  0x40   : > { %s1464_s5 = scalar_lea.vmem (!%p1433_p10), [#allocation3], %s1003_s25  ;;  %s285_s6 = scalar_lea.sflag (!%p1433_p10), [#allocation5], %s278_s23 }
  0x41   : > { %s1466_s8 = scalar_lea.vmem (!%p1433_p10), [#allocation4], %s1004_s30  ;;  %p1555_p4 = scmp.ne.s32.totalorder (!%p1433_p10), %s1553_s27, 0 }
  0x43   : > { %1315 = dma.done.wait (%p1555_p4), %s285_s6, 4096  }
  0x44   : > { %1317 = vsyncadd (%p1555_p4), %s285_s6, 4294963200 }
  0x45   : > { %1319 = dma.done.wait (%p1418_p5), [#allocation7], 16  }
  0x46   : > { %1321 = vsyncadd (%p1418_p5), [#allocation7], 4294967280  ;;  %p1006_p3 = scmp.ne.s32.totalorder %s1336_s18, 0 }
  0x48   : > { %354 = sbr.rel (%p1006_p3) target bundleno = 80 (0x50), region = 67 }
  0x4d   : > { %v1007_v8 = vld [vmem:[#allocation6] ss:$0 sm:$0xff] }
  0x4e   : > { %362 = vst [vmem:[#allocation2 + $0x10] sm:$0xff] %v1007_v8  ;;  %363 = vst [vmem:[#allocation2] sm:$0xff] %v1007_v8 }
  0x4f   : > { %364 = vst [vmem:[#allocation2 + $0x18] sm:$0xff] %v1007_v8  ;;  %365 = vst [vmem:[#allocation2 + $0x8] sm:$0xff] %v1007_v8 }
  0x50 PF: > { %v1194_v9 = vld [vmem:[%s1466_s8 + $0x78] sm:$0xff]   ;;  %v1198_v13 = vld [vmem:[%s1466_s8 + $0x70] sm:$0xff]   ;;  %v1202_v17 = vld [vmem:[%s1466_s8 + $0x68] sm:$0xff]   ;;  %p1048_p5 = scmp.ne.s32.totalorder %s1336_s18, 1 }
  0x51   : > { %v1195_v10 = vld [vmem:[%s1466_s8 + $0xf8] sm:$0xff]   ;;  %1075 = vmatprep.subr.bf16.mxu0 %v1194_v9  ;;  %v1199_v14 = vld [vmem:[%s1466_s8 + $0xf0] sm:$0xff]   ;;  %v1203_v18 = vld [vmem:[%s1466_s8 + $0xe8] sm:$0xff]  }
  0x52   : > { %v1196_v11 = vld [vmem:[%s1466_s8 + $0x38] sm:$0xff]   ;;  %1103 = vmatprep.subr.bf16.mxu1 %v1195_v10  ;;  %v1200_v15 = vld [vmem:[%s1466_s8 + $0x30] sm:$0xff]   ;;  %v1204_v19 = vld [vmem:[%s1466_s8 + $0x28] sm:$0xff]  }
  0x53   : > { %v1197_v12 = vld [vmem:[%s1466_s8 + $0xb8] sm:$0xff]   ;;  %1076 = vmatpush3.bf16.msra.mxu0 %v1196_v11  ;;  %v1201_v16 = vld [vmem:[%s1466_s8 + $0xb0] sm:$0xff]   ;;  %v1205_v20 = vld [vmem:[%s1466_s8 + $0xa8] sm:$0xff]  }
  0x54   : > { %1104 = vmatpush3.bf16.msra.mxu1 %v1197_v12  ;;  %1077 = vmatprep.subr.bf16.mxu0 %v1198_v13  ;;  %v1206_v21 = vld [vmem:[%s1466_s8 + $0x60] sm:$0xff]   ;;  %v1210_v25 = vld [vmem:[%s1466_s8 + $0x58] sm:$0xff]   ;;  %v1214_v29 = vld [vmem:[%s1466_s8 + $0x50] sm:$0xff]  }
  0x55   : > { %1105 = vmatprep.subr.bf16.mxu1 %v1199_v14  ;;  %v1207_v22 = vld [vmem:[%s1466_s8 + $0xe0] sm:$0xff]   ;;  %v1211_v26 = vld [vmem:[%s1466_s8 + $0xd8] sm:$0xff]   ;;  %v1215_v30 = vld [vmem:[%s1466_s8 + $0xd0] sm:$0xff]  }
  0x56   : > { %v1208_v23 = vld [vmem:[%s1466_s8 + $0x20] sm:$0xff]   ;;  %v1212_v27 = vld [vmem:[%s1466_s8 + $0x18] sm:$0xff]   ;;  %v1216_v31 = vld [vmem:[%s1466_s8 + $0x10] sm:$0xff]  }
  0x57   : > { %1078 = vmatpush3.bf16.msra.mxu0 %v1200_v15  ;;  %v1209_v24 = vld [vmem:[%s1466_s8 + $0xa0] sm:$0xff]   ;;  %v1213_v28 = vld [vmem:[%s1466_s8 + $0x98] sm:$0xff]   ;;  %v1217_v32 = vld [vmem:[%s1466_s8 + $0x90] sm:$0xff]  }
  0x58   : > { %1106 = vmatpush3.bf16.msra.mxu1 %v1201_v16  ;;  %1079 = vmatprep.subr.bf16.mxu0 %v1202_v17  ;;  %v1218_v33 = vld [vmem:[%s1466_s8 + $0x48] sm:$0xff]   ;;  %v1222_v37 = vld [vmem:[%s1466_s8 + $0x40] sm:$0xff]   ;;  %v366_v56 = vld [vmem:[#allocation2 + $0x10] sm:$0xff] }
  0x59   : > { %1107 = vmatprep.subr.bf16.mxu1 %v1203_v18  ;;  %v1219_v34 = vld [vmem:[%s1466_s8 + $0xc8] sm:$0xff]   ;;  %v1223_v38 = vld [vmem:[%s1466_s8 + $0xc0] sm:$0xff]   ;;  %v368_v10 = vld [vmem:[#allocation2 + $0x18] sm:$0xff] }
  0x5a   : > { %v1220_v35 = vld [vmem:[%s1466_s8 + $0x8] sm:$0xff]   ;;  %v1224_v39 = vld [vmem:[%s1466_s8] sm:$0xff]  }
  0x5b   : > { %1080 = vmatpush3.bf16.msra.mxu0 %v1204_v19  ;;  %v1221_v36 = vld [vmem:[%s1466_s8 + $0x88] sm:$0xff]   ;;  %v1225_v40 = vld [vmem:[%s1466_s8 + $0x80] sm:$0xff]  }
  0x5c   : > { %1108 = vmatpush3.bf16.msra.mxu1 %v1205_v20  ;;  %1081 = vmatprep.subr.bf16.mxu0 %v1206_v21  ;;  %v1226_v41 = vld [vmem:[%s1464_s5] ss:$16 sps:$4 sm:$0xff]   ;;  %v1228_v42 = vld [vmem:[%s1464_s5 + $0x4] ss:$16 sps:$4 sm:$0xff]   ;;  %v1229_v43 = vld [vmem:[%s1464_s5 + $0x8] ss:$16 sps:$4 sm:$0xff]  }
  0x5d   : > { %1109 = vmatprep.subr.bf16.mxu1 %v1207_v22  ;;  %v1231_v44 = vld [vmem:[%s1464_s5 + $0xc] ss:$16 sps:$4 sm:$0xff]   ;;  %706 = vmatprep.mubr.bf16.mxu0 %v1228_v42  ;;  %v1232_v45 = vld [vmem:[%s1464_s5 + $0x24] ss:$16 sps:$4 sm:$0xff]   ;;  %v1236_v47 = vld [vmem:[%s1464_s5 + $0x20] ss:$16 sps:$4 sm:$0xff]  }
  0x5e   : > { %755 = vmatprep.mubr.bf16.mxu1 %v1231_v44  ;;  %v1234_v46 = vld [vmem:[%s1464_s5 + $0x2c] ss:$16 sps:$4 sm:$0xff]   ;;  %v1237_v48 = vld [vmem:[%s1464_s5 + $0x28] ss:$16 sps:$4 sm:$0xff]   ;;  %v367_v1 = vld [vmem:[#allocation2] sm:$0xff] }
  0x5f   : > { %1082 = vmatpush3.bf16.msra.mxu0 %v1208_v23  ;;  %v369_v18 = vld [vmem:[#allocation2 + $0x8] sm:$0xff] }
  0x60   : > { %1110 = vmatpush3.bf16.msra.mxu1 %v1209_v24  ;;  %1083 = vmatprep.subr.bf16.mxu0 %v1210_v25 }
  0x61   : > { %1111 = vmatprep.subr.bf16.mxu1 %v1211_v26 }
  0x63   : > { %1084 = vmatpush3.bf16.msra.mxu0 %v1212_v27 }
  0x64   : > { %1112 = vmatpush3.bf16.msra.mxu1 %v1213_v28  ;;  %1085 = vmatprep.subr.bf16.mxu0 %v1214_v29 }
  0x65   : > { %1113 = vmatprep.subr.bf16.mxu1 %v1215_v30 }
  0x67   : > { %1086 = vmatpush3.bf16.msra.mxu0 %v1216_v31 }
  0x68   : > { %1114 = vmatpush3.bf16.msra.mxu1 %v1217_v32  ;;  %1087 = vmatprep.subr.bf16.mxu0 %v1218_v33 }
  0x69   : > { %1115 = vmatprep.subr.bf16.mxu1 %v1219_v34 }
  0x6b   : > { %1088 = vmatpush3.bf16.msra.mxu0 %v1220_v35 }
  0x6c   : > { %1116 = vmatpush3.bf16.msra.mxu1 %v1221_v36  ;;  %1089 = vmatprep.subr.bf16.mxu0 %v1222_v37 }
  0x6d   : > { %1117 = vmatprep.subr.bf16.mxu1 %v1223_v38 }
  0x6f   : > { %1090 = vmatpush3.bf16.msra.mxu0 %v1224_v39 }
  0x70   : > { %1118 = vmatpush3.bf16.msra.mxu1 %v1225_v40 }
  0x72   : > { %707 = vmatmul.mubr.bf16.vlgmr.msra.gmra.mxu0 %v1226_v41 }
  0x73   : > { %756 = vmatmul.mubr.bf16.vlgmr.msra.gmra.mxu1 %v1229_v43  ;;  %714 = vmatprep.mubr.bf16.mxu0 %v1232_v45 }
  0x74   : > { %763 = vmatprep.mubr.bf16.mxu1 %v1234_v46 }
  0x7a   : > { %715 = vmatmul.mubr.bf16.gmra.mxu0 %v1236_v47 }
  0x7b   : > { %764 = vmatmul.mubr.bf16.gmra.mxu1 %v1237_v48 }
 0x132   : > { %v1091_v49 = vpop.f32.mrf.mxu0 }
 0x133   : > { %v1119_v50 = vpop.f32.mrf.mxu1 }
 0x134   : > { %v1092_v51 = vpop.f32.mrf.mxu0 }
 0x135   : > { %v1093_v52 = vadd.f32 %v1092_v51, %v1091_v49  ;;  %v1120_v53 = vpop.f32.mrf.mxu1 }
 0x136   : > { %v1121_v54 = vadd.f32 %v1120_v53, %v1119_v50  ;;  %v1094_v55 = vpop.f32.mrf.mxu0 }
 0x137   : > { %v1122_v57 = vpop.f32.mrf.mxu1 }
 0x138   : > { %v758_v58 = vadd.f32 %v1121_v54, %v1093_v52  ;;  %v1095_v59 = vpop.f32.mrf.mxu0 }
 0x139   : > { %v1096_v60 = vadd.f32 %v1095_v59, %v1094_v55  ;;  %v1123_v61 = vpop.f32.mrf.mxu1 }
 0x13a   : > { %v772_v62 = vadd.f32 %v758_v58, %v366_v56  ;;  %v1124_v63 = vadd.f32 %v1123_v61, %v1122_v57  ;;  %v1097_v0 = vpop.f32.mrf.mxu0 }
 0x13b   : > { %v1125_v2 = vpop.f32.mrf.mxu1 }
 0x13c   : > { %776 = vst [vmem:[#allocation2 + $0x10] sm:$0xff] %v772_v62  ;;  %v761_v3 = vadd.f32 %v1124_v63, %v1096_v60  ;;  %v1098_v4 = vpop.f32.mrf.mxu0 }
 0x13d   : > { %v1099_v5 = vadd.f32 %v1098_v4, %v1097_v0  ;;  %v1126_v6 = vpop.f32.mrf.mxu1 }
 0x13e   : > { %v773_v7 = vadd.f32 %v761_v3, %v367_v1  ;;  %v1127_v8 = vadd.f32 %v1126_v6, %v1125_v2  ;;  %v1100_v9 = vpop.f32.mrf.mxu0 }
 0x13f   : > { %v1128_v11 = vpop.f32.mrf.mxu1 }
 0x140   : > { %777 = vst [vmem:[#allocation2] sm:$0xff] %v773_v7  ;;  %v766_v12 = vadd.f32 %v1127_v8, %v1099_v5  ;;  %v1101_v13 = vpop.f32.mrf.mxu0 }
 0x141   : > { %v1102_v14 = vadd.f32 %v1101_v13, %v1100_v9  ;;  %v1129_v15 = vpop.f32.mrf.mxu1 }
 0x142   : > { %v774_v16 = vadd.f32 %v766_v12, %v368_v10  ;;  %v1130_v17 = vadd.f32 %v1129_v15, %v1128_v11 }
 0x144   : > { %778 = vst [vmem:[#allocation2 + $0x18] sm:$0xff] %v774_v16  ;;  %v769_v19 = vadd.f32 %v1130_v17, %v1102_v14  ;;  %783 = sbr.rel (%p1048_p5) target bundleno = 354 (0x162), region = 71 }
 0x146   : > { %v775_v20 = vadd.f32 %v769_v19, %v369_v18 }
 0x148   : > { %779 = vst [vmem:[#allocation2 + $0x8] sm:$0xff] %v775_v20 }
 0x149   : > { %v784_v21 = vld [vmem:[#allocation2 + $0x10] sm:$0xff]  ;;  %v785_v22 = vld [vmem:[#allocation2] sm:$0xff]  ;;  %vm830_vm0 = vcmask 1040384  }
 0x14a   : > { %v1067_v24 = vpack.c.bf16 %v785_v22, %v784_v21  ;;  %v808_v25 = vadd.f32 %v785_v22, %v784_v21  ;;  %v817_v26 = vmul.f32 %v784_v21, %v784_v21  ;;  %v818_v27 = vmul.f32 %v785_v22, %v785_v22 }
 0x14b   : > { %v786_v23 = vld [vmem:[#allocation2 + $0x18] sm:$0xff] }
 0x14c   : > { %v819_v30 = vmul.f32 %v786_v23, %v786_v23  ;;  %1068 = vst [vmem:[%s1548_s3] sm:$0xff] %v1067_v24   ;;  %v821_v31 = vadd.f32 %v818_v27, %v817_v26  ;;  %v809_v32 = vadd.f32 %v808_v25, %v786_v23 }
 0x14e   : > { %v822_v35 = vadd.f32 %v821_v31, %v819_v30 }
 0x14f   : > { %v787_v28 = vld [vmem:[#allocation2 + $0x8] sm:$0xff] }
 0x150   : > { %v1072_v29 = vpack.c.bf16 %v787_v28, %v786_v23  ;;  %v820_v33 = vmul.f32 %v787_v28, %v787_v28  ;;  %v810_v34 = vadd.f32 %v809_v32, %v787_v28 }
 0x152   : > { %1074 = vst [vmem:[%s1548_s3 + $0x8] sm:$0xff] %v1072_v29   ;;  %v811_v36 = vrot.slane %v810_v34, 4  ;;  %v823_v37 = vadd.f32 %v822_v35, %v820_v33 }
 0x154   : > { %v812_v38 = vadd.f32 %v811_v36, %v810_v34  ;;  %v824_v39 = vrot.slane %v823_v37, 4 }
 0x156   : > { %v813_v40 = vrot.slane %v812_v38, 2  ;;  %v825_v41 = vadd.f32 %v824_v39, %v823_v37 }
 0x158   : > { %v814_v42 = vadd.f32 %v813_v40, %v812_v38  ;;  %v826_v43 = vrot.slane %v825_v41, 2 }
 0x15a   : > { %v815_v44 = vrot.slane %v814_v42, 1  ;;  %v827_v45 = vadd.f32 %v826_v43, %v825_v41 }
 0x15c   : > { %v816_v46 = vadd.f32 %v815_v44, %v814_v42  ;;  %v828_v47 = vrot.slane %v827_v45, 1 }
 0x15e   : > { %v829_v48 = vadd.f32 %v828_v47, %v827_v45 }
 0x160   : > { %v831_v49 = vsel %vm830_vm0, %v816_v46, %v829_v48 }
 0x161   : > { %832 = vst [vmem:[%s1549_s4] sm:$0x3] %v831_v49 }
 0x162 PF: > { %s19_s20 = sadd.s32 1, %s1344_s20   ;;  %s1556_s15 = smov %s1328_s16 }
 0x163   : > { %p16_p10 = scmp.ge.s32.totalorder %s19_s20, 4   ;;  %s1557_s16 = smov %s1332_s17 }
 0x164   : > { %s1558_s17 = smov %s1431_s28  ;;  %s1559_s18 = smov %s1340_s19 }
 0x165   : > { %s1560_s19 = smov %s1562_s22  ;;  %18 = sbr.rel (!%p16_p10) target bundleno = 5 (0x5), region = 128 }
 0x16a   :  { %881 = vsyncpa [#allocation5], 1 }
 0x16b   :  { %883 = vsyncpa [#allocation5 + $0x1], 1 }
 0x16c   :  { %884 = vsyncpa [#allocation7], 1 }

// kernel: conv_ae_forward.14
= control target key start
LH: loop header
LB: loop body
LE: loop exit
PB: predicated region body
PF: predicated region fallthrough
CT: control target
= control target key end

     0   :  { %v991_v22 = vmov 1966171168   ;;  %v163_v24 = vlaneseq  ;;  %vm26_vm0 = vcmask 254976   ;;  %s1229_s1 = inlined_call_operand.vmem [shape: bf16[1024,32], index: 1, kind: input, shape index: {}]   ;;  %s1230_s0 = inlined_call_operand.vmem [shape: bf16[2,1024], index: 0, kind: input, shape index: {}]   ;;  %s1231_s2 = inlined_call_operand.vmem [shape: f32[1,32], index: 2, kind: input, shape index: {}]   ;;  %s1232_s3 = inlined_call_operand.vmem [shape: f32[2,32], index: 3, kind: output, shape index: {}]  }
   0x1   :  { %v926_v0 = vld [vmem:[%s1229_s1 + $0x78] sm:$0xff]   ;;  %v930_v4 = vld [vmem:[%s1229_s1 + $0x70] sm:$0xff]   ;;  %v934_v8 = vld [vmem:[%s1229_s1 + $0x68] sm:$0xff]   ;;  %v161_v23 = vunpack.c.l.s4 %v991_v22 }
   0x2   :  { %v927_v1 = vld [vmem:[%s1229_s1 + $0xf8] sm:$0xff]   ;;  %837 = vmatprep.subr.bf16.mxu0 %v926_v0  ;;  %v931_v5 = vld [vmem:[%s1229_s1 + $0xf0] sm:$0xff]   ;;  %v935_v9 = vld [vmem:[%s1229_s1 + $0xe8] sm:$0xff]   ;;  %v164_v30 = vshrl.u32 %v163_v24, 7 }
   0x3   :  { %v928_v2 = vld [vmem:[%s1229_s1 + $0x38] sm:$0xff]   ;;  %859 = vmatprep.subr.bf16.mxu1 %v927_v1  ;;  %v932_v6 = vld [vmem:[%s1229_s1 + $0x30] sm:$0xff]   ;;  %v936_v10 = vld [vmem:[%s1229_s1 + $0x28] sm:$0xff]   ;;  %v162_v29 = vunpack.c.0.s8 %v161_v23 }
   0x4   :  { %v929_v3 = vld [vmem:[%s1229_s1 + $0xb8] sm:$0xff]   ;;  %838 = vmatpush3.bf16.msra.mxu0 %v928_v2  ;;  %v933_v7 = vld [vmem:[%s1229_s1 + $0xb0] sm:$0xff]   ;;  %v937_v11 = vld [vmem:[%s1229_s1 + $0xa8] sm:$0xff]  }
   0x5   :  { %860 = vmatpush3.bf16.msra.mxu1 %v929_v3  ;;  %839 = vmatprep.subr.bf16.mxu0 %v930_v4  ;;  %v938_v12 = vld [vmem:[%s1229_s1 + $0x60] sm:$0xff]   ;;  %v942_v16 = vld [vmem:[%s1229_s1 + $0x58] sm:$0xff]   ;;  %v946_v20 = vld [vmem:[%s1229_s1 + $0x50] sm:$0xff]   ;;  %v1102_v35 = vsub.s32 %v162_v29, %v164_v30 }
   0x6   :  { %861 = vmatprep.subr.bf16.mxu1 %v931_v5  ;;  %v939_v13 = vld [vmem:[%s1229_s1 + $0xe0] sm:$0xff]   ;;  %v943_v17 = vld [vmem:[%s1229_s1 + $0xd8] sm:$0xff]   ;;  %v947_v21 = vld [vmem:[%s1229_s1 + $0xd0] sm:$0xff]  }
   0x7   :  { %v940_v14 = vld [vmem:[%s1229_s1 + $0x20] sm:$0xff]   ;;  %v944_v18 = vld [vmem:[%s1229_s1 + $0x18] sm:$0xff]   ;;  %v948_v25 = vld [vmem:[%s1229_s1 + $0x10] sm:$0xff]  }
   0x8   :  { %840 = vmatpush3.bf16.msra.mxu0 %v932_v6  ;;  %v941_v15 = vld [vmem:[%s1229_s1 + $0xa0] sm:$0xff]   ;;  %v945_v19 = vld [vmem:[%s1229_s1 + $0x98] sm:$0xff]   ;;  %v949_v26 = vld [vmem:[%s1229_s1 + $0x90] sm:$0xff]  }
   0x9   :  { %862 = vmatpush3.bf16.msra.mxu1 %v933_v7  ;;  %841 = vmatprep.subr.bf16.mxu0 %v934_v8  ;;  %v950_v27 = vld [vmem:[%s1229_s1 + $0x48] sm:$0xff]   ;;  %v954_v33 = vld [vmem:[%s1229_s1 + $0x40] sm:$0xff]   ;;  %v959_v41 = vld [vmem:[%s1229_s1 + $0x178] sm:$0xff]  }
   0xa   :  { %863 = vmatprep.subr.bf16.mxu1 %v935_v9  ;;  %v951_v28 = vld [vmem:[%s1229_s1 + $0xc8] sm:$0xff]   ;;  %v955_v34 = vld [vmem:[%s1229_s1 + $0xc0] sm:$0xff]   ;;  %v960_v42 = vld [vmem:[%s1229_s1 + $0x1f8] sm:$0xff]  }
   0xb   :  { %v952_v31 = vld [vmem:[%s1229_s1 + $0x8] sm:$0xff]   ;;  %v956_v36 = vld [vmem:[%s1229_s1] sm:$0xff]   ;;  %v961_v47 = vld [vmem:[%s1229_s1 + $0x138] sm:$0xff]  }
   0xc   :  { %842 = vmatpush3.bf16.msra.mxu0 %v936_v10  ;;  %v953_v32 = vld [vmem:[%s1229_s1 + $0x88] sm:$0xff]   ;;  %v957_v37 = vld [vmem:[%s1229_s1 + $0x80] sm:$0xff]   ;;  %v963_v50 = vld [vmem:[%s1229_s1 + $0x170] sm:$0xff]  }
   0xd   :  { %864 = vmatpush3.bf16.msra.mxu1 %v937_v11  ;;  %843 = vmatprep.subr.bf16.mxu0 %v938_v12  ;;  %v29_v38 = vld [vmem:[%s1230_s0] sm:$0xff]  ;;  %v962_v52 = vld [vmem:[%s1229_s1 + $0x1b8] sm:$0xff]   ;;  %v964_v54 = vld [vmem:[%s1229_s1 + $0x1f0] sm:$0xff]  }
   0xe   :  { %865 = vmatprep.subr.bf16.mxu1 %v939_v13  ;;  %v159_v39 = vcombine.high %v29_v38, %v29_v38  ;;  %v166_v40 = vrot.slane %v29_v38, %v1102_v35  ;;  %v965_v55 = vld [vmem:[%s1229_s1 + $0x130] sm:$0xff]   ;;  %v967_v57 = vld [vmem:[%s1229_s1 + $0x168] sm:$0xff]   ;;  %v971_v61 = vld [vmem:[%s1229_s1 + $0x160] sm:$0xff]  }
   0xf   :  { %v966_v58 = vld [vmem:[%s1229_s1 + $0x1b0] sm:$0xff]   ;;  %v968_v59 = vld [vmem:[%s1229_s1 + $0x1e8] sm:$0xff]   ;;  %v972_v63 = vld [vmem:[%s1229_s1 + $0x1e0] sm:$0xff]  }
  0x10   :  { %844 = vmatpush3.bf16.msra.mxu0 %v940_v14  ;;  %v174_v43 = vcombine.high %v166_v40, %v166_v40  ;;  %v182_v44 = vrot.slane %v166_v40, %v1102_v35  ;;  %v1122_v45 = vrot.slane %v159_v39, %v1102_v35  ;;  %v969_v60 = vld [vmem:[%s1229_s1 + $0x128] sm:$0xff]   ;;  %v973_v0 = vld [vmem:[%s1229_s1 + $0x120] sm:$0xff]   ;;  %v975_v1 = vld [vmem:[%s1229_s1 + $0x158] sm:$0xff]  }
  0x11   :  { %866 = vmatpush3.bf16.msra.mxu1 %v941_v15  ;;  %845 = vmatprep.subr.bf16.mxu0 %v942_v16  ;;  %v970_v62 = vld [vmem:[%s1229_s1 + $0x1a8] sm:$0xff]   ;;  %v974_v2 = vld [vmem:[%s1229_s1 + $0x1a0] sm:$0xff]   ;;  %v976_v3 = vld [vmem:[%s1229_s1 + $0x1d8] sm:$0xff]  }
  0x12   :  { %867 = vmatprep.subr.bf16.mxu1 %v943_v17  ;;  %v196_v46 = vrot.slane %v174_v43, %v1102_v35  ;;  %v175_v48 = vcombine.high %v1122_v45, %v1122_v45  ;;  %v204_v49 = vcombine.high %v182_v44, %v182_v44  ;;  %v977_v4 = vld [vmem:[%s1229_s1 + $0x118] sm:$0xff]   ;;  %v979_v5 = vld [vmem:[%s1229_s1 + $0x150] sm:$0xff]   ;;  %v983_v9 = vld [vmem:[%s1229_s1 + $0x148] sm:$0xff]   ;;  %v189_v17 = vrot.slane %v1122_v45, %v1102_v35 }
  0x13   :  { %v978_v6 = vld [vmem:[%s1229_s1 + $0x198] sm:$0xff]   ;;  %v980_v7 = vld [vmem:[%s1229_s1 + $0x1d0] sm:$0xff]   ;;  %v984_v11 = vld [vmem:[%s1229_s1 + $0x1c8] sm:$0xff]  }
  0x14   :  { %846 = vmatpush3.bf16.msra.mxu0 %v944_v18  ;;  %632 = vmatprep.mubr.bf16.mxu0 %v196_v46  ;;  %v206_v51 = vcombine.high %v196_v46, %v196_v46  ;;  %v203_v53 = vrot.slane %v175_v48, %v1102_v35  ;;  %v981_v8 = vld [vmem:[%s1229_s1 + $0x110] sm:$0xff]   ;;  %v985_v12 = vld [vmem:[%s1229_s1 + $0x108] sm:$0xff]   ;;  %v987_v13 = vld [vmem:[%s1229_s1 + $0x140] sm:$0xff]  }
  0x15   :  { %868 = vmatpush3.bf16.msra.mxu1 %v945_v19  ;;  %847 = vmatprep.subr.bf16.mxu0 %v946_v20  ;;  %v982_v10 = vld [vmem:[%s1229_s1 + $0x190] sm:$0xff]   ;;  %v986_v14 = vld [vmem:[%s1229_s1 + $0x188] sm:$0xff]   ;;  %v988_v15 = vld [vmem:[%s1229_s1 + $0x1c0] sm:$0xff]   ;;  %v205_v19 = vcombine.high %v189_v17, %v189_v17 }
  0x16   :  { %869 = vmatprep.subr.bf16.mxu1 %v947_v21  ;;  %672 = vmatprep.mubr.bf16.mxu1 %v206_v51  ;;  %v207_v56 = vcombine.high %v203_v53, %v203_v53  ;;  %v989_v16 = vld [vmem:[%s1229_s1 + $0x100] sm:$0xff]  }
  0x17   :  { %v990_v18 = vld [vmem:[%s1229_s1 + $0x180] sm:$0xff]  }
  0x18   :  { %848 = vmatpush3.bf16.msra.mxu0 %v948_v25  ;;  %v772_v20 = vld [vmem:[%s1231_s2] ss:$0 sm:$0xff] }
  0x19   :  { %870 = vmatpush3.bf16.msra.mxu1 %v949_v26  ;;  %849 = vmatprep.subr.bf16.mxu0 %v950_v27  ;;  %27 = vst.msk [vmem:[#allocation2] sm:$0x3] %vm26_vm0, %v772_v20 }
  0x1a   :  { %871 = vmatprep.subr.bf16.mxu1 %v951_v28 }
  0x1c   :  { %850 = vmatpush3.bf16.msra.mxu0 %v952_v31 }
  0x1d   :  { %872 = vmatpush3.bf16.msra.mxu1 %v953_v32  ;;  %851 = vmatprep.subr.bf16.mxu0 %v954_v33 }
  0x1e   :  { %873 = vmatprep.subr.bf16.mxu1 %v955_v34 }
  0x20   :  { %852 = vmatpush3.bf16.msra.mxu0 %v956_v36  ;;  %v28_v40 = vld [vmem:[#allocation2] sm:$0x3] }
  0x21   :  { %874 = vmatpush3.bf16.msra.mxu1 %v957_v37  ;;  %881 = vmatprep.subr.bf16.mxu0 %v959_v41 }
  0x22   :  { %903 = vmatprep.subr.bf16.mxu1 %v960_v42 }
  0x23   :  { %633 = vmatmul.mubr.bf16.vlgmr.msra.gmra.mxu0 %v182_v44 }
  0x24   :  { %882 = vmatpush3.bf16.msra.mxu0 %v961_v47  ;;  %673 = vmatmul.mubr.bf16.vlgmr.msra.gmra.mxu1 %v204_v49 }
  0x25   :  { %883 = vmatprep.subr.bf16.mxu0 %v963_v50  ;;  %904 = vmatpush3.bf16.msra.mxu1 %v962_v52 }
  0x26   :  { %712 = vmatprep.mubr.bf16.mxu0 %v203_v53  ;;  %905 = vmatprep.subr.bf16.mxu1 %v964_v54 }
  0x27   :  { %752 = vmatprep.mubr.bf16.mxu1 %v207_v56 }
  0x28   :  { %884 = vmatpush3.bf16.msra.mxu0 %v965_v55 }
  0x29   :  { %885 = vmatprep.subr.bf16.mxu0 %v967_v57  ;;  %906 = vmatpush3.bf16.msra.mxu1 %v966_v58 }
  0x2a   :  { %907 = vmatprep.subr.bf16.mxu1 %v968_v59 }
  0x2c   :  { %886 = vmatpush3.bf16.msra.mxu0 %v969_v60 }
  0x2d   :  { %887 = vmatprep.subr.bf16.mxu0 %v971_v61  ;;  %908 = vmatpush3.bf16.msra.mxu1 %v970_v62 }
  0x2e   :  { %909 = vmatprep.subr.bf16.mxu1 %v972_v63 }
  0x30   :  { %888 = vmatpush3.bf16.msra.mxu0 %v973_v0 }
  0x31   :  { %889 = vmatprep.subr.bf16.mxu0 %v975_v1  ;;  %910 = vmatpush3.bf16.msra.mxu1 %v974_v2 }
  0x32   :  { %911 = vmatprep.subr.bf16.mxu1 %v976_v3 }
  0x34   :  { %890 = vmatpush3.bf16.msra.mxu0 %v977_v4 }
  0x35   :  { %891 = vmatprep.subr.bf16.mxu0 %v979_v5  ;;  %912 = vmatpush3.bf16.msra.mxu1 %v978_v6 }
  0x36   :  { %913 = vmatprep.subr.bf16.mxu1 %v980_v7 }
  0x38   :  { %892 = vmatpush3.bf16.msra.mxu0 %v981_v8 }
  0x39   :  { %893 = vmatprep.subr.bf16.mxu0 %v983_v9  ;;  %914 = vmatpush3.bf16.msra.mxu1 %v982_v10 }
  0x3a   :  { %915 = vmatprep.subr.bf16.mxu1 %v984_v11 }
  0x3c   :  { %894 = vmatpush3.bf16.msra.mxu0 %v985_v12 }
  0x3d   :  { %895 = vmatprep.subr.bf16.mxu0 %v987_v13  ;;  %916 = vmatpush3.bf16.msra.mxu1 %v986_v14 }
  0x3e   :  { %917 = vmatprep.subr.bf16.mxu1 %v988_v15 }
  0x40   :  { %896 = vmatpush3.bf16.msra.mxu0 %v989_v16 }
  0x41   :  { %918 = vmatpush3.bf16.msra.mxu1 %v990_v18 }
  0x43   :  { %713 = vmatmul.mubr.bf16.vlgmr.msra.gmra.mxu0 %v189_v17 }
  0x44   :  { %753 = vmatmul.mubr.bf16.vlgmr.msra.gmra.mxu1 %v205_v19 }
  0xe3   :  { %v853_v21 = vpop.f32.mrf.mxu0 }
  0xe4   :  { %v875_v22 = vpop.f32.mrf.mxu1 }
  0xe5   :  { %v854_v23 = vpop.f32.mrf.mxu0 }
  0xe6   :  { %v876_v24 = vpop.f32.mrf.mxu1  ;;  %v855_v29 = vadd.f32 %v854_v23, %v853_v21 }
  0xe7   :  { %v856_v25 = vpop.f32.mrf.mxu0  ;;  %v877_v30 = vadd.f32 %v876_v24, %v875_v22 }
  0xe8   :  { %v878_v26 = vpop.f32.mrf.mxu1 }
  0xe9   :  { %v857_v27 = vpop.f32.mrf.mxu0  ;;  %v675_v34 = vadd.f32 %v877_v30, %v855_v29 }
  0xea   :  { %v879_v28 = vpop.f32.mrf.mxu1 }
 0x103   :  { %v897_v31 = vpop.f32.mrf.mxu0 }
 0x104   :  { %v919_v32 = vpop.f32.mrf.mxu1 }
 0x105   :  { %v898_v33 = vpop.f32.mrf.mxu0 }
 0x106   :  { %v899_v35 = vadd.f32 %v898_v33, %v897_v31  ;;  %v920_v36 = vpop.f32.mrf.mxu1 }
 0x107   :  { %v900_v37 = vpop.f32.mrf.mxu0  ;;  %v921_v39 = vadd.f32 %v920_v36, %v919_v32 }
 0x108   :  { %v715_v38 = vadd.f32 %v899_v35, %v675_v34  ;;  %v922_v41 = vpop.f32.mrf.mxu1 }
 0x109   :  { %v901_v42 = vpop.f32.mrf.mxu0 }
 0x10a   :  { %v755_v43 = vadd.f32 %v921_v39, %v715_v38  ;;  %v923_v44 = vpop.f32.mrf.mxu1 }
 0x10c   :  { %v760_v45 = vadd.f32 %v755_v43, %v28_v40 }
 0x10e   :  { %762 = vst.msk [vmem:[#allocation2] sm:$0x3] %vm26_vm0, %v760_v45 }
 0x115   :  { %v766_v46 = vld [vmem:[#allocation2] sm:$0x3] }
 0x116   :  { %767 = vst.msk [vmem:[%s1232_s3] sm:$0x3] %vm26_vm0, %v766_v46 }

// kernel: conv_ae_forward.15
= control target key start
LH: loop header
LB: loop body
LE: loop exit
PB: predicated region body
PF: predicated region fallthrough
CT: control target
= control target key end

     0   :  { %s927_s12 = smov 0   ;;  %s929_s13 = smov 0   ;;  %s1034_s0 = inlined_call_operand.vmem [shape: bf16[2,32], index: 0, kind: input, shape index: {}]   ;;  %s1035_s1 = inlined_call_operand.vmem [shape: bf16[32,1024], index: 1, kind: input, shape index: {}]   ;;  %s1036_s2 = inlined_call_operand.vmem [shape: f32[1,1024], index: 2, kind: input, shape index: {}]   ;;  %s1037_s3 = inlined_call_operand.vmem [shape: bf16[2,1024], index: 3, kind: output, shape index: {}]  }
   0x1   :  { %s931_s14 = smov 0   ;;  %s933_s15 = smov 0  }
   0x2   :  { %s935_s16 = smov 0  }
   0x3 LB: > { %s25_s17 = sadd.s32 1, %s898_s15  ;;  %p67_p1 = scmp.ne.s32.totalorder %s890_s13, %s886_s12  ;;  %s902_s16 = sphi %s935_s16, %s13_s16   ;;  %s898_s15 = sphi %s933_s15, %s1041_s15   ;;  %s894_s14 = sphi %s931_s14, %s1040_s14   ;;  %s890_s13 = sphi %s929_s13, %s1039_s13   ;;  %s886_s12 = sphi %s927_s12, %s1038_s12  }
   0x4   : > { %p27_p0 = scmp.ge.s32.totalorder %s25_s17, 2  ;;  %p68_p2 = scmp.eq.s32.totalorder %s902_s16, 0 }
   0x5   : > { %s60_s19 = sadd.s32 1, %s890_s13  ;;  %p777_p5 = scmp.ge.s32.totalorder %s902_s16, 2 }
   0x6   : > { %s1043_s17 = smov (%p27_p0, %s25_s17), 0  ;;  %p69_p3 = por %p68_p2, %p67_p1 }
   0x7   : > { %s56_s18 = ssub.s32 %s898_s15, %s1043_s17  ;;  %151 = sbr.rel (%p777_p5) target bundleno = 20 (0x14), region = 20 }
   0x8   : > { %p58_p4 = scmp.eq.s32.totalorder %s56_s18, 0 }
   0xa   : > { %s962_s20 = scalar_select %p58_p4, %s890_s13, %s60_s19  }
   0xc   : > { %154 = sbr.rel (!%p69_p3) target bundleno = 20 (0x14), region = 24  ;;  %s156_s21 = sand.u32 (%p69_p3), 1, %s890_s13  }
   0xd   : > { %s800_s22 = sshll.u32 (%p69_p3), %s898_s15, 4  ;;  %s778_s23 = sshll.u32 (%p69_p3), %s156_s21, 6 }
   0xe   : > { %s164_s26 = scalar_lea.vmem (%p69_p3), %s1035_s1, %s800_s22  ;;  %s158_s27 = scalar_lea.vmem (%p69_p3), [#allocation3], %s778_s23 }
   0xf   : > { %v177_v0 = vld [vmem:[%s164_s26] sm:$0xff] (%p69_p3)  ;;  %v179_v1 = vld [vmem:[%s164_s26 + $0x8] sm:$0xff] (%p69_p3) }
  0x10   : > { %v181_v2 = vld [vmem:[%s164_s26 + $0x20] sm:$0xff] (%p69_p3)  ;;  %178 = vst [vmem:[%s158_s27] sm:$0xff] (%p69_p3), %v177_v0  ;;  %180 = vst [vmem:[%s158_s27 + $0x8] sm:$0xff] (%p69_p3), %v179_v1  ;;  %v183_v3 = vld [vmem:[%s164_s26 + $0x28] sm:$0xff] (%p69_p3) }
  0x11   : > { %182 = vst [vmem:[%s158_s27 + $0x10] sm:$0xff] %v181_v2  ;;  %v185_v4 = vld [vmem:[%s164_s26 + $0x40] sm:$0xff]  ;;  %v187_v5 = vld [vmem:[%s164_s26 + $0x48] sm:$0xff]  ;;  %184 = vst [vmem:[%s158_s27 + $0x18] sm:$0xff] %v183_v3 }
  0x12   : > { %186 = vst [vmem:[%s158_s27 + $0x20] sm:$0xff] %v185_v4  ;;  %188 = vst [vmem:[%s158_s27 + $0x28] sm:$0xff] %v187_v5  ;;  %v189_v6 = vld [vmem:[%s164_s26 + $0x60] sm:$0xff]  ;;  %v191_v7 = vld [vmem:[%s164_s26 + $0x68] sm:$0xff] }
  0x13   : > { %190 = vst [vmem:[%s158_s27 + $0x30] sm:$0xff] %v189_v6  ;;  %192 = vst [vmem:[%s158_s27 + $0x38] sm:$0xff] %v191_v7 }
  0x14 PF: > { %p781_p6 = scmp.ge.s32.totalorder %s902_s16, 1  ;;  %p205_p7 = scmp.lt.s32.totalorder %s902_s16, 3 }
  0x16   : > { %p206_p8 = pnand %p781_p6, %p205_p7 }
  0x17   : > { %s212_s28 = sand.u32 (!%p206_p8), 1, %s886_s12   ;;  %s783_s6 = sshll.u32 (!%p206_p8), %s894_s14, 2 }
  0x18   : > { %209 = sbr.rel (%p206_p8) target bundleno = 333 (0x14d), region = 51  ;;  %s782_s29 = sshll.u32 (!%p206_p8), %s212_s28, 6 }
  0x19   : > { %s214_s30 = scalar_lea.vmem (!%p206_p8), [#allocation3], %s782_s29  ;;  %p247_p9 = scmp.lt.s32.totalorder (!%p206_p8), %s783_s6, 7 }
  0x1d   : > { %v904_v8 = vmov 0   ;;  %v844_v9 = vld [vmem:[%s214_s30 + $0x24] ss:$16 sps:$4 sm:$0xff]   ;;  %v846_v10 = vld [vmem:[%s214_s30 + $0x2c] ss:$16 sps:$4 sm:$0xff]   ;;  %vm348_vm0 = vcmask 261120   ;;  %v263_v18 = vlaneseq }
  0x1e   : > { %384 = vmatprep.mubr.bf16.mxu0 %v904_v8  ;;  %425 = vmatprep.mubr.bf16.mxu1 %v904_v8  ;;  %v848_v11 = vld [vmem:[%s214_s30 + $0x20] ss:$16 sps:$4 sm:$0xff]   ;;  %v849_v12 = vld [vmem:[%s214_s30 + $0x28] ss:$16 sps:$4 sm:$0xff]   ;;  %v850_v13 = vld [vmem:[%s214_s30 + $0x4] ss:$16 sps:$4 sm:$0xff]  }
  0x1f   : > { %364 = vmatprep.subr.bf16.mxu0 %v844_v9  ;;  %405 = vmatprep.subr.bf16.mxu1 %v846_v10  ;;  %v852_v14 = vld [vmem:[%s214_s30 + $0xc] ss:$16 sps:$4 sm:$0xff]   ;;  %v854_v15 = vld [vmem:[%s214_s30] ss:$16 sps:$4 sm:$0xff]   ;;  %v855_v16 = vld [vmem:[%s214_s30 + $0x8] ss:$16 sps:$4 sm:$0xff]  }
  0x20   : > { %365 = vmatpush1.bf16.msra.mxu0 %v848_v11  ;;  %406 = vmatpush1.bf16.msra.mxu1 %v849_v12  ;;  %v299_v17 = vld [vmem:[%s1034_s0] sm:$0x1]  ;;  %s1045_s6 = smov (!%p247_p9, %s783_s6), 7  ;;  %v979_v19 = vshrl.u32 %v263_v18, 7  ;;  %v905_v20 = vmov 1983009808  }
  0x21   : > { %366 = vmatprep.subr.bf16.mxu0 %v850_v13  ;;  %407 = vmatprep.subr.bf16.mxu1 %v852_v14  ;;  %s249_s9 = scalar_lea.vmem %s1036_s2, %s1045_s6  ;;  %v282_v21 = vunpack.c.l.s4 %v905_v20  ;;  %vm484_vm1 = vcmask 1041408   ;;  %s254_s12 = scalar_lea.vmem %s1037_s3, %s1045_s6 }
  0x22   : > { %v265_v22 = vsub.s32 0, %v979_v19  ;;  %v269_v23 = vsub.s32 1, %v979_v19  ;;  %v273_v24 = vsub.s32 2, %v979_v19  ;;  %v277_v25 = vsub.s32 3, %v979_v19  ;;  %v261_v26 = vld [vmem:[%s249_s9] sm:$0xf] }
  0x23   : > { %v283_v27 = vunpack.c.0.s8 %v282_v21 }
  0x24   : > { %367 = vmatpush1.bf16.msra.mxu0 %v854_v15  ;;  %408 = vmatpush1.bf16.msra.mxu1 %v855_v16  ;;  %v266_v28 = vrot.slane %v261_v26, %v265_v22  ;;  %v270_v29 = vrot.slane %v261_v26, %v269_v23  ;;  %v274_v30 = vrot.slane %v261_v26, %v273_v24 }
  0x25   : > { %v278_v31 = vrot.slane %v261_v26, %v277_v25  ;;  %v990_v32 = vsub.s32 %v283_v27, %v979_v19 }
  0x26   : > { %v279_v33 = vcombine.low %v266_v28, %v270_v29 }
  0x27   : > { %793 = vmatmul.mubr.msk.bf16.vlgmr.msra.gmra.mxu0 %vm348_vm0, %v299_v17  ;;  %794 = vmatmul.mubr.msk.bf16.vlgmr.msra.gmra.mxu1 %vm348_vm0, %v299_v17  ;;  %v280_v34 = vcombine.low %v274_v30, %v278_v31 }
  0x28   : > { %v287_v37 = vrot.slane %v279_v33, %v990_v32 }
  0x29   : > { %v294_v38 = vrot.slane %v280_v34, %v990_v32 }
  0x2b   : > { %v295_v46 = vcombine.low %v287_v37, %v294_v38 }
  0xe7   : > { %v386_v35 = vpop.f32.mrf.mxu0  ;;  %v427_v36 = vpop.f32.mrf.mxu1 }
  0xe9   : > { %v388_v39 = vpop.f32.mrf.mxu0  ;;  %v429_v40 = vpop.f32.mrf.mxu1 }
  0xea   : > { %v438_v41 = vcombine.low %v386_v35, %v388_v39  ;;  %v439_v42 = vcombine.low %v427_v36, %v429_v40 }
  0xeb   : > { %v390_v43 = vpop.f32.mrf.mxu0  ;;  %v431_v44 = vpop.f32.mrf.mxu1 }
  0xec   : > { %v446_v45 = vrot.slane %v438_v41, %v990_v32  ;;  %v453_v47 = vrot.slane %v439_v42, %v990_v32 }
  0xed   : > { %v391_v48 = vpop.f32.mrf.mxu0  ;;  %v432_v49 = vpop.f32.mrf.mxu1 }
  0xee   : > { %v454_v50 = vcombine.low %v446_v45, %v453_v47 }
  0xf0   : > { %v456_v51 = vadd.f32 %v454_v50, %v295_v46 }
  0xf2   : > { %v463_v52 = vcombine.high %v456_v51, %v456_v51  ;;  %v470_v53 = vrot.slane %v456_v51, %v990_v32 }
  0xf4   : > { %v477_v54 = vrot.slane %v463_v52, %v990_v32  ;;  %v478_v55 = vcombine.high %v470_v53, %v470_v53  ;;  %v485_v56 = vsel %vm484_vm1, %v470_v53, 0.0 }
  0xf5   : > { %v486_v57 = vrot.slane %v485_v56, 4 }
  0xf6   : > { %v479_v58 = vcombine.high %v477_v54, %v477_v54  ;;  %v492_v59 = vsel %vm484_vm1, %v478_v55, 0.0  ;;  %v499_v60 = vsel %vm484_vm1, %v477_v54, 0.0 }
  0xf7   : > { %v487_v61 = vadd.f32 %v486_v57, %v485_v56  ;;  %v493_v62 = vrot.slane %v492_v59, 4  ;;  %v500_v63 = vrot.slane %v499_v60, 4 }
  0xf8   : > { %v506_v0 = vsel %vm484_vm1, %v479_v58, 0.0 }
  0xf9   : > { %v488_v1 = vrot.slane %v487_v61, 2  ;;  %v494_v2 = vadd.f32 %v493_v62, %v492_v59  ;;  %v501_v3 = vadd.f32 %v500_v63, %v499_v60  ;;  %v507_v4 = vrot.slane %v506_v0, 4 }
  0xfb   : > { %v489_v5 = vadd.f32 %v488_v1, %v487_v61  ;;  %v495_v6 = vrot.slane %v494_v2, 2  ;;  %v502_v7 = vrot.slane %v501_v3, 2  ;;  %v508_v8 = vadd.f32 %v507_v4, %v506_v0 }
  0xfd   : > { %v490_v9 = vrot.slane %v489_v5, 1  ;;  %v496_v10 = vadd.f32 %v495_v6, %v494_v2  ;;  %v503_v11 = vadd.f32 %v502_v7, %v501_v3  ;;  %v509_v12 = vrot.slane %v508_v8, 2 }
  0xff   : > { %v491_v13 = vadd.f32 %v490_v9, %v489_v5  ;;  %v497_v14 = vrot.slane %v496_v10, 1  ;;  %v504_v15 = vrot.slane %v503_v11, 1  ;;  %v510_v16 = vadd.f32 %v509_v12, %v508_v8 }
 0x101   : > { %v498_v17 = vadd.f32 %v497_v14, %v496_v10  ;;  %v505_v18 = vadd.f32 %v504_v15, %v503_v11  ;;  %v511_v20 = vrot.slane %v510_v16, 1  ;;  %v514_v22 = vmul.f32 0.5, %v491_v13 }
 0x103   : > { %v512_v21 = vadd.f32 %v511_v20, %v510_v16  ;;  %v515_v23 = vmul.f32 0.5, %v498_v17  ;;  %v516_v24 = vmul.f32 0.5, %v505_v18 }
 0x105   : > { %v517_v25 = vmul.f32 0.5, %v512_v21  ;;  %v522_v26 = vcombine.low %v514_v22, %v515_v23  ;;  %v906_v22 = vmov 1966171168  }
 0x106   : > { %v661_v23 = vunpack.c.l.s4 %v906_v22 }
 0x107   : > { %v523_v27 = vcombine.low %v516_v24, %v517_v25  ;;  %v530_v28 = vrot.slane %v522_v26, %v990_v32 }
 0x109   : > { %v537_v29 = vrot.slane %v523_v27, %v990_v32  ;;  %v662_v27 = vunpack.c.0.s8 %v661_v23 }
 0x10b   : > { %v538_v30 = vcombine.low %v530_v28, %v537_v29 }
 0x10d   : > { %v540_v31 = vsub.f32 %v456_v51, %v538_v30 }
 0x10f   : > { %v541_v33 = vmul.f32 %v540_v31, %v540_v31 }
 0x111   : > { %v543_v34 = vcombine.high %v541_v33, %v541_v33  ;;  %v550_v35 = vrot.slane %v541_v33, %v990_v32 }
 0x113   : > { %v557_v36 = vrot.slane %v543_v34, %v990_v32  ;;  %v558_v37 = vcombine.high %v550_v35, %v550_v35  ;;  %v564_v38 = vsel %vm484_vm1, %v550_v35, 0.0  ;;  %v665_v34 = vsub.s32 %v662_v27, %v979_v19 }
 0x114   : > { %v565_v39 = vrot.slane %v564_v38, 4 }
 0x115   : > { %v559_v40 = vcombine.high %v557_v36, %v557_v36  ;;  %v571_v41 = vsel %vm484_vm1, %v558_v37, 0.0  ;;  %v578_v42 = vsel %vm484_vm1, %v557_v36, 0.0 }
 0x116   : > { %v566_v43 = vadd.f32 %v565_v39, %v564_v38  ;;  %v572_v44 = vrot.slane %v571_v41, 4  ;;  %v579_v45 = vrot.slane %v578_v42, 4 }
 0x117   : > { %v585_v46 = vsel %vm484_vm1, %v559_v40, 0.0 }
 0x118   : > { %v567_v47 = vrot.slane %v566_v43, 2  ;;  %v573_v48 = vadd.f32 %v572_v44, %v571_v41  ;;  %v580_v49 = vadd.f32 %v579_v45, %v578_v42  ;;  %v586_v50 = vrot.slane %v585_v46, 4 }
 0x11a   : > { %v568_v51 = vadd.f32 %v567_v47, %v566_v43  ;;  %v574_v52 = vrot.slane %v573_v48, 2  ;;  %v581_v53 = vrot.slane %v580_v49, 2  ;;  %v587_v54 = vadd.f32 %v586_v50, %v585_v46 }
 0x11c   : > { %v569_v55 = vrot.slane %v568_v51, 1  ;;  %v575_v56 = vadd.f32 %v574_v52, %v573_v48  ;;  %v582_v57 = vadd.f32 %v581_v53, %v580_v49  ;;  %v588_v58 = vrot.slane %v587_v54, 2 }
 0x11e   : > { %v570_v59 = vadd.f32 %v569_v55, %v568_v51  ;;  %v576_v60 = vrot.slane %v575_v56, 1  ;;  %v583_v61 = vrot.slane %v582_v57, 1  ;;  %v589_v62 = vadd.f32 %v588_v58, %v587_v54 }
 0x120   : > { %v577_v63 = vadd.f32 %v576_v60, %v575_v56  ;;  %v584_v0 = vadd.f32 %v583_v61, %v582_v57  ;;  %v590_v1 = vrot.slane %v589_v62, 1  ;;  %v592_v2 = vmul.f32 0.5, %v570_v59 }
 0x122   : > { %v591_v3 = vadd.f32 %v590_v1, %v589_v62  ;;  %v593_v4 = vmul.f32 0.5, %v577_v63  ;;  %v594_v5 = vmul.f32 0.5, %v584_v0  ;;  %v596_v6 = vadd.f32 1e-05, %v592_v2 }
 0x124   : > { %v595_v7 = vmul.f32 0.5, %v591_v3  ;;  %v597_v8 = vadd.f32 1e-05, %v593_v4  ;;  %v598_v9 = vadd.f32 1e-05, %v594_v5  ;;  %856 = vrsqrt.f32 %v596_v6 }
 0x126   : > { %v599_v10 = vadd.f32 1e-05, %v595_v7  ;;  %858 = vrsqrt.f32 %v597_v8 }
 0x127   : > { %860 = vrsqrt.f32 %v598_v9 }
 0x128   : > { %862 = vrsqrt.f32 %v599_v10 }
 0x131   : > { %v857_v11 = vpop.eup %856 }
 0x133   : > { %v859_v12 = vpop.eup %858 }
 0x134   : > { %v861_v13 = vpop.eup %860  ;;  %v608_v14 = vcombine.low %v857_v11, %v859_v12 }
 0x135   : > { %v863_v15 = vpop.eup %862 }
 0x136   : > { %v609_v16 = vcombine.low %v861_v13, %v863_v15  ;;  %v616_v17 = vrot.slane %v608_v14, %v990_v32 }
 0x138   : > { %v623_v18 = vrot.slane %v609_v16, %v990_v32 }
 0x13a   : > { %v624_v20 = vcombine.low %v616_v17, %v623_v18 }
 0x13c   : > { %v626_v21 = vmul.f32 %v624_v20, %v540_v31 }
 0x13e   : > { %v627_v24 = vmax.f32 %v626_v21, 0.0 }
 0x140   : > { %v629_v25 = vcombine.high %v627_v24, %v627_v24  ;;  %v636_v26 = vrot.slane %v627_v24, %v990_v32 }
 0x142   : > { %v643_v28 = vrot.slane %v629_v25, %v990_v32  ;;  %v644_v29 = vcombine.high %v636_v26, %v636_v26 }
 0x144   : > { %v645_v30 = vcombine.high %v643_v28, %v643_v28  ;;  %v795_v33 = vpack.c.bf16 %v644_v29, %v636_v26 }
 0x146   : > { %v796_v35 = vpack.c.bf16 %v645_v30, %v643_v28  ;;  %v666_v36 = vrot.slane %v795_v33, %v665_v34 }
 0x148   : > { %v673_v37 = vrot.slane %v796_v35, %v665_v34 }
 0x14a   : > { %v674_v31 = vcombine.low %v666_v36, %v673_v37 }
 0x14c   : > { %797 = vst.sshfl [vmem:[%s254_s12] sm:$0x55 pattern:$0x73625140] %v674_v31 }
 0x14d PF: > { %s13_s16 = sadd.s32 1, %s902_s16   ;;  %s1038_s12 = smov %s890_s13 }
 0x14e   : > { %p10_p10 = scmp.ge.s32.totalorder %s13_s16, 4   ;;  %s1039_s13 = smov %s962_s20 }
 0x14f   : > { %s1040_s14 = smov %s898_s15  ;;  %s1041_s15 = smov %s1043_s17 }
 0x150   :  { %12 = sbr.rel (!%p10_p10) target bundleno = 3 (0x3), region = 104 }

// kernel: conv_ae_forward.13
= control target key start
LH: loop header
LB: loop body
LE: loop exit
PB: predicated region body
PF: predicated region fallthrough
CT: control target
= control target key end

     0   :  { %s4121_s0 = inlined_call_operand.vmem [shape: bf16[2,2048], index: 0, kind: input, shape index: {}]   ;;  %s4122_s1 = inlined_call_operand.hbm [shape: bf16[2048,1024], index: 1, kind: input, shape index: {}]   ;;  %s4123_s2 = inlined_call_operand.hbm [shape: f32[1,1024], index: 2, kind: input, shape index: {}]   ;;  %s4124_s3 = inlined_call_operand.vmem [shape: bf16[2,1024], index: 3, kind: output, shape index: {}]  }
   0x1   :  { %4127 = sst [smem:[#allocation11_spill]] %s4122_s1 }
   0x2   :  { %8 = vsyncpa [#allocation4], 0 }
   0x3   :  { %10 = vsyncpa [#allocation4 + $0x1], 0 }
   0x4   :  { %11 = vsyncpa [#allocation6], 0 }
   0x5   :  { %13 = vsyncpa [#allocation6 + $0x1], 0  ;;  %s3553_s12 = smov 0   ;;  %s3555_s13 = smov 0  }
   0x6   :  { %s3557_s14 = smov 0   ;;  %s3559_s15 = smov 0  }
   0x7   :  { %s3561_s16 = smov 0   ;;  %s3563_s17 = smov 0  }
   0x8   :  { %s3565_s18 = smov 0   ;;  %s3567_s19 = smov 0  }
   0x9   :  { %s3569_s20 = smov 0   ;;  %s3571_s21 = smov 0  }
   0xa   :  { %s3573_s22 = smov 0  }
   0xb LB: > { %s28_s23 = sadd.s32 1, %s3515_s20  ;;  %p73_p1 = scmp.ne.s32.totalorder %s3503_s17, %s3499_s16  ;;  %s3523_s22 = sphi %s3573_s22, %s19_s22   ;;  %s3519_s21 = sphi %s3571_s21, %s4152_s21   ;;  %s3515_s20 = sphi %s3569_s20, %s4151_s20   ;;  %s3511_s19 = sphi %s3567_s19, %s4150_s19   ;;  %s3507_s18 = sphi %s3565_s18, %s4149_s18   ;;  %s3503_s17 = sphi %s3563_s17, %s4148_s17   ;;  %s3499_s16 = sphi %s3561_s16, %s4147_s16   ;;  %s3495_s15 = sphi %s3559_s15, %s4146_s15   ;;  %s3491_s14 = sphi %s3557_s14, %s4145_s14   ;;  %s3487_s13 = sphi %s3555_s13, %s4144_s13   ;;  %s3483_s12 = sphi %s3553_s12, %s4143_s12  }
   0xc   : > { %p3610_p0 = scmp.ge.s32.totalorder %s28_s23, 2  ;;  %p74_p2 = scmp.eq.s32.totalorder %s3523_s22, 0 }
   0xd   : > { %p2884_p4 = scmp.lt.s32.totalorder %s3523_s22, 4  ;;  %s163_s27 = sand.u32 1, %s3503_s17  }
   0xe   : > { %s4154_s23 = smov (%p3610_p0, %s28_s23), 0  ;;  %p75_p3 = por %p74_p2, %p73_p1 }
   0xf   : > { %4129 = sst [smem:[#allocation9_spill]] %s4154_s23  ;;  %s2595_s28 = sshll.u32 %s163_s27, 11 }
  0x10   : > { %s2597_s29 = sshll.u32 %s3519_s21, 2  ;;  %s2871_s30 = sshll.u32 %s3515_s20, 10 }
  0x11   : > { %s167_s4 = scalar_lea.vmem [#allocation3], %s2595_s28  ;;  %s174_s6 = sadd.s32 %s2871_s30, %s2597_s29 }
  0x12   : > { %s177_s5 = sshll.u32 %s167_s4, 4  ;;  %s2599_s7 = sshll.u32 %s174_s6, 6  ;;  %s178_s5 = int_to_ptr.vmem [resolvable:$true] %s177_s5 }
  0x13   : > { %p3631_p5 = pnand %p2884_p4, %p75_p3  ;;  %s4131_s1 = sld [smem:[#allocation11_spill]] }
  0x14   : > { %p2603_p6 = scmp.ge.s32.totalorder %s3523_s22, 1  ;;  %s164_s24 = scalar_lea.sflag [#allocation4], %s163_s27 }
  0x15   : > { %p3375_p7 = pneg %p3631_p5  ;;  %s3386_s26 = scalar_lea.vmem %s178_s5, 32768 }
  0x16   : > { %p3387_p8 = scmp.ne.s32.totalorder %s178_s5, %s3386_s26  ;;  %s3525_s28 = smov [#allocation3]  }
  0x17   : > { %s3391_s29 = sshll.u32 %s3525_s28, 4  ;;  %s3392_s29 = int_to_ptr.vmem [resolvable:$false] %s3391_s29 }
  0x18   : > { %p3389_p9 = pnand %p3387_p8, %p3375_p7  ;;  %s3393_s30 = scalar_lea.vmem %s3392_s29, 65536 }
  0x19   : > { %s176_s11 = scalar_lea.hbm %s4131_s1, %s2599_s7  ;;  %p3394_p11 = scmp.lt.s32.totalorder %s178_s5, %s3392_s29 }
  0x1a   : > { %p3390_p10 = pneg %p3389_p9  ;;  %p3395_p12 = scmp.lt.s32.totalorder %s3393_s30, %s3386_s26 }
  0x1c   : > { %p3396_p13 = por %p3395_p12, %p3394_p11 }
  0x1e   : > { %p3397_p1 = pnand %p3396_p13, %p3390_p10 }
  0x20   : > { %3400 = shalt.err (!%p3397_p1)
}
  0x21   : > { %s3526_s4 = smov 512   ;;  %s3527_s27 = smov 256  }
  0x22   : > { %s3528_s26 = smov 16   ;;  %p204_p3 = scmp.lt.s32.totalorder %s3523_s22, 5 }
  0x23   : > { %2880 = dma.hbm_to_vmem [thread:$0]  (!%p3631_p5), %s176_s11, 32768, %s178_s5, %s164_s24, %s3526_s4, %s3527_s27, %s3528_s26  }
  0x24   : > { %p3646_p7 = pnand %p2603_p6, %p204_p3  ;;  %s2591_s7 = sadd.s32 4294967295, %s3523_s22  }
  0x25   : > { %s31_s9 = sadd.s32 1, %s3519_s21  ;;  %p79_p8 = scmp.ne.s32.totalorder %s3499_s16, %s3495_s15 }
  0x26   : > { %s4156_s9 = smov (!%p3610_p0, %s31_s9), %s3519_s21  ;;  %p3657_p9 = scmp.eq.s32.totalorder %s2591_s7, 0 }
  0x27   : > { %p33_p5 = scmp.ge.s32.totalorder %s4156_s9, 2  ;;  %s92_s24 = sadd.s32 1, %s3491_s14 }
  0x28   : > { %p3664_p6 = por %p3657_p9, %p79_p8  ;;  %p99_p10 = scmp.ne.s32.totalorder %s3491_s14, %s3487_s13 }
  0x29   : > { %s4158_s9 = smov (%p33_p5, %s4156_s9), 0  ;;  %p105_p11 = scmp.ne.s32.totalorder %s3487_s13, %s3483_s12 }
  0x2a   : > { %4135 = sst [smem:[#allocation10_spill]] %s4158_s9  ;;  %p3674_p0 = por %p99_p10, %p74_p2 }
  0x2b   : > { %s62_s25 = ssub.s32 %s3519_s21, %s4158_s9  ;;  %s187_s10 = sand.u32 1, %s3491_s14  }
  0x2c   : > { %s4137_s11 = ssub.s32 %s3515_s20, %s4154_s23  ;;  %p90_p12 = scmp.eq.s32.totalorder %s62_s25, 0 }
  0x2d   : > { %s63_s28 = sor.u32 %s62_s25, %s4137_s11  ;;  %p3688_p1 = por %p105_p11, %p3657_p9 }
  0x2e   : > { %p64_p13 = scmp.eq.s32.totalorder %s63_s28, 0  ;;  %s4139_s4 = sadd.s32 1, %s3503_s17 }
  0x2f   : > { %s3693_s30 = scalar_select %p90_p12, %s3491_s14, %s92_s24  }
  0x30   : > { %s3698_s27 = scalar_select %p64_p13, %s3503_s17, %s4139_s4  }
  0x31   : > { %s2600_s26 = sshll.u32 %s187_s10, 2  ;;  %s2872_s7 = sshll.u32 %s3519_s21, 6 }
  0x32   : > { %s197_s9 = scalar_lea.hbm %s4123_s2, %s2872_s7  ;;  %s191_s23 = scalar_lea.vmem [#allocation5], %s2600_s26 }
  0x33   : > { %s199_s11 = sshll.u32 %s191_s23, 4  ;;  %p3708_p2 = pnand %p2884_p4, %p3674_p0  ;;  %s200_s11 = int_to_ptr.vmem [resolvable:$true] %s199_s11 }
  0x34   : > { %s188_s24 = scalar_lea.sflag [#allocation6], %s187_s10  ;;  %s3414_s25 = scalar_lea.vmem %s200_s11, 64 }
  0x35   : > { %p3403_p3 = pneg %p3708_p2  ;;  %p3415_p8 = scmp.ne.s32.totalorder %s200_s11, %s3414_s25 }
  0x36   : > { %s3529_s28 = smov [#allocation5]  }
  0x37   : > { %p3417_p9 = pnand %p3415_p8, %p3403_p3  ;;  %s3419_s1 = sshll.u32 %s3529_s28, 4  ;;  %s3420_s1 = int_to_ptr.vmem [resolvable:$false] %s3419_s1 }
  0x38   : > { %s3421_s4 = scalar_lea.vmem %s3420_s1, 128  ;;  %p3422_p10 = scmp.lt.s32.totalorder %s200_s11, %s3420_s1 }
  0x39   : > { %p3418_p5 = pneg %p3417_p9  ;;  %p3423_p11 = scmp.lt.s32.totalorder %s3421_s4, %s3414_s25 }
  0x3b   : > { %p3424_p12 = por %p3423_p11, %p3422_p10 }
  0x3d   : > { %p3425_p13 = pnand %p3424_p12, %p3418_p5 }
  0x3f   : > { %3428 = shalt.err (!%p3425_p13)
}
  0x40   : > { %2883 = dma.hbm_to_vmem [thread:$0]  (!%p3708_p2), %s197_s9, 64, %s200_s11, %s188_s24  }
  0x41   : > { %208 = sbr.rel (%p3646_p7) target bundleno = 663 (0x297), region = 32  ;;  %s210_s23 = sand.u32 (!%p3646_p7), 1, %s3499_s16  }
  0x42   : > { %s2604_s15 = sshll.u32 (!%p3646_p7), %s210_s23, 11  ;;  %s211_s10 = scalar_lea.sflag (!%p3646_p7), [#allocation4], %s210_s23 }
  0x43   : > { %s3719_s26 = scalar_lea.vmem (!%p3646_p7), [#allocation3], %s2604_s15 }
  0x46   : > { %3474 = dma.done.wait (%p3664_p6), %s211_s10, 32768  }
  0x47   : > { %3476 = vsyncadd (%p3664_p6), %s211_s10, 4294934528  ;;  %s219_s7 = sand.u32 1, %s3487_s13  }
  0x48   : > { %s2605_s12 = sshll.u32 %s219_s7, 2  ;;  %s220_s9 = scalar_lea.sflag [#allocation6], %s219_s7 }
  0x49   : > { %s223_s11 = scalar_lea.vmem [#allocation5], %s2605_s12 }
  0x4a   : > { %3478 = dma.done.wait (%p3688_p1), %s220_s9, 64  }
  0x4b   : > { %3480 = vsyncadd (%p3688_p1), %s220_s9, 4294967232  ;;  %s2606_s6 = sshll.u32 %s3507_s18, 3  ;;  %s2607_s8 = sshll.u32 %s3511_s19, 2 }
  0x4c   : > { %p255_p4 = scmp.lt.s32.totalorder %s2606_s6, 15  ;;  %p263_p7 = scmp.lt.s32.totalorder %s2607_s8, 7 }
  0x4d   : > { %p2608_p6 = scmp.ne.s32.totalorder %s3507_s18, 0 }
  0x4e   : > { %s4160_s6 = smov (!%p255_p4, %s2606_s6), 15  ;;  %s4162_s8 = smov (!%p263_p7, %s2607_s8), 7 }
  0x4f   : > { %s257_s25 = scalar_lea.vmem %s4121_s0, %s4160_s6  ;;  %s265_s29 = scalar_lea.vmem %s4124_s3, %s4162_s8 }
  0x50   : > { %270 = sbr.rel (%p2608_p6) target bundleno = 100 (0x64), region = 44 }
  0x55   : > { %v273_v0 = vlaneseq  ;;  %v3530_v1 = vmov 1983009808   ;;  %v271_v4 = vld [vmem:[%s223_s11] sm:$0xf] }
  0x56   : > { %v292_v2 = vunpack.c.l.s4 %v3530_v1 }
  0x57   : > { %v274_v3 = vshrl.u32 %v273_v0, 7 }
  0x58   : > { %v293_v5 = vunpack.c.0.s8 %v292_v2 }
  0x59   : > { %v275_v6 = vsub.s32 0, %v274_v3  ;;  %v279_v7 = vsub.s32 1, %v274_v3  ;;  %v283_v8 = vsub.s32 2, %v274_v3  ;;  %v287_v9 = vsub.s32 3, %v274_v3 }
  0x5a   : > { %v296_v10 = vsub.s32 %v293_v5, %v274_v3 }
  0x5b   : > { %v276_v11 = vrot.slane %v271_v4, %v275_v6  ;;  %v280_v12 = vrot.slane %v271_v4, %v279_v7  ;;  %v284_v13 = vrot.slane %v271_v4, %v283_v8  ;;  %v288_v14 = vrot.slane %v271_v4, %v287_v9 }
  0x5d   : > { %v289_v15 = vcombine.low %v276_v11, %v280_v12  ;;  %v290_v16 = vcombine.low %v284_v13, %v288_v14 }
  0x5f   : > { %v297_v17 = vrot.slane %v289_v15, %v296_v10  ;;  %v304_v18 = vrot.slane %v290_v16, %v296_v10 }
  0x61   : > { %v305_v19 = vcombine.low %v297_v17, %v304_v18 }
  0x63   : > { %307 = vst [vmem:[#allocation2] sm:$0xff] %v305_v19 }
  0x64 PF: > { %v2979_v20 = vld [vmem:[%s3719_s26 + $0xe4] ss:$16 sps:$4 sm:$0xff]   ;;  %v2983_v22 = vld [vmem:[%s3719_s26 + $0xe0] ss:$16 sps:$4 sm:$0xff]   ;;  %v3531_v56 = vmov 1966171168   ;;  %v571_v58 = vlaneseq }
  0x65   : > { %v2981_v21 = vld [vmem:[%s3719_s26 + $0x2e4] ss:$16 sps:$4 sm:$0xff]   ;;  %1904 = vmatprep.subr.bf16.mxu0 %v2979_v20  ;;  %v2984_v23 = vld [vmem:[%s3719_s26 + $0x2e0] ss:$16 sps:$4 sm:$0xff]   ;;  %v569_v57 = vunpack.c.l.s4 %v3531_v56  ;;  %v309_v8 = vld [vmem:[%s257_s25] sm:$0xff]  ;;  %p2865_p0 = scmp.ne.s32.totalorder %s3507_s18, 1 }
  0x66   : > { %1945 = vmatprep.subr.bf16.mxu1 %v2981_v21  ;;  %v2985_v24 = vld [vmem:[%s3719_s26 + $0xc4] ss:$16 sps:$4 sm:$0xff]   ;;  %1905 = vmatpush1.bf16.msra.mxu0 %v2983_v22  ;;  %v2989_v26 = vld [vmem:[%s3719_s26 + $0xc0] ss:$16 sps:$4 sm:$0xff]   ;;  %v3784_v63 = vshrl.u32 %v571_v58, 7  ;;  %v567_v11 = vcombine.high %v309_v8, %v309_v8 }
  0x67   : > { %1946 = vmatpush1.bf16.msra.mxu1 %v2984_v23  ;;  %v2987_v25 = vld [vmem:[%s3719_s26 + $0x2c4] ss:$16 sps:$4 sm:$0xff]   ;;  %1906 = vmatprep.subr.bf16.mxu0 %v2985_v24  ;;  %v2990_v27 = vld [vmem:[%s3719_s26 + $0x2c0] ss:$16 sps:$4 sm:$0xff]   ;;  %v570_v62 = vunpack.c.0.s8 %v569_v57 }
  0x68   : > { %1947 = vmatprep.subr.bf16.mxu1 %v2987_v25  ;;  %v2991_v28 = vld [vmem:[%s3719_s26 + $0xa4] ss:$16 sps:$4 sm:$0xff]   ;;  %v2995_v30 = vld [vmem:[%s3719_s26 + $0xa0] ss:$16 sps:$4 sm:$0xff]  }
  0x69   : > { %v2993_v29 = vld [vmem:[%s3719_s26 + $0x2a4] ss:$16 sps:$4 sm:$0xff]   ;;  %v2996_v31 = vld [vmem:[%s3719_s26 + $0x2a0] ss:$16 sps:$4 sm:$0xff]   ;;  %v3792_v5 = vsub.s32 %v570_v62, %v3784_v63 }
  0x6a   : > { %1907 = vmatpush1.bf16.msra.mxu0 %v2989_v26  ;;  %v2997_v32 = vld [vmem:[%s3719_s26 + $0x84] ss:$16 sps:$4 sm:$0xff]   ;;  %v3001_v34 = vld [vmem:[%s3719_s26 + $0x80] ss:$16 sps:$4 sm:$0xff]  }
  0x6b   : > { %1948 = vmatpush1.bf16.msra.mxu1 %v2990_v27  ;;  %1908 = vmatprep.subr.bf16.mxu0 %v2991_v28  ;;  %v2999_v33 = vld [vmem:[%s3719_s26 + $0x284] ss:$16 sps:$4 sm:$0xff]   ;;  %v3002_v35 = vld [vmem:[%s3719_s26 + $0x280] ss:$16 sps:$4 sm:$0xff]   ;;  %v574_v10 = vrot.slane %v309_v8, %v3792_v5  ;;  %v581_v16 = vrot.slane %v567_v11, %v3792_v5 }
  0x6c   : > { %1949 = vmatprep.subr.bf16.mxu1 %v2993_v29  ;;  %v3003_v36 = vld [vmem:[%s3719_s26 + $0x64] ss:$16 sps:$4 sm:$0xff]   ;;  %v3007_v38 = vld [vmem:[%s3719_s26 + $0x60] ss:$16 sps:$4 sm:$0xff]  }
  0x6d   : > { %v3005_v37 = vld [vmem:[%s3719_s26 + $0x264] ss:$16 sps:$4 sm:$0xff]   ;;  %v3008_v39 = vld [vmem:[%s3719_s26 + $0x260] ss:$16 sps:$4 sm:$0xff]   ;;  %v582_v15 = vcombine.high %v574_v10, %v574_v10  ;;  %v3812_v19 = vrot.slane %v581_v16, %v3792_v5 }
  0x6e   : > { %1909 = vmatpush1.bf16.msra.mxu0 %v2995_v30  ;;  %v3009_v40 = vld [vmem:[%s3719_s26 + $0x44] ss:$16 sps:$4 sm:$0xff]   ;;  %v3013_v42 = vld [vmem:[%s3719_s26 + $0x40] ss:$16 sps:$4 sm:$0xff]  }
  0x6f   : > { %1950 = vmatpush1.bf16.msra.mxu1 %v2996_v31  ;;  %1910 = vmatprep.subr.bf16.mxu0 %v2997_v32  ;;  %v3011_v41 = vld [vmem:[%s3719_s26 + $0x244] ss:$16 sps:$4 sm:$0xff]   ;;  %v3014_v43 = vld [vmem:[%s3719_s26 + $0x240] ss:$16 sps:$4 sm:$0xff]   ;;  %v3809_v18 = vrot.slane %v582_v15, %v3792_v5  ;;  %v583_v32 = vcombine.high %v581_v16, %v581_v16 }
  0x70   : > { %1951 = vmatprep.subr.bf16.mxu1 %v2999_v33  ;;  %v3015_v44 = vld [vmem:[%s3719_s26 + $0x24] ss:$16 sps:$4 sm:$0xff]   ;;  %v3019_v46 = vld [vmem:[%s3719_s26 + $0x20] ss:$16 sps:$4 sm:$0xff]  }
  0x71   : > { %v3017_v45 = vld [vmem:[%s3719_s26 + $0x224] ss:$16 sps:$4 sm:$0xff]   ;;  %v3020_v47 = vld [vmem:[%s3719_s26 + $0x220] ss:$16 sps:$4 sm:$0xff]   ;;  %v3819_v23 = vcombine.high %v3809_v18, %v3809_v18  ;;  %1936 = vmatprep.mubr.bf16.mxu0 %v3809_v18 }
  0x72   : > { %1911 = vmatpush1.bf16.msra.mxu0 %v3001_v34  ;;  %v3021_v48 = vld [vmem:[%s3719_s26 + $0x4] ss:$16 sps:$4 sm:$0xff]   ;;  %v3025_v50 = vld [vmem:[%s3719_s26] ss:$16 sps:$4 sm:$0xff]   ;;  %v3833_v34 = vrot.slane %v574_v10, %v3792_v5 }
  0x73   : > { %1952 = vmatpush1.bf16.msra.mxu1 %v3002_v35  ;;  %1912 = vmatprep.subr.bf16.mxu0 %v3003_v36  ;;  %v3023_v49 = vld [vmem:[%s3719_s26 + $0x204] ss:$16 sps:$4 sm:$0xff]   ;;  %v3026_v51 = vld [vmem:[%s3719_s26 + $0x200] ss:$16 sps:$4 sm:$0xff]  }
  0x74   : > { %1953 = vmatprep.subr.bf16.mxu1 %v3005_v37  ;;  %v3027_v52 = vld [vmem:[%s3719_s26 + $0x1e4] ss:$16 sps:$4 sm:$0xff]   ;;  %v3031_v54 = vld [vmem:[%s3719_s26 + $0x1e0] ss:$16 sps:$4 sm:$0xff]   ;;  %1977 = vmatprep.mubr.bf16.mxu1 %v3819_v23 }
  0x75   : > { %v3029_v53 = vld [vmem:[%s3719_s26 + $0x3e4] ss:$16 sps:$4 sm:$0xff]   ;;  %v3032_v55 = vld [vmem:[%s3719_s26 + $0x3e0] ss:$16 sps:$4 sm:$0xff]  }
  0x76   : > { %1913 = vmatpush1.bf16.msra.mxu0 %v3007_v38  ;;  %v3033_v59 = vld [vmem:[%s3719_s26 + $0x1c4] ss:$16 sps:$4 sm:$0xff]   ;;  %v3037_v61 = vld [vmem:[%s3719_s26 + $0x1c0] ss:$16 sps:$4 sm:$0xff]   ;;  %v3839_v38 = vrot.slane %v583_v32, %v3792_v5 }
  0x77   : > { %1954 = vmatpush1.bf16.msra.mxu1 %v3008_v39  ;;  %1914 = vmatprep.subr.bf16.mxu0 %v3009_v40  ;;  %v3035_v60 = vld [vmem:[%s3719_s26 + $0x3c4] ss:$16 sps:$4 sm:$0xff]   ;;  %v3038_v0 = vld [vmem:[%s3719_s26 + $0x3c0] ss:$16 sps:$4 sm:$0xff]   ;;  %v3843_v39 = vcombine.high %v3833_v34, %v3833_v34 }
  0x78   : > { %1955 = vmatprep.subr.bf16.mxu1 %v3011_v41  ;;  %v3039_v1 = vld [vmem:[%s3719_s26 + $0x1a4] ss:$16 sps:$4 sm:$0xff]   ;;  %v3043_v3 = vld [vmem:[%s3719_s26 + $0x1a0] ss:$16 sps:$4 sm:$0xff]  }
  0x79   : > { %v3041_v2 = vld [vmem:[%s3719_s26 + $0x3a4] ss:$16 sps:$4 sm:$0xff]   ;;  %v3044_v4 = vld [vmem:[%s3719_s26 + $0x3a0] ss:$16 sps:$4 sm:$0xff]  }
  0x7a   : > { %1915 = vmatpush1.bf16.msra.mxu0 %v3013_v42  ;;  %v3045_v6 = vld [vmem:[%s3719_s26 + $0x184] ss:$16 sps:$4 sm:$0xff]   ;;  %v3049_v9 = vld [vmem:[%s3719_s26 + $0x180] ss:$16 sps:$4 sm:$0xff]  }
  0x7b   : > { %1956 = vmatpush1.bf16.msra.mxu1 %v3014_v43  ;;  %1916 = vmatprep.subr.bf16.mxu0 %v3015_v44  ;;  %v3047_v7 = vld [vmem:[%s3719_s26 + $0x384] ss:$16 sps:$4 sm:$0xff]   ;;  %v3050_v12 = vld [vmem:[%s3719_s26 + $0x380] ss:$16 sps:$4 sm:$0xff]   ;;  %v3851_v44 = vcombine.high %v3839_v38, %v3839_v38 }
  0x7c   : > { %1957 = vmatprep.subr.bf16.mxu1 %v3017_v45  ;;  %v3051_v13 = vld [vmem:[%s3719_s26 + $0x164] ss:$16 sps:$4 sm:$0xff]   ;;  %v3055_v17 = vld [vmem:[%s3719_s26 + $0x160] ss:$16 sps:$4 sm:$0xff]  }
  0x7d   : > { %v3053_v14 = vld [vmem:[%s3719_s26 + $0x364] ss:$16 sps:$4 sm:$0xff]   ;;  %v3056_v20 = vld [vmem:[%s3719_s26 + $0x360] ss:$16 sps:$4 sm:$0xff]  }
  0x7e   : > { %1917 = vmatpush1.bf16.msra.mxu0 %v3019_v46  ;;  %v3057_v21 = vld [vmem:[%s3719_s26 + $0x144] ss:$16 sps:$4 sm:$0xff]   ;;  %v3061_v24 = vld [vmem:[%s3719_s26 + $0x140] ss:$16 sps:$4 sm:$0xff]  }
  0x7f   : > { %1958 = vmatpush1.bf16.msra.mxu1 %v3020_v47  ;;  %1918 = vmatprep.subr.bf16.mxu0 %v3021_v48  ;;  %v3059_v22 = vld [vmem:[%s3719_s26 + $0x344] ss:$16 sps:$4 sm:$0xff]   ;;  %v3062_v25 = vld [vmem:[%s3719_s26 + $0x340] ss:$16 sps:$4 sm:$0xff]  }
  0x80   : > { %1959 = vmatprep.subr.bf16.mxu1 %v3023_v49  ;;  %v3063_v26 = vld [vmem:[%s3719_s26 + $0x124] ss:$16 sps:$4 sm:$0xff]   ;;  %v3067_v28 = vld [vmem:[%s3719_s26 + $0x120] ss:$16 sps:$4 sm:$0xff]  }
  0x81   : > { %v3065_v27 = vld [vmem:[%s3719_s26 + $0x324] ss:$16 sps:$4 sm:$0xff]   ;;  %v3068_v29 = vld [vmem:[%s3719_s26 + $0x320] ss:$16 sps:$4 sm:$0xff]  }
  0x82   : > { %1919 = vmatpush1.bf16.msra.mxu0 %v3025_v50  ;;  %v3069_v30 = vld [vmem:[%s3719_s26 + $0x104] ss:$16 sps:$4 sm:$0xff]   ;;  %v3073_v33 = vld [vmem:[%s3719_s26 + $0x100] ss:$16 sps:$4 sm:$0xff]  }
  0x83   : > { %1960 = vmatpush1.bf16.msra.mxu1 %v3026_v51  ;;  %1920 = vmatprep.subr.bf16.mxu0 %v3027_v52  ;;  %v3071_v31 = vld [vmem:[%s3719_s26 + $0x304] ss:$16 sps:$4 sm:$0xff]   ;;  %v3074_v35 = vld [vmem:[%s3719_s26 + $0x300] ss:$16 sps:$4 sm:$0xff]  }
  0x84   : > { %1961 = vmatprep.subr.bf16.mxu1 %v3029_v53  ;;  %v3077_v36 = vld [vmem:[%s3719_s26 + $0x4e4] ss:$16 sps:$4 sm:$0xff]   ;;  %v3075_v40 = vld [vmem:[%s3719_s26 + $0x4e0] ss:$16 sps:$4 sm:$0xff]  }
  0x85   : > { %v3080_v37 = vld [vmem:[%s3719_s26 + $0x6e4] ss:$16 sps:$4 sm:$0xff]   ;;  %v3078_v41 = vld [vmem:[%s3719_s26 + $0x6e0] ss:$16 sps:$4 sm:$0xff]  }
  0x86   : > { %1921 = vmatpush2.bf16.msra.mxu0 %v3031_v54  ;;  %v3083_v42 = vld [vmem:[%s3719_s26 + $0x4c4] ss:$16 sps:$4 sm:$0xff]   ;;  %v3081_v45 = vld [vmem:[%s3719_s26 + $0x4c0] ss:$16 sps:$4 sm:$0xff]  }
  0x87   : > { %1962 = vmatpush2.bf16.msra.mxu1 %v3032_v55  ;;  %1922 = vmatprep.subr.bf16.mxu0 %v3033_v59  ;;  %v3086_v43 = vld [vmem:[%s3719_s26 + $0x6c4] ss:$16 sps:$4 sm:$0xff]   ;;  %v3084_v46 = vld [vmem:[%s3719_s26 + $0x6c0] ss:$16 sps:$4 sm:$0xff]  }
  0x88   : > { %1963 = vmatprep.subr.bf16.mxu1 %v3035_v60  ;;  %v3089_v47 = vld [vmem:[%s3719_s26 + $0x4a4] ss:$16 sps:$4 sm:$0xff]   ;;  %v3087_v49 = vld [vmem:[%s3719_s26 + $0x4a0] ss:$16 sps:$4 sm:$0xff]  }
  0x89   : > { %v3092_v48 = vld [vmem:[%s3719_s26 + $0x6a4] ss:$16 sps:$4 sm:$0xff]   ;;  %v3090_v50 = vld [vmem:[%s3719_s26 + $0x6a0] ss:$16 sps:$4 sm:$0xff]  }
  0x8a   : > { %1923 = vmatpush2.bf16.msra.mxu0 %v3037_v61  ;;  %v3095_v51 = vld [vmem:[%s3719_s26 + $0x484] ss:$16 sps:$4 sm:$0xff]   ;;  %v3093_v53 = vld [vmem:[%s3719_s26 + $0x480] ss:$16 sps:$4 sm:$0xff]  }
  0x8b   : > { %1964 = vmatpush2.bf16.msra.mxu1 %v3038_v0  ;;  %1924 = vmatprep.subr.bf16.mxu0 %v3039_v1  ;;  %v3098_v52 = vld [vmem:[%s3719_s26 + $0x684] ss:$16 sps:$4 sm:$0xff]   ;;  %v3096_v54 = vld [vmem:[%s3719_s26 + $0x680] ss:$16 sps:$4 sm:$0xff]  }
  0x8c   : > { %1965 = vmatprep.subr.bf16.mxu1 %v3041_v2  ;;  %v3101_v55 = vld [vmem:[%s3719_s26 + $0x464] ss:$16 sps:$4 sm:$0xff]   ;;  %v3099_v57 = vld [vmem:[%s3719_s26 + $0x460] ss:$16 sps:$4 sm:$0xff]  }
  0x8d   : > { %v3104_v56 = vld [vmem:[%s3719_s26 + $0x664] ss:$16 sps:$4 sm:$0xff]   ;;  %v3102_v58 = vld [vmem:[%s3719_s26 + $0x660] ss:$16 sps:$4 sm:$0xff]  }
  0x8e   : > { %1925 = vmatpush2.bf16.msra.mxu0 %v3043_v3  ;;  %v3107_v59 = vld [vmem:[%s3719_s26 + $0x444] ss:$16 sps:$4 sm:$0xff]   ;;  %v3105_v61 = vld [vmem:[%s3719_s26 + $0x440] ss:$16 sps:$4 sm:$0xff]  }
  0x8f   : > { %1966 = vmatpush2.bf16.msra.mxu1 %v3044_v4  ;;  %1926 = vmatprep.subr.bf16.mxu0 %v3045_v6  ;;  %v3110_v60 = vld [vmem:[%s3719_s26 + $0x644] ss:$16 sps:$4 sm:$0xff]   ;;  %v3108_v62 = vld [vmem:[%s3719_s26 + $0x640] ss:$16 sps:$4 sm:$0xff]  }
  0x90   : > { %1967 = vmatprep.subr.bf16.mxu1 %v3047_v7  ;;  %v3113_v0 = vld [vmem:[%s3719_s26 + $0x424] ss:$16 sps:$4 sm:$0xff]   ;;  %v3111_v2 = vld [vmem:[%s3719_s26 + $0x420] ss:$16 sps:$4 sm:$0xff]  }
  0x91   : > { %v3116_v1 = vld [vmem:[%s3719_s26 + $0x624] ss:$16 sps:$4 sm:$0xff]   ;;  %v3114_v3 = vld [vmem:[%s3719_s26 + $0x620] ss:$16 sps:$4 sm:$0xff]  }
  0x92   : > { %1927 = vmatpush2.bf16.msra.mxu0 %v3049_v9  ;;  %v3119_v4 = vld [vmem:[%s3719_s26 + $0x404] ss:$16 sps:$4 sm:$0xff]   ;;  %v3117_v7 = vld [vmem:[%s3719_s26 + $0x400] ss:$16 sps:$4 sm:$0xff]  }
  0x93   : > { %1968 = vmatpush2.bf16.msra.mxu1 %v3050_v12  ;;  %1928 = vmatprep.subr.bf16.mxu0 %v3051_v13  ;;  %v3122_v6 = vld [vmem:[%s3719_s26 + $0x604] ss:$16 sps:$4 sm:$0xff]   ;;  %v3120_v8 = vld [vmem:[%s3719_s26 + $0x600] ss:$16 sps:$4 sm:$0xff]  }
  0x94   : > { %1969 = vmatprep.subr.bf16.mxu1 %v3053_v14  ;;  %v3125_v9 = vld [vmem:[%s3719_s26 + $0x5e4] ss:$16 sps:$4 sm:$0xff]   ;;  %v3123_v11 = vld [vmem:[%s3719_s26 + $0x5e0] ss:$16 sps:$4 sm:$0xff]  }
  0x95   : > { %v3128_v10 = vld [vmem:[%s3719_s26 + $0x7e4] ss:$16 sps:$4 sm:$0xff]   ;;  %v3126_v12 = vld [vmem:[%s3719_s26 + $0x7e0] ss:$16 sps:$4 sm:$0xff]  }
  0x96   : > { %1929 = vmatpush2.bf16.msra.mxu0 %v3055_v17  ;;  %v3131_v13 = vld [vmem:[%s3719_s26 + $0x5c4] ss:$16 sps:$4 sm:$0xff]   ;;  %v3129_v15 = vld [vmem:[%s3719_s26 + $0x5c0] ss:$16 sps:$4 sm:$0xff]  }
  0x97   : > { %1970 = vmatpush2.bf16.msra.mxu1 %v3056_v20  ;;  %1930 = vmatprep.subr.bf16.mxu0 %v3057_v21  ;;  %v3134_v14 = vld [vmem:[%s3719_s26 + $0x7c4] ss:$16 sps:$4 sm:$0xff]   ;;  %v3132_v16 = vld [vmem:[%s3719_s26 + $0x7c0] ss:$16 sps:$4 sm:$0xff]  }
  0x98   : > { %1971 = vmatprep.subr.bf16.mxu1 %v3059_v22  ;;  %v3137_v17 = vld [vmem:[%s3719_s26 + $0x5a4] ss:$16 sps:$4 sm:$0xff]   ;;  %v3135_v21 = vld [vmem:[%s3719_s26 + $0x5a0] ss:$16 sps:$4 sm:$0xff]  }
  0x99   : > { %v3140_v20 = vld [vmem:[%s3719_s26 + $0x7a4] ss:$16 sps:$4 sm:$0xff]   ;;  %v3138_v22 = vld [vmem:[%s3719_s26 + $0x7a0] ss:$16 sps:$4 sm:$0xff]  }
  0x9a   : > { %1931 = vmatpush2.bf16.msra.mxu0 %v3061_v24  ;;  %v3143_v24 = vld [vmem:[%s3719_s26 + $0x584] ss:$16 sps:$4 sm:$0xff]  }
  0x9b   : > { %1972 = vmatpush2.bf16.msra.mxu1 %v3062_v25  ;;  %1932 = vmatprep.subr.bf16.mxu0 %v3063_v26  ;;  %v3146_v25 = vld [vmem:[%s3719_s26 + $0x784] ss:$16 sps:$4 sm:$0xff]   ;;  %v3141_v26 = vld [vmem:[%s3719_s26 + $0x580] ss:$16 sps:$4 sm:$0xff]  }
  0x9c   : > { %1973 = vmatprep.subr.bf16.mxu1 %v3065_v27  ;;  %v3144_v27 = vld [vmem:[%s3719_s26 + $0x780] ss:$16 sps:$4 sm:$0xff]   ;;  %v3155_v32 = vld [vmem:[%s3719_s26 + $0x544] ss:$16 sps:$4 sm:$0xff]  }
  0x9e   : > { %1933 = vmatpush2.bf16.msra.mxu0 %v3067_v28  ;;  %v3149_v28 = vld [vmem:[%s3719_s26 + $0x564] ss:$16 sps:$4 sm:$0xff]  }
  0x9f   : > { %1974 = vmatpush2.bf16.msra.mxu1 %v3068_v29  ;;  %1934 = vmatprep.subr.bf16.mxu0 %v3069_v30  ;;  %v3152_v29 = vld [vmem:[%s3719_s26 + $0x764] ss:$16 sps:$4 sm:$0xff]   ;;  %v3147_v30 = vld [vmem:[%s3719_s26 + $0x560] ss:$16 sps:$4 sm:$0xff]  }
  0xa0   : > { %1975 = vmatprep.subr.bf16.mxu1 %v3071_v31  ;;  %v3150_v31 = vld [vmem:[%s3719_s26 + $0x760] ss:$16 sps:$4 sm:$0xff]  }
  0xa2   : > { %1935 = vmatpush2.bf16.msra.mxu0 %v3073_v33  ;;  %v3158_v33 = vld [vmem:[%s3719_s26 + $0x744] ss:$16 sps:$4 sm:$0xff]  }
  0xa3   : > { %1976 = vmatpush2.bf16.msra.mxu1 %v3074_v35  ;;  %1986 = vmatprep.subr.bf16.mxu0 %v3077_v36  ;;  %v3153_v35 = vld [vmem:[%s3719_s26 + $0x540] ss:$16 sps:$4 sm:$0xff]  }
  0xa4   : > { %2027 = vmatprep.subr.bf16.mxu1 %v3080_v37  ;;  %v3156_v36 = vld [vmem:[%s3719_s26 + $0x740] ss:$16 sps:$4 sm:$0xff]   ;;  %v3161_v37 = vld [vmem:[%s3719_s26 + $0x524] ss:$16 sps:$4 sm:$0xff]  }
  0xa5   : > { %1937 = vmatmul.mubr.bf16.vlgmr.msra.gmra.mxu0 %v3833_v34 }
  0xa6   : > { %1978 = vmatmul.mubr.bf16.vlgmr.msra.gmra.mxu1 %v3843_v39  ;;  %1987 = vmatpush1.bf16.msra.mxu0 %v3075_v40  ;;  %v3164_v40 = vld [vmem:[%s3719_s26 + $0x724] ss:$16 sps:$4 sm:$0xff]  }
  0xa7   : > { %2028 = vmatpush1.bf16.msra.mxu1 %v3078_v41  ;;  %1988 = vmatprep.subr.bf16.mxu0 %v3083_v42  ;;  %v3159_v41 = vld [vmem:[%s3719_s26 + $0x520] ss:$16 sps:$4 sm:$0xff]  }
  0xa8   : > { %2029 = vmatprep.subr.bf16.mxu1 %v3086_v43  ;;  %2018 = vmatprep.mubr.bf16.mxu0 %v3839_v38  ;;  %v3162_v42 = vld [vmem:[%s3719_s26 + $0x720] ss:$16 sps:$4 sm:$0xff]   ;;  %v3167_v43 = vld [vmem:[%s3719_s26 + $0x504] ss:$16 sps:$4 sm:$0xff]  }
  0xa9   : > { %2059 = vmatprep.mubr.bf16.mxu1 %v3851_v44 }
  0xaa   : > { %1989 = vmatpush1.bf16.msra.mxu0 %v3081_v45  ;;  %v3170_v45 = vld [vmem:[%s3719_s26 + $0x704] ss:$16 sps:$4 sm:$0xff]  }
  0xab   : > { %2030 = vmatpush1.bf16.msra.mxu1 %v3084_v46  ;;  %1990 = vmatprep.subr.bf16.mxu0 %v3089_v47  ;;  %v3165_v46 = vld [vmem:[%s3719_s26 + $0x500] ss:$16 sps:$4 sm:$0xff]  }
  0xac   : > { %2031 = vmatprep.subr.bf16.mxu1 %v3092_v48  ;;  %v3168_v47 = vld [vmem:[%s3719_s26 + $0x700] ss:$16 sps:$4 sm:$0xff]   ;;  %v3174_v48 = vld [vmem:[%s3719_s26 + $0xec] ss:$16 sps:$4 sm:$0xff]  }
  0xae   : > { %1991 = vmatpush1.bf16.msra.mxu0 %v3087_v49  ;;  %v3177_v49 = vld [vmem:[%s3719_s26 + $0x2ec] ss:$16 sps:$4 sm:$0xff]  }
  0xaf   : > { %2032 = vmatpush1.bf16.msra.mxu1 %v3090_v50  ;;  %1992 = vmatprep.subr.bf16.mxu0 %v3095_v51  ;;  %v3919_v50 = vcombine.high %v3812_v19, %v3812_v19  ;;  %v3172_v51 = vld [vmem:[%s3719_s26 + $0xe8] ss:$16 sps:$4 sm:$0xff]  }
  0xb0   : > { %2033 = vmatprep.subr.bf16.mxu1 %v3098_v52  ;;  %v3175_v52 = vld [vmem:[%s3719_s26 + $0x2e8] ss:$16 sps:$4 sm:$0xff]  }
  0xb2   : > { %1993 = vmatpush1.bf16.msra.mxu0 %v3093_v53  ;;  %v3180_v53 = vld [vmem:[%s3719_s26 + $0xcc] ss:$16 sps:$4 sm:$0xff]  }
  0xb3   : > { %2034 = vmatpush1.bf16.msra.mxu1 %v3096_v54  ;;  %1994 = vmatprep.subr.bf16.mxu0 %v3101_v55  ;;  %v3183_v54 = vld [vmem:[%s3719_s26 + $0x2cc] ss:$16 sps:$4 sm:$0xff]   ;;  %v3178_v55 = vld [vmem:[%s3719_s26 + $0xc8] ss:$16 sps:$4 sm:$0xff]  }
  0xb4   : > { %2035 = vmatprep.subr.bf16.mxu1 %v3104_v56  ;;  %v3181_v56 = vld [vmem:[%s3719_s26 + $0x2c8] ss:$16 sps:$4 sm:$0xff]  }
  0xb6   : > { %1995 = vmatpush1.bf16.msra.mxu0 %v3099_v57  ;;  %v3186_v57 = vld [vmem:[%s3719_s26 + $0xac] ss:$16 sps:$4 sm:$0xff]  }
  0xb7   : > { %2036 = vmatpush1.bf16.msra.mxu1 %v3102_v58  ;;  %1996 = vmatprep.subr.bf16.mxu0 %v3107_v59  ;;  %v3189_v58 = vld [vmem:[%s3719_s26 + $0x2ac] ss:$16 sps:$4 sm:$0xff]   ;;  %v3184_v59 = vld [vmem:[%s3719_s26 + $0xa8] ss:$16 sps:$4 sm:$0xff]  }
  0xb8   : > { %2037 = vmatprep.subr.bf16.mxu1 %v3110_v60  ;;  %v3187_v60 = vld [vmem:[%s3719_s26 + $0x2a8] ss:$16 sps:$4 sm:$0xff]  }
  0xba   : > { %1997 = vmatpush1.bf16.msra.mxu0 %v3105_v61  ;;  %v3192_v61 = vld [vmem:[%s3719_s26 + $0x8c] ss:$16 sps:$4 sm:$0xff]  }
  0xbb   : > { %2038 = vmatpush1.bf16.msra.mxu1 %v3108_v62  ;;  %1998 = vmatprep.subr.bf16.mxu0 %v3113_v0  ;;  %v3195_v62 = vld [vmem:[%s3719_s26 + $0x28c] ss:$16 sps:$4 sm:$0xff]   ;;  %v3190_v0 = vld [vmem:[%s3719_s26 + $0x88] ss:$16 sps:$4 sm:$0xff]  }
  0xbc   : > { %2039 = vmatprep.subr.bf16.mxu1 %v3116_v1  ;;  %v3201_v1 = vld [vmem:[%s3719_s26 + $0x26c] ss:$16 sps:$4 sm:$0xff]  }
  0xbe   : > { %1999 = vmatpush1.bf16.msra.mxu0 %v3111_v2  ;;  %v3196_v2 = vld [vmem:[%s3719_s26 + $0x68] ss:$16 sps:$4 sm:$0xff]  }
  0xbf   : > { %2040 = vmatpush1.bf16.msra.mxu1 %v3114_v3  ;;  %2000 = vmatprep.subr.bf16.mxu0 %v3119_v4  ;;  %v3199_v3 = vld [vmem:[%s3719_s26 + $0x268] ss:$16 sps:$4 sm:$0xff]   ;;  %v3204_v4 = vld [vmem:[%s3719_s26 + $0x4c] ss:$16 sps:$4 sm:$0xff]  }
  0xc0   : > { %2041 = vmatprep.subr.bf16.mxu1 %v3122_v6  ;;  %v3207_v6 = vld [vmem:[%s3719_s26 + $0x24c] ss:$16 sps:$4 sm:$0xff]  }
  0xc2   : > { %2001 = vmatpush1.bf16.msra.mxu0 %v3117_v7  ;;  %v3202_v7 = vld [vmem:[%s3719_s26 + $0x48] ss:$16 sps:$4 sm:$0xff]  }
  0xc3   : > { %2042 = vmatpush1.bf16.msra.mxu1 %v3120_v8  ;;  %2002 = vmatprep.subr.bf16.mxu0 %v3125_v9  ;;  %v3205_v8 = vld [vmem:[%s3719_s26 + $0x248] ss:$16 sps:$4 sm:$0xff]   ;;  %v3210_v9 = vld [vmem:[%s3719_s26 + $0x2c] ss:$16 sps:$4 sm:$0xff]  }
  0xc4   : > { %2043 = vmatprep.subr.bf16.mxu1 %v3128_v10  ;;  %v3213_v10 = vld [vmem:[%s3719_s26 + $0x22c] ss:$16 sps:$4 sm:$0xff]  }
  0xc6   : > { %2003 = vmatpush2.bf16.msra.mxu0 %v3123_v11  ;;  %v3208_v11 = vld [vmem:[%s3719_s26 + $0x28] ss:$16 sps:$4 sm:$0xff]  }
  0xc7   : > { %2044 = vmatpush2.bf16.msra.mxu1 %v3126_v12  ;;  %2004 = vmatprep.subr.bf16.mxu0 %v3131_v13  ;;  %v3211_v12 = vld [vmem:[%s3719_s26 + $0x228] ss:$16 sps:$4 sm:$0xff]   ;;  %v3216_v13 = vld [vmem:[%s3719_s26 + $0xc] ss:$16 sps:$4 sm:$0xff]  }
  0xc8   : > { %2045 = vmatprep.subr.bf16.mxu1 %v3134_v14  ;;  %v3219_v14 = vld [vmem:[%s3719_s26 + $0x20c] ss:$16 sps:$4 sm:$0xff]  }
  0xca   : > { %2005 = vmatpush2.bf16.msra.mxu0 %v3129_v15  ;;  %v3214_v15 = vld [vmem:[%s3719_s26 + $0x8] ss:$16 sps:$4 sm:$0xff]  }
  0xcb   : > { %2046 = vmatpush2.bf16.msra.mxu1 %v3132_v16  ;;  %2006 = vmatprep.subr.bf16.mxu0 %v3137_v17  ;;  %v3217_v16 = vld [vmem:[%s3719_s26 + $0x208] ss:$16 sps:$4 sm:$0xff]   ;;  %v3222_v17 = vld [vmem:[%s3719_s26 + $0x1ec] ss:$16 sps:$4 sm:$0xff]  }
  0xcc   : > { %2047 = vmatprep.subr.bf16.mxu1 %v3140_v20  ;;  %v3225_v20 = vld [vmem:[%s3719_s26 + $0x3ec] ss:$16 sps:$4 sm:$0xff]  }
  0xce   : > { %2007 = vmatpush2.bf16.msra.mxu0 %v3135_v21  ;;  %v3220_v21 = vld [vmem:[%s3719_s26 + $0x1e8] ss:$16 sps:$4 sm:$0xff]  }
  0xcf   : > { %2048 = vmatpush2.bf16.msra.mxu1 %v3138_v22  ;;  %2008 = vmatprep.subr.bf16.mxu0 %v3143_v24  ;;  %v3223_v22 = vld [vmem:[%s3719_s26 + $0x3e8] ss:$16 sps:$4 sm:$0xff]   ;;  %v3228_v24 = vld [vmem:[%s3719_s26 + $0x1cc] ss:$16 sps:$4 sm:$0xff]  }
  0xd0   : > { %2049 = vmatprep.subr.bf16.mxu1 %v3146_v25  ;;  %v3231_v25 = vld [vmem:[%s3719_s26 + $0x3cc] ss:$16 sps:$4 sm:$0xff]  }
  0xd2   : > { %2009 = vmatpush2.bf16.msra.mxu0 %v3141_v26  ;;  %v3226_v26 = vld [vmem:[%s3719_s26 + $0x1c8] ss:$16 sps:$4 sm:$0xff]  }
  0xd3   : > { %2050 = vmatpush2.bf16.msra.mxu1 %v3144_v27  ;;  %2010 = vmatprep.subr.bf16.mxu0 %v3149_v28  ;;  %v3229_v27 = vld [vmem:[%s3719_s26 + $0x3c8] ss:$16 sps:$4 sm:$0xff]   ;;  %v3234_v28 = vld [vmem:[%s3719_s26 + $0x1ac] ss:$16 sps:$4 sm:$0xff]  }
  0xd4   : > { %2051 = vmatprep.subr.bf16.mxu1 %v3152_v29  ;;  %v3237_v29 = vld [vmem:[%s3719_s26 + $0x3ac] ss:$16 sps:$4 sm:$0xff]  }
  0xd6   : > { %2011 = vmatpush2.bf16.msra.mxu0 %v3147_v30  ;;  %v3232_v30 = vld [vmem:[%s3719_s26 + $0x1a8] ss:$16 sps:$4 sm:$0xff]  }
  0xd7   : > { %2052 = vmatpush2.bf16.msra.mxu1 %v3150_v31  ;;  %2012 = vmatprep.subr.bf16.mxu0 %v3155_v32  ;;  %v3235_v31 = vld [vmem:[%s3719_s26 + $0x3a8] ss:$16 sps:$4 sm:$0xff]   ;;  %v3240_v32 = vld [vmem:[%s3719_s26 + $0x18c] ss:$16 sps:$4 sm:$0xff]  }
  0xd8   : > { %2053 = vmatprep.subr.bf16.mxu1 %v3158_v33  ;;  %v3243_v33 = vld [vmem:[%s3719_s26 + $0x38c] ss:$16 sps:$4 sm:$0xff]  }
  0xda   : > { %2013 = vmatpush2.bf16.msra.mxu0 %v3153_v35  ;;  %v3238_v35 = vld [vmem:[%s3719_s26 + $0x188] ss:$16 sps:$4 sm:$0xff]  }
  0xdb   : > { %2054 = vmatpush2.bf16.msra.mxu1 %v3156_v36  ;;  %2014 = vmatprep.subr.bf16.mxu0 %v3161_v37  ;;  %v3241_v36 = vld [vmem:[%s3719_s26 + $0x388] ss:$16 sps:$4 sm:$0xff]   ;;  %v3246_v37 = vld [vmem:[%s3719_s26 + $0x16c] ss:$16 sps:$4 sm:$0xff]  }
  0xdc   : > { %2055 = vmatprep.subr.bf16.mxu1 %v3164_v40  ;;  %v3249_v40 = vld [vmem:[%s3719_s26 + $0x36c] ss:$16 sps:$4 sm:$0xff]  }
  0xde   : > { %2015 = vmatpush2.bf16.msra.mxu0 %v3159_v41  ;;  %v3244_v41 = vld [vmem:[%s3719_s26 + $0x168] ss:$16 sps:$4 sm:$0xff]  }
  0xdf   : > { %2056 = vmatpush2.bf16.msra.mxu1 %v3162_v42  ;;  %2016 = vmatprep.subr.bf16.mxu0 %v3167_v43  ;;  %v3247_v42 = vld [vmem:[%s3719_s26 + $0x368] ss:$16 sps:$4 sm:$0xff]   ;;  %v3252_v43 = vld [vmem:[%s3719_s26 + $0x14c] ss:$16 sps:$4 sm:$0xff]  }
  0xe0   : > { %2057 = vmatprep.subr.bf16.mxu1 %v3170_v45  ;;  %v3255_v45 = vld [vmem:[%s3719_s26 + $0x34c] ss:$16 sps:$4 sm:$0xff]  }
  0xe2   : > { %2017 = vmatpush2.bf16.msra.mxu0 %v3165_v46  ;;  %v3250_v46 = vld [vmem:[%s3719_s26 + $0x148] ss:$16 sps:$4 sm:$0xff]  }
  0xe3   : > { %2058 = vmatpush2.bf16.msra.mxu1 %v3168_v47  ;;  %2068 = vmatprep.subr.bf16.mxu0 %v3174_v48  ;;  %v3253_v47 = vld [vmem:[%s3719_s26 + $0x348] ss:$16 sps:$4 sm:$0xff]   ;;  %v3258_v48 = vld [vmem:[%s3719_s26 + $0x12c] ss:$16 sps:$4 sm:$0xff]  }
  0xe4   : > { %2109 = vmatprep.subr.bf16.mxu1 %v3177_v49  ;;  %v3261_v49 = vld [vmem:[%s3719_s26 + $0x32c] ss:$16 sps:$4 sm:$0xff]  }
  0xe5   : > { %2019 = vmatmul.mubr.bf16.vlgmr.msra.gmra.mxu0 %v3812_v19 }
  0xe6   : > { %2060 = vmatmul.mubr.bf16.vlgmr.msra.gmra.mxu1 %v3919_v50  ;;  %2069 = vmatpush1.bf16.msra.mxu0 %v3172_v51  ;;  %v3256_v51 = vld [vmem:[%s3719_s26 + $0x128] ss:$16 sps:$4 sm:$0xff]  }
  0xe7   : > { %2110 = vmatpush1.bf16.msra.mxu1 %v3175_v52  ;;  %2070 = vmatprep.subr.bf16.mxu0 %v3180_v53  ;;  %v3259_v52 = vld [vmem:[%s3719_s26 + $0x328] ss:$16 sps:$4 sm:$0xff]   ;;  %v3264_v53 = vld [vmem:[%s3719_s26 + $0x10c] ss:$16 sps:$4 sm:$0xff]  }
  0xe8   : > { %2111 = vmatprep.subr.bf16.mxu1 %v3183_v54  ;;  %2100 = vmatprep.mubr.bf16.mxu0 %v3809_v18  ;;  %v3193_v18 = vld [vmem:[%s3719_s26 + $0x288] ss:$16 sps:$4 sm:$0xff]   ;;  %v3267_v54 = vld [vmem:[%s3719_s26 + $0x30c] ss:$16 sps:$4 sm:$0xff]  }
  0xe9   : > { %2141 = vmatprep.mubr.bf16.mxu1 %v3819_v23  ;;  %v3198_v23 = vld [vmem:[%s3719_s26 + $0x6c] ss:$16 sps:$4 sm:$0xff]  }
  0xea   : > { %2071 = vmatpush1.bf16.msra.mxu0 %v3178_v55  ;;  %v3262_v55 = vld [vmem:[%s3719_s26 + $0x108] ss:$16 sps:$4 sm:$0xff]  }
  0xeb   : > { %2112 = vmatpush1.bf16.msra.mxu1 %v3181_v56  ;;  %2072 = vmatprep.subr.bf16.mxu0 %v3186_v57  ;;  %v3265_v56 = vld [vmem:[%s3719_s26 + $0x308] ss:$16 sps:$4 sm:$0xff]   ;;  %v3270_v57 = vld [vmem:[%s3719_s26 + $0x4ec] ss:$16 sps:$4 sm:$0xff]  }
  0xec   : > { %2113 = vmatprep.subr.bf16.mxu1 %v3189_v58  ;;  %v3273_v58 = vld [vmem:[%s3719_s26 + $0x6ec] ss:$16 sps:$4 sm:$0xff]  }
  0xee   : > { %2073 = vmatpush1.bf16.msra.mxu0 %v3184_v59  ;;  %v3268_v59 = vld [vmem:[%s3719_s26 + $0x4e8] ss:$16 sps:$4 sm:$0xff]  }
  0xef   : > { %2114 = vmatpush1.bf16.msra.mxu1 %v3187_v60  ;;  %2074 = vmatprep.subr.bf16.mxu0 %v3192_v61  ;;  %v3271_v60 = vld [vmem:[%s3719_s26 + $0x6e8] ss:$16 sps:$4 sm:$0xff]   ;;  %v3276_v61 = vld [vmem:[%s3719_s26 + $0x4cc] ss:$16 sps:$4 sm:$0xff]  }
  0xf0   : > { %2115 = vmatprep.subr.bf16.mxu1 %v3195_v62  ;;  %v3279_v62 = vld [vmem:[%s3719_s26 + $0x6cc] ss:$16 sps:$4 sm:$0xff]  }
  0xf2   : > { %2075 = vmatpush1.bf16.msra.mxu0 %v3190_v0  ;;  %v3274_v0 = vld [vmem:[%s3719_s26 + $0x4c8] ss:$16 sps:$4 sm:$0xff]  }
  0xf3   : > { %2116 = vmatpush1.bf16.msra.mxu1 %v3193_v18  ;;  %2076 = vmatprep.subr.bf16.mxu0 %v3198_v23  ;;  %v3277_v18 = vld [vmem:[%s3719_s26 + $0x6c8] ss:$16 sps:$4 sm:$0xff]   ;;  %v3282_v23 = vld [vmem:[%s3719_s26 + $0x4ac] ss:$16 sps:$4 sm:$0xff]  }
  0xf4   : > { %2117 = vmatprep.subr.bf16.mxu1 %v3201_v1  ;;  %v3285_v1 = vld [vmem:[%s3719_s26 + $0x6ac] ss:$16 sps:$4 sm:$0xff]  }
  0xf6   : > { %2077 = vmatpush1.bf16.msra.mxu0 %v3196_v2  ;;  %v3288_v2 = vld [vmem:[%s3719_s26 + $0x48c] ss:$16 sps:$4 sm:$0xff]  }
  0xf7   : > { %2118 = vmatpush1.bf16.msra.mxu1 %v3199_v3  ;;  %2078 = vmatprep.subr.bf16.mxu0 %v3204_v4  ;;  %v3291_v3 = vld [vmem:[%s3719_s26 + $0x68c] ss:$16 sps:$4 sm:$0xff]   ;;  %v3286_v4 = vld [vmem:[%s3719_s26 + $0x488] ss:$16 sps:$4 sm:$0xff]  }
  0xf8   : > { %2119 = vmatprep.subr.bf16.mxu1 %v3207_v6  ;;  %v3297_v6 = vld [vmem:[%s3719_s26 + $0x66c] ss:$16 sps:$4 sm:$0xff]  }
  0xfa   : > { %2079 = vmatpush1.bf16.msra.mxu0 %v3202_v7  ;;  %v3292_v7 = vld [vmem:[%s3719_s26 + $0x468] ss:$16 sps:$4 sm:$0xff]  }
  0xfb   : > { %2120 = vmatpush1.bf16.msra.mxu1 %v3205_v8  ;;  %2080 = vmatprep.subr.bf16.mxu0 %v3210_v9  ;;  %v3295_v8 = vld [vmem:[%s3719_s26 + $0x668] ss:$16 sps:$4 sm:$0xff]   ;;  %v3300_v9 = vld [vmem:[%s3719_s26 + $0x44c] ss:$16 sps:$4 sm:$0xff]  }
  0xfc   : > { %2121 = vmatprep.subr.bf16.mxu1 %v3213_v10  ;;  %v3303_v10 = vld [vmem:[%s3719_s26 + $0x64c] ss:$16 sps:$4 sm:$0xff]  }
  0xfe   : > { %2081 = vmatpush1.bf16.msra.mxu0 %v3208_v11  ;;  %v3298_v11 = vld [vmem:[%s3719_s26 + $0x448] ss:$16 sps:$4 sm:$0xff]  }
  0xff   : > { %2122 = vmatpush1.bf16.msra.mxu1 %v3211_v12  ;;  %2082 = vmatprep.subr.bf16.mxu0 %v3216_v13  ;;  %v3301_v12 = vld [vmem:[%s3719_s26 + $0x648] ss:$16 sps:$4 sm:$0xff]   ;;  %v3306_v13 = vld [vmem:[%s3719_s26 + $0x42c] ss:$16 sps:$4 sm:$0xff]  }
 0x100   : > { %2123 = vmatprep.subr.bf16.mxu1 %v3219_v14  ;;  %v3309_v14 = vld [vmem:[%s3719_s26 + $0x62c] ss:$16 sps:$4 sm:$0xff]  }
 0x102   : > { %2083 = vmatpush1.bf16.msra.mxu0 %v3214_v15  ;;  %v3304_v15 = vld [vmem:[%s3719_s26 + $0x428] ss:$16 sps:$4 sm:$0xff]  }
 0x103   : > { %2124 = vmatpush1.bf16.msra.mxu1 %v3217_v16  ;;  %2084 = vmatprep.subr.bf16.mxu0 %v3222_v17  ;;  %v3307_v16 = vld [vmem:[%s3719_s26 + $0x628] ss:$16 sps:$4 sm:$0xff]   ;;  %v3312_v17 = vld [vmem:[%s3719_s26 + $0x40c] ss:$16 sps:$4 sm:$0xff]  }
 0x104   : > { %2125 = vmatprep.subr.bf16.mxu1 %v3225_v20  ;;  %v3315_v20 = vld [vmem:[%s3719_s26 + $0x60c] ss:$16 sps:$4 sm:$0xff]  }
 0x106   : > { %2085 = vmatpush2.bf16.msra.mxu0 %v3220_v21  ;;  %v3310_v21 = vld [vmem:[%s3719_s26 + $0x408] ss:$16 sps:$4 sm:$0xff]  }
 0x107   : > { %2126 = vmatpush2.bf16.msra.mxu1 %v3223_v22  ;;  %2086 = vmatprep.subr.bf16.mxu0 %v3228_v24  ;;  %v3313_v22 = vld [vmem:[%s3719_s26 + $0x608] ss:$16 sps:$4 sm:$0xff]   ;;  %v3318_v24 = vld [vmem:[%s3719_s26 + $0x5ec] ss:$16 sps:$4 sm:$0xff]  }
 0x108   : > { %2127 = vmatprep.subr.bf16.mxu1 %v3231_v25  ;;  %v3321_v25 = vld [vmem:[%s3719_s26 + $0x7ec] ss:$16 sps:$4 sm:$0xff]  }
 0x10a   : > { %2087 = vmatpush2.bf16.msra.mxu0 %v3226_v26  ;;  %v3316_v26 = vld [vmem:[%s3719_s26 + $0x5e8] ss:$16 sps:$4 sm:$0xff]  }
 0x10b   : > { %2128 = vmatpush2.bf16.msra.mxu1 %v3229_v27  ;;  %2088 = vmatprep.subr.bf16.mxu0 %v3234_v28  ;;  %v3319_v27 = vld [vmem:[%s3719_s26 + $0x7e8] ss:$16 sps:$4 sm:$0xff]   ;;  %v3324_v28 = vld [vmem:[%s3719_s26 + $0x5cc] ss:$16 sps:$4 sm:$0xff]  }
 0x10c   : > { %2129 = vmatprep.subr.bf16.mxu1 %v3237_v29  ;;  %v3327_v29 = vld [vmem:[%s3719_s26 + $0x7cc] ss:$16 sps:$4 sm:$0xff]  }
 0x10e   : > { %2089 = vmatpush2.bf16.msra.mxu0 %v3232_v30  ;;  %v3322_v30 = vld [vmem:[%s3719_s26 + $0x5c8] ss:$16 sps:$4 sm:$0xff]  }
 0x10f   : > { %2130 = vmatpush2.bf16.msra.mxu1 %v3235_v31  ;;  %2090 = vmatprep.subr.bf16.mxu0 %v3240_v32  ;;  %v3325_v31 = vld [vmem:[%s3719_s26 + $0x7c8] ss:$16 sps:$4 sm:$0xff]   ;;  %v3330_v32 = vld [vmem:[%s3719_s26 + $0x5ac] ss:$16 sps:$4 sm:$0xff]  }
 0x110   : > { %2131 = vmatprep.subr.bf16.mxu1 %v3243_v33  ;;  %v3333_v33 = vld [vmem:[%s3719_s26 + $0x7ac] ss:$16 sps:$4 sm:$0xff]  }
 0x112   : > { %2091 = vmatpush2.bf16.msra.mxu0 %v3238_v35  ;;  %v3328_v35 = vld [vmem:[%s3719_s26 + $0x5a8] ss:$16 sps:$4 sm:$0xff]  }
 0x113   : > { %2132 = vmatpush2.bf16.msra.mxu1 %v3241_v36  ;;  %2092 = vmatprep.subr.bf16.mxu0 %v3246_v37  ;;  %v3331_v36 = vld [vmem:[%s3719_s26 + $0x7a8] ss:$16 sps:$4 sm:$0xff]   ;;  %v3336_v37 = vld [vmem:[%s3719_s26 + $0x58c] ss:$16 sps:$4 sm:$0xff]  }
 0x114   : > { %2133 = vmatprep.subr.bf16.mxu1 %v3249_v40  ;;  %v3339_v40 = vld [vmem:[%s3719_s26 + $0x78c] ss:$16 sps:$4 sm:$0xff]  }
 0x116   : > { %2093 = vmatpush2.bf16.msra.mxu0 %v3244_v41  ;;  %v3334_v41 = vld [vmem:[%s3719_s26 + $0x588] ss:$16 sps:$4 sm:$0xff]  }
 0x117   : > { %2134 = vmatpush2.bf16.msra.mxu1 %v3247_v42  ;;  %2094 = vmatprep.subr.bf16.mxu0 %v3252_v43  ;;  %v3337_v42 = vld [vmem:[%s3719_s26 + $0x788] ss:$16 sps:$4 sm:$0xff]   ;;  %v3342_v43 = vld [vmem:[%s3719_s26 + $0x56c] ss:$16 sps:$4 sm:$0xff]  }
 0x118   : > { %2135 = vmatprep.subr.bf16.mxu1 %v3255_v45  ;;  %v3345_v45 = vld [vmem:[%s3719_s26 + $0x76c] ss:$16 sps:$4 sm:$0xff]  }
 0x11a   : > { %2095 = vmatpush2.bf16.msra.mxu0 %v3250_v46  ;;  %v3340_v46 = vld [vmem:[%s3719_s26 + $0x568] ss:$16 sps:$4 sm:$0xff]  }
 0x11b   : > { %2136 = vmatpush2.bf16.msra.mxu1 %v3253_v47  ;;  %2096 = vmatprep.subr.bf16.mxu0 %v3258_v48  ;;  %v3343_v47 = vld [vmem:[%s3719_s26 + $0x768] ss:$16 sps:$4 sm:$0xff]   ;;  %v3348_v48 = vld [vmem:[%s3719_s26 + $0x54c] ss:$16 sps:$4 sm:$0xff]  }
 0x11c   : > { %2137 = vmatprep.subr.bf16.mxu1 %v3261_v49  ;;  %v3351_v49 = vld [vmem:[%s3719_s26 + $0x74c] ss:$16 sps:$4 sm:$0xff]  }
 0x11e   : > { %2097 = vmatpush2.bf16.msra.mxu0 %v3256_v51  ;;  %v3346_v51 = vld [vmem:[%s3719_s26 + $0x548] ss:$16 sps:$4 sm:$0xff]  }
 0x11f   : > { %2138 = vmatpush2.bf16.msra.mxu1 %v3259_v52  ;;  %2098 = vmatprep.subr.bf16.mxu0 %v3264_v53  ;;  %v3349_v52 = vld [vmem:[%s3719_s26 + $0x748] ss:$16 sps:$4 sm:$0xff]   ;;  %v3354_v53 = vld [vmem:[%s3719_s26 + $0x52c] ss:$16 sps:$4 sm:$0xff]  }
 0x120   : > { %2139 = vmatprep.subr.bf16.mxu1 %v3267_v54  ;;  %v3357_v54 = vld [vmem:[%s3719_s26 + $0x72c] ss:$16 sps:$4 sm:$0xff]  }
 0x122   : > { %2099 = vmatpush2.bf16.msra.mxu0 %v3262_v55  ;;  %v3352_v55 = vld [vmem:[%s3719_s26 + $0x528] ss:$16 sps:$4 sm:$0xff]  }
 0x123   : > { %2140 = vmatpush2.bf16.msra.mxu1 %v3265_v56  ;;  %2150 = vmatprep.subr.bf16.mxu0 %v3270_v57  ;;  %v3355_v56 = vld [vmem:[%s3719_s26 + $0x728] ss:$16 sps:$4 sm:$0xff]   ;;  %v3360_v57 = vld [vmem:[%s3719_s26 + $0x50c] ss:$16 sps:$4 sm:$0xff]  }
 0x124   : > { %2191 = vmatprep.subr.bf16.mxu1 %v3273_v58  ;;  %v3363_v58 = vld [vmem:[%s3719_s26 + $0x70c] ss:$16 sps:$4 sm:$0xff]  }
 0x125   : > { %2101 = vmatmul.mubr.bf16.vlgmr.msra.gmra.mxu0 %v3833_v34  ;;  %v3280_v34 = vld [vmem:[%s3719_s26 + $0x4a8] ss:$16 sps:$4 sm:$0xff]  }
 0x126   : > { %2142 = vmatmul.mubr.bf16.vlgmr.msra.gmra.mxu1 %v3843_v39  ;;  %2151 = vmatpush1.bf16.msra.mxu0 %v3268_v59  ;;  %v3283_v39 = vld [vmem:[%s3719_s26 + $0x6a8] ss:$16 sps:$4 sm:$0xff]  }
 0x127   : > { %2192 = vmatpush1.bf16.msra.mxu1 %v3271_v60  ;;  %2152 = vmatprep.subr.bf16.mxu0 %v3276_v61  ;;  %v3358_v59 = vld [vmem:[%s3719_s26 + $0x508] ss:$16 sps:$4 sm:$0xff]  }
 0x128   : > { %2193 = vmatprep.subr.bf16.mxu1 %v3279_v62  ;;  %2182 = vmatprep.mubr.bf16.mxu0 %v3839_v38  ;;  %v3289_v38 = vld [vmem:[%s3719_s26 + $0x688] ss:$16 sps:$4 sm:$0xff]  }
 0x129   : > { %2223 = vmatprep.mubr.bf16.mxu1 %v3851_v44  ;;  %v3294_v44 = vld [vmem:[%s3719_s26 + $0x46c] ss:$16 sps:$4 sm:$0xff]   ;;  %v3361_v60 = vld [vmem:[%s3719_s26 + $0x708] ss:$16 sps:$4 sm:$0xff]  }
 0x12a   : > { %2153 = vmatpush1.bf16.msra.mxu0 %v3274_v0 }
 0x12b   : > { %2194 = vmatpush1.bf16.msra.mxu1 %v3277_v18  ;;  %2154 = vmatprep.subr.bf16.mxu0 %v3282_v23 }
 0x12c   : > { %2195 = vmatprep.subr.bf16.mxu1 %v3285_v1 }
 0x12e   : > { %2155 = vmatpush1.bf16.msra.mxu0 %v3280_v34 }
 0x12f   : > { %2196 = vmatpush1.bf16.msra.mxu1 %v3283_v39  ;;  %2156 = vmatprep.subr.bf16.mxu0 %v3288_v2 }
 0x130   : > { %2197 = vmatprep.subr.bf16.mxu1 %v3291_v3 }
 0x132   : > { %2157 = vmatpush1.bf16.msra.mxu0 %v3286_v4 }
 0x133   : > { %2198 = vmatpush1.bf16.msra.mxu1 %v3289_v38  ;;  %2158 = vmatprep.subr.bf16.mxu0 %v3294_v44 }
 0x134   : > { %2199 = vmatprep.subr.bf16.mxu1 %v3297_v6 }
 0x136   : > { %2159 = vmatpush1.bf16.msra.mxu0 %v3292_v7 }
 0x137   : > { %2200 = vmatpush1.bf16.msra.mxu1 %v3295_v8  ;;  %2160 = vmatprep.subr.bf16.mxu0 %v3300_v9 }
 0x138   : > { %2201 = vmatprep.subr.bf16.mxu1 %v3303_v10 }
 0x13a   : > { %2161 = vmatpush1.bf16.msra.mxu0 %v3298_v11 }
 0x13b   : > { %2202 = vmatpush1.bf16.msra.mxu1 %v3301_v12  ;;  %2162 = vmatprep.subr.bf16.mxu0 %v3306_v13 }
 0x13c   : > { %2203 = vmatprep.subr.bf16.mxu1 %v3309_v14 }
 0x13e   : > { %2163 = vmatpush1.bf16.msra.mxu0 %v3304_v15 }
 0x13f   : > { %2204 = vmatpush1.bf16.msra.mxu1 %v3307_v16  ;;  %2164 = vmatprep.subr.bf16.mxu0 %v3312_v17 }
 0x140   : > { %2205 = vmatprep.subr.bf16.mxu1 %v3315_v20 }
 0x142   : > { %2165 = vmatpush1.bf16.msra.mxu0 %v3310_v21 }
 0x143   : > { %2206 = vmatpush1.bf16.msra.mxu1 %v3313_v22  ;;  %2166 = vmatprep.subr.bf16.mxu0 %v3318_v24 }
 0x144   : > { %2207 = vmatprep.subr.bf16.mxu1 %v3321_v25 }
 0x146   : > { %2167 = vmatpush2.bf16.msra.mxu0 %v3316_v26  ;;  %v3532_v26 = vmov 1983009808  }
 0x147   : > { %2208 = vmatpush2.bf16.msra.mxu1 %v3319_v27  ;;  %2168 = vmatprep.subr.bf16.mxu0 %v3324_v28  ;;  %v2239_v27 = vunpack.c.l.s4 %v3532_v26 }
 0x148   : > { %2209 = vmatprep.subr.bf16.mxu1 %v3327_v29 }
 0x14a   : > { %2169 = vmatpush2.bf16.msra.mxu0 %v3322_v30  ;;  %v2240_v30 = vunpack.c.0.s8 %v2239_v27 }
 0x14b   : > { %2210 = vmatpush2.bf16.msra.mxu1 %v3325_v31  ;;  %2170 = vmatprep.subr.bf16.mxu0 %v3330_v32 }
 0x14c   : > { %2211 = vmatprep.subr.bf16.mxu1 %v3333_v33 }
 0x14e   : > { %2171 = vmatpush2.bf16.msra.mxu0 %v3328_v35 }
 0x14f   : > { %2212 = vmatpush2.bf16.msra.mxu1 %v3331_v36  ;;  %2172 = vmatprep.subr.bf16.mxu0 %v3336_v37 }
 0x150   : > { %2213 = vmatprep.subr.bf16.mxu1 %v3339_v40 }
 0x152   : > { %2173 = vmatpush2.bf16.msra.mxu0 %v3334_v41  ;;  %v4058_v41 = vsub.s32 %v2240_v30, %v3784_v63 }
 0x153   : > { %2214 = vmatpush2.bf16.msra.mxu1 %v3337_v42  ;;  %2174 = vmatprep.subr.bf16.mxu0 %v3342_v43 }
 0x154   : > { %2215 = vmatprep.subr.bf16.mxu1 %v3345_v45 }
 0x156   : > { %2175 = vmatpush2.bf16.msra.mxu0 %v3340_v46 }
 0x157   : > { %2216 = vmatpush2.bf16.msra.mxu1 %v3343_v47  ;;  %2176 = vmatprep.subr.bf16.mxu0 %v3348_v48 }
 0x158   : > { %2217 = vmatprep.subr.bf16.mxu1 %v3351_v49 }
 0x15a   : > { %2177 = vmatpush2.bf16.msra.mxu0 %v3346_v51  ;;  %v308_v51 = vld [vmem:[#allocation2] sm:$0xff] }
 0x15b   : > { %2218 = vmatpush2.bf16.msra.mxu1 %v3349_v52  ;;  %2178 = vmatprep.subr.bf16.mxu0 %v3354_v53 }
 0x15c   : > { %2219 = vmatprep.subr.bf16.mxu1 %v3357_v54 }
 0x15e   : > { %2179 = vmatpush2.bf16.msra.mxu0 %v3352_v55 }
 0x15f   : > { %2220 = vmatpush2.bf16.msra.mxu1 %v3355_v56  ;;  %2180 = vmatprep.subr.bf16.mxu0 %v3360_v57 }
 0x160   : > { %2221 = vmatprep.subr.bf16.mxu1 %v3363_v58 }
 0x162   : > { %2181 = vmatpush2.bf16.msra.mxu0 %v3358_v59 }
 0x163   : > { %2222 = vmatpush2.bf16.msra.mxu1 %v3361_v60 }
 0x165   : > { %v1938_v61 = vpop.f32.mrf.mxu0  ;;  %2183 = vmatmul.mubr.bf16.vlgmr.msra.gmra.mxu0 %v3812_v19 }
 0x166   : > { %v1979_v62 = vpop.f32.mrf.mxu1  ;;  %2224 = vmatmul.mubr.bf16.vlgmr.msra.gmra.mxu1 %v3919_v50 }
 0x167   : > { %v1980_v0 = vadd.f32 %v1979_v62, %v1938_v61  ;;  %v1940_v18 = vpop.f32.mrf.mxu0 }
 0x168   : > { %v1981_v23 = vpop.f32.mrf.mxu1 }
 0x169   : > { %v1982_v1 = vadd.f32 %v1981_v23, %v1940_v18  ;;  %v1942_v34 = vpop.f32.mrf.mxu0 }
 0x16a   : > { %v1983_v39 = vpop.f32.mrf.mxu1 }
 0x16b   : > { %v1943_v2 = vpop.f32.mrf.mxu0 }
 0x16c   : > { %v1984_v3 = vpop.f32.mrf.mxu1 }
 0x1a5   : > { %v2020_v4 = vpop.f32.mrf.mxu0 }
 0x1a6   : > { %v2061_v38 = vpop.f32.mrf.mxu1  ;;  %v2021_v44 = vadd.f32 %v2020_v4, %v1980_v0 }
 0x1a7   : > { %v2022_v6 = vpop.f32.mrf.mxu0 }
 0x1a8   : > { %v2063_v7 = vpop.f32.mrf.mxu1  ;;  %v2062_v8 = vadd.f32 %v2061_v38, %v2021_v44  ;;  %v2023_v9 = vadd.f32 %v2022_v6, %v1982_v1 }
 0x1a9   : > { %v2024_v10 = vpop.f32.mrf.mxu0 }
 0x1aa   : > { %v2065_v11 = vpop.f32.mrf.mxu1  ;;  %v2064_v19 = vadd.f32 %v2063_v7, %v2023_v9 }
 0x1ab   : > { %v2025_v12 = vpop.f32.mrf.mxu0 }
 0x1ac   : > { %v2066_v50 = vpop.f32.mrf.mxu1  ;;  %v2236_v13 = vcombine.low %v2062_v8, %v2064_v19 }
 0x1ae   : > { %v2244_v48 = vrot.slane %v2236_v13, %v4058_v41 }
 0x1e5   : > { %v2102_v14 = vpop.f32.mrf.mxu0 }
 0x1e6   : > { %v2143_v15 = vpop.f32.mrf.mxu1 }
 0x1e7   : > { %v2144_v16 = vadd.f32 %v2143_v15, %v2102_v14  ;;  %v2104_v17 = vpop.f32.mrf.mxu0 }
 0x1e8   : > { %v2145_v20 = vpop.f32.mrf.mxu1 }
 0x1e9   : > { %v2106_v21 = vpop.f32.mrf.mxu0  ;;  %v2146_v31 = vadd.f32 %v2145_v20, %v2104_v17 }
 0x1ea   : > { %v2147_v22 = vpop.f32.mrf.mxu1 }
 0x1eb   : > { %v2107_v24 = vpop.f32.mrf.mxu0 }
 0x1ec   : > { %v2148_v25 = vpop.f32.mrf.mxu1 }
 0x225   : > { %v2184_v28 = vpop.f32.mrf.mxu0 }
 0x226   : > { %v2225_v29 = vpop.f32.mrf.mxu1  ;;  %v2185_v32 = vadd.f32 %v2184_v28, %v2144_v16 }
 0x227   : > { %v2186_v33 = vpop.f32.mrf.mxu0 }
 0x228   : > { %v2227_v35 = vpop.f32.mrf.mxu1  ;;  %v2187_v36 = vadd.f32 %v2186_v33, %v2146_v31  ;;  %v2226_v42 = vadd.f32 %v2225_v29, %v2185_v32 }
 0x229   : > { %v2188_v37 = vpop.f32.mrf.mxu0 }
 0x22a   : > { %v2229_v40 = vpop.f32.mrf.mxu1  ;;  %v2228_v43 = vadd.f32 %v2227_v35, %v2187_v36 }
 0x22b   : > { %v2189_v45 = vpop.f32.mrf.mxu0 }
 0x22c   : > { %v2230_v46 = vpop.f32.mrf.mxu1  ;;  %v2237_v47 = vcombine.low %v2226_v42, %v2228_v43 }
 0x22e   : > { %v2251_v49 = vrot.slane %v2237_v47, %v4058_v41 }
 0x230   : > { %v2252_v52 = vcombine.low %v2244_v48, %v2251_v49  ;;  %2259 = sbr.rel (%p2865_p0) target bundleno = 663 (0x297), region = 48 }
 0x232   : > { %v2254_v53 = vadd.f32 %v2252_v52, %v308_v51 }
 0x234   : > { %2255 = vst [vmem:[#allocation2] sm:$0xff] %v2254_v53 }
 0x235   : > { %vm2283_vm0 = vcmask 1041408  }
 0x23b   : > { %v2260_v54 = vld [vmem:[#allocation2] sm:$0xff] }
 0x23c   : > { %v2262_v63 = vcombine.high %v2260_v54, %v2260_v54  ;;  %v2269_v55 = vrot.slane %v2260_v54, %v4058_v41 }
 0x23e   : > { %v2276_v56 = vrot.slane %v2262_v63, %v4058_v41  ;;  %v2277_v57 = vcombine.high %v2269_v55, %v2269_v55  ;;  %v2284_v58 = vsel %vm2283_vm0, %v2269_v55, 0.0 }
 0x23f   : > { %v2285_v59 = vrot.slane %v2284_v58, 4 }
 0x240   : > { %v2278_v60 = vcombine.high %v2276_v56, %v2276_v56  ;;  %v2291_v61 = vsel %vm2283_vm0, %v2277_v57, 0.0  ;;  %v2298_v62 = vsel %vm2283_vm0, %v2276_v56, 0.0 }
 0x241   : > { %v2286_v0 = vadd.f32 %v2285_v59, %v2284_v58  ;;  %v2292_v18 = vrot.slane %v2291_v61, 4  ;;  %v2299_v23 = vrot.slane %v2298_v62, 4 }
 0x242   : > { %v2305_v1 = vsel %vm2283_vm0, %v2278_v60, 0.0 }
 0x243   : > { %v2287_v34 = vrot.slane %v2286_v0, 2  ;;  %v2293_v39 = vadd.f32 %v2292_v18, %v2291_v61  ;;  %v2300_v2 = vadd.f32 %v2299_v23, %v2298_v62  ;;  %v2306_v3 = vrot.slane %v2305_v1, 4 }
 0x245   : > { %v2288_v4 = vadd.f32 %v2287_v34, %v2286_v0  ;;  %v2294_v38 = vrot.slane %v2293_v39, 2  ;;  %v2301_v44 = vrot.slane %v2300_v2, 2  ;;  %v2307_v6 = vadd.f32 %v2306_v3, %v2305_v1 }
 0x247   : > { %v2289_v7 = vrot.slane %v2288_v4, 1  ;;  %v2295_v8 = vadd.f32 %v2294_v38, %v2293_v39  ;;  %v2302_v9 = vadd.f32 %v2301_v44, %v2300_v2  ;;  %v2308_v10 = vrot.slane %v2307_v6, 2 }
 0x249   : > { %v2290_v11 = vadd.f32 %v2289_v7, %v2288_v4  ;;  %v2296_v19 = vrot.slane %v2295_v8, 1  ;;  %v2303_v12 = vrot.slane %v2302_v9, 1  ;;  %v2309_v50 = vadd.f32 %v2308_v10, %v2307_v6 }
 0x24b   : > { %v2297_v13 = vadd.f32 %v2296_v19, %v2295_v8  ;;  %v2304_v14 = vadd.f32 %v2303_v12, %v2302_v9  ;;  %v2310_v15 = vrot.slane %v2309_v50, 1  ;;  %v2313_v16 = vmul.f32 0.5, %v2290_v11 }
 0x24d   : > { %v2311_v17 = vadd.f32 %v2310_v15, %v2309_v50  ;;  %v2314_v20 = vmul.f32 0.5, %v2297_v13  ;;  %v2315_v21 = vmul.f32 0.5, %v2304_v14 }
 0x24f   : > { %v2316_v22 = vmul.f32 0.5, %v2311_v17  ;;  %v2321_v24 = vcombine.low %v2313_v16, %v2314_v20 }
 0x251   : > { %v2322_v25 = vcombine.low %v2315_v21, %v2316_v22  ;;  %v2329_v26 = vrot.slane %v2321_v24, %v4058_v41 }
 0x253   : > { %v2336_v27 = vrot.slane %v2322_v25, %v4058_v41 }
 0x255   : > { %v2337_v28 = vcombine.low %v2329_v26, %v2336_v27 }
 0x257   : > { %v2339_v29 = vsub.f32 %v2260_v54, %v2337_v28 }
 0x259   : > { %v2340_v30 = vmul.f32 %v2339_v29, %v2339_v29 }
 0x25b   : > { %v2342_v31 = vcombine.high %v2340_v30, %v2340_v30  ;;  %v2349_v32 = vrot.slane %v2340_v30, %v4058_v41 }
 0x25d   : > { %v2356_v33 = vrot.slane %v2342_v31, %v4058_v41  ;;  %v2357_v35 = vcombine.high %v2349_v32, %v2349_v32  ;;  %v2363_v36 = vsel %vm2283_vm0, %v2349_v32, 0.0 }
 0x25e   : > { %v2364_v37 = vrot.slane %v2363_v36, 4 }
 0x25f   : > { %v2358_v40 = vcombine.high %v2356_v33, %v2356_v33  ;;  %v2370_v42 = vsel %vm2283_vm0, %v2357_v35, 0.0  ;;  %v2377_v43 = vsel %vm2283_vm0, %v2356_v33, 0.0 }
 0x260   : > { %v2365_v45 = vadd.f32 %v2364_v37, %v2363_v36  ;;  %v2371_v46 = vrot.slane %v2370_v42, 4  ;;  %v2378_v47 = vrot.slane %v2377_v43, 4 }
 0x261   : > { %v2384_v48 = vsel %vm2283_vm0, %v2358_v40, 0.0 }
 0x262   : > { %v2366_v49 = vrot.slane %v2365_v45, 2  ;;  %v2372_v51 = vadd.f32 %v2371_v46, %v2370_v42  ;;  %v2379_v52 = vadd.f32 %v2378_v47, %v2377_v43  ;;  %v2385_v53 = vrot.slane %v2384_v48, 4 }
 0x264   : > { %v2367_v54 = vadd.f32 %v2366_v49, %v2365_v45  ;;  %v2373_v63 = vrot.slane %v2372_v51, 2  ;;  %v2380_v55 = vrot.slane %v2379_v52, 2  ;;  %v2386_v56 = vadd.f32 %v2385_v53, %v2384_v48 }
 0x266   : > { %v2368_v57 = vrot.slane %v2367_v54, 1  ;;  %v2374_v58 = vadd.f32 %v2373_v63, %v2372_v51  ;;  %v2381_v59 = vadd.f32 %v2380_v55, %v2379_v52  ;;  %v2387_v60 = vrot.slane %v2386_v56, 2 }
 0x268   : > { %v2369_v61 = vadd.f32 %v2368_v57, %v2367_v54  ;;  %v2375_v62 = vrot.slane %v2374_v58, 1  ;;  %v2382_v0 = vrot.slane %v2381_v59, 1  ;;  %v2388_v18 = vadd.f32 %v2387_v60, %v2386_v56 }
 0x26a   : > { %v2376_v23 = vadd.f32 %v2375_v62, %v2374_v58  ;;  %v2383_v1 = vadd.f32 %v2382_v0, %v2381_v59  ;;  %v2389_v34 = vrot.slane %v2388_v18, 1  ;;  %v2391_v39 = vmul.f32 0.5, %v2369_v61 }
 0x26c   : > { %v2390_v2 = vadd.f32 %v2389_v34, %v2388_v18  ;;  %v2392_v3 = vmul.f32 0.5, %v2376_v23  ;;  %v2393_v4 = vmul.f32 0.5, %v2383_v1  ;;  %v2395_v38 = vadd.f32 1e-05, %v2391_v39 }
 0x26e   : > { %v2394_v44 = vmul.f32 0.5, %v2390_v2  ;;  %v2396_v6 = vadd.f32 1e-05, %v2392_v3  ;;  %v2397_v7 = vadd.f32 1e-05, %v2393_v4  ;;  %3365 = vrsqrt.f32 %v2395_v38 }
 0x270   : > { %v2398_v8 = vadd.f32 1e-05, %v2394_v44  ;;  %3367 = vrsqrt.f32 %v2396_v6 }
 0x271   : > { %3369 = vrsqrt.f32 %v2397_v7 }
 0x272   : > { %3371 = vrsqrt.f32 %v2398_v8 }
 0x27b   : > { %v3366_v9 = vpop.eup %3365 }
 0x27d   : > { %v3368_v10 = vpop.eup %3367 }
 0x27e   : > { %v3370_v11 = vpop.eup %3369  ;;  %v2407_v19 = vcombine.low %v3366_v9, %v3368_v10 }
 0x27f   : > { %v3372_v12 = vpop.eup %3371 }
 0x280   : > { %v2408_v50 = vcombine.low %v3370_v11, %v3372_v12  ;;  %v2415_v13 = vrot.slane %v2407_v19, %v4058_v41 }
 0x282   : > { %v2422_v14 = vrot.slane %v2408_v50, %v4058_v41 }
 0x284   : > { %v2423_v15 = vcombine.low %v2415_v13, %v2422_v14 }
 0x286   : > { %v2425_v16 = vmul.f32 %v2423_v15, %v2339_v29 }
 0x288   : > { %v2426_v17 = vmax.f32 %v2425_v16, 0.0 }
 0x28a   : > { %v2428_v20 = vcombine.high %v2426_v17, %v2426_v17  ;;  %v2435_v21 = vrot.slane %v2426_v17, %v4058_v41 }
 0x28c   : > { %v2442_v22 = vrot.slane %v2428_v20, %v4058_v41  ;;  %v2443_v24 = vcombine.high %v2435_v21, %v2435_v21 }
 0x28e   : > { %v2444_v25 = vcombine.high %v2442_v22, %v2442_v22  ;;  %v2866_v26 = vpack.c.bf16 %v2443_v24, %v2435_v21 }
 0x290   : > { %v2867_v27 = vpack.c.bf16 %v2444_v25, %v2442_v22  ;;  %v2465_v28 = vrot.slane %v2866_v26, %v3792_v5 }
 0x292   : > { %v2472_v30 = vrot.slane %v2867_v27, %v3792_v5 }
 0x294   : > { %v2473_v31 = vcombine.low %v2465_v28, %v2472_v30 }
 0x296   : > { %2868 = vst.sshfl [vmem:[%s265_s29] sm:$0x55 pattern:$0x73625140] %v2473_v31 }
 0x297 PF: > { %s19_s22 = sadd.s32 1, %s3523_s22   ;;  %s4141_s10 = sld [smem:[#allocation9_spill]] }
 0x298   : > { %p16_p1 = scmp.ge.s32.totalorder %s19_s22, 6   ;;  %s4142_s26 = sld [smem:[#allocation10_spill]] }
 0x299   : > { %s4143_s12 = smov %s3487_s13  ;;  %s4144_s13 = smov %s3491_s14 }
 0x29a   : > { %s4145_s14 = smov %s3693_s30  ;;  %s4146_s15 = smov %s3499_s16 }
 0x29b   : > { %s4147_s16 = smov %s3503_s17  ;;  %s4148_s17 = smov %s3698_s27 }
 0x29c   : > { %s4149_s18 = smov %s3515_s20  ;;  %s4150_s19 = smov %s3519_s21 }
 0x29d   : > { %s4151_s20 = smov %s4141_s10  ;;  %18 = sbr.rel (!%p16_p1) target bundleno = 11 (0xb), region = 96 }
 0x29e   : > { %s4152_s21 = smov %s4142_s26 }
 0x2a2   :  { %2503 = vsyncpa [#allocation4], 1 }
 0x2a3   :  { %2505 = vsyncpa [#allocation4 + $0x1], 1 }
 0x2a4   :  { %2506 = vsyncpa [#allocation6], 1 }
 0x2a5   :  { %2508 = vsyncpa [#allocation6 + $0x1], 1 }

// kernel: tile.9
= control target key start
LH: loop header
LB: loop body
LE: loop exit
PB: predicated region body
PF: predicated region fallthrough
CT: control target
= control target key end

     0   :  { %vm13_vm0 = vcmask 523264   ;;  %s16_s10 = smov 3  ;;  %s46_s11 = smov 64   ;;  %vm25_vm1 = vcmask 1048064   ;;  %s69_s0 = inlined_call_operand.vmem [shape: f32[2,4,64], index: 0, kind: input, shape index: {}]   ;;  %s70_s1 = inlined_call_operand.vmem [shape: f32[2,256], index: 1, kind: output, shape index: {}]  }
   0x1   :  { %v43_v0 = vld [vmem:[%s69_s0 + $0x4] sm:$0xf]  ;;  %v9_v1 = vld [vmem:[%s69_s0] sm:$0xf]  ;;  %s11_s0 = smov 3 }
   0x2   :  { %8 = vst [vmem:[#allocation1 + $0x8] sm:$0xf] %v43_v0  ;;  %10 = vst [vmem:[#allocation1] sm:$0xf] %v9_v1 }
   0x9   :  { %v22_v2 = vld.sshfl [vmem:[#allocation1 + $0x1] sm:$0xff pattern:$0xaaaaa280]   ;;  %v12_v3 = vld [vmem:[#allocation1] ss:$2 sm:%s11_s0]  }
   0xa   :  { %23 = vrot.lane.b32.xlu0 %v22_v2, %s46_s11  ;;  %14 = vst.msk [vmem:[#allocation0] ss:$8 sm:$0x3] %vm13_vm0, %v12_v3   ;;  %v17_v4 = vld [vmem:[#allocation1 + $0x8] ss:$2 sm:%s16_s10]  }
   0xb   :  { %20 = vst.msk [vmem:[#allocation0 + $0x1] ss:$8 sm:$0x3] %vm13_vm0, %v17_v4  }
  0x7c   :  { %v24_v5 = vpop.permute.xlu0 %23  }
  0x7d   :  { %26 = vst.msk [vmem:[#allocation0] sm:$0x3] %vm25_vm1, %v24_v5   ;;  %28 = vst.msk [vmem:[#allocation0 + $0x6] sm:$0xc] %vm25_vm1, %v24_v5  }
  0x84   :  { %v33_v6 = vld [vmem:[#allocation0] sm:$0x3]  ;;  %v38_v7 = vld [vmem:[#allocation0 + $0x8] sm:$0x3] }
  0x85   :  { %36 = vst [vmem:[%s70_s1] sm:$0x3] %v33_v6  ;;  %44 = vst [vmem:[%s70_s1 + $0x2] sm:$0x3] %v38_v7 }

// kernel: conv_ae_forward.17
= control target key start
LH: loop header
LB: loop body
LE: loop exit
PB: predicated region body
PF: predicated region fallthrough
CT: control target
= control target key end

     0   :  { %s1873_s0 = inlined_call_operand.vmem [shape: bf16[32,1152], index: 0, kind: input, shape index: {}]   ;;  %s1874_s1 = inlined_call_operand.vmem [shape: bf16[1152,256], index: 1, kind: input, shape index: {}]   ;;  %s1875_s2 = inlined_call_operand.vmem [shape: f32[1,256], index: 2, kind: input, shape index: {}]   ;;  %s1876_s3 = inlined_call_operand.vmem [shape: bf16[32,256], index: 3, kind: output, shape index: {0}]   ;;  %s1877_s4 = inlined_call_operand.vmem [shape: f32[1,2,256], index: 4, kind: output, shape index: {1}]  }
   0x1   :  { %1882 = sst [smem:[#allocation10_spill]] %s1873_s0 }
   0x2   :  { %1883 = sst [smem:[#allocation11_spill]] %s1874_s1 }
   0x3   :  { %s1560_s15 = smov 0   ;;  %s1562_s16 = smov 0  }
   0x4   :  { %s1564_s17 = smov 0   ;;  %s1566_s18 = smov 0  }
   0x5   :  { %s1568_s19 = smov 0   ;;  %s1570_s20 = smov 0  }
   0x6   :  { %s1572_s21 = smov 0   ;;  %s1574_s22 = smov 0  }
   0x7   :  { %s1576_s23 = smov 0   ;;  %s1578_s24 = smov 0  }
   0x8   :  { %s1580_s25 = smov 0  }
   0x9 LB: > { %1884 = sst [smem:[#allocation6_spill]] %s1525_s23  ;;  %s1189_s26 = sadd.s32 4294967295, %s1533_s25   ;;  %s1533_s25 = sphi %s1580_s25, %s15_s25   ;;  %s1529_s24 = sphi %s1578_s24, %s1896_s24   ;;  %s1525_s23 = sphi %s1576_s23, %s1895_s23   ;;  %s1521_s22 = sphi %s1574_s22, %s1894_s22   ;;  %s1517_s21 = sphi %s1572_s21, %s1893_s21   ;;  %s1513_s20 = sphi %s1570_s20, %s1902_s20   ;;  %s1509_s19 = sphi %s1568_s19, %s1901_s19   ;;  %s1505_s18 = sphi %s1566_s18, %s1900_s18   ;;  %s1501_s17 = sphi %s1564_s17, %s1899_s17   ;;  %s1497_s16 = sphi %s1562_s16, %s1898_s16   ;;  %s1493_s15 = sphi %s1560_s15, %s1897_s15  }
   0xa   : > { %1885 = sst [smem:[#allocation7_spill]] %s1529_s24  ;;  %s27_s27 = sadd.s32 1, %s1525_s23 }
   0xb   : > { %p28_p0 = scmp.ge.s32.totalorder %s27_s27, 3  ;;  %s30_s28 = sadd.s32 1, %s1529_s24 }
   0xc   : > { %s43_s29 = sadd.s32 1, %s1513_s20  ;;  %p50_p1 = scmp.ne.s32.totalorder %s1513_s20, %s1509_s19 }
   0xd   : > { %s1904_s27 = smov (%p28_p0, %s27_s27), 0  ;;  %s1906_s28 = smov (!%p28_p0, %s30_s28), %s1529_s24 }
   0xe   : > { %1886 = sst [smem:[#allocation8_spill]] %s1904_s27  ;;  %s39_s30 = ssub.s32 %s1525_s23, %s1904_s27 }
   0xf   : > { %p51_p2 = scmp.eq.s32.totalorder %s1533_s25, 0  ;;  %p32_p3 = scmp.ge.s32.totalorder %s1906_s28, 2 }
  0x10   : > { %p41_p4 = scmp.eq.s32.totalorder %s39_s30, 0  ;;  %s71_s6 = sadd.s32 1, %s1505_s18 }
  0x11   : > { %p1627_p5 = por %p51_p2, %p50_p1  ;;  %s1908_s28 = smov (%p32_p3, %s1906_s28), 0 }
  0x12   : > { %1888 = sst [smem:[#allocation9_spill]] %s1908_s28  ;;  %s67_s8 = ssub.s32 %s1529_s24, %s1908_s28 }
  0x13   : > { %s1635_s7 = scalar_select %p41_p4, %s1513_s20, %s43_s29  }
  0x14   : > { %p78_p6 = scmp.ne.s32.totalorder %s1505_s18, %s1501_s17  ;;  %s68_s9 = sor.u32 %s67_s8, %s39_s30 }
  0x15   : > { %p123_p7 = scmp.eq.s32.totalorder %s67_s8, 0  ;;  %p69_p8 = scmp.eq.s32.totalorder %s68_s9, 0 }
  0x16   : > { %p1641_p9 = por %p78_p6, %p51_p2  ;;  %s125_s11 = sadd.s32 1, %s1497_s16 }
  0x17   : > { %p135_p10 = scmp.ne.s32.totalorder %s1497_s16, %s1493_s15  ;;  %p136_p11 = scmp.eq.s32.totalorder %s1189_s26, 5 }
  0x18   : > { %s1649_s12 = scalar_select %p69_p8, %s1505_s18, %s71_s6  }
  0x19   : > { %s1652_s13 = scalar_select %p123_p7, %s1497_s16, %s125_s11  }
  0x1a   : > { %p1654_p12 = por %p136_p11, %p135_p10  ;;  %p1192_p13 = scmp.ge.s32.totalorder %s1533_s25, 6 }
  0x1c   : > { %186 = sbr.rel (%p1192_p13) target bundleno = 87 (0x57), region = 16 }
  0x21   : > { %189 = sbr.rel (!%p1627_p5) target bundleno = 46 (0x2e), region = 20  ;;  %s191_s29 = sand.u32 (%p1627_p5), 1, %s1513_s20  }
  0x22   : > { %s1248_s30 = smul.u32 (%p1627_p5), 12, %s1525_s23  ;;  %s1891_s0 = sld [smem:[#allocation10_spill]] (%p1627_p5) }
  0x23   : > { %s1323_s8 = smul.u32 (%p1627_p5), 48, %s191_s29 }
  0x25   : > { %s193_s26 = scalar_lea.vmem (%p1627_p5), [#allocation3], %s1323_s8 }
  0x28   : > { %s199_s11 = scalar_lea.vmem %s1891_s0, %s1248_s30 }
  0x29   : > { %v214_v0 = vld [vmem:[%s199_s11] sm:$0xff]  ;;  %v218_v2 = vld [vmem:[%s199_s11 + $0x48] sm:$0xff]  ;;  %v1198_v6 = vld [vmem:[%s199_s11 + $0x50] sm:$0xf] }
  0x2a   : > { %v216_v1 = vld [vmem:[%s199_s11 + $0x24] sm:$0xff]  ;;  %215 = vst [vmem:[%s193_s26] sm:$0xff] %v214_v0  ;;  %219 = vst [vmem:[%s193_s26 + $0x18] sm:$0xff] %v218_v2  ;;  %v220_v3 = vld [vmem:[%s199_s11 + $0x6c] sm:$0xff] }
  0x2b   : > { %217 = vst [vmem:[%s193_s26 + $0xc] sm:$0xff] %v216_v1  ;;  %v1194_v4 = vld [vmem:[%s199_s11 + $0x8] sm:$0xf]  ;;  %v1196_v5 = vld [vmem:[%s199_s11 + $0x2c] sm:$0xf]  ;;  %221 = vst [vmem:[%s193_s26 + $0x24] sm:$0xff] %v220_v3 }
  0x2c   : > { %1195 = vst [vmem:[%s193_s26 + $0x8] sm:$0xf] %v1194_v4  ;;  %1197 = vst [vmem:[%s193_s26 + $0x14] sm:$0xf] %v1196_v5  ;;  %v1200_v7 = vld [vmem:[%s199_s11 + $0x74] sm:$0xf] }
  0x2d   : > { %1199 = vst [vmem:[%s193_s26 + $0x20] sm:$0xf] %v1198_v6  ;;  %1201 = vst [vmem:[%s193_s26 + $0x2c] sm:$0xf] %v1200_v7 }
  0x2e PF: > { %243 = sbr.rel (!%p1641_p9) target bundleno = 87 (0x57), region = 46  ;;  %s245_s5 = sand.u32 (%p1641_p9), 1, %s1505_s18  }
  0x2f   : > { %s1249_s29 = smul.u32 (%p1641_p9), 96, %s1525_s23  ;;  %s1892_s1 = sld [smem:[#allocation11_spill]] (%p1641_p9) }
  0x30   : > { %s1324_s30 = smul.u32 (%p1641_p9), 192, %s245_s5 }
  0x31   : > { %s250_s8 = sadd.s32 (%p1641_p9), %s1529_s24, %s1249_s29 }
  0x32   : > { %s1203_s6 = sshll.u32 (%p1641_p9), %s250_s8, 2  ;;  %s1679_s10 = scalar_lea.vmem (%p1641_p9), [#allocation4], %s1324_s30 }
  0x35   : > { %s1674_s28 = scalar_lea.vmem %s1892_s1, %s1203_s6 }
  0x36   : > { %v269_v8 = vld [vmem:[%s1674_s28] sm:$0xf]  ;;  %v271_v9 = vld [vmem:[%s1674_s28 + $0x8] sm:$0xf]  ;;  %v273_v10 = vld [vmem:[%s1674_s28 + $0x10] sm:$0xf] }
  0x37   : > { %270 = vst [vmem:[%s1679_s10] sm:$0xf] %v269_v8  ;;  %272 = vst [vmem:[%s1679_s10 + $0x4] sm:$0xf] %v271_v9  ;;  %v275_v11 = vld [vmem:[%s1674_s28 + $0x18] sm:$0xf] }
  0x38   : > { %274 = vst [vmem:[%s1679_s10 + $0x8] sm:$0xf] %v273_v10  ;;  %v277_v12 = vld [vmem:[%s1674_s28 + $0x20] sm:$0xf]  ;;  %v279_v13 = vld [vmem:[%s1674_s28 + $0x28] sm:$0xf] }
  0x39   : > { %276 = vst [vmem:[%s1679_s10 + $0xc] sm:$0xf] %v275_v11  ;;  %278 = vst [vmem:[%s1679_s10 + $0x10] sm:$0xf] %v277_v12  ;;  %v281_v14 = vld [vmem:[%s1674_s28 + $0x30] sm:$0xf] }
  0x3a   : > { %280 = vst [vmem:[%s1679_s10 + $0x14] sm:$0xf] %v279_v13  ;;  %v283_v15 = vld [vmem:[%s1674_s28 + $0x38] sm:$0xf]  ;;  %v285_v16 = vld [vmem:[%s1674_s28 + $0x40] sm:$0xf] }
  0x3b   : > { %282 = vst [vmem:[%s1679_s10 + $0x18] sm:$0xf] %v281_v14  ;;  %284 = vst [vmem:[%s1679_s10 + $0x1c] sm:$0xf] %v283_v15  ;;  %v287_v17 = vld [vmem:[%s1674_s28 + $0x48] sm:$0xf] }
  0x3c   : > { %286 = vst [vmem:[%s1679_s10 + $0x20] sm:$0xf] %v285_v16  ;;  %v289_v18 = vld [vmem:[%s1674_s28 + $0x50] sm:$0xf]  ;;  %v291_v19 = vld [vmem:[%s1674_s28 + $0x58] sm:$0xf] }
  0x3d   : > { %288 = vst [vmem:[%s1679_s10 + $0x24] sm:$0xf] %v287_v17  ;;  %290 = vst [vmem:[%s1679_s10 + $0x28] sm:$0xf] %v289_v18  ;;  %v293_v20 = vld [vmem:[%s1674_s28 + $0x60] sm:$0xf] }
  0x3e   : > { %292 = vst [vmem:[%s1679_s10 + $0x2c] sm:$0xf] %v291_v19  ;;  %v295_v21 = vld [vmem:[%s1674_s28 + $0x68] sm:$0xf]  ;;  %v297_v22 = vld [vmem:[%s1674_s28 + $0x70] sm:$0xf] }
  0x3f   : > { %294 = vst [vmem:[%s1679_s10 + $0x30] sm:$0xf] %v293_v20  ;;  %296 = vst [vmem:[%s1679_s10 + $0x34] sm:$0xf] %v295_v21  ;;  %v299_v23 = vld [vmem:[%s1674_s28 + $0x78] sm:$0xf] }
  0x40   : > { %298 = vst [vmem:[%s1679_s10 + $0x38] sm:$0xf] %v297_v22  ;;  %v301_v24 = vld [vmem:[%s1674_s28 + $0x80] sm:$0xf]  ;;  %v303_v25 = vld [vmem:[%s1674_s28 + $0x88] sm:$0xf] }
  0x41   : > { %300 = vst [vmem:[%s1679_s10 + $0x3c] sm:$0xf] %v299_v23  ;;  %302 = vst [vmem:[%s1679_s10 + $0x40] sm:$0xf] %v301_v24  ;;  %v305_v26 = vld [vmem:[%s1674_s28 + $0x90] sm:$0xf] }
  0x42   : > { %304 = vst [vmem:[%s1679_s10 + $0x44] sm:$0xf] %v303_v25  ;;  %v307_v27 = vld [vmem:[%s1674_s28 + $0x98] sm:$0xf]  ;;  %v309_v28 = vld [vmem:[%s1674_s28 + $0xa0] sm:$0xf] }
  0x43   : > { %306 = vst [vmem:[%s1679_s10 + $0x48] sm:$0xf] %v305_v26  ;;  %308 = vst [vmem:[%s1679_s10 + $0x4c] sm:$0xf] %v307_v27  ;;  %v311_v29 = vld [vmem:[%s1674_s28 + $0xa8] sm:$0xf] }
  0x44   : > { %310 = vst [vmem:[%s1679_s10 + $0x50] sm:$0xf] %v309_v28  ;;  %v313_v30 = vld [vmem:[%s1674_s28 + $0xb0] sm:$0xf]  ;;  %v315_v31 = vld [vmem:[%s1674_s28 + $0xb8] sm:$0xf] }
  0x45   : > { %312 = vst [vmem:[%s1679_s10 + $0x54] sm:$0xf] %v311_v29  ;;  %314 = vst [vmem:[%s1679_s10 + $0x58] sm:$0xf] %v313_v30  ;;  %v317_v32 = vld [vmem:[%s1674_s28 + $0xc0] sm:$0xf] }
  0x46   : > { %316 = vst [vmem:[%s1679_s10 + $0x5c] sm:$0xf] %v315_v31  ;;  %v319_v33 = vld [vmem:[%s1674_s28 + $0xc8] sm:$0xf]  ;;  %v321_v34 = vld [vmem:[%s1674_s28 + $0xd0] sm:$0xf] }
  0x47   : > { %318 = vst [vmem:[%s1679_s10 + $0x60] sm:$0xf] %v317_v32  ;;  %320 = vst [vmem:[%s1679_s10 + $0x64] sm:$0xf] %v319_v33  ;;  %v323_v35 = vld [vmem:[%s1674_s28 + $0xd8] sm:$0xf] }
  0x48   : > { %322 = vst [vmem:[%s1679_s10 + $0x68] sm:$0xf] %v321_v34  ;;  %v325_v36 = vld [vmem:[%s1674_s28 + $0xe0] sm:$0xf]  ;;  %v327_v37 = vld [vmem:[%s1674_s28 + $0xe8] sm:$0xf] }
  0x49   : > { %324 = vst [vmem:[%s1679_s10 + $0x6c] sm:$0xf] %v323_v35  ;;  %326 = vst [vmem:[%s1679_s10 + $0x70] sm:$0xf] %v325_v36  ;;  %v329_v38 = vld [vmem:[%s1674_s28 + $0xf0] sm:$0xf] }
  0x4a   : > { %328 = vst [vmem:[%s1679_s10 + $0x74] sm:$0xf] %v327_v37  ;;  %v331_v39 = vld [vmem:[%s1674_s28 + $0xf8] sm:$0xf]  ;;  %v333_v40 = vld [vmem:[%s1674_s28 + $0x100] sm:$0xf] }
  0x4b   : > { %330 = vst [vmem:[%s1679_s10 + $0x78] sm:$0xf] %v329_v38  ;;  %332 = vst [vmem:[%s1679_s10 + $0x7c] sm:$0xf] %v331_v39  ;;  %v335_v41 = vld [vmem:[%s1674_s28 + $0x108] sm:$0xf] }
  0x4c   : > { %334 = vst [vmem:[%s1679_s10 + $0x80] sm:$0xf] %v333_v40  ;;  %v337_v42 = vld [vmem:[%s1674_s28 + $0x110] sm:$0xf]  ;;  %v339_v43 = vld [vmem:[%s1674_s28 + $0x118] sm:$0xf] }
  0x4d   : > { %336 = vst [vmem:[%s1679_s10 + $0x84] sm:$0xf] %v335_v41  ;;  %338 = vst [vmem:[%s1679_s10 + $0x88] sm:$0xf] %v337_v42  ;;  %v341_v44 = vld [vmem:[%s1674_s28 + $0x120] sm:$0xf] }
  0x4e   : > { %340 = vst [vmem:[%s1679_s10 + $0x8c] sm:$0xf] %v339_v43  ;;  %v343_v45 = vld [vmem:[%s1674_s28 + $0x128] sm:$0xf]  ;;  %v345_v46 = vld [vmem:[%s1674_s28 + $0x130] sm:$0xf] }
  0x4f   : > { %342 = vst [vmem:[%s1679_s10 + $0x90] sm:$0xf] %v341_v44  ;;  %344 = vst [vmem:[%s1679_s10 + $0x94] sm:$0xf] %v343_v45  ;;  %v347_v47 = vld [vmem:[%s1674_s28 + $0x138] sm:$0xf] }
  0x50   : > { %346 = vst [vmem:[%s1679_s10 + $0x98] sm:$0xf] %v345_v46  ;;  %v349_v48 = vld [vmem:[%s1674_s28 + $0x140] sm:$0xf]  ;;  %v351_v49 = vld [vmem:[%s1674_s28 + $0x148] sm:$0xf] }
  0x51   : > { %348 = vst [vmem:[%s1679_s10 + $0x9c] sm:$0xf] %v347_v47  ;;  %350 = vst [vmem:[%s1679_s10 + $0xa0] sm:$0xf] %v349_v48  ;;  %v353_v50 = vld [vmem:[%s1674_s28 + $0x150] sm:$0xf] }
  0x52   : > { %352 = vst [vmem:[%s1679_s10 + $0xa4] sm:$0xf] %v351_v49  ;;  %v355_v51 = vld [vmem:[%s1674_s28 + $0x158] sm:$0xf]  ;;  %v357_v52 = vld [vmem:[%s1674_s28 + $0x160] sm:$0xf] }
  0x53   : > { %354 = vst [vmem:[%s1679_s10 + $0xa8] sm:$0xf] %v353_v50  ;;  %356 = vst [vmem:[%s1679_s10 + $0xac] sm:$0xf] %v355_v51  ;;  %v359_v53 = vld [vmem:[%s1674_s28 + $0x168] sm:$0xf] }
  0x54   : > { %358 = vst [vmem:[%s1679_s10 + $0xb0] sm:$0xf] %v357_v52  ;;  %v361_v54 = vld [vmem:[%s1674_s28 + $0x170] sm:$0xf]  ;;  %v363_v55 = vld [vmem:[%s1674_s28 + $0x178] sm:$0xf] }
  0x55   : > { %360 = vst [vmem:[%s1679_s10 + $0xb4] sm:$0xf] %v359_v53  ;;  %362 = vst [vmem:[%s1679_s10 + $0xb8] sm:$0xf] %v361_v54 }
  0x56   : > { %364 = vst [vmem:[%s1679_s10 + $0xbc] sm:$0xf] %v363_v55 }
  0x57 PF: > { %p1204_p0 = scmp.ge.s32.totalorder %s1533_s25, 1  ;;  %p489_p1 = scmp.lt.s32.totalorder %s1533_s25, 7 }
  0x59   : > { %p490_p2 = pnand %p1204_p0, %p489_p1 }
  0x5a   : > { %s496_s0 = sand.u32 (!%p490_p2), 1, %s1509_s19   ;;  %s503_s11 = sand.u32 (!%p490_p2), 1, %s1501_s17  }
  0x5b   : > { %493 = sbr.rel (%p490_p2) target bundleno = 382 (0x17e), region = 91  ;;  %s529_s28 = sand.u32 (!%p490_p2), 1, %s1493_s15  }
  0x5c   : > { %s1325_s26 = smul.u32 (!%p490_p2), 48, %s496_s0  ;;  %s1205_s29 = sshll.u32 (!%p490_p2), %s529_s28, 4 }
  0x5d   : > { %s1326_s5 = smul.u32 (!%p490_p2), 192, %s503_s11  ;;  %p545_p3 = scmp.lt.s32.totalorder (!%p490_p2), %s1521_s22, 1 }
  0x5e   : > { %s1789_s23 = scalar_lea.vmem (!%p490_p2), [#allocation3], %s1325_s26  ;;  %s1793_s17 = scalar_lea.vmem (!%p490_p2), [#allocation5], %s1205_s29 }
  0x5f   : > { %s1791_s19 = scalar_lea.vmem (!%p490_p2), [#allocation4], %s1326_s5  ;;  %p1207_p4 = scmp.ne.s32.totalorder (!%p490_p2), %s1517_s21, 0 }
  0x60   : > { %s546_s30 = scalar_select %p545_p3, %s1521_s22, 1 }
  0x61   : > { %561 = sbr.rel (%p1207_p4) target bundleno = 105 (0x69), region = 103 }
  0x62   : > { %s547_s9 = scalar_lea.vmem %s1875_s2, %s546_s30  ;;  %s1206_s10 = sshll.u32 %s546_s30, 1 }
  0x63   : > { %s1787_s24 = scalar_lea.vmem %s1877_s4, %s1206_s10 }
  0x66   : > { %v1208_v56 = vld [vmem:[%s547_s9] ss:$0 sm:$0xff] }
  0x67   : > { %569 = vst [vmem:[#allocation2 + $0x10] sm:$0xff] %v1208_v56  ;;  %570 = vst [vmem:[#allocation2] sm:$0xff] %v1208_v56 }
  0x68   : > { %571 = vst [vmem:[#allocation2 + $0x18] sm:$0xff] %v1208_v56  ;;  %572 = vst [vmem:[#allocation2 + $0x8] sm:$0xff] %v1208_v56 }
  0x69 PF: > { %v1415_v57 = vld [vmem:[%s1791_s19 + $0x78] sm:$0xff]   ;;  %v1418_v60 = vld [vmem:[%s1791_s19 + $0x70] sm:$0xff]   ;;  %v1421_v63 = vld [vmem:[%s1791_s19 + $0x68] sm:$0xff]   ;;  %p1239_p5 = scmp.ne.s32.totalorder %s1517_s21, 2 }
  0x6a   : > { %v1416_v58 = vld [vmem:[%s1791_s19 + $0x38] sm:$0xff]   ;;  %1265 = vmatprep.subr.bf16.mxu0 %v1415_v57  ;;  %v1419_v61 = vld [vmem:[%s1791_s19 + $0x30] sm:$0xff]   ;;  %v1422_v0 = vld [vmem:[%s1791_s19 + $0x28] sm:$0xff]  }
  0x6b   : > { %v1417_v59 = vld [vmem:[%s1791_s19 + $0xb8] sm:$0xff]   ;;  %1266 = vmatpush3.bf16.msra.mxu0 %v1416_v58  ;;  %v1420_v62 = vld [vmem:[%s1791_s19 + $0xb0] sm:$0xff]   ;;  %v1423_v1 = vld [vmem:[%s1791_s19 + $0xa8] sm:$0xff]  }
  0x6c   : > { %1303 = vmatprep.subr.bf16.mxu1 %v1417_v59  ;;  %1267 = vmatprep.subr.bf16.mxu0 %v1418_v60  ;;  %v1424_v2 = vld [vmem:[%s1791_s19 + $0x60] sm:$0xff]   ;;  %v1427_v5 = vld [vmem:[%s1791_s19 + $0x58] sm:$0xff]   ;;  %v1430_v8 = vld [vmem:[%s1791_s19 + $0x50] sm:$0xff]  }
  0x6d   : > { %1304 = vmatpush3.bf16.msra.mxu1 %v1417_v59  ;;  %v1425_v3 = vld [vmem:[%s1791_s19 + $0x20] sm:$0xff]   ;;  %v1429_v6 = vld [vmem:[%s1791_s19 + $0x98] sm:$0xff]   ;;  %v1432_v9 = vld [vmem:[%s1791_s19 + $0x90] sm:$0xff]  }
  0x6e   : > { %1305 = vmatprep.subr.bf16.mxu1 %v1420_v62  ;;  %v1426_v4 = vld [vmem:[%s1791_s19 + $0xa0] sm:$0xff]   ;;  %v1428_v7 = vld [vmem:[%s1791_s19 + $0x18] sm:$0xff]   ;;  %v1431_v10 = vld [vmem:[%s1791_s19 + $0x10] sm:$0xff]  }
  0x6f   : > { %1268 = vmatpush3.bf16.msra.mxu0 %v1419_v61  ;;  %v1433_v11 = vld [vmem:[%s1791_s19 + $0x48] sm:$0xff]   ;;  %v1436_v14 = vld [vmem:[%s1791_s19 + $0x40] sm:$0xff]   ;;  %v573_v28 = vld [vmem:[#allocation2 + $0x10] sm:$0xff] }
  0x70   : > { %1269 = vmatprep.subr.bf16.mxu0 %v1421_v63  ;;  %v1434_v12 = vld [vmem:[%s1791_s19 + $0x8] sm:$0xff]   ;;  %v1438_v15 = vld [vmem:[%s1791_s19 + $0x80] sm:$0xff]   ;;  %v575_v42 = vld [vmem:[#allocation2 + $0x18] sm:$0xff] }
  0x71   : > { %1306 = vmatpush3.bf16.msra.mxu1 %v1420_v62  ;;  %v1435_v13 = vld [vmem:[%s1791_s19 + $0x88] sm:$0xff]   ;;  %v1441_v16 = vld [vmem:[%s1789_s23 + $0x4] ss:$12 sps:$4 sm:$0xff]  }
  0x72   : > { %1307 = vmatprep.subr.bf16.mxu1 %v1423_v1  ;;  %v1442_v17 = vld [vmem:[%s1789_s23 + $0x8] ss:$12 sps:$4 sm:$0xff]   ;;  %841 = vmatprep.mubr.bf16.mxu0 %v1441_v16  ;;  %v1439_v19 = vld [vmem:[%s1789_s23] ss:$12 sps:$4 sm:$0xff]   ;;  %v1446_v22 = vld [vmem:[%s1789_s23 + $0x18] ss:$12 sps:$4 sm:$0xff]  }
  0x73   : > { %1270 = vmatpush3.bf16.msra.mxu0 %v1422_v0  ;;  %v1437_v18 = vld [vmem:[%s1791_s19] sm:$0xff]   ;;  %1319 = vmatprep.mubr.bf16.mxu1 %v1442_v17  ;;  %v1444_v20 = vld [vmem:[%s1789_s23 + $0x1c] ss:$12 sps:$4 sm:$0xff]  }
  0x74   : > { %1271 = vmatprep.subr.bf16.mxu0 %v1424_v2  ;;  %v1443_v21 = vld [vmem:[%s1789_s23 + $0x20] ss:$12 sps:$4 sm:$0xff]  }
  0x75   : > { %1308 = vmatpush3.bf16.msra.mxu1 %v1423_v1  ;;  %v574_v36 = vld [vmem:[#allocation2] sm:$0xff]  ;;  %v576_v48 = vld [vmem:[#allocation2 + $0x8] sm:$0xff] }
  0x76   : > { %1309 = vmatprep.subr.bf16.mxu1 %v1426_v4 }
  0x77   : > { %1272 = vmatpush3.bf16.msra.mxu0 %v1425_v3 }
  0x78   : > { %1273 = vmatprep.subr.bf16.mxu0 %v1427_v5 }
  0x79   : > { %1310 = vmatpush3.bf16.msra.mxu1 %v1426_v4 }
  0x7a   : > { %1311 = vmatprep.subr.bf16.mxu1 %v1429_v6 }
  0x7b   : > { %1274 = vmatpush3.bf16.msra.mxu0 %v1428_v7 }
  0x7c   : > { %1275 = vmatprep.subr.bf16.mxu0 %v1430_v8 }
  0x7d   : > { %1312 = vmatpush3.bf16.msra.mxu1 %v1429_v6 }
  0x7e   : > { %1313 = vmatprep.subr.bf16.mxu1 %v1432_v9 }
  0x7f   : > { %1276 = vmatpush3.bf16.msra.mxu0 %v1431_v10 }
  0x80   : > { %1277 = vmatprep.subr.bf16.mxu0 %v1433_v11 }
  0x81   : > { %1314 = vmatpush3.bf16.msra.mxu1 %v1432_v9 }
  0x82   : > { %1315 = vmatprep.subr.bf16.mxu1 %v1435_v13 }
  0x83   : > { %1278 = vmatpush3.bf16.msra.mxu0 %v1434_v12 }
  0x84   : > { %1279 = vmatprep.subr.bf16.mxu0 %v1436_v14 }
  0x85   : > { %1316 = vmatpush3.bf16.msra.mxu1 %v1435_v13 }
  0x86   : > { %1317 = vmatprep.subr.bf16.mxu1 %v1438_v15 }
  0x87   : > { %1280 = vmatpush3.bf16.msra.mxu0 %v1437_v18 }
  0x89   : > { %1318 = vmatpush3.bf16.msra.mxu1 %v1438_v15 }
  0x8a   : > { %842 = vmatmul.mubr.bf16.vlgmr.msra.gmra.mxu0 %v1439_v19 }
  0x8b   : > { %849 = vmatprep.mubr.bf16.mxu0 %v1444_v20 }
  0x8c   : > { %1320 = vmatmul.mubr.bf16.vlgmr.msra.gmra.mxu1 %v1443_v21 }
  0x92   : > { %850 = vmatmul.mubr.bf16.gmra.mxu0 %v1446_v22 }
 0x14a   : > { %v1281_v23 = vpop.f32.mrf.mxu0 }
 0x14c   : > { %v1282_v24 = vpop.f32.mrf.mxu0  ;;  %v1321_v25 = vpop.f32.mrf.mxu1 }
 0x14d   : > { %v1283_v26 = vadd.f32 %v1282_v24, %v1281_v23 }
 0x14e   : > { %v1284_v27 = vpop.f32.mrf.mxu0  ;;  %v892_v29 = vpop.f32.mrf.mxu1 }
 0x14f   : > { %v893_v30 = vadd.f32 %v1283_v26, %v892_v29 }
 0x150   : > { %v1285_v31 = vpop.f32.mrf.mxu0  ;;  %v1322_v32 = vpop.f32.mrf.mxu1 }
 0x151   : > { %v907_v33 = vadd.f32 %v893_v30, %v573_v28  ;;  %v1286_v34 = vadd.f32 %v1285_v31, %v1284_v27 }
 0x152   : > { %v1287_v35 = vpop.f32.mrf.mxu0  ;;  %v895_v37 = vpop.f32.mrf.mxu1 }
 0x153   : > { %911 = vst [vmem:[#allocation2 + $0x10] sm:$0xff] %v907_v33  ;;  %v896_v38 = vadd.f32 %v1286_v34, %v895_v37 }
 0x154   : > { %v1288_v39 = vpop.f32.mrf.mxu0 }
 0x155   : > { %v908_v40 = vadd.f32 %v896_v38, %v574_v36  ;;  %v1289_v41 = vadd.f32 %v1288_v39, %v1287_v35 }
 0x156   : > { %v1290_v43 = vpop.f32.mrf.mxu0 }
 0x157   : > { %912 = vst [vmem:[#allocation2] sm:$0xff] %v908_v40  ;;  %v901_v44 = vadd.f32 %v1321_v25, %v1289_v41 }
 0x158   : > { %v1291_v45 = vpop.f32.mrf.mxu0 }
 0x159   : > { %v909_v46 = vadd.f32 %v901_v44, %v575_v42  ;;  %v1292_v47 = vadd.f32 %v1291_v45, %v1290_v43 }
 0x15b   : > { %913 = vst [vmem:[#allocation2 + $0x18] sm:$0xff] %v909_v46  ;;  %v904_v49 = vadd.f32 %v1322_v32, %v1292_v47  ;;  %918 = sbr.rel (%p1239_p5) target bundleno = 377 (0x179), region = 107 }
 0x15d   : > { %v910_v50 = vadd.f32 %v904_v49, %v576_v48 }
 0x15f   : > { %914 = vst [vmem:[#allocation2 + $0x8] sm:$0xff] %v910_v50 }
 0x160   : > { %v919_v51 = vld [vmem:[#allocation2 + $0x10] sm:$0xff]  ;;  %v920_v52 = vld [vmem:[#allocation2] sm:$0xff]  ;;  %vm965_vm0 = vcmask 1040384  }
 0x161   : > { %v1257_v54 = vpack.c.bf16 %v920_v52, %v919_v51  ;;  %v943_v55 = vadd.f32 %v920_v52, %v919_v51  ;;  %v952_v56 = vmul.f32 %v919_v51, %v919_v51  ;;  %v953_v57 = vmul.f32 %v920_v52, %v920_v52 }
 0x162   : > { %v921_v53 = vld [vmem:[#allocation2 + $0x18] sm:$0xff] }
 0x163   : > { %v954_v60 = vmul.f32 %v921_v53, %v921_v53  ;;  %1258 = vst [vmem:[%s1793_s17] sm:$0xff] %v1257_v54   ;;  %v956_v61 = vadd.f32 %v953_v57, %v952_v56  ;;  %v944_v62 = vadd.f32 %v943_v55, %v921_v53 }
 0x165   : > { %v957_v1 = vadd.f32 %v956_v61, %v954_v60 }
 0x166   : > { %v922_v58 = vld [vmem:[#allocation2 + $0x8] sm:$0xff] }
 0x167   : > { %v1262_v59 = vpack.c.bf16 %v922_v58, %v921_v53  ;;  %v955_v63 = vmul.f32 %v922_v58, %v922_v58  ;;  %v945_v0 = vadd.f32 %v944_v62, %v922_v58 }
 0x169   : > { %1264 = vst [vmem:[%s1793_s17 + $0x8] sm:$0xff] %v1262_v59   ;;  %v946_v2 = vrot.slane %v945_v0, 4  ;;  %v958_v3 = vadd.f32 %v957_v1, %v955_v63 }
 0x16b   : > { %v947_v4 = vadd.f32 %v946_v2, %v945_v0  ;;  %v959_v5 = vrot.slane %v958_v3, 4 }
 0x16d   : > { %v948_v6 = vrot.slane %v947_v4, 2  ;;  %v960_v7 = vadd.f32 %v959_v5, %v958_v3 }
 0x16f   : > { %v949_v8 = vadd.f32 %v948_v6, %v947_v4  ;;  %v961_v9 = vrot.slane %v960_v7, 2 }
 0x171   : > { %v950_v10 = vrot.slane %v949_v8, 1  ;;  %v962_v11 = vadd.f32 %v961_v9, %v960_v7 }
 0x173   : > { %v951_v12 = vadd.f32 %v950_v10, %v949_v8  ;;  %v963_v13 = vrot.slane %v962_v11, 1 }
 0x175   : > { %v964_v14 = vadd.f32 %v963_v13, %v962_v11 }
 0x177   : > { %v966_v15 = vsel %vm965_vm0, %v951_v12, %v964_v14 }
 0x178   : > { %967 = vst [vmem:[%s1787_s24] sm:$0x3] %v966_v15 }
 0x179 PF: > { %982 = sbr.rel (!%p1654_p12) target bundleno = 382 (0x17e), region = 111  ;;  %s1245_s1 = sshll.u32 (%p1654_p12), %s1521_s22, 2  ;;  %v1004_v16 = vld [vmem:[%s1793_s17] sm:$0xf] (%p1654_p12)  ;;  %v1006_v17 = vld [vmem:[%s1793_s17 + $0x4] sm:$0xf] (%p1654_p12) }
 0x17a   : > { %s987_s23 = scalar_lea.vmem (%p1654_p12), %s1876_s3, %s1245_s1  ;;  %v1008_v18 = vld [vmem:[%s1793_s17 + $0x8] sm:$0xf] (%p1654_p12)  ;;  %v1010_v19 = vld [vmem:[%s1793_s17 + $0xc] sm:$0xf] (%p1654_p12) }
 0x17b   : > { %1005 = vst [vmem:[%s987_s23] sm:$0xf] (%p1654_p12), %v1004_v16  ;;  %1007 = vst [vmem:[%s987_s23 + $0x8] sm:$0xf] (%p1654_p12), %v1006_v17 }
 0x17c   : > { %1009 = vst [vmem:[%s987_s23 + $0x10] sm:$0xf] (%p1654_p12), %v1008_v18  ;;  %1011 = vst [vmem:[%s987_s23 + $0x18] sm:$0xf] (%p1654_p12), %v1010_v19 }
 0x17e PF: > { %s15_s25 = sadd.s32 1, %s1533_s25   ;;  %s1893_s21 = sld [smem:[#allocation6_spill]] }
 0x17f   : > { %p12_p6 = scmp.ge.s32.totalorder %s15_s25, 8   ;;  %s1894_s22 = sld [smem:[#allocation7_spill]] }
 0x180   : > { %s1895_s23 = sld [smem:[#allocation8_spill]]  ;;  %s1897_s15 = smov %s1497_s16 }
 0x181   : > { %s1896_s24 = sld [smem:[#allocation9_spill]]  ;;  %s1898_s16 = smov %s1652_s13 }
 0x182   : > { %s1899_s17 = smov %s1505_s18  ;;  %s1900_s18 = smov %s1649_s12 }
 0x183   : > { %s1901_s19 = smov %s1513_s20  ;;  %s1902_s20 = smov %s1635_s7 }
 0x184   :  { %14 = sbr.rel (!%p12_p6) target bundleno = 9 (0x9), region = 212 }

// kernel: conv_ae_forward.16
= control target key start
LH: loop header
LB: loop body
LE: loop exit
PB: predicated region body
PF: predicated region fallthrough
CT: control target
= control target key end

     0   :  { %s3832_s12 = smov 0   ;;  %s3834_s13 = smov 0   ;;  %s4778_s0 = inlined_call_operand.vmem [shape: bf16[2,1024], index: 0, kind: input, shape index: {}]   ;;  %s4779_s1 = inlined_call_operand.vmem [shape: bf16[1024,2048], index: 1, kind: input, shape index: {}]   ;;  %s4780_s2 = inlined_call_operand.vmem [shape: f32[1,2048], index: 2, kind: input, shape index: {}]   ;;  %s4781_s3 = inlined_call_operand.vmem [shape: bf16[2,2048], index: 3, kind: output, shape index: {}]  }
   0x1   :  { %s3836_s14 = smov 0   ;;  %s3838_s15 = smov 0  }
   0x2   :  { %s3840_s16 = smov 0  }
   0x3 LB: > { %s25_s17 = sadd.s32 1, %s3804_s15  ;;  %p67_p1 = scmp.ne.s32.totalorder %s3796_s13, %s3792_s12  ;;  %s3808_s16 = sphi %s3840_s16, %s13_s16   ;;  %s3804_s15 = sphi %s3838_s15, %s4785_s15   ;;  %s3800_s14 = sphi %s3836_s14, %s4784_s14   ;;  %s3796_s13 = sphi %s3834_s13, %s4783_s13   ;;  %s3792_s12 = sphi %s3832_s12, %s4782_s12  }
   0x4   : > { %p27_p0 = scmp.ge.s32.totalorder %s25_s17, 4  ;;  %p68_p2 = scmp.eq.s32.totalorder %s3808_s16, 0 }
   0x5   : > { %s60_s19 = sadd.s32 1, %s3796_s13  ;;  %p3065_p5 = scmp.ge.s32.totalorder %s3808_s16, 4 }
   0x6   : > { %s4787_s17 = smov (%p27_p0, %s25_s17), 0  ;;  %p69_p3 = por %p68_p2, %p67_p1 }
   0x7   : > { %s56_s18 = ssub.s32 %s3804_s15, %s4787_s17  ;;  %153 = sbr.rel (%p3065_p5) target bundleno = 144 (0x90), region = 20 }
   0x8   : > { %p58_p4 = scmp.eq.s32.totalorder %s56_s18, 0 }
   0xa   : > { %s3867_s20 = scalar_select %p58_p4, %s3796_s13, %s60_s19  }
   0xc   : > { %156 = sbr.rel (!%p69_p3) target bundleno = 144 (0x90), region = 24  ;;  %s158_s21 = sand.u32 (%p69_p3), 1, %s3796_s13  }
   0xd   : > { %s3334_s22 = sshll.u32 (%p69_p3), %s3804_s15, 4  ;;  %s3066_s23 = sshll.u32 (%p69_p3), %s158_s21, 11 }
   0xe   : > { %s3875_s26 = scalar_lea.vmem (%p69_p3), %s4779_s1, %s3334_s22  ;;  %s3880_s27 = scalar_lea.vmem (%p69_p3), [#allocation3], %s3066_s23 }
   0xf   : > { %v179_v0 = vld [vmem:[%s3875_s26] sm:$0xff] (%p69_p3)  ;;  %v181_v1 = vld [vmem:[%s3875_s26 + $0x8] sm:$0xff] (%p69_p3) }
  0x10   : > { %v183_v2 = vld [vmem:[%s3875_s26 + $0x40] sm:$0xff] (%p69_p3)  ;;  %180 = vst [vmem:[%s3880_s27] sm:$0xff] (%p69_p3), %v179_v0  ;;  %182 = vst [vmem:[%s3880_s27 + $0x8] sm:$0xff] (%p69_p3), %v181_v1  ;;  %v185_v3 = vld [vmem:[%s3875_s26 + $0x48] sm:$0xff] (%p69_p3) }
  0x11   : > { %184 = vst [vmem:[%s3880_s27 + $0x10] sm:$0xff] %v183_v2  ;;  %v187_v4 = vld [vmem:[%s3875_s26 + $0x80] sm:$0xff]  ;;  %v189_v5 = vld [vmem:[%s3875_s26 + $0x88] sm:$0xff]  ;;  %186 = vst [vmem:[%s3880_s27 + $0x18] sm:$0xff] %v185_v3 }
  0x12   : > { %188 = vst [vmem:[%s3880_s27 + $0x20] sm:$0xff] %v187_v4  ;;  %190 = vst [vmem:[%s3880_s27 + $0x28] sm:$0xff] %v189_v5  ;;  %v191_v6 = vld [vmem:[%s3875_s26 + $0xc0] sm:$0xff]  ;;  %v193_v7 = vld [vmem:[%s3875_s26 + $0xc8] sm:$0xff] }
  0x13   : > { %v195_v8 = vld [vmem:[%s3875_s26 + $0x100] sm:$0xff]  ;;  %192 = vst [vmem:[%s3880_s27 + $0x30] sm:$0xff] %v191_v6  ;;  %194 = vst [vmem:[%s3880_s27 + $0x38] sm:$0xff] %v193_v7  ;;  %v197_v9 = vld [vmem:[%s3875_s26 + $0x108] sm:$0xff] }
  0x14   : > { %196 = vst [vmem:[%s3880_s27 + $0x40] sm:$0xff] %v195_v8  ;;  %v199_v10 = vld [vmem:[%s3875_s26 + $0x140] sm:$0xff]  ;;  %v201_v11 = vld [vmem:[%s3875_s26 + $0x148] sm:$0xff]  ;;  %198 = vst [vmem:[%s3880_s27 + $0x48] sm:$0xff] %v197_v9 }
  0x15   : > { %200 = vst [vmem:[%s3880_s27 + $0x50] sm:$0xff] %v199_v10  ;;  %202 = vst [vmem:[%s3880_s27 + $0x58] sm:$0xff] %v201_v11  ;;  %v203_v12 = vld [vmem:[%s3875_s26 + $0x180] sm:$0xff]  ;;  %v205_v13 = vld [vmem:[%s3875_s26 + $0x188] sm:$0xff] }
  0x16   : > { %v207_v14 = vld [vmem:[%s3875_s26 + $0x1c0] sm:$0xff]  ;;  %204 = vst [vmem:[%s3880_s27 + $0x60] sm:$0xff] %v203_v12  ;;  %206 = vst [vmem:[%s3880_s27 + $0x68] sm:$0xff] %v205_v13  ;;  %v209_v15 = vld [vmem:[%s3875_s26 + $0x1c8] sm:$0xff] }
  0x17   : > { %208 = vst [vmem:[%s3880_s27 + $0x70] sm:$0xff] %v207_v14  ;;  %v211_v16 = vld [vmem:[%s3875_s26 + $0x200] sm:$0xff]  ;;  %v213_v17 = vld [vmem:[%s3875_s26 + $0x208] sm:$0xff]  ;;  %210 = vst [vmem:[%s3880_s27 + $0x78] sm:$0xff] %v209_v15 }
  0x18   : > { %212 = vst [vmem:[%s3880_s27 + $0x80] sm:$0xff] %v211_v16  ;;  %214 = vst [vmem:[%s3880_s27 + $0x88] sm:$0xff] %v213_v17  ;;  %v215_v18 = vld [vmem:[%s3875_s26 + $0x240] sm:$0xff]  ;;  %v217_v19 = vld [vmem:[%s3875_s26 + $0x248] sm:$0xff] }
  0x19   : > { %v219_v20 = vld [vmem:[%s3875_s26 + $0x280] sm:$0xff]  ;;  %216 = vst [vmem:[%s3880_s27 + $0x90] sm:$0xff] %v215_v18  ;;  %218 = vst [vmem:[%s3880_s27 + $0x98] sm:$0xff] %v217_v19  ;;  %v221_v21 = vld [vmem:[%s3875_s26 + $0x288] sm:$0xff] }
  0x1a   : > { %220 = vst [vmem:[%s3880_s27 + $0xa0] sm:$0xff] %v219_v20  ;;  %v223_v22 = vld [vmem:[%s3875_s26 + $0x2c0] sm:$0xff]  ;;  %v225_v23 = vld [vmem:[%s3875_s26 + $0x2c8] sm:$0xff]  ;;  %222 = vst [vmem:[%s3880_s27 + $0xa8] sm:$0xff] %v221_v21 }
  0x1b   : > { %224 = vst [vmem:[%s3880_s27 + $0xb0] sm:$0xff] %v223_v22  ;;  %226 = vst [vmem:[%s3880_s27 + $0xb8] sm:$0xff] %v225_v23  ;;  %v227_v24 = vld [vmem:[%s3875_s26 + $0x300] sm:$0xff]  ;;  %v229_v25 = vld [vmem:[%s3875_s26 + $0x308] sm:$0xff] }
  0x1c   : > { %v231_v26 = vld [vmem:[%s3875_s26 + $0x340] sm:$0xff]  ;;  %228 = vst [vmem:[%s3880_s27 + $0xc0] sm:$0xff] %v227_v24  ;;  %230 = vst [vmem:[%s3880_s27 + $0xc8] sm:$0xff] %v229_v25  ;;  %v233_v27 = vld [vmem:[%s3875_s26 + $0x348] sm:$0xff] }
  0x1d   : > { %232 = vst [vmem:[%s3880_s27 + $0xd0] sm:$0xff] %v231_v26  ;;  %v235_v28 = vld [vmem:[%s3875_s26 + $0x380] sm:$0xff]  ;;  %v237_v29 = vld [vmem:[%s3875_s26 + $0x388] sm:$0xff]  ;;  %234 = vst [vmem:[%s3880_s27 + $0xd8] sm:$0xff] %v233_v27 }
  0x1e   : > { %236 = vst [vmem:[%s3880_s27 + $0xe0] sm:$0xff] %v235_v28  ;;  %238 = vst [vmem:[%s3880_s27 + $0xe8] sm:$0xff] %v237_v29  ;;  %v239_v30 = vld [vmem:[%s3875_s26 + $0x3c0] sm:$0xff]  ;;  %v241_v31 = vld [vmem:[%s3875_s26 + $0x3c8] sm:$0xff] }
  0x1f   : > { %v243_v32 = vld [vmem:[%s3875_s26 + $0x400] sm:$0xff]  ;;  %240 = vst [vmem:[%s3880_s27 + $0xf0] sm:$0xff] %v239_v30  ;;  %242 = vst [vmem:[%s3880_s27 + $0xf8] sm:$0xff] %v241_v31  ;;  %v245_v33 = vld [vmem:[%s3875_s26 + $0x408] sm:$0xff] }
  0x20   : > { %244 = vst [vmem:[%s3880_s27 + $0x100] sm:$0xff] %v243_v32  ;;  %v247_v34 = vld [vmem:[%s3875_s26 + $0x440] sm:$0xff]  ;;  %v249_v35 = vld [vmem:[%s3875_s26 + $0x448] sm:$0xff]  ;;  %246 = vst [vmem:[%s3880_s27 + $0x108] sm:$0xff] %v245_v33 }
  0x21   : > { %248 = vst [vmem:[%s3880_s27 + $0x110] sm:$0xff] %v247_v34  ;;  %250 = vst [vmem:[%s3880_s27 + $0x118] sm:$0xff] %v249_v35  ;;  %v251_v36 = vld [vmem:[%s3875_s26 + $0x480] sm:$0xff]  ;;  %v253_v37 = vld [vmem:[%s3875_s26 + $0x488] sm:$0xff] }
  0x22   : > { %v255_v38 = vld [vmem:[%s3875_s26 + $0x4c0] sm:$0xff]  ;;  %252 = vst [vmem:[%s3880_s27 + $0x120] sm:$0xff] %v251_v36  ;;  %254 = vst [vmem:[%s3880_s27 + $0x128] sm:$0xff] %v253_v37  ;;  %v257_v39 = vld [vmem:[%s3875_s26 + $0x4c8] sm:$0xff] }
  0x23   : > { %256 = vst [vmem:[%s3880_s27 + $0x130] sm:$0xff] %v255_v38  ;;  %v259_v40 = vld [vmem:[%s3875_s26 + $0x500] sm:$0xff]  ;;  %v261_v41 = vld [vmem:[%s3875_s26 + $0x508] sm:$0xff]  ;;  %258 = vst [vmem:[%s3880_s27 + $0x138] sm:$0xff] %v257_v39 }
  0x24   : > { %260 = vst [vmem:[%s3880_s27 + $0x140] sm:$0xff] %v259_v40  ;;  %262 = vst [vmem:[%s3880_s27 + $0x148] sm:$0xff] %v261_v41  ;;  %v263_v42 = vld [vmem:[%s3875_s26 + $0x540] sm:$0xff]  ;;  %v265_v43 = vld [vmem:[%s3875_s26 + $0x548] sm:$0xff] }
  0x25   : > { %v267_v44 = vld [vmem:[%s3875_s26 + $0x580] sm:$0xff]  ;;  %264 = vst [vmem:[%s3880_s27 + $0x150] sm:$0xff] %v263_v42  ;;  %266 = vst [vmem:[%s3880_s27 + $0x158] sm:$0xff] %v265_v43  ;;  %v269_v45 = vld [vmem:[%s3875_s26 + $0x588] sm:$0xff] }
  0x26   : > { %268 = vst [vmem:[%s3880_s27 + $0x160] sm:$0xff] %v267_v44  ;;  %v271_v46 = vld [vmem:[%s3875_s26 + $0x5c0] sm:$0xff]  ;;  %v273_v47 = vld [vmem:[%s3875_s26 + $0x5c8] sm:$0xff]  ;;  %270 = vst [vmem:[%s3880_s27 + $0x168] sm:$0xff] %v269_v45 }
  0x27   : > { %272 = vst [vmem:[%s3880_s27 + $0x170] sm:$0xff] %v271_v46  ;;  %274 = vst [vmem:[%s3880_s27 + $0x178] sm:$0xff] %v273_v47  ;;  %v275_v48 = vld [vmem:[%s3875_s26 + $0x600] sm:$0xff]  ;;  %v277_v49 = vld [vmem:[%s3875_s26 + $0x608] sm:$0xff] }
  0x28   : > { %v279_v50 = vld [vmem:[%s3875_s26 + $0x640] sm:$0xff]  ;;  %276 = vst [vmem:[%s3880_s27 + $0x180] sm:$0xff] %v275_v48  ;;  %278 = vst [vmem:[%s3880_s27 + $0x188] sm:$0xff] %v277_v49  ;;  %v281_v51 = vld [vmem:[%s3875_s26 + $0x648] sm:$0xff] }
  0x29   : > { %280 = vst [vmem:[%s3880_s27 + $0x190] sm:$0xff] %v279_v50  ;;  %v283_v52 = vld [vmem:[%s3875_s26 + $0x680] sm:$0xff]  ;;  %v285_v53 = vld [vmem:[%s3875_s26 + $0x688] sm:$0xff]  ;;  %282 = vst [vmem:[%s3880_s27 + $0x198] sm:$0xff] %v281_v51 }
  0x2a   : > { %284 = vst [vmem:[%s3880_s27 + $0x1a0] sm:$0xff] %v283_v52  ;;  %286 = vst [vmem:[%s3880_s27 + $0x1a8] sm:$0xff] %v285_v53  ;;  %v287_v54 = vld [vmem:[%s3875_s26 + $0x6c0] sm:$0xff]  ;;  %v289_v55 = vld [vmem:[%s3875_s26 + $0x6c8] sm:$0xff] }
  0x2b   : > { %v291_v56 = vld [vmem:[%s3875_s26 + $0x700] sm:$0xff]  ;;  %288 = vst [vmem:[%s3880_s27 + $0x1b0] sm:$0xff] %v287_v54  ;;  %290 = vst [vmem:[%s3880_s27 + $0x1b8] sm:$0xff] %v289_v55  ;;  %v293_v57 = vld [vmem:[%s3875_s26 + $0x708] sm:$0xff] }
  0x2c   : > { %292 = vst [vmem:[%s3880_s27 + $0x1c0] sm:$0xff] %v291_v56  ;;  %v295_v58 = vld [vmem:[%s3875_s26 + $0x740] sm:$0xff]  ;;  %v297_v59 = vld [vmem:[%s3875_s26 + $0x748] sm:$0xff]  ;;  %294 = vst [vmem:[%s3880_s27 + $0x1c8] sm:$0xff] %v293_v57 }
  0x2d   : > { %296 = vst [vmem:[%s3880_s27 + $0x1d0] sm:$0xff] %v295_v58  ;;  %298 = vst [vmem:[%s3880_s27 + $0x1d8] sm:$0xff] %v297_v59  ;;  %v299_v60 = vld [vmem:[%s3875_s26 + $0x780] sm:$0xff]  ;;  %v301_v61 = vld [vmem:[%s3875_s26 + $0x788] sm:$0xff] }
  0x2e   : > { %v303_v62 = vld [vmem:[%s3875_s26 + $0x7c0] sm:$0xff]  ;;  %300 = vst [vmem:[%s3880_s27 + $0x1e0] sm:$0xff] %v299_v60  ;;  %302 = vst [vmem:[%s3880_s27 + $0x1e8] sm:$0xff] %v301_v61  ;;  %v305_v63 = vld [vmem:[%s3875_s26 + $0x7c8] sm:$0xff] }
  0x2f   : > { %304 = vst [vmem:[%s3880_s27 + $0x1f0] sm:$0xff] %v303_v62  ;;  %v307_v0 = vld [vmem:[%s3875_s26 + $0x800] sm:$0xff]  ;;  %v309_v1 = vld [vmem:[%s3875_s26 + $0x808] sm:$0xff]  ;;  %306 = vst [vmem:[%s3880_s27 + $0x1f8] sm:$0xff] %v305_v63 }
  0x30   : > { %308 = vst [vmem:[%s3880_s27 + $0x200] sm:$0xff] %v307_v0  ;;  %310 = vst [vmem:[%s3880_s27 + $0x208] sm:$0xff] %v309_v1  ;;  %v311_v2 = vld [vmem:[%s3875_s26 + $0x840] sm:$0xff]  ;;  %v313_v3 = vld [vmem:[%s3875_s26 + $0x848] sm:$0xff] }
  0x31   : > { %v315_v4 = vld [vmem:[%s3875_s26 + $0x880] sm:$0xff]  ;;  %312 = vst [vmem:[%s3880_s27 + $0x210] sm:$0xff] %v311_v2  ;;  %314 = vst [vmem:[%s3880_s27 + $0x218] sm:$0xff] %v313_v3  ;;  %v317_v5 = vld [vmem:[%s3875_s26 + $0x888] sm:$0xff] }
  0x32   : > { %316 = vst [vmem:[%s3880_s27 + $0x220] sm:$0xff] %v315_v4  ;;  %v319_v6 = vld [vmem:[%s3875_s26 + $0x8c0] sm:$0xff]  ;;  %v321_v7 = vld [vmem:[%s3875_s26 + $0x8c8] sm:$0xff]  ;;  %318 = vst [vmem:[%s3880_s27 + $0x228] sm:$0xff] %v317_v5 }
  0x33   : > { %320 = vst [vmem:[%s3880_s27 + $0x230] sm:$0xff] %v319_v6  ;;  %322 = vst [vmem:[%s3880_s27 + $0x238] sm:$0xff] %v321_v7  ;;  %v323_v8 = vld [vmem:[%s3875_s26 + $0x900] sm:$0xff]  ;;  %v325_v9 = vld [vmem:[%s3875_s26 + $0x908] sm:$0xff] }
  0x34   : > { %v327_v10 = vld [vmem:[%s3875_s26 + $0x940] sm:$0xff]  ;;  %324 = vst [vmem:[%s3880_s27 + $0x240] sm:$0xff] %v323_v8  ;;  %326 = vst [vmem:[%s3880_s27 + $0x248] sm:$0xff] %v325_v9  ;;  %v329_v11 = vld [vmem:[%s3875_s26 + $0x948] sm:$0xff] }
  0x35   : > { %328 = vst [vmem:[%s3880_s27 + $0x250] sm:$0xff] %v327_v10  ;;  %v331_v12 = vld [vmem:[%s3875_s26 + $0x980] sm:$0xff]  ;;  %v333_v13 = vld [vmem:[%s3875_s26 + $0x988] sm:$0xff]  ;;  %330 = vst [vmem:[%s3880_s27 + $0x258] sm:$0xff] %v329_v11 }
  0x36   : > { %332 = vst [vmem:[%s3880_s27 + $0x260] sm:$0xff] %v331_v12  ;;  %334 = vst [vmem:[%s3880_s27 + $0x268] sm:$0xff] %v333_v13  ;;  %v335_v14 = vld [vmem:[%s3875_s26 + $0x9c0] sm:$0xff]  ;;  %v337_v15 = vld [vmem:[%s3875_s26 + $0x9c8] sm:$0xff] }
  0x37   : > { %v339_v16 = vld [vmem:[%s3875_s26 + $0xa00] sm:$0xff]  ;;  %336 = vst [vmem:[%s3880_s27 + $0x270] sm:$0xff] %v335_v14  ;;  %338 = vst [vmem:[%s3880_s27 + $0x278] sm:$0xff] %v337_v15  ;;  %v341_v17 = vld [vmem:[%s3875_s26 + $0xa08] sm:$0xff] }
  0x38   : > { %340 = vst [vmem:[%s3880_s27 + $0x280] sm:$0xff] %v339_v16  ;;  %v343_v18 = vld [vmem:[%s3875_s26 + $0xa40] sm:$0xff]  ;;  %v345_v19 = vld [vmem:[%s3875_s26 + $0xa48] sm:$0xff]  ;;  %342 = vst [vmem:[%s3880_s27 + $0x288] sm:$0xff] %v341_v17 }
  0x39   : > { %344 = vst [vmem:[%s3880_s27 + $0x290] sm:$0xff] %v343_v18  ;;  %346 = vst [vmem:[%s3880_s27 + $0x298] sm:$0xff] %v345_v19  ;;  %v347_v20 = vld [vmem:[%s3875_s26 + $0xa80] sm:$0xff]  ;;  %v349_v21 = vld [vmem:[%s3875_s26 + $0xa88] sm:$0xff] }
  0x3a   : > { %v351_v22 = vld [vmem:[%s3875_s26 + $0xac0] sm:$0xff]  ;;  %348 = vst [vmem:[%s3880_s27 + $0x2a0] sm:$0xff] %v347_v20  ;;  %350 = vst [vmem:[%s3880_s27 + $0x2a8] sm:$0xff] %v349_v21  ;;  %v353_v23 = vld [vmem:[%s3875_s26 + $0xac8] sm:$0xff] }
  0x3b   : > { %352 = vst [vmem:[%s3880_s27 + $0x2b0] sm:$0xff] %v351_v22  ;;  %v355_v24 = vld [vmem:[%s3875_s26 + $0xb00] sm:$0xff]  ;;  %v357_v25 = vld [vmem:[%s3875_s26 + $0xb08] sm:$0xff]  ;;  %354 = vst [vmem:[%s3880_s27 + $0x2b8] sm:$0xff] %v353_v23 }
  0x3c   : > { %356 = vst [vmem:[%s3880_s27 + $0x2c0] sm:$0xff] %v355_v24  ;;  %358 = vst [vmem:[%s3880_s27 + $0x2c8] sm:$0xff] %v357_v25  ;;  %v359_v26 = vld [vmem:[%s3875_s26 + $0xb40] sm:$0xff]  ;;  %v361_v27 = vld [vmem:[%s3875_s26 + $0xb48] sm:$0xff] }
  0x3d   : > { %v363_v28 = vld [vmem:[%s3875_s26 + $0xb80] sm:$0xff]  ;;  %360 = vst [vmem:[%s3880_s27 + $0x2d0] sm:$0xff] %v359_v26  ;;  %362 = vst [vmem:[%s3880_s27 + $0x2d8] sm:$0xff] %v361_v27  ;;  %v365_v29 = vld [vmem:[%s3875_s26 + $0xb88] sm:$0xff] }
  0x3e   : > { %364 = vst [vmem:[%s3880_s27 + $0x2e0] sm:$0xff] %v363_v28  ;;  %v367_v30 = vld [vmem:[%s3875_s26 + $0xbc0] sm:$0xff]  ;;  %v369_v31 = vld [vmem:[%s3875_s26 + $0xbc8] sm:$0xff]  ;;  %366 = vst [vmem:[%s3880_s27 + $0x2e8] sm:$0xff] %v365_v29 }
  0x3f   : > { %368 = vst [vmem:[%s3880_s27 + $0x2f0] sm:$0xff] %v367_v30  ;;  %370 = vst [vmem:[%s3880_s27 + $0x2f8] sm:$0xff] %v369_v31  ;;  %v371_v32 = vld [vmem:[%s3875_s26 + $0xc00] sm:$0xff]  ;;  %v373_v33 = vld [vmem:[%s3875_s26 + $0xc08] sm:$0xff] }
  0x40   : > { %v375_v34 = vld [vmem:[%s3875_s26 + $0xc40] sm:$0xff]  ;;  %372 = vst [vmem:[%s3880_s27 + $0x300] sm:$0xff] %v371_v32  ;;  %374 = vst [vmem:[%s3880_s27 + $0x308] sm:$0xff] %v373_v33  ;;  %v377_v35 = vld [vmem:[%s3875_s26 + $0xc48] sm:$0xff] }
  0x41   : > { %376 = vst [vmem:[%s3880_s27 + $0x310] sm:$0xff] %v375_v34  ;;  %v379_v36 = vld [vmem:[%s3875_s26 + $0xc80] sm:$0xff]  ;;  %v381_v37 = vld [vmem:[%s3875_s26 + $0xc88] sm:$0xff]  ;;  %378 = vst [vmem:[%s3880_s27 + $0x318] sm:$0xff] %v377_v35 }
  0x42   : > { %380 = vst [vmem:[%s3880_s27 + $0x320] sm:$0xff] %v379_v36  ;;  %382 = vst [vmem:[%s3880_s27 + $0x328] sm:$0xff] %v381_v37  ;;  %v383_v38 = vld [vmem:[%s3875_s26 + $0xcc0] sm:$0xff]  ;;  %v385_v39 = vld [vmem:[%s3875_s26 + $0xcc8] sm:$0xff] }
  0x43   : > { %v387_v40 = vld [vmem:[%s3875_s26 + $0xd00] sm:$0xff]  ;;  %384 = vst [vmem:[%s3880_s27 + $0x330] sm:$0xff] %v383_v38  ;;  %386 = vst [vmem:[%s3880_s27 + $0x338] sm:$0xff] %v385_v39  ;;  %v389_v41 = vld [vmem:[%s3875_s26 + $0xd08] sm:$0xff] }
  0x44   : > { %388 = vst [vmem:[%s3880_s27 + $0x340] sm:$0xff] %v387_v40  ;;  %v391_v42 = vld [vmem:[%s3875_s26 + $0xd40] sm:$0xff]  ;;  %v393_v43 = vld [vmem:[%s3875_s26 + $0xd48] sm:$0xff]  ;;  %390 = vst [vmem:[%s3880_s27 + $0x348] sm:$0xff] %v389_v41 }
  0x45   : > { %392 = vst [vmem:[%s3880_s27 + $0x350] sm:$0xff] %v391_v42  ;;  %394 = vst [vmem:[%s3880_s27 + $0x358] sm:$0xff] %v393_v43  ;;  %v395_v44 = vld [vmem:[%s3875_s26 + $0xd80] sm:$0xff]  ;;  %v397_v45 = vld [vmem:[%s3875_s26 + $0xd88] sm:$0xff] }
  0x46   : > { %v399_v46 = vld [vmem:[%s3875_s26 + $0xdc0] sm:$0xff]  ;;  %396 = vst [vmem:[%s3880_s27 + $0x360] sm:$0xff] %v395_v44  ;;  %398 = vst [vmem:[%s3880_s27 + $0x368] sm:$0xff] %v397_v45  ;;  %v401_v47 = vld [vmem:[%s3875_s26 + $0xdc8] sm:$0xff] }
  0x47   : > { %400 = vst [vmem:[%s3880_s27 + $0x370] sm:$0xff] %v399_v46  ;;  %v403_v48 = vld [vmem:[%s3875_s26 + $0xe00] sm:$0xff]  ;;  %v405_v49 = vld [vmem:[%s3875_s26 + $0xe08] sm:$0xff]  ;;  %402 = vst [vmem:[%s3880_s27 + $0x378] sm:$0xff] %v401_v47 }
  0x48   : > { %404 = vst [vmem:[%s3880_s27 + $0x380] sm:$0xff] %v403_v48  ;;  %406 = vst [vmem:[%s3880_s27 + $0x388] sm:$0xff] %v405_v49  ;;  %v407_v50 = vld [vmem:[%s3875_s26 + $0xe40] sm:$0xff]  ;;  %v409_v51 = vld [vmem:[%s3875_s26 + $0xe48] sm:$0xff] }
  0x49   : > { %v411_v52 = vld [vmem:[%s3875_s26 + $0xe80] sm:$0xff]  ;;  %408 = vst [vmem:[%s3880_s27 + $0x390] sm:$0xff] %v407_v50  ;;  %410 = vst [vmem:[%s3880_s27 + $0x398] sm:$0xff] %v409_v51  ;;  %v413_v53 = vld [vmem:[%s3875_s26 + $0xe88] sm:$0xff] }
  0x4a   : > { %412 = vst [vmem:[%s3880_s27 + $0x3a0] sm:$0xff] %v411_v52  ;;  %v415_v54 = vld [vmem:[%s3875_s26 + $0xec0] sm:$0xff]  ;;  %v417_v55 = vld [vmem:[%s3875_s26 + $0xec8] sm:$0xff]  ;;  %414 = vst [vmem:[%s3880_s27 + $0x3a8] sm:$0xff] %v413_v53 }
  0x4b   : > { %416 = vst [vmem:[%s3880_s27 + $0x3b0] sm:$0xff] %v415_v54  ;;  %418 = vst [vmem:[%s3880_s27 + $0x3b8] sm:$0xff] %v417_v55  ;;  %v419_v56 = vld [vmem:[%s3875_s26 + $0xf00] sm:$0xff]  ;;  %v421_v57 = vld [vmem:[%s3875_s26 + $0xf08] sm:$0xff] }
  0x4c   : > { %v423_v58 = vld [vmem:[%s3875_s26 + $0xf40] sm:$0xff]  ;;  %420 = vst [vmem:[%s3880_s27 + $0x3c0] sm:$0xff] %v419_v56  ;;  %422 = vst [vmem:[%s3880_s27 + $0x3c8] sm:$0xff] %v421_v57  ;;  %v425_v59 = vld [vmem:[%s3875_s26 + $0xf48] sm:$0xff] }
  0x4d   : > { %424 = vst [vmem:[%s3880_s27 + $0x3d0] sm:$0xff] %v423_v58  ;;  %v427_v60 = vld [vmem:[%s3875_s26 + $0xf80] sm:$0xff]  ;;  %v429_v61 = vld [vmem:[%s3875_s26 + $0xf88] sm:$0xff]  ;;  %426 = vst [vmem:[%s3880_s27 + $0x3d8] sm:$0xff] %v425_v59 }
  0x4e   : > { %428 = vst [vmem:[%s3880_s27 + $0x3e0] sm:$0xff] %v427_v60  ;;  %430 = vst [vmem:[%s3880_s27 + $0x3e8] sm:$0xff] %v429_v61  ;;  %v431_v62 = vld [vmem:[%s3875_s26 + $0xfc0] sm:$0xff]  ;;  %v433_v63 = vld [vmem:[%s3875_s26 + $0xfc8] sm:$0xff] }
  0x4f   : > { %v435_v0 = vld [vmem:[%s3875_s26 + $0x1000] sm:$0xff]  ;;  %432 = vst [vmem:[%s3880_s27 + $0x3f0] sm:$0xff] %v431_v62  ;;  %434 = vst [vmem:[%s3880_s27 + $0x3f8] sm:$0xff] %v433_v63  ;;  %v437_v1 = vld [vmem:[%s3875_s26 + $0x1008] sm:$0xff] }
  0x50   : > { %436 = vst [vmem:[%s3880_s27 + $0x400] sm:$0xff] %v435_v0  ;;  %v439_v2 = vld [vmem:[%s3875_s26 + $0x1040] sm:$0xff]  ;;  %v441_v3 = vld [vmem:[%s3875_s26 + $0x1048] sm:$0xff]  ;;  %438 = vst [vmem:[%s3880_s27 + $0x408] sm:$0xff] %v437_v1 }
  0x51   : > { %440 = vst [vmem:[%s3880_s27 + $0x410] sm:$0xff] %v439_v2  ;;  %442 = vst [vmem:[%s3880_s27 + $0x418] sm:$0xff] %v441_v3  ;;  %v443_v4 = vld [vmem:[%s3875_s26 + $0x1080] sm:$0xff]  ;;  %v445_v5 = vld [vmem:[%s3875_s26 + $0x1088] sm:$0xff] }
  0x52   : > { %v447_v6 = vld [vmem:[%s3875_s26 + $0x10c0] sm:$0xff]  ;;  %444 = vst [vmem:[%s3880_s27 + $0x420] sm:$0xff] %v443_v4  ;;  %446 = vst [vmem:[%s3880_s27 + $0x428] sm:$0xff] %v445_v5  ;;  %v449_v7 = vld [vmem:[%s3875_s26 + $0x10c8] sm:$0xff] }
  0x53   : > { %448 = vst [vmem:[%s3880_s27 + $0x430] sm:$0xff] %v447_v6  ;;  %v451_v8 = vld [vmem:[%s3875_s26 + $0x1100] sm:$0xff]  ;;  %v453_v9 = vld [vmem:[%s3875_s26 + $0x1108] sm:$0xff]  ;;  %450 = vst [vmem:[%s3880_s27 + $0x438] sm:$0xff] %v449_v7 }
  0x54   : > { %452 = vst [vmem:[%s3880_s27 + $0x440] sm:$0xff] %v451_v8  ;;  %454 = vst [vmem:[%s3880_s27 + $0x448] sm:$0xff] %v453_v9  ;;  %v455_v10 = vld [vmem:[%s3875_s26 + $0x1140] sm:$0xff]  ;;  %v457_v11 = vld [vmem:[%s3875_s26 + $0x1148] sm:$0xff] }
  0x55   : > { %v459_v12 = vld [vmem:[%s3875_s26 + $0x1180] sm:$0xff]  ;;  %456 = vst [vmem:[%s3880_s27 + $0x450] sm:$0xff] %v455_v10  ;;  %458 = vst [vmem:[%s3880_s27 + $0x458] sm:$0xff] %v457_v11  ;;  %v461_v13 = vld [vmem:[%s3875_s26 + $0x1188] sm:$0xff] }
  0x56   : > { %460 = vst [vmem:[%s3880_s27 + $0x460] sm:$0xff] %v459_v12  ;;  %v463_v14 = vld [vmem:[%s3875_s26 + $0x11c0] sm:$0xff]  ;;  %v465_v15 = vld [vmem:[%s3875_s26 + $0x11c8] sm:$0xff]  ;;  %462 = vst [vmem:[%s3880_s27 + $0x468] sm:$0xff] %v461_v13 }
  0x57   : > { %464 = vst [vmem:[%s3880_s27 + $0x470] sm:$0xff] %v463_v14  ;;  %466 = vst [vmem:[%s3880_s27 + $0x478] sm:$0xff] %v465_v15  ;;  %v467_v16 = vld [vmem:[%s3875_s26 + $0x1200] sm:$0xff]  ;;  %v469_v17 = vld [vmem:[%s3875_s26 + $0x1208] sm:$0xff] }
  0x58   : > { %v471_v18 = vld [vmem:[%s3875_s26 + $0x1240] sm:$0xff]  ;;  %468 = vst [vmem:[%s3880_s27 + $0x480] sm:$0xff] %v467_v16  ;;  %470 = vst [vmem:[%s3880_s27 + $0x488] sm:$0xff] %v469_v17  ;;  %v473_v19 = vld [vmem:[%s3875_s26 + $0x1248] sm:$0xff] }
  0x59   : > { %472 = vst [vmem:[%s3880_s27 + $0x490] sm:$0xff] %v471_v18  ;;  %v475_v20 = vld [vmem:[%s3875_s26 + $0x1280] sm:$0xff]  ;;  %v477_v21 = vld [vmem:[%s3875_s26 + $0x1288] sm:$0xff]  ;;  %474 = vst [vmem:[%s3880_s27 + $0x498] sm:$0xff] %v473_v19 }
  0x5a   : > { %476 = vst [vmem:[%s3880_s27 + $0x4a0] sm:$0xff] %v475_v20  ;;  %478 = vst [vmem:[%s3880_s27 + $0x4a8] sm:$0xff] %v477_v21  ;;  %v479_v22 = vld [vmem:[%s3875_s26 + $0x12c0] sm:$0xff]  ;;  %v481_v23 = vld [vmem:[%s3875_s26 + $0x12c8] sm:$0xff] }
  0x5b   : > { %v483_v24 = vld [vmem:[%s3875_s26 + $0x1300] sm:$0xff]  ;;  %480 = vst [vmem:[%s3880_s27 + $0x4b0] sm:$0xff] %v479_v22  ;;  %482 = vst [vmem:[%s3880_s27 + $0x4b8] sm:$0xff] %v481_v23  ;;  %v485_v25 = vld [vmem:[%s3875_s26 + $0x1308] sm:$0xff] }
  0x5c   : > { %484 = vst [vmem:[%s3880_s27 + $0x4c0] sm:$0xff] %v483_v24  ;;  %v487_v26 = vld [vmem:[%s3875_s26 + $0x1340] sm:$0xff]  ;;  %v489_v27 = vld [vmem:[%s3875_s26 + $0x1348] sm:$0xff]  ;;  %486 = vst [vmem:[%s3880_s27 + $0x4c8] sm:$0xff] %v485_v25 }
  0x5d   : > { %488 = vst [vmem:[%s3880_s27 + $0x4d0] sm:$0xff] %v487_v26  ;;  %490 = vst [vmem:[%s3880_s27 + $0x4d8] sm:$0xff] %v489_v27  ;;  %v491_v28 = vld [vmem:[%s3875_s26 + $0x1380] sm:$0xff]  ;;  %v493_v29 = vld [vmem:[%s3875_s26 + $0x1388] sm:$0xff] }
  0x5e   : > { %v495_v30 = vld [vmem:[%s3875_s26 + $0x13c0] sm:$0xff]  ;;  %492 = vst [vmem:[%s3880_s27 + $0x4e0] sm:$0xff] %v491_v28  ;;  %494 = vst [vmem:[%s3880_s27 + $0x4e8] sm:$0xff] %v493_v29  ;;  %v497_v31 = vld [vmem:[%s3875_s26 + $0x13c8] sm:$0xff] }
  0x5f   : > { %496 = vst [vmem:[%s3880_s27 + $0x4f0] sm:$0xff] %v495_v30  ;;  %v499_v32 = vld [vmem:[%s3875_s26 + $0x1400] sm:$0xff]  ;;  %v501_v33 = vld [vmem:[%s3875_s26 + $0x1408] sm:$0xff]  ;;  %498 = vst [vmem:[%s3880_s27 + $0x4f8] sm:$0xff] %v497_v31 }
  0x60   : > { %500 = vst [vmem:[%s3880_s27 + $0x500] sm:$0xff] %v499_v32  ;;  %502 = vst [vmem:[%s3880_s27 + $0x508] sm:$0xff] %v501_v33  ;;  %v503_v34 = vld [vmem:[%s3875_s26 + $0x1440] sm:$0xff]  ;;  %v505_v35 = vld [vmem:[%s3875_s26 + $0x1448] sm:$0xff] }
  0x61   : > { %v507_v36 = vld [vmem:[%s3875_s26 + $0x1480] sm:$0xff]  ;;  %504 = vst [vmem:[%s3880_s27 + $0x510] sm:$0xff] %v503_v34  ;;  %506 = vst [vmem:[%s3880_s27 + $0x518] sm:$0xff] %v505_v35  ;;  %v509_v37 = vld [vmem:[%s3875_s26 + $0x1488] sm:$0xff] }
  0x62   : > { %508 = vst [vmem:[%s3880_s27 + $0x520] sm:$0xff] %v507_v36  ;;  %v511_v38 = vld [vmem:[%s3875_s26 + $0x14c0] sm:$0xff]  ;;  %v513_v39 = vld [vmem:[%s3875_s26 + $0x14c8] sm:$0xff]  ;;  %510 = vst [vmem:[%s3880_s27 + $0x528] sm:$0xff] %v509_v37 }
  0x63   : > { %512 = vst [vmem:[%s3880_s27 + $0x530] sm:$0xff] %v511_v38  ;;  %514 = vst [vmem:[%s3880_s27 + $0x538] sm:$0xff] %v513_v39  ;;  %v515_v40 = vld [vmem:[%s3875_s26 + $0x1500] sm:$0xff]  ;;  %v517_v41 = vld [vmem:[%s3875_s26 + $0x1508] sm:$0xff] }
  0x64   : > { %v519_v42 = vld [vmem:[%s3875_s26 + $0x1540] sm:$0xff]  ;;  %516 = vst [vmem:[%s3880_s27 + $0x540] sm:$0xff] %v515_v40  ;;  %518 = vst [vmem:[%s3880_s27 + $0x548] sm:$0xff] %v517_v41  ;;  %v521_v43 = vld [vmem:[%s3875_s26 + $0x1548] sm:$0xff] }
  0x65   : > { %520 = vst [vmem:[%s3880_s27 + $0x550] sm:$0xff] %v519_v42  ;;  %v523_v44 = vld [vmem:[%s3875_s26 + $0x1580] sm:$0xff]  ;;  %v525_v45 = vld [vmem:[%s3875_s26 + $0x1588] sm:$0xff]  ;;  %522 = vst [vmem:[%s3880_s27 + $0x558] sm:$0xff] %v521_v43 }
  0x66   : > { %524 = vst [vmem:[%s3880_s27 + $0x560] sm:$0xff] %v523_v44  ;;  %526 = vst [vmem:[%s3880_s27 + $0x568] sm:$0xff] %v525_v45  ;;  %v527_v46 = vld [vmem:[%s3875_s26 + $0x15c0] sm:$0xff]  ;;  %v529_v47 = vld [vmem:[%s3875_s26 + $0x15c8] sm:$0xff] }
  0x67   : > { %v531_v48 = vld [vmem:[%s3875_s26 + $0x1600] sm:$0xff]  ;;  %528 = vst [vmem:[%s3880_s27 + $0x570] sm:$0xff] %v527_v46  ;;  %530 = vst [vmem:[%s3880_s27 + $0x578] sm:$0xff] %v529_v47  ;;  %v533_v49 = vld [vmem:[%s3875_s26 + $0x1608] sm:$0xff] }
  0x68   : > { %532 = vst [vmem:[%s3880_s27 + $0x580] sm:$0xff] %v531_v48  ;;  %v535_v50 = vld [vmem:[%s3875_s26 + $0x1640] sm:$0xff]  ;;  %v537_v51 = vld [vmem:[%s3875_s26 + $0x1648] sm:$0xff]  ;;  %534 = vst [vmem:[%s3880_s27 + $0x588] sm:$0xff] %v533_v49 }
  0x69   : > { %536 = vst [vmem:[%s3880_s27 + $0x590] sm:$0xff] %v535_v50  ;;  %538 = vst [vmem:[%s3880_s27 + $0x598] sm:$0xff] %v537_v51  ;;  %v539_v52 = vld [vmem:[%s3875_s26 + $0x1680] sm:$0xff]  ;;  %v541_v53 = vld [vmem:[%s3875_s26 + $0x1688] sm:$0xff] }
  0x6a   : > { %v543_v54 = vld [vmem:[%s3875_s26 + $0x16c0] sm:$0xff]  ;;  %540 = vst [vmem:[%s3880_s27 + $0x5a0] sm:$0xff] %v539_v52  ;;  %542 = vst [vmem:[%s3880_s27 + $0x5a8] sm:$0xff] %v541_v53  ;;  %v545_v55 = vld [vmem:[%s3875_s26 + $0x16c8] sm:$0xff] }
  0x6b   : > { %544 = vst [vmem:[%s3880_s27 + $0x5b0] sm:$0xff] %v543_v54  ;;  %v547_v56 = vld [vmem:[%s3875_s26 + $0x1700] sm:$0xff]  ;;  %v549_v57 = vld [vmem:[%s3875_s26 + $0x1708] sm:$0xff]  ;;  %546 = vst [vmem:[%s3880_s27 + $0x5b8] sm:$0xff] %v545_v55 }
  0x6c   : > { %548 = vst [vmem:[%s3880_s27 + $0x5c0] sm:$0xff] %v547_v56  ;;  %550 = vst [vmem:[%s3880_s27 + $0x5c8] sm:$0xff] %v549_v57  ;;  %v551_v58 = vld [vmem:[%s3875_s26 + $0x1740] sm:$0xff]  ;;  %v553_v59 = vld [vmem:[%s3875_s26 + $0x1748] sm:$0xff] }
  0x6d   : > { %v555_v60 = vld [vmem:[%s3875_s26 + $0x1780] sm:$0xff]  ;;  %552 = vst [vmem:[%s3880_s27 + $0x5d0] sm:$0xff] %v551_v58  ;;  %554 = vst [vmem:[%s3880_s27 + $0x5d8] sm:$0xff] %v553_v59  ;;  %v557_v61 = vld [vmem:[%s3875_s26 + $0x1788] sm:$0xff] }
  0x6e   : > { %556 = vst [vmem:[%s3880_s27 + $0x5e0] sm:$0xff] %v555_v60  ;;  %v559_v62 = vld [vmem:[%s3875_s26 + $0x17c0] sm:$0xff]  ;;  %v561_v63 = vld [vmem:[%s3875_s26 + $0x17c8] sm:$0xff]  ;;  %558 = vst [vmem:[%s3880_s27 + $0x5e8] sm:$0xff] %v557_v61 }
  0x6f   : > { %560 = vst [vmem:[%s3880_s27 + $0x5f0] sm:$0xff] %v559_v62  ;;  %562 = vst [vmem:[%s3880_s27 + $0x5f8] sm:$0xff] %v561_v63  ;;  %v563_v0 = vld [vmem:[%s3875_s26 + $0x1800] sm:$0xff]  ;;  %v565_v1 = vld [vmem:[%s3875_s26 + $0x1808] sm:$0xff] }
  0x70   : > { %v567_v2 = vld [vmem:[%s3875_s26 + $0x1840] sm:$0xff]  ;;  %564 = vst [vmem:[%s3880_s27 + $0x600] sm:$0xff] %v563_v0  ;;  %566 = vst [vmem:[%s3880_s27 + $0x608] sm:$0xff] %v565_v1  ;;  %v569_v3 = vld [vmem:[%s3875_s26 + $0x1848] sm:$0xff] }
  0x71   : > { %568 = vst [vmem:[%s3880_s27 + $0x610] sm:$0xff] %v567_v2  ;;  %v571_v4 = vld [vmem:[%s3875_s26 + $0x1880] sm:$0xff]  ;;  %v573_v5 = vld [vmem:[%s3875_s26 + $0x1888] sm:$0xff]  ;;  %570 = vst [vmem:[%s3880_s27 + $0x618] sm:$0xff] %v569_v3 }
  0x72   : > { %572 = vst [vmem:[%s3880_s27 + $0x620] sm:$0xff] %v571_v4  ;;  %574 = vst [vmem:[%s3880_s27 + $0x628] sm:$0xff] %v573_v5  ;;  %v575_v6 = vld [vmem:[%s3875_s26 + $0x18c0] sm:$0xff]  ;;  %v577_v7 = vld [vmem:[%s3875_s26 + $0x18c8] sm:$0xff] }
  0x73   : > { %v579_v8 = vld [vmem:[%s3875_s26 + $0x1900] sm:$0xff]  ;;  %576 = vst [vmem:[%s3880_s27 + $0x630] sm:$0xff] %v575_v6  ;;  %578 = vst [vmem:[%s3880_s27 + $0x638] sm:$0xff] %v577_v7  ;;  %v581_v9 = vld [vmem:[%s3875_s26 + $0x1908] sm:$0xff] }
  0x74   : > { %580 = vst [vmem:[%s3880_s27 + $0x640] sm:$0xff] %v579_v8  ;;  %v583_v10 = vld [vmem:[%s3875_s26 + $0x1940] sm:$0xff]  ;;  %v585_v11 = vld [vmem:[%s3875_s26 + $0x1948] sm:$0xff]  ;;  %582 = vst [vmem:[%s3880_s27 + $0x648] sm:$0xff] %v581_v9 }
  0x75   : > { %584 = vst [vmem:[%s3880_s27 + $0x650] sm:$0xff] %v583_v10  ;;  %586 = vst [vmem:[%s3880_s27 + $0x658] sm:$0xff] %v585_v11  ;;  %v587_v12 = vld [vmem:[%s3875_s26 + $0x1980] sm:$0xff]  ;;  %v589_v13 = vld [vmem:[%s3875_s26 + $0x1988] sm:$0xff] }
  0x76   : > { %v591_v14 = vld [vmem:[%s3875_s26 + $0x19c0] sm:$0xff]  ;;  %588 = vst [vmem:[%s3880_s27 + $0x660] sm:$0xff] %v587_v12  ;;  %590 = vst [vmem:[%s3880_s27 + $0x668] sm:$0xff] %v589_v13  ;;  %v593_v15 = vld [vmem:[%s3875_s26 + $0x19c8] sm:$0xff] }
  0x77   : > { %592 = vst [vmem:[%s3880_s27 + $0x670] sm:$0xff] %v591_v14  ;;  %v595_v16 = vld [vmem:[%s3875_s26 + $0x1a00] sm:$0xff]  ;;  %v597_v17 = vld [vmem:[%s3875_s26 + $0x1a08] sm:$0xff]  ;;  %594 = vst [vmem:[%s3880_s27 + $0x678] sm:$0xff] %v593_v15 }
  0x78   : > { %596 = vst [vmem:[%s3880_s27 + $0x680] sm:$0xff] %v595_v16  ;;  %598 = vst [vmem:[%s3880_s27 + $0x688] sm:$0xff] %v597_v17  ;;  %v599_v18 = vld [vmem:[%s3875_s26 + $0x1a40] sm:$0xff]  ;;  %v601_v19 = vld [vmem:[%s3875_s26 + $0x1a48] sm:$0xff] }
  0x79   : > { %v603_v20 = vld [vmem:[%s3875_s26 + $0x1a80] sm:$0xff]  ;;  %600 = vst [vmem:[%s3880_s27 + $0x690] sm:$0xff] %v599_v18  ;;  %602 = vst [vmem:[%s3880_s27 + $0x698] sm:$0xff] %v601_v19  ;;  %v605_v21 = vld [vmem:[%s3875_s26 + $0x1a88] sm:$0xff] }
  0x7a   : > { %604 = vst [vmem:[%s3880_s27 + $0x6a0] sm:$0xff] %v603_v20  ;;  %v607_v22 = vld [vmem:[%s3875_s26 + $0x1ac0] sm:$0xff]  ;;  %v609_v23 = vld [vmem:[%s3875_s26 + $0x1ac8] sm:$0xff]  ;;  %606 = vst [vmem:[%s3880_s27 + $0x6a8] sm:$0xff] %v605_v21 }
  0x7b   : > { %608 = vst [vmem:[%s3880_s27 + $0x6b0] sm:$0xff] %v607_v22  ;;  %610 = vst [vmem:[%s3880_s27 + $0x6b8] sm:$0xff] %v609_v23  ;;  %v611_v24 = vld [vmem:[%s3875_s26 + $0x1b00] sm:$0xff]  ;;  %v613_v25 = vld [vmem:[%s3875_s26 + $0x1b08] sm:$0xff] }
  0x7c   : > { %v615_v26 = vld [vmem:[%s3875_s26 + $0x1b40] sm:$0xff]  ;;  %612 = vst [vmem:[%s3880_s27 + $0x6c0] sm:$0xff] %v611_v24  ;;  %614 = vst [vmem:[%s3880_s27 + $0x6c8] sm:$0xff] %v613_v25  ;;  %v617_v27 = vld [vmem:[%s3875_s26 + $0x1b48] sm:$0xff] }
  0x7d   : > { %616 = vst [vmem:[%s3880_s27 + $0x6d0] sm:$0xff] %v615_v26  ;;  %v619_v28 = vld [vmem:[%s3875_s26 + $0x1b80] sm:$0xff]  ;;  %v621_v29 = vld [vmem:[%s3875_s26 + $0x1b88] sm:$0xff]  ;;  %618 = vst [vmem:[%s3880_s27 + $0x6d8] sm:$0xff] %v617_v27 }
  0x7e   : > { %620 = vst [vmem:[%s3880_s27 + $0x6e0] sm:$0xff] %v619_v28  ;;  %622 = vst [vmem:[%s3880_s27 + $0x6e8] sm:$0xff] %v621_v29  ;;  %v623_v30 = vld [vmem:[%s3875_s26 + $0x1bc0] sm:$0xff]  ;;  %v625_v31 = vld [vmem:[%s3875_s26 + $0x1bc8] sm:$0xff] }
  0x7f   : > { %v627_v32 = vld [vmem:[%s3875_s26 + $0x1c00] sm:$0xff]  ;;  %624 = vst [vmem:[%s3880_s27 + $0x6f0] sm:$0xff] %v623_v30  ;;  %626 = vst [vmem:[%s3880_s27 + $0x6f8] sm:$0xff] %v625_v31  ;;  %v629_v33 = vld [vmem:[%s3875_s26 + $0x1c08] sm:$0xff] }
  0x80   : > { %628 = vst [vmem:[%s3880_s27 + $0x700] sm:$0xff] %v627_v32  ;;  %v631_v34 = vld [vmem:[%s3875_s26 + $0x1c40] sm:$0xff]  ;;  %v633_v35 = vld [vmem:[%s3875_s26 + $0x1c48] sm:$0xff]  ;;  %630 = vst [vmem:[%s3880_s27 + $0x708] sm:$0xff] %v629_v33 }
  0x81   : > { %632 = vst [vmem:[%s3880_s27 + $0x710] sm:$0xff] %v631_v34  ;;  %634 = vst [vmem:[%s3880_s27 + $0x718] sm:$0xff] %v633_v35  ;;  %v635_v36 = vld [vmem:[%s3875_s26 + $0x1c80] sm:$0xff]  ;;  %v637_v37 = vld [vmem:[%s3875_s26 + $0x1c88] sm:$0xff] }
  0x82   : > { %v639_v38 = vld [vmem:[%s3875_s26 + $0x1cc0] sm:$0xff]  ;;  %636 = vst [vmem:[%s3880_s27 + $0x720] sm:$0xff] %v635_v36  ;;  %638 = vst [vmem:[%s3880_s27 + $0x728] sm:$0xff] %v637_v37  ;;  %v641_v39 = vld [vmem:[%s3875_s26 + $0x1cc8] sm:$0xff] }
  0x83   : > { %640 = vst [vmem:[%s3880_s27 + $0x730] sm:$0xff] %v639_v38  ;;  %v643_v40 = vld [vmem:[%s3875_s26 + $0x1d00] sm:$0xff]  ;;  %v645_v41 = vld [vmem:[%s3875_s26 + $0x1d08] sm:$0xff]  ;;  %642 = vst [vmem:[%s3880_s27 + $0x738] sm:$0xff] %v641_v39 }
  0x84   : > { %644 = vst [vmem:[%s3880_s27 + $0x740] sm:$0xff] %v643_v40  ;;  %646 = vst [vmem:[%s3880_s27 + $0x748] sm:$0xff] %v645_v41  ;;  %v647_v42 = vld [vmem:[%s3875_s26 + $0x1d40] sm:$0xff]  ;;  %v649_v43 = vld [vmem:[%s3875_s26 + $0x1d48] sm:$0xff] }
  0x85   : > { %v651_v44 = vld [vmem:[%s3875_s26 + $0x1d80] sm:$0xff]  ;;  %648 = vst [vmem:[%s3880_s27 + $0x750] sm:$0xff] %v647_v42  ;;  %650 = vst [vmem:[%s3880_s27 + $0x758] sm:$0xff] %v649_v43  ;;  %v653_v45 = vld [vmem:[%s3875_s26 + $0x1d88] sm:$0xff] }
  0x86   : > { %652 = vst [vmem:[%s3880_s27 + $0x760] sm:$0xff] %v651_v44  ;;  %v655_v46 = vld [vmem:[%s3875_s26 + $0x1dc0] sm:$0xff]  ;;  %v657_v47 = vld [vmem:[%s3875_s26 + $0x1dc8] sm:$0xff]  ;;  %654 = vst [vmem:[%s3880_s27 + $0x768] sm:$0xff] %v653_v45 }
  0x87   : > { %656 = vst [vmem:[%s3880_s27 + $0x770] sm:$0xff] %v655_v46  ;;  %658 = vst [vmem:[%s3880_s27 + $0x778] sm:$0xff] %v657_v47  ;;  %v659_v48 = vld [vmem:[%s3875_s26 + $0x1e00] sm:$0xff]  ;;  %v661_v49 = vld [vmem:[%s3875_s26 + $0x1e08] sm:$0xff] }
  0x88   : > { %v663_v50 = vld [vmem:[%s3875_s26 + $0x1e40] sm:$0xff]  ;;  %660 = vst [vmem:[%s3880_s27 + $0x780] sm:$0xff] %v659_v48  ;;  %662 = vst [vmem:[%s3880_s27 + $0x788] sm:$0xff] %v661_v49  ;;  %v665_v51 = vld [vmem:[%s3875_s26 + $0x1e48] sm:$0xff] }
  0x89   : > { %664 = vst [vmem:[%s3880_s27 + $0x790] sm:$0xff] %v663_v50  ;;  %v667_v52 = vld [vmem:[%s3875_s26 + $0x1e80] sm:$0xff]  ;;  %v669_v53 = vld [vmem:[%s3875_s26 + $0x1e88] sm:$0xff]  ;;  %666 = vst [vmem:[%s3880_s27 + $0x798] sm:$0xff] %v665_v51 }
  0x8a   : > { %668 = vst [vmem:[%s3880_s27 + $0x7a0] sm:$0xff] %v667_v52  ;;  %670 = vst [vmem:[%s3880_s27 + $0x7a8] sm:$0xff] %v669_v53  ;;  %v671_v54 = vld [vmem:[%s3875_s26 + $0x1ec0] sm:$0xff]  ;;  %v673_v55 = vld [vmem:[%s3875_s26 + $0x1ec8] sm:$0xff] }
  0x8b   : > { %v675_v56 = vld [vmem:[%s3875_s26 + $0x1f00] sm:$0xff]  ;;  %672 = vst [vmem:[%s3880_s27 + $0x7b0] sm:$0xff] %v671_v54  ;;  %674 = vst [vmem:[%s3880_s27 + $0x7b8] sm:$0xff] %v673_v55  ;;  %v677_v57 = vld [vmem:[%s3875_s26 + $0x1f08] sm:$0xff] }
  0x8c   : > { %676 = vst [vmem:[%s3880_s27 + $0x7c0] sm:$0xff] %v675_v56  ;;  %v679_v58 = vld [vmem:[%s3875_s26 + $0x1f40] sm:$0xff]  ;;  %v681_v59 = vld [vmem:[%s3875_s26 + $0x1f48] sm:$0xff]  ;;  %678 = vst [vmem:[%s3880_s27 + $0x7c8] sm:$0xff] %v677_v57 }
  0x8d   : > { %680 = vst [vmem:[%s3880_s27 + $0x7d0] sm:$0xff] %v679_v58  ;;  %682 = vst [vmem:[%s3880_s27 + $0x7d8] sm:$0xff] %v681_v59  ;;  %v683_v60 = vld [vmem:[%s3875_s26 + $0x1f80] sm:$0xff]  ;;  %v685_v61 = vld [vmem:[%s3875_s26 + $0x1f88] sm:$0xff] }
  0x8e   : > { %v687_v62 = vld [vmem:[%s3875_s26 + $0x1fc0] sm:$0xff]  ;;  %684 = vst [vmem:[%s3880_s27 + $0x7e0] sm:$0xff] %v683_v60  ;;  %686 = vst [vmem:[%s3880_s27 + $0x7e8] sm:$0xff] %v685_v61  ;;  %v689_v63 = vld [vmem:[%s3875_s26 + $0x1fc8] sm:$0xff] }
  0x8f   : > { %688 = vst [vmem:[%s3880_s27 + $0x7f0] sm:$0xff] %v687_v62  ;;  %690 = vst [vmem:[%s3880_s27 + $0x7f8] sm:$0xff] %v689_v63 }
  0x90 PF: > { %p3069_p6 = scmp.ge.s32.totalorder %s3808_s16, 1  ;;  %p703_p7 = scmp.lt.s32.totalorder %s3808_s16, 5 }
  0x92   : > { %p704_p8 = pnand %p3069_p6, %p703_p7 }
  0x93   : > { %s710_s28 = sand.u32 (!%p704_p8), 1, %s3792_s12   ;;  %s3071_s6 = sshll.u32 (!%p704_p8), %s3800_s14, 2 }
  0x94   : > { %707 = sbr.rel (%p704_p8) target bundleno = 709 (0x2c5), region = 51  ;;  %s3070_s29 = sshll.u32 (!%p704_p8), %s710_s28, 11 }
  0x95   : > { %s4401_s5 = scalar_lea.vmem (!%p704_p8), [#allocation3], %s3070_s29  ;;  %p748_p9 = scmp.lt.s32.totalorder (!%p704_p8), %s3071_s6, 15 }
  0x99   : > { %v763_v0 = vlaneseq  ;;  %v3810_v1 = vmov 1966171168   ;;  %v4399_v4 = vld [vmem:[%s4778_s0] sm:$0xff]  ;;  %s4789_s6 = smov (!%p748_p9, %s3071_s6), 15  ;;  %vm2772_vm0 = vcmask 1041408  }
  0x9a   : > { %v1059_v2 = vunpack.c.l.s4 %v3810_v1  ;;  %v3377_v5 = vld [vmem:[%s4401_s5 + $0xe4] ss:$16 sps:$4 sm:$0xff]   ;;  %v3381_v8 = vld [vmem:[%s4401_s5 + $0xe0] ss:$16 sps:$4 sm:$0xff]   ;;  %v1057_v1 = vcombine.high %v4399_v4, %v4399_v4  ;;  %s750_s9 = scalar_lea.vmem %s4780_s2, %s4789_s6  ;;  %s755_s12 = scalar_lea.vmem %s4781_s3, %s4789_s6 }
  0x9b   : > { %v4394_v3 = vshrl.u32 %v763_v0, 7  ;;  %v3379_v7 = vld [vmem:[%s4401_s5 + $0x2e4] ss:$16 sps:$4 sm:$0xff]   ;;  %2394 = vmatprep.subr.bf16.mxu0 %v3377_v5  ;;  %v3382_v9 = vld [vmem:[%s4401_s5 + $0x2e0] ss:$16 sps:$4 sm:$0xff]  }
  0x9c   : > { %v1060_v6 = vunpack.c.0.s8 %v1059_v2  ;;  %2435 = vmatprep.subr.bf16.mxu1 %v3379_v7  ;;  %v3383_v11 = vld [vmem:[%s4401_s5 + $0xc4] ss:$16 sps:$4 sm:$0xff]   ;;  %2395 = vmatpush1.bf16.msra.mxu0 %v3381_v8  ;;  %v3387_v13 = vld [vmem:[%s4401_s5 + $0xc0] ss:$16 sps:$4 sm:$0xff]  }
  0x9d   : > { %2436 = vmatpush1.bf16.msra.mxu1 %v3382_v9  ;;  %v3385_v12 = vld [vmem:[%s4401_s5 + $0x2c4] ss:$16 sps:$4 sm:$0xff]   ;;  %2396 = vmatprep.subr.bf16.mxu0 %v3383_v11  ;;  %v3388_v15 = vld [vmem:[%s4401_s5 + $0x2c0] ss:$16 sps:$4 sm:$0xff]  }
  0x9e   : > { %v4408_v10 = vsub.s32 %v1060_v6, %v4394_v3  ;;  %2437 = vmatprep.subr.bf16.mxu1 %v3385_v12  ;;  %v3389_v16 = vld [vmem:[%s4401_s5 + $0xa4] ss:$16 sps:$4 sm:$0xff]   ;;  %v3393_v19 = vld [vmem:[%s4401_s5 + $0xa0] ss:$16 sps:$4 sm:$0xff]  }
  0x9f   : > { %v3391_v18 = vld [vmem:[%s4401_s5 + $0x2a4] ss:$16 sps:$4 sm:$0xff]   ;;  %v3394_v20 = vld [vmem:[%s4401_s5 + $0x2a0] ss:$16 sps:$4 sm:$0xff]  }
  0xa0   : > { %v4415_v14 = vrot.slane %v4399_v4, %v4408_v10  ;;  %2397 = vmatpush1.bf16.msra.mxu0 %v3387_v13  ;;  %v3395_v21 = vld [vmem:[%s4401_s5 + $0x84] ss:$16 sps:$4 sm:$0xff]   ;;  %v3399_v25 = vld [vmem:[%s4401_s5 + $0x80] ss:$16 sps:$4 sm:$0xff]   ;;  %v4482_v8 = vrot.slane %v1057_v1, %v4408_v10 }
  0xa1   : > { %2438 = vmatpush1.bf16.msra.mxu1 %v3388_v15  ;;  %2398 = vmatprep.subr.bf16.mxu0 %v3389_v16  ;;  %v3397_v23 = vld [vmem:[%s4401_s5 + $0x284] ss:$16 sps:$4 sm:$0xff]   ;;  %v3400_v26 = vld [vmem:[%s4401_s5 + $0x280] ss:$16 sps:$4 sm:$0xff]  }
  0xa2   : > { %v1072_v17 = vcombine.high %v4415_v14, %v4415_v14  ;;  %2439 = vmatprep.subr.bf16.mxu1 %v3391_v18  ;;  %v3401_v27 = vld [vmem:[%s4401_s5 + $0x64] ss:$16 sps:$4 sm:$0xff]   ;;  %v3405_v29 = vld [vmem:[%s4401_s5 + $0x60] ss:$16 sps:$4 sm:$0xff]   ;;  %v1073_v13 = vcombine.high %v4482_v8, %v4482_v8 }
  0xa3   : > { %v3403_v28 = vld [vmem:[%s4401_s5 + $0x264] ss:$16 sps:$4 sm:$0xff]   ;;  %v3406_v30 = vld [vmem:[%s4401_s5 + $0x260] ss:$16 sps:$4 sm:$0xff]  }
  0xa4   : > { %v4426_v22 = vrot.slane %v1072_v17, %v4408_v10  ;;  %2399 = vmatpush1.bf16.msra.mxu0 %v3393_v19  ;;  %v3407_v31 = vld [vmem:[%s4401_s5 + $0x44] ss:$16 sps:$4 sm:$0xff]   ;;  %v3411_v33 = vld [vmem:[%s4401_s5 + $0x40] ss:$16 sps:$4 sm:$0xff]   ;;  %v4494_v17 = vrot.slane %v4415_v14, %v4408_v10 }
  0xa5   : > { %2440 = vmatpush1.bf16.msra.mxu1 %v3394_v20  ;;  %2400 = vmatprep.subr.bf16.mxu0 %v3395_v21  ;;  %v3409_v32 = vld [vmem:[%s4401_s5 + $0x244] ss:$16 sps:$4 sm:$0xff]   ;;  %v3412_v34 = vld [vmem:[%s4401_s5 + $0x240] ss:$16 sps:$4 sm:$0xff]   ;;  %v4499_v20 = vrot.slane %v1073_v13, %v4408_v10 }
  0xa6   : > { %2426 = vmatprep.mubr.bf16.mxu0 %v4426_v22  ;;  %v4432_v24 = vcombine.high %v4426_v22, %v4426_v22  ;;  %2441 = vmatprep.subr.bf16.mxu1 %v3397_v23  ;;  %v3413_v35 = vld [vmem:[%s4401_s5 + $0x24] ss:$16 sps:$4 sm:$0xff]   ;;  %v3417_v37 = vld [vmem:[%s4401_s5 + $0x20] ss:$16 sps:$4 sm:$0xff]   ;;  %v4503_v21 = vcombine.high %v4494_v17, %v4494_v17 }
  0xa7   : > { %v3415_v36 = vld [vmem:[%s4401_s5 + $0x224] ss:$16 sps:$4 sm:$0xff]   ;;  %v3418_v38 = vld [vmem:[%s4401_s5 + $0x220] ss:$16 sps:$4 sm:$0xff]  }
  0xa8   : > { %2467 = vmatprep.mubr.bf16.mxu1 %v4432_v24  ;;  %2401 = vmatpush1.bf16.msra.mxu0 %v3399_v25  ;;  %v3419_v39 = vld [vmem:[%s4401_s5 + $0x4] ss:$16 sps:$4 sm:$0xff]   ;;  %v3423_v41 = vld [vmem:[%s4401_s5] ss:$16 sps:$4 sm:$0xff]  }
  0xa9   : > { %2442 = vmatpush1.bf16.msra.mxu1 %v3400_v26  ;;  %2402 = vmatprep.subr.bf16.mxu0 %v3401_v27  ;;  %v3421_v40 = vld [vmem:[%s4401_s5 + $0x204] ss:$16 sps:$4 sm:$0xff]   ;;  %v3424_v42 = vld [vmem:[%s4401_s5 + $0x200] ss:$16 sps:$4 sm:$0xff]   ;;  %v4511_v27 = vcombine.high %v4499_v20, %v4499_v20 }
  0xaa   : > { %2443 = vmatprep.subr.bf16.mxu1 %v3403_v28  ;;  %v3425_v43 = vld [vmem:[%s4401_s5 + $0x1e4] ss:$16 sps:$4 sm:$0xff]   ;;  %v3429_v45 = vld [vmem:[%s4401_s5 + $0x1e0] ss:$16 sps:$4 sm:$0xff]  }
  0xab   : > { %v3427_v44 = vld [vmem:[%s4401_s5 + $0x3e4] ss:$16 sps:$4 sm:$0xff]   ;;  %v3430_v46 = vld [vmem:[%s4401_s5 + $0x3e0] ss:$16 sps:$4 sm:$0xff]  }
  0xac   : > { %2403 = vmatpush1.bf16.msra.mxu0 %v3405_v29  ;;  %v3431_v47 = vld [vmem:[%s4401_s5 + $0x1c4] ss:$16 sps:$4 sm:$0xff]   ;;  %v3435_v49 = vld [vmem:[%s4401_s5 + $0x1c0] ss:$16 sps:$4 sm:$0xff]  }
  0xad   : > { %2444 = vmatpush1.bf16.msra.mxu1 %v3406_v30  ;;  %2404 = vmatprep.subr.bf16.mxu0 %v3407_v31  ;;  %v3433_v48 = vld [vmem:[%s4401_s5 + $0x3c4] ss:$16 sps:$4 sm:$0xff]   ;;  %v3436_v50 = vld [vmem:[%s4401_s5 + $0x3c0] ss:$16 sps:$4 sm:$0xff]  }
  0xae   : > { %2445 = vmatprep.subr.bf16.mxu1 %v3409_v32  ;;  %v3437_v51 = vld [vmem:[%s4401_s5 + $0x1a4] ss:$16 sps:$4 sm:$0xff]   ;;  %v3441_v53 = vld [vmem:[%s4401_s5 + $0x1a0] ss:$16 sps:$4 sm:$0xff]  }
  0xaf   : > { %v3439_v52 = vld [vmem:[%s4401_s5 + $0x3a4] ss:$16 sps:$4 sm:$0xff]   ;;  %v3442_v54 = vld [vmem:[%s4401_s5 + $0x3a0] ss:$16 sps:$4 sm:$0xff]  }
  0xb0   : > { %2405 = vmatpush1.bf16.msra.mxu0 %v3411_v33  ;;  %v3443_v55 = vld [vmem:[%s4401_s5 + $0x184] ss:$16 sps:$4 sm:$0xff]   ;;  %v3447_v57 = vld [vmem:[%s4401_s5 + $0x180] ss:$16 sps:$4 sm:$0xff]  }
  0xb1   : > { %2446 = vmatpush1.bf16.msra.mxu1 %v3412_v34  ;;  %2406 = vmatprep.subr.bf16.mxu0 %v3413_v35  ;;  %v3445_v56 = vld [vmem:[%s4401_s5 + $0x384] ss:$16 sps:$4 sm:$0xff]   ;;  %v3448_v58 = vld [vmem:[%s4401_s5 + $0x380] ss:$16 sps:$4 sm:$0xff]  }
  0xb2   : > { %2447 = vmatprep.subr.bf16.mxu1 %v3415_v36  ;;  %v3449_v59 = vld [vmem:[%s4401_s5 + $0x164] ss:$16 sps:$4 sm:$0xff]   ;;  %v3453_v61 = vld [vmem:[%s4401_s5 + $0x160] ss:$16 sps:$4 sm:$0xff]  }
  0xb3   : > { %v3451_v60 = vld [vmem:[%s4401_s5 + $0x364] ss:$16 sps:$4 sm:$0xff]   ;;  %v3454_v62 = vld [vmem:[%s4401_s5 + $0x360] ss:$16 sps:$4 sm:$0xff]  }
  0xb4   : > { %2407 = vmatpush1.bf16.msra.mxu0 %v3417_v37  ;;  %v3455_v63 = vld [vmem:[%s4401_s5 + $0x144] ss:$16 sps:$4 sm:$0xff]   ;;  %v3459_v2 = vld [vmem:[%s4401_s5 + $0x140] ss:$16 sps:$4 sm:$0xff]  }
  0xb5   : > { %2448 = vmatpush1.bf16.msra.mxu1 %v3418_v38  ;;  %2408 = vmatprep.subr.bf16.mxu0 %v3419_v39  ;;  %v3457_v0 = vld [vmem:[%s4401_s5 + $0x344] ss:$16 sps:$4 sm:$0xff]   ;;  %v3460_v5 = vld [vmem:[%s4401_s5 + $0x340] ss:$16 sps:$4 sm:$0xff]  }
  0xb6   : > { %2449 = vmatprep.subr.bf16.mxu1 %v3421_v40  ;;  %v3461_v6 = vld [vmem:[%s4401_s5 + $0x124] ss:$16 sps:$4 sm:$0xff]   ;;  %v3465_v9 = vld [vmem:[%s4401_s5 + $0x120] ss:$16 sps:$4 sm:$0xff]  }
  0xb7   : > { %v3463_v7 = vld [vmem:[%s4401_s5 + $0x324] ss:$16 sps:$4 sm:$0xff]   ;;  %v3466_v11 = vld [vmem:[%s4401_s5 + $0x320] ss:$16 sps:$4 sm:$0xff]  }
  0xb8   : > { %2409 = vmatpush1.bf16.msra.mxu0 %v3423_v41  ;;  %v3467_v4 = vld [vmem:[%s4401_s5 + $0x104] ss:$16 sps:$4 sm:$0xff]   ;;  %v3471_v15 = vld [vmem:[%s4401_s5 + $0x100] ss:$16 sps:$4 sm:$0xff]  }
  0xb9   : > { %2450 = vmatpush1.bf16.msra.mxu1 %v3424_v42  ;;  %2410 = vmatprep.subr.bf16.mxu0 %v3425_v43  ;;  %v3469_v12 = vld [vmem:[%s4401_s5 + $0x304] ss:$16 sps:$4 sm:$0xff]   ;;  %v3472_v16 = vld [vmem:[%s4401_s5 + $0x300] ss:$16 sps:$4 sm:$0xff]  }
  0xba   : > { %2451 = vmatprep.subr.bf16.mxu1 %v3427_v44  ;;  %v3475_v18 = vld [vmem:[%s4401_s5 + $0x4e4] ss:$16 sps:$4 sm:$0xff]   ;;  %v3473_v23 = vld [vmem:[%s4401_s5 + $0x4e0] ss:$16 sps:$4 sm:$0xff]  }
  0xbb   : > { %v3478_v19 = vld [vmem:[%s4401_s5 + $0x6e4] ss:$16 sps:$4 sm:$0xff]   ;;  %v3476_v14 = vld [vmem:[%s4401_s5 + $0x6e0] ss:$16 sps:$4 sm:$0xff]  }
  0xbc   : > { %2411 = vmatpush2.bf16.msra.mxu0 %v3429_v45  ;;  %v3481_v25 = vld [vmem:[%s4401_s5 + $0x4c4] ss:$16 sps:$4 sm:$0xff]   ;;  %v3479_v28 = vld [vmem:[%s4401_s5 + $0x4c0] ss:$16 sps:$4 sm:$0xff]  }
  0xbd   : > { %2452 = vmatpush2.bf16.msra.mxu1 %v3430_v46  ;;  %2412 = vmatprep.subr.bf16.mxu0 %v3431_v47  ;;  %v3484_v26 = vld [vmem:[%s4401_s5 + $0x6c4] ss:$16 sps:$4 sm:$0xff]   ;;  %v3482_v29 = vld [vmem:[%s4401_s5 + $0x6c0] ss:$16 sps:$4 sm:$0xff]  }
  0xbe   : > { %2453 = vmatprep.subr.bf16.mxu1 %v3433_v48  ;;  %v3487_v30 = vld [vmem:[%s4401_s5 + $0x4a4] ss:$16 sps:$4 sm:$0xff]   ;;  %v3485_v32 = vld [vmem:[%s4401_s5 + $0x4a0] ss:$16 sps:$4 sm:$0xff]  }
  0xbf   : > { %v3490_v31 = vld [vmem:[%s4401_s5 + $0x6a4] ss:$16 sps:$4 sm:$0xff]   ;;  %v3488_v33 = vld [vmem:[%s4401_s5 + $0x6a0] ss:$16 sps:$4 sm:$0xff]  }
  0xc0   : > { %2413 = vmatpush2.bf16.msra.mxu0 %v3435_v49  ;;  %v3493_v34 = vld [vmem:[%s4401_s5 + $0x484] ss:$16 sps:$4 sm:$0xff]   ;;  %v3491_v36 = vld [vmem:[%s4401_s5 + $0x480] ss:$16 sps:$4 sm:$0xff]  }
  0xc1   : > { %2454 = vmatpush2.bf16.msra.mxu1 %v3436_v50  ;;  %2414 = vmatprep.subr.bf16.mxu0 %v3437_v51  ;;  %v3496_v35 = vld [vmem:[%s4401_s5 + $0x684] ss:$16 sps:$4 sm:$0xff]   ;;  %v3494_v37 = vld [vmem:[%s4401_s5 + $0x680] ss:$16 sps:$4 sm:$0xff]  }
  0xc2   : > { %2455 = vmatprep.subr.bf16.mxu1 %v3439_v52  ;;  %v3499_v38 = vld [vmem:[%s4401_s5 + $0x464] ss:$16 sps:$4 sm:$0xff]   ;;  %v3497_v40 = vld [vmem:[%s4401_s5 + $0x460] ss:$16 sps:$4 sm:$0xff]  }
  0xc3   : > { %v3502_v39 = vld [vmem:[%s4401_s5 + $0x664] ss:$16 sps:$4 sm:$0xff]   ;;  %v3500_v41 = vld [vmem:[%s4401_s5 + $0x660] ss:$16 sps:$4 sm:$0xff]  }
  0xc4   : > { %2415 = vmatpush2.bf16.msra.mxu0 %v3441_v53  ;;  %v3505_v42 = vld [vmem:[%s4401_s5 + $0x444] ss:$16 sps:$4 sm:$0xff]   ;;  %v3503_v44 = vld [vmem:[%s4401_s5 + $0x440] ss:$16 sps:$4 sm:$0xff]  }
  0xc5   : > { %2456 = vmatpush2.bf16.msra.mxu1 %v3442_v54  ;;  %2416 = vmatprep.subr.bf16.mxu0 %v3443_v55  ;;  %v3508_v43 = vld [vmem:[%s4401_s5 + $0x644] ss:$16 sps:$4 sm:$0xff]   ;;  %v3506_v45 = vld [vmem:[%s4401_s5 + $0x640] ss:$16 sps:$4 sm:$0xff]  }
  0xc6   : > { %2457 = vmatprep.subr.bf16.mxu1 %v3445_v56  ;;  %v3511_v46 = vld [vmem:[%s4401_s5 + $0x424] ss:$16 sps:$4 sm:$0xff]   ;;  %v3509_v48 = vld [vmem:[%s4401_s5 + $0x420] ss:$16 sps:$4 sm:$0xff]  }
  0xc7   : > { %v3514_v47 = vld [vmem:[%s4401_s5 + $0x624] ss:$16 sps:$4 sm:$0xff]   ;;  %v3512_v49 = vld [vmem:[%s4401_s5 + $0x620] ss:$16 sps:$4 sm:$0xff]  }
  0xc8   : > { %2417 = vmatpush2.bf16.msra.mxu0 %v3447_v57  ;;  %v3517_v50 = vld [vmem:[%s4401_s5 + $0x404] ss:$16 sps:$4 sm:$0xff]   ;;  %v3515_v52 = vld [vmem:[%s4401_s5 + $0x400] ss:$16 sps:$4 sm:$0xff]  }
  0xc9   : > { %2458 = vmatpush2.bf16.msra.mxu1 %v3448_v58  ;;  %2418 = vmatprep.subr.bf16.mxu0 %v3449_v59  ;;  %v3520_v51 = vld [vmem:[%s4401_s5 + $0x604] ss:$16 sps:$4 sm:$0xff]   ;;  %v3518_v53 = vld [vmem:[%s4401_s5 + $0x600] ss:$16 sps:$4 sm:$0xff]  }
  0xca   : > { %2459 = vmatprep.subr.bf16.mxu1 %v3451_v60  ;;  %v3523_v54 = vld [vmem:[%s4401_s5 + $0x5e4] ss:$16 sps:$4 sm:$0xff]   ;;  %v3521_v56 = vld [vmem:[%s4401_s5 + $0x5e0] ss:$16 sps:$4 sm:$0xff]  }
  0xcb   : > { %v3526_v55 = vld [vmem:[%s4401_s5 + $0x7e4] ss:$16 sps:$4 sm:$0xff]   ;;  %v3524_v57 = vld [vmem:[%s4401_s5 + $0x7e0] ss:$16 sps:$4 sm:$0xff]  }
  0xcc   : > { %2419 = vmatpush2.bf16.msra.mxu0 %v3453_v61  ;;  %v3529_v58 = vld [vmem:[%s4401_s5 + $0x5c4] ss:$16 sps:$4 sm:$0xff]   ;;  %v3527_v60 = vld [vmem:[%s4401_s5 + $0x5c0] ss:$16 sps:$4 sm:$0xff]  }
  0xcd   : > { %2460 = vmatpush2.bf16.msra.mxu1 %v3454_v62  ;;  %2420 = vmatprep.subr.bf16.mxu0 %v3455_v63  ;;  %v3532_v59 = vld [vmem:[%s4401_s5 + $0x7c4] ss:$16 sps:$4 sm:$0xff]   ;;  %v3530_v61 = vld [vmem:[%s4401_s5 + $0x7c0] ss:$16 sps:$4 sm:$0xff]  }
  0xce   : > { %2461 = vmatprep.subr.bf16.mxu1 %v3457_v0  ;;  %v3535_v62 = vld [vmem:[%s4401_s5 + $0x5a4] ss:$16 sps:$4 sm:$0xff]   ;;  %v3533_v0 = vld [vmem:[%s4401_s5 + $0x5a0] ss:$16 sps:$4 sm:$0xff]  }
  0xcf   : > { %v3538_v63 = vld [vmem:[%s4401_s5 + $0x7a4] ss:$16 sps:$4 sm:$0xff]   ;;  %v3536_v1 = vld [vmem:[%s4401_s5 + $0x7a0] ss:$16 sps:$4 sm:$0xff]  }
  0xd0   : > { %2421 = vmatpush2.bf16.msra.mxu0 %v3459_v2  ;;  %v3541_v2 = vld [vmem:[%s4401_s5 + $0x584] ss:$16 sps:$4 sm:$0xff]  }
  0xd1   : > { %2462 = vmatpush2.bf16.msra.mxu1 %v3460_v5  ;;  %2422 = vmatprep.subr.bf16.mxu0 %v3461_v6  ;;  %v3544_v5 = vld [vmem:[%s4401_s5 + $0x784] ss:$16 sps:$4 sm:$0xff]   ;;  %v3539_v6 = vld [vmem:[%s4401_s5 + $0x580] ss:$16 sps:$4 sm:$0xff]  }
  0xd2   : > { %2463 = vmatprep.subr.bf16.mxu1 %v3463_v7  ;;  %v3542_v7 = vld [vmem:[%s4401_s5 + $0x780] ss:$16 sps:$4 sm:$0xff]   ;;  %v3553_v13 = vld [vmem:[%s4401_s5 + $0x544] ss:$16 sps:$4 sm:$0xff]  }
  0xd4   : > { %2423 = vmatpush2.bf16.msra.mxu0 %v3465_v9  ;;  %v3547_v9 = vld [vmem:[%s4401_s5 + $0x564] ss:$16 sps:$4 sm:$0xff]  }
  0xd5   : > { %2464 = vmatpush2.bf16.msra.mxu1 %v3466_v11  ;;  %2424 = vmatprep.subr.bf16.mxu0 %v3467_v4  ;;  %v3550_v11 = vld [vmem:[%s4401_s5 + $0x764] ss:$16 sps:$4 sm:$0xff]   ;;  %v3545_v4 = vld [vmem:[%s4401_s5 + $0x560] ss:$16 sps:$4 sm:$0xff]  }
  0xd6   : > { %2465 = vmatprep.subr.bf16.mxu1 %v3469_v12  ;;  %v3548_v12 = vld [vmem:[%s4401_s5 + $0x760] ss:$16 sps:$4 sm:$0xff]  }
  0xd8   : > { %2425 = vmatpush2.bf16.msra.mxu0 %v3471_v15  ;;  %v3556_v15 = vld [vmem:[%s4401_s5 + $0x744] ss:$16 sps:$4 sm:$0xff]  }
  0xd9   : > { %2466 = vmatpush2.bf16.msra.mxu1 %v3472_v16  ;;  %2476 = vmatprep.subr.bf16.mxu0 %v3475_v18  ;;  %v3551_v16 = vld [vmem:[%s4401_s5 + $0x540] ss:$16 sps:$4 sm:$0xff]  }
  0xda   : > { %2517 = vmatprep.subr.bf16.mxu1 %v3478_v19  ;;  %v3554_v18 = vld [vmem:[%s4401_s5 + $0x740] ss:$16 sps:$4 sm:$0xff]   ;;  %v3559_v19 = vld [vmem:[%s4401_s5 + $0x524] ss:$16 sps:$4 sm:$0xff]  }
  0xdb   : > { %2427 = vmatmul.mubr.bf16.vlgmr.msra.gmra.mxu0 %v4494_v17 }
  0xdc   : > { %2468 = vmatmul.mubr.bf16.vlgmr.msra.gmra.mxu1 %v4503_v21  ;;  %2477 = vmatpush1.bf16.msra.mxu0 %v3473_v23  ;;  %v3562_v23 = vld [vmem:[%s4401_s5 + $0x724] ss:$16 sps:$4 sm:$0xff]  }
  0xdd   : > { %2518 = vmatpush1.bf16.msra.mxu1 %v3476_v14  ;;  %2478 = vmatprep.subr.bf16.mxu0 %v3481_v25  ;;  %v3557_v14 = vld [vmem:[%s4401_s5 + $0x520] ss:$16 sps:$4 sm:$0xff]  }
  0xde   : > { %2519 = vmatprep.subr.bf16.mxu1 %v3484_v26  ;;  %2508 = vmatprep.mubr.bf16.mxu0 %v4499_v20  ;;  %v3560_v25 = vld [vmem:[%s4401_s5 + $0x720] ss:$16 sps:$4 sm:$0xff]   ;;  %v3565_v26 = vld [vmem:[%s4401_s5 + $0x504] ss:$16 sps:$4 sm:$0xff]  }
  0xdf   : > { %2549 = vmatprep.mubr.bf16.mxu1 %v4511_v27 }
  0xe0   : > { %2479 = vmatpush1.bf16.msra.mxu0 %v3479_v28  ;;  %v3568_v28 = vld [vmem:[%s4401_s5 + $0x704] ss:$16 sps:$4 sm:$0xff]  }
  0xe1   : > { %2520 = vmatpush1.bf16.msra.mxu1 %v3482_v29  ;;  %2480 = vmatprep.subr.bf16.mxu0 %v3487_v30  ;;  %v3563_v29 = vld [vmem:[%s4401_s5 + $0x500] ss:$16 sps:$4 sm:$0xff]  }
  0xe2   : > { %2521 = vmatprep.subr.bf16.mxu1 %v3490_v31  ;;  %v3566_v30 = vld [vmem:[%s4401_s5 + $0x700] ss:$16 sps:$4 sm:$0xff]   ;;  %v4577_v31 = vrot.slane %v4482_v8, %v4408_v10  ;;  %v3578_v8 = vld [vmem:[%s4401_s5 + $0xcc] ss:$16 sps:$4 sm:$0xff]  }
  0xe4   : > { %2481 = vmatpush1.bf16.msra.mxu0 %v3485_v32  ;;  %v3572_v32 = vld [vmem:[%s4401_s5 + $0xec] ss:$16 sps:$4 sm:$0xff]  }
  0xe5   : > { %2522 = vmatpush1.bf16.msra.mxu1 %v3488_v33  ;;  %2482 = vmatprep.subr.bf16.mxu0 %v3493_v34  ;;  %v3575_v33 = vld [vmem:[%s4401_s5 + $0x2ec] ss:$16 sps:$4 sm:$0xff]   ;;  %v4583_v34 = vcombine.high %v4577_v31, %v4577_v31 }
  0xe6   : > { %2523 = vmatprep.subr.bf16.mxu1 %v3496_v35  ;;  %v3570_v35 = vld [vmem:[%s4401_s5 + $0xe8] ss:$16 sps:$4 sm:$0xff]  }
  0xe8   : > { %2483 = vmatpush1.bf16.msra.mxu0 %v3491_v36  ;;  %v3573_v36 = vld [vmem:[%s4401_s5 + $0x2e8] ss:$16 sps:$4 sm:$0xff]  }
  0xe9   : > { %2524 = vmatpush1.bf16.msra.mxu1 %v3494_v37  ;;  %2484 = vmatprep.subr.bf16.mxu0 %v3499_v38  ;;  %v3581_v37 = vld [vmem:[%s4401_s5 + $0x2cc] ss:$16 sps:$4 sm:$0xff]   ;;  %v3576_v38 = vld [vmem:[%s4401_s5 + $0xc8] ss:$16 sps:$4 sm:$0xff]  }
  0xea   : > { %2525 = vmatprep.subr.bf16.mxu1 %v3502_v39  ;;  %v3579_v39 = vld [vmem:[%s4401_s5 + $0x2c8] ss:$16 sps:$4 sm:$0xff]  }
  0xec   : > { %2485 = vmatpush1.bf16.msra.mxu0 %v3497_v40  ;;  %v3584_v40 = vld [vmem:[%s4401_s5 + $0xac] ss:$16 sps:$4 sm:$0xff]  }
  0xed   : > { %2526 = vmatpush1.bf16.msra.mxu1 %v3500_v41  ;;  %2486 = vmatprep.subr.bf16.mxu0 %v3505_v42  ;;  %v3587_v41 = vld [vmem:[%s4401_s5 + $0x2ac] ss:$16 sps:$4 sm:$0xff]   ;;  %v3582_v42 = vld [vmem:[%s4401_s5 + $0xa8] ss:$16 sps:$4 sm:$0xff]  }
  0xee   : > { %2527 = vmatprep.subr.bf16.mxu1 %v3508_v43  ;;  %v3585_v43 = vld [vmem:[%s4401_s5 + $0x2a8] ss:$16 sps:$4 sm:$0xff]  }
  0xf0   : > { %2487 = vmatpush1.bf16.msra.mxu0 %v3503_v44  ;;  %v3590_v44 = vld [vmem:[%s4401_s5 + $0x8c] ss:$16 sps:$4 sm:$0xff]  }
  0xf1   : > { %2528 = vmatpush1.bf16.msra.mxu1 %v3506_v45  ;;  %2488 = vmatprep.subr.bf16.mxu0 %v3511_v46  ;;  %v3593_v45 = vld [vmem:[%s4401_s5 + $0x28c] ss:$16 sps:$4 sm:$0xff]   ;;  %v3588_v46 = vld [vmem:[%s4401_s5 + $0x88] ss:$16 sps:$4 sm:$0xff]  }
  0xf2   : > { %2529 = vmatprep.subr.bf16.mxu1 %v3514_v47  ;;  %v3591_v47 = vld [vmem:[%s4401_s5 + $0x288] ss:$16 sps:$4 sm:$0xff]  }
  0xf4   : > { %2489 = vmatpush1.bf16.msra.mxu0 %v3509_v48  ;;  %v3594_v48 = vld [vmem:[%s4401_s5 + $0x68] ss:$16 sps:$4 sm:$0xff]  }
  0xf5   : > { %2530 = vmatpush1.bf16.msra.mxu1 %v3512_v49  ;;  %2490 = vmatprep.subr.bf16.mxu0 %v3517_v50  ;;  %v3597_v49 = vld [vmem:[%s4401_s5 + $0x268] ss:$16 sps:$4 sm:$0xff]   ;;  %v3602_v50 = vld [vmem:[%s4401_s5 + $0x4c] ss:$16 sps:$4 sm:$0xff]  }
  0xf6   : > { %2531 = vmatprep.subr.bf16.mxu1 %v3520_v51  ;;  %v3605_v51 = vld [vmem:[%s4401_s5 + $0x24c] ss:$16 sps:$4 sm:$0xff]  }
  0xf8   : > { %2491 = vmatpush1.bf16.msra.mxu0 %v3515_v52  ;;  %v3600_v52 = vld [vmem:[%s4401_s5 + $0x48] ss:$16 sps:$4 sm:$0xff]  }
  0xf9   : > { %2532 = vmatpush1.bf16.msra.mxu1 %v3518_v53  ;;  %2492 = vmatprep.subr.bf16.mxu0 %v3523_v54  ;;  %v3603_v53 = vld [vmem:[%s4401_s5 + $0x248] ss:$16 sps:$4 sm:$0xff]   ;;  %v3608_v54 = vld [vmem:[%s4401_s5 + $0x2c] ss:$16 sps:$4 sm:$0xff]  }
  0xfa   : > { %2533 = vmatprep.subr.bf16.mxu1 %v3526_v55  ;;  %v3611_v55 = vld [vmem:[%s4401_s5 + $0x22c] ss:$16 sps:$4 sm:$0xff]  }
  0xfc   : > { %2493 = vmatpush2.bf16.msra.mxu0 %v3521_v56  ;;  %v3606_v56 = vld [vmem:[%s4401_s5 + $0x28] ss:$16 sps:$4 sm:$0xff]  }
  0xfd   : > { %2534 = vmatpush2.bf16.msra.mxu1 %v3524_v57  ;;  %2494 = vmatprep.subr.bf16.mxu0 %v3529_v58  ;;  %v3609_v57 = vld [vmem:[%s4401_s5 + $0x228] ss:$16 sps:$4 sm:$0xff]   ;;  %v3614_v58 = vld [vmem:[%s4401_s5 + $0xc] ss:$16 sps:$4 sm:$0xff]  }
  0xfe   : > { %2535 = vmatprep.subr.bf16.mxu1 %v3532_v59  ;;  %v3617_v59 = vld [vmem:[%s4401_s5 + $0x20c] ss:$16 sps:$4 sm:$0xff]  }
 0x100   : > { %2495 = vmatpush2.bf16.msra.mxu0 %v3527_v60  ;;  %v3612_v60 = vld [vmem:[%s4401_s5 + $0x8] ss:$16 sps:$4 sm:$0xff]  }
 0x101   : > { %2536 = vmatpush2.bf16.msra.mxu1 %v3530_v61  ;;  %2496 = vmatprep.subr.bf16.mxu0 %v3535_v62  ;;  %v3615_v61 = vld [vmem:[%s4401_s5 + $0x208] ss:$16 sps:$4 sm:$0xff]   ;;  %v3620_v62 = vld [vmem:[%s4401_s5 + $0x1ec] ss:$16 sps:$4 sm:$0xff]  }
 0x102   : > { %2537 = vmatprep.subr.bf16.mxu1 %v3538_v63  ;;  %v3623_v63 = vld [vmem:[%s4401_s5 + $0x3ec] ss:$16 sps:$4 sm:$0xff]  }
 0x104   : > { %2497 = vmatpush2.bf16.msra.mxu0 %v3533_v0  ;;  %v3618_v0 = vld [vmem:[%s4401_s5 + $0x1e8] ss:$16 sps:$4 sm:$0xff]  }
 0x105   : > { %2538 = vmatpush2.bf16.msra.mxu1 %v3536_v1  ;;  %2498 = vmatprep.subr.bf16.mxu0 %v3541_v2  ;;  %v3621_v1 = vld [vmem:[%s4401_s5 + $0x3e8] ss:$16 sps:$4 sm:$0xff]   ;;  %v3626_v2 = vld [vmem:[%s4401_s5 + $0x1cc] ss:$16 sps:$4 sm:$0xff]  }
 0x106   : > { %2539 = vmatprep.subr.bf16.mxu1 %v3544_v5  ;;  %v3629_v5 = vld [vmem:[%s4401_s5 + $0x3cc] ss:$16 sps:$4 sm:$0xff]  }
 0x108   : > { %2499 = vmatpush2.bf16.msra.mxu0 %v3539_v6  ;;  %v3624_v6 = vld [vmem:[%s4401_s5 + $0x1c8] ss:$16 sps:$4 sm:$0xff]  }
 0x109   : > { %2540 = vmatpush2.bf16.msra.mxu1 %v3542_v7  ;;  %2500 = vmatprep.subr.bf16.mxu0 %v3547_v9  ;;  %v3627_v7 = vld [vmem:[%s4401_s5 + $0x3c8] ss:$16 sps:$4 sm:$0xff]   ;;  %v3632_v9 = vld [vmem:[%s4401_s5 + $0x1ac] ss:$16 sps:$4 sm:$0xff]  }
 0x10a   : > { %2541 = vmatprep.subr.bf16.mxu1 %v3550_v11  ;;  %v3635_v11 = vld [vmem:[%s4401_s5 + $0x3ac] ss:$16 sps:$4 sm:$0xff]  }
 0x10c   : > { %2501 = vmatpush2.bf16.msra.mxu0 %v3545_v4  ;;  %v3630_v4 = vld [vmem:[%s4401_s5 + $0x1a8] ss:$16 sps:$4 sm:$0xff]  }
 0x10d   : > { %2542 = vmatpush2.bf16.msra.mxu1 %v3548_v12  ;;  %2502 = vmatprep.subr.bf16.mxu0 %v3553_v13  ;;  %v3633_v12 = vld [vmem:[%s4401_s5 + $0x3a8] ss:$16 sps:$4 sm:$0xff]   ;;  %v3638_v13 = vld [vmem:[%s4401_s5 + $0x18c] ss:$16 sps:$4 sm:$0xff]  }
 0x10e   : > { %2543 = vmatprep.subr.bf16.mxu1 %v3556_v15  ;;  %v3641_v15 = vld [vmem:[%s4401_s5 + $0x38c] ss:$16 sps:$4 sm:$0xff]  }
 0x110   : > { %2503 = vmatpush2.bf16.msra.mxu0 %v3551_v16  ;;  %v3636_v16 = vld [vmem:[%s4401_s5 + $0x188] ss:$16 sps:$4 sm:$0xff]  }
 0x111   : > { %2544 = vmatpush2.bf16.msra.mxu1 %v3554_v18  ;;  %2504 = vmatprep.subr.bf16.mxu0 %v3559_v19  ;;  %v3639_v18 = vld [vmem:[%s4401_s5 + $0x388] ss:$16 sps:$4 sm:$0xff]   ;;  %v3644_v19 = vld [vmem:[%s4401_s5 + $0x16c] ss:$16 sps:$4 sm:$0xff]  }
 0x112   : > { %2545 = vmatprep.subr.bf16.mxu1 %v3562_v23  ;;  %v3647_v23 = vld [vmem:[%s4401_s5 + $0x36c] ss:$16 sps:$4 sm:$0xff]  }
 0x114   : > { %2505 = vmatpush2.bf16.msra.mxu0 %v3557_v14  ;;  %v3642_v14 = vld [vmem:[%s4401_s5 + $0x168] ss:$16 sps:$4 sm:$0xff]  }
 0x115   : > { %2546 = vmatpush2.bf16.msra.mxu1 %v3560_v25  ;;  %2506 = vmatprep.subr.bf16.mxu0 %v3565_v26  ;;  %v3645_v25 = vld [vmem:[%s4401_s5 + $0x368] ss:$16 sps:$4 sm:$0xff]   ;;  %v3650_v26 = vld [vmem:[%s4401_s5 + $0x14c] ss:$16 sps:$4 sm:$0xff]  }
 0x116   : > { %2547 = vmatprep.subr.bf16.mxu1 %v3568_v28  ;;  %v3653_v28 = vld [vmem:[%s4401_s5 + $0x34c] ss:$16 sps:$4 sm:$0xff]  }
 0x118   : > { %2507 = vmatpush2.bf16.msra.mxu0 %v3563_v29  ;;  %v3648_v29 = vld [vmem:[%s4401_s5 + $0x148] ss:$16 sps:$4 sm:$0xff]  }
 0x119   : > { %2548 = vmatpush2.bf16.msra.mxu1 %v3566_v30  ;;  %2558 = vmatprep.subr.bf16.mxu0 %v3572_v32  ;;  %v3651_v30 = vld [vmem:[%s4401_s5 + $0x348] ss:$16 sps:$4 sm:$0xff]   ;;  %v3656_v32 = vld [vmem:[%s4401_s5 + $0x12c] ss:$16 sps:$4 sm:$0xff]  }
 0x11a   : > { %2599 = vmatprep.subr.bf16.mxu1 %v3575_v33  ;;  %v3659_v33 = vld [vmem:[%s4401_s5 + $0x32c] ss:$16 sps:$4 sm:$0xff]  }
 0x11b   : > { %2509 = vmatmul.mubr.bf16.vlgmr.msra.gmra.mxu0 %v4577_v31 }
 0x11c   : > { %2550 = vmatmul.mubr.bf16.vlgmr.msra.gmra.mxu1 %v4583_v34  ;;  %2559 = vmatpush1.bf16.msra.mxu0 %v3570_v35  ;;  %v3654_v35 = vld [vmem:[%s4401_s5 + $0x128] ss:$16 sps:$4 sm:$0xff]  }
 0x11d   : > { %2600 = vmatpush1.bf16.msra.mxu1 %v3573_v36  ;;  %2560 = vmatprep.subr.bf16.mxu0 %v3578_v8  ;;  %v3657_v36 = vld [vmem:[%s4401_s5 + $0x328] ss:$16 sps:$4 sm:$0xff]   ;;  %v3662_v8 = vld [vmem:[%s4401_s5 + $0x10c] ss:$16 sps:$4 sm:$0xff]  }
 0x11e   : > { %2601 = vmatprep.subr.bf16.mxu1 %v3581_v37  ;;  %2590 = vmatprep.mubr.bf16.mxu0 %v4426_v22  ;;  %v3596_v22 = vld [vmem:[%s4401_s5 + $0x6c] ss:$16 sps:$4 sm:$0xff]  }
 0x11f   : > { %2631 = vmatprep.mubr.bf16.mxu1 %v4432_v24  ;;  %v3599_v24 = vld [vmem:[%s4401_s5 + $0x26c] ss:$16 sps:$4 sm:$0xff]  }
 0x120   : > { %2561 = vmatpush1.bf16.msra.mxu0 %v3576_v38  ;;  %v3665_v37 = vld [vmem:[%s4401_s5 + $0x30c] ss:$16 sps:$4 sm:$0xff]   ;;  %v3660_v38 = vld [vmem:[%s4401_s5 + $0x108] ss:$16 sps:$4 sm:$0xff]  }
 0x121   : > { %2602 = vmatpush1.bf16.msra.mxu1 %v3579_v39  ;;  %2562 = vmatprep.subr.bf16.mxu0 %v3584_v40  ;;  %v3663_v39 = vld [vmem:[%s4401_s5 + $0x308] ss:$16 sps:$4 sm:$0xff]   ;;  %v3668_v40 = vld [vmem:[%s4401_s5 + $0x4ec] ss:$16 sps:$4 sm:$0xff]  }
 0x122   : > { %2603 = vmatprep.subr.bf16.mxu1 %v3587_v41  ;;  %v3671_v41 = vld [vmem:[%s4401_s5 + $0x6ec] ss:$16 sps:$4 sm:$0xff]  }
 0x124   : > { %2563 = vmatpush1.bf16.msra.mxu0 %v3582_v42  ;;  %v3666_v42 = vld [vmem:[%s4401_s5 + $0x4e8] ss:$16 sps:$4 sm:$0xff]  }
 0x125   : > { %2604 = vmatpush1.bf16.msra.mxu1 %v3585_v43  ;;  %2564 = vmatprep.subr.bf16.mxu0 %v3590_v44  ;;  %v3669_v43 = vld [vmem:[%s4401_s5 + $0x6e8] ss:$16 sps:$4 sm:$0xff]   ;;  %v3674_v44 = vld [vmem:[%s4401_s5 + $0x4cc] ss:$16 sps:$4 sm:$0xff]  }
 0x126   : > { %2605 = vmatprep.subr.bf16.mxu1 %v3593_v45  ;;  %v3677_v45 = vld [vmem:[%s4401_s5 + $0x6cc] ss:$16 sps:$4 sm:$0xff]  }
 0x128   : > { %2565 = vmatpush1.bf16.msra.mxu0 %v3588_v46  ;;  %v3672_v46 = vld [vmem:[%s4401_s5 + $0x4c8] ss:$16 sps:$4 sm:$0xff]  }
 0x129   : > { %2606 = vmatpush1.bf16.msra.mxu1 %v3591_v47  ;;  %2566 = vmatprep.subr.bf16.mxu0 %v3596_v22  ;;  %v3675_v47 = vld [vmem:[%s4401_s5 + $0x6c8] ss:$16 sps:$4 sm:$0xff]   ;;  %v3680_v22 = vld [vmem:[%s4401_s5 + $0x4ac] ss:$16 sps:$4 sm:$0xff]  }
 0x12a   : > { %2607 = vmatprep.subr.bf16.mxu1 %v3599_v24  ;;  %v3683_v24 = vld [vmem:[%s4401_s5 + $0x6ac] ss:$16 sps:$4 sm:$0xff]  }
 0x12c   : > { %2567 = vmatpush1.bf16.msra.mxu0 %v3594_v48  ;;  %v3686_v48 = vld [vmem:[%s4401_s5 + $0x48c] ss:$16 sps:$4 sm:$0xff]  }
 0x12d   : > { %2608 = vmatpush1.bf16.msra.mxu1 %v3597_v49  ;;  %2568 = vmatprep.subr.bf16.mxu0 %v3602_v50  ;;  %v3689_v49 = vld [vmem:[%s4401_s5 + $0x68c] ss:$16 sps:$4 sm:$0xff]   ;;  %v3684_v50 = vld [vmem:[%s4401_s5 + $0x488] ss:$16 sps:$4 sm:$0xff]  }
 0x12e   : > { %2609 = vmatprep.subr.bf16.mxu1 %v3605_v51  ;;  %v3695_v51 = vld [vmem:[%s4401_s5 + $0x66c] ss:$16 sps:$4 sm:$0xff]  }
 0x130   : > { %2569 = vmatpush1.bf16.msra.mxu0 %v3600_v52  ;;  %v3690_v52 = vld [vmem:[%s4401_s5 + $0x468] ss:$16 sps:$4 sm:$0xff]  }
 0x131   : > { %2610 = vmatpush1.bf16.msra.mxu1 %v3603_v53  ;;  %2570 = vmatprep.subr.bf16.mxu0 %v3608_v54  ;;  %v3693_v53 = vld [vmem:[%s4401_s5 + $0x668] ss:$16 sps:$4 sm:$0xff]   ;;  %v3698_v54 = vld [vmem:[%s4401_s5 + $0x44c] ss:$16 sps:$4 sm:$0xff]  }
 0x132   : > { %2611 = vmatprep.subr.bf16.mxu1 %v3611_v55  ;;  %v3701_v55 = vld [vmem:[%s4401_s5 + $0x64c] ss:$16 sps:$4 sm:$0xff]  }
 0x134   : > { %2571 = vmatpush1.bf16.msra.mxu0 %v3606_v56  ;;  %v3696_v56 = vld [vmem:[%s4401_s5 + $0x448] ss:$16 sps:$4 sm:$0xff]  }
 0x135   : > { %2612 = vmatpush1.bf16.msra.mxu1 %v3609_v57  ;;  %2572 = vmatprep.subr.bf16.mxu0 %v3614_v58  ;;  %v3699_v57 = vld [vmem:[%s4401_s5 + $0x648] ss:$16 sps:$4 sm:$0xff]   ;;  %v3704_v58 = vld [vmem:[%s4401_s5 + $0x42c] ss:$16 sps:$4 sm:$0xff]  }
 0x136   : > { %2613 = vmatprep.subr.bf16.mxu1 %v3617_v59  ;;  %v3707_v59 = vld [vmem:[%s4401_s5 + $0x62c] ss:$16 sps:$4 sm:$0xff]  }
 0x138   : > { %2573 = vmatpush1.bf16.msra.mxu0 %v3612_v60  ;;  %v3702_v60 = vld [vmem:[%s4401_s5 + $0x428] ss:$16 sps:$4 sm:$0xff]  }
 0x139   : > { %2614 = vmatpush1.bf16.msra.mxu1 %v3615_v61  ;;  %2574 = vmatprep.subr.bf16.mxu0 %v3620_v62  ;;  %v3705_v61 = vld [vmem:[%s4401_s5 + $0x628] ss:$16 sps:$4 sm:$0xff]   ;;  %v3710_v62 = vld [vmem:[%s4401_s5 + $0x40c] ss:$16 sps:$4 sm:$0xff]  }
 0x13a   : > { %2615 = vmatprep.subr.bf16.mxu1 %v3623_v63  ;;  %v3713_v63 = vld [vmem:[%s4401_s5 + $0x60c] ss:$16 sps:$4 sm:$0xff]  }
 0x13c   : > { %2575 = vmatpush2.bf16.msra.mxu0 %v3618_v0  ;;  %v3708_v0 = vld [vmem:[%s4401_s5 + $0x408] ss:$16 sps:$4 sm:$0xff]  }
 0x13d   : > { %2616 = vmatpush2.bf16.msra.mxu1 %v3621_v1  ;;  %2576 = vmatprep.subr.bf16.mxu0 %v3626_v2  ;;  %v3711_v1 = vld [vmem:[%s4401_s5 + $0x608] ss:$16 sps:$4 sm:$0xff]   ;;  %v3716_v2 = vld [vmem:[%s4401_s5 + $0x5ec] ss:$16 sps:$4 sm:$0xff]  }
 0x13e   : > { %2617 = vmatprep.subr.bf16.mxu1 %v3629_v5  ;;  %v3719_v5 = vld [vmem:[%s4401_s5 + $0x7ec] ss:$16 sps:$4 sm:$0xff]  }
 0x140   : > { %2577 = vmatpush2.bf16.msra.mxu0 %v3624_v6  ;;  %v3714_v6 = vld [vmem:[%s4401_s5 + $0x5e8] ss:$16 sps:$4 sm:$0xff]  }
 0x141   : > { %2618 = vmatpush2.bf16.msra.mxu1 %v3627_v7  ;;  %2578 = vmatprep.subr.bf16.mxu0 %v3632_v9  ;;  %v3717_v7 = vld [vmem:[%s4401_s5 + $0x7e8] ss:$16 sps:$4 sm:$0xff]   ;;  %v3722_v9 = vld [vmem:[%s4401_s5 + $0x5cc] ss:$16 sps:$4 sm:$0xff]  }
 0x142   : > { %2619 = vmatprep.subr.bf16.mxu1 %v3635_v11  ;;  %v3725_v11 = vld [vmem:[%s4401_s5 + $0x7cc] ss:$16 sps:$4 sm:$0xff]  }
 0x144   : > { %2579 = vmatpush2.bf16.msra.mxu0 %v3630_v4  ;;  %v3720_v4 = vld [vmem:[%s4401_s5 + $0x5c8] ss:$16 sps:$4 sm:$0xff]  }
 0x145   : > { %2620 = vmatpush2.bf16.msra.mxu1 %v3633_v12  ;;  %2580 = vmatprep.subr.bf16.mxu0 %v3638_v13  ;;  %v3723_v12 = vld [vmem:[%s4401_s5 + $0x7c8] ss:$16 sps:$4 sm:$0xff]   ;;  %v3728_v13 = vld [vmem:[%s4401_s5 + $0x5ac] ss:$16 sps:$4 sm:$0xff]  }
 0x146   : > { %2621 = vmatprep.subr.bf16.mxu1 %v3641_v15  ;;  %v3731_v15 = vld [vmem:[%s4401_s5 + $0x7ac] ss:$16 sps:$4 sm:$0xff]  }
 0x148   : > { %2581 = vmatpush2.bf16.msra.mxu0 %v3636_v16  ;;  %v3726_v16 = vld [vmem:[%s4401_s5 + $0x5a8] ss:$16 sps:$4 sm:$0xff]  }
 0x149   : > { %2622 = vmatpush2.bf16.msra.mxu1 %v3639_v18  ;;  %2582 = vmatprep.subr.bf16.mxu0 %v3644_v19  ;;  %v3729_v18 = vld [vmem:[%s4401_s5 + $0x7a8] ss:$16 sps:$4 sm:$0xff]   ;;  %v3734_v19 = vld [vmem:[%s4401_s5 + $0x58c] ss:$16 sps:$4 sm:$0xff]  }
 0x14a   : > { %2623 = vmatprep.subr.bf16.mxu1 %v3647_v23  ;;  %v3737_v23 = vld [vmem:[%s4401_s5 + $0x78c] ss:$16 sps:$4 sm:$0xff]  }
 0x14c   : > { %2583 = vmatpush2.bf16.msra.mxu0 %v3642_v14  ;;  %v3732_v14 = vld [vmem:[%s4401_s5 + $0x588] ss:$16 sps:$4 sm:$0xff]  }
 0x14d   : > { %2624 = vmatpush2.bf16.msra.mxu1 %v3645_v25  ;;  %2584 = vmatprep.subr.bf16.mxu0 %v3650_v26  ;;  %v3735_v25 = vld [vmem:[%s4401_s5 + $0x788] ss:$16 sps:$4 sm:$0xff]   ;;  %v3740_v26 = vld [vmem:[%s4401_s5 + $0x56c] ss:$16 sps:$4 sm:$0xff]  }
 0x14e   : > { %2625 = vmatprep.subr.bf16.mxu1 %v3653_v28  ;;  %v3743_v28 = vld [vmem:[%s4401_s5 + $0x76c] ss:$16 sps:$4 sm:$0xff]  }
 0x150   : > { %2585 = vmatpush2.bf16.msra.mxu0 %v3648_v29  ;;  %v3738_v29 = vld [vmem:[%s4401_s5 + $0x568] ss:$16 sps:$4 sm:$0xff]  }
 0x151   : > { %2626 = vmatpush2.bf16.msra.mxu1 %v3651_v30  ;;  %2586 = vmatprep.subr.bf16.mxu0 %v3656_v32  ;;  %v3741_v30 = vld [vmem:[%s4401_s5 + $0x768] ss:$16 sps:$4 sm:$0xff]   ;;  %v3746_v32 = vld [vmem:[%s4401_s5 + $0x54c] ss:$16 sps:$4 sm:$0xff]  }
 0x152   : > { %2627 = vmatprep.subr.bf16.mxu1 %v3659_v33  ;;  %v3749_v33 = vld [vmem:[%s4401_s5 + $0x74c] ss:$16 sps:$4 sm:$0xff]  }
 0x154   : > { %2587 = vmatpush2.bf16.msra.mxu0 %v3654_v35  ;;  %v3744_v35 = vld [vmem:[%s4401_s5 + $0x548] ss:$16 sps:$4 sm:$0xff]  }
 0x155   : > { %2628 = vmatpush2.bf16.msra.mxu1 %v3657_v36  ;;  %2588 = vmatprep.subr.bf16.mxu0 %v3662_v8  ;;  %v3747_v36 = vld [vmem:[%s4401_s5 + $0x748] ss:$16 sps:$4 sm:$0xff]   ;;  %v3752_v8 = vld [vmem:[%s4401_s5 + $0x52c] ss:$16 sps:$4 sm:$0xff]  }
 0x156   : > { %2629 = vmatprep.subr.bf16.mxu1 %v3665_v37  ;;  %v3755_v37 = vld [vmem:[%s4401_s5 + $0x72c] ss:$16 sps:$4 sm:$0xff]  }
 0x158   : > { %2589 = vmatpush2.bf16.msra.mxu0 %v3660_v38  ;;  %v3750_v38 = vld [vmem:[%s4401_s5 + $0x528] ss:$16 sps:$4 sm:$0xff]  }
 0x159   : > { %2630 = vmatpush2.bf16.msra.mxu1 %v3663_v39  ;;  %2640 = vmatprep.subr.bf16.mxu0 %v3668_v40  ;;  %v3753_v39 = vld [vmem:[%s4401_s5 + $0x728] ss:$16 sps:$4 sm:$0xff]   ;;  %v3758_v40 = vld [vmem:[%s4401_s5 + $0x50c] ss:$16 sps:$4 sm:$0xff]  }
 0x15a   : > { %2681 = vmatprep.subr.bf16.mxu1 %v3671_v41  ;;  %v3761_v41 = vld [vmem:[%s4401_s5 + $0x70c] ss:$16 sps:$4 sm:$0xff]  }
 0x15b   : > { %2591 = vmatmul.mubr.bf16.vlgmr.msra.gmra.mxu0 %v4494_v17  ;;  %v3678_v17 = vld [vmem:[%s4401_s5 + $0x4a8] ss:$16 sps:$4 sm:$0xff]  }
 0x15c   : > { %2632 = vmatmul.mubr.bf16.vlgmr.msra.gmra.mxu1 %v4503_v21  ;;  %2641 = vmatpush1.bf16.msra.mxu0 %v3666_v42  ;;  %v3681_v21 = vld [vmem:[%s4401_s5 + $0x6a8] ss:$16 sps:$4 sm:$0xff]  }
 0x15d   : > { %2682 = vmatpush1.bf16.msra.mxu1 %v3669_v43  ;;  %2642 = vmatprep.subr.bf16.mxu0 %v3674_v44  ;;  %v3756_v42 = vld [vmem:[%s4401_s5 + $0x508] ss:$16 sps:$4 sm:$0xff]  }
 0x15e   : > { %2683 = vmatprep.subr.bf16.mxu1 %v3677_v45  ;;  %2672 = vmatprep.mubr.bf16.mxu0 %v4499_v20  ;;  %v3687_v20 = vld [vmem:[%s4401_s5 + $0x688] ss:$16 sps:$4 sm:$0xff]  }
 0x15f   : > { %2713 = vmatprep.mubr.bf16.mxu1 %v4511_v27  ;;  %v3692_v27 = vld [vmem:[%s4401_s5 + $0x46c] ss:$16 sps:$4 sm:$0xff]   ;;  %v3759_v43 = vld [vmem:[%s4401_s5 + $0x708] ss:$16 sps:$4 sm:$0xff]  }
 0x160   : > { %2643 = vmatpush1.bf16.msra.mxu0 %v3672_v46 }
 0x161   : > { %2684 = vmatpush1.bf16.msra.mxu1 %v3675_v47  ;;  %2644 = vmatprep.subr.bf16.mxu0 %v3680_v22 }
 0x162   : > { %2685 = vmatprep.subr.bf16.mxu1 %v3683_v24 }
 0x164   : > { %2645 = vmatpush1.bf16.msra.mxu0 %v3678_v17 }
 0x165   : > { %2686 = vmatpush1.bf16.msra.mxu1 %v3681_v21  ;;  %2646 = vmatprep.subr.bf16.mxu0 %v3686_v48 }
 0x166   : > { %2687 = vmatprep.subr.bf16.mxu1 %v3689_v49 }
 0x168   : > { %2647 = vmatpush1.bf16.msra.mxu0 %v3684_v50 }
 0x169   : > { %2688 = vmatpush1.bf16.msra.mxu1 %v3687_v20  ;;  %2648 = vmatprep.subr.bf16.mxu0 %v3692_v27 }
 0x16a   : > { %2689 = vmatprep.subr.bf16.mxu1 %v3695_v51 }
 0x16c   : > { %2649 = vmatpush1.bf16.msra.mxu0 %v3690_v52 }
 0x16d   : > { %2690 = vmatpush1.bf16.msra.mxu1 %v3693_v53  ;;  %2650 = vmatprep.subr.bf16.mxu0 %v3698_v54 }
 0x16e   : > { %2691 = vmatprep.subr.bf16.mxu1 %v3701_v55 }
 0x170   : > { %2651 = vmatpush1.bf16.msra.mxu0 %v3696_v56 }
 0x171   : > { %2692 = vmatpush1.bf16.msra.mxu1 %v3699_v57  ;;  %2652 = vmatprep.subr.bf16.mxu0 %v3704_v58 }
 0x172   : > { %2693 = vmatprep.subr.bf16.mxu1 %v3707_v59 }
 0x174   : > { %2653 = vmatpush1.bf16.msra.mxu0 %v3702_v60 }
 0x175   : > { %2694 = vmatpush1.bf16.msra.mxu1 %v3705_v61  ;;  %2654 = vmatprep.subr.bf16.mxu0 %v3710_v62 }
 0x176   : > { %2695 = vmatprep.subr.bf16.mxu1 %v3713_v63 }
 0x178   : > { %2655 = vmatpush1.bf16.msra.mxu0 %v3708_v0 }
 0x179   : > { %2696 = vmatpush1.bf16.msra.mxu1 %v3711_v1  ;;  %2656 = vmatprep.subr.bf16.mxu0 %v3716_v2 }
 0x17a   : > { %2697 = vmatprep.subr.bf16.mxu1 %v3719_v5 }
 0x17c   : > { %2657 = vmatpush2.bf16.msra.mxu0 %v3714_v6  ;;  %v765_v6 = vsub.s32 0, %v4394_v3 }
 0x17d   : > { %2698 = vmatpush2.bf16.msra.mxu1 %v3717_v7  ;;  %2658 = vmatprep.subr.bf16.mxu0 %v3722_v9  ;;  %v769_v7 = vsub.s32 1, %v4394_v3  ;;  %v773_v9 = vsub.s32 2, %v4394_v3 }
 0x17e   : > { %2699 = vmatprep.subr.bf16.mxu1 %v3725_v11  ;;  %v777_v11 = vsub.s32 3, %v4394_v3 }
 0x180   : > { %2659 = vmatpush2.bf16.msra.mxu0 %v3720_v4  ;;  %v761_v4 = vld [vmem:[%s750_s9] sm:$0xf] }
 0x181   : > { %2700 = vmatpush2.bf16.msra.mxu1 %v3723_v12  ;;  %2660 = vmatprep.subr.bf16.mxu0 %v3728_v13  ;;  %v3811_v12 = vmov 1983009808  }
 0x182   : > { %2701 = vmatprep.subr.bf16.mxu1 %v3731_v15  ;;  %v782_v13 = vunpack.c.l.s4 %v3811_v12  ;;  %v766_v15 = vrot.slane %v761_v4, %v765_v6 }
 0x184   : > { %2661 = vmatpush2.bf16.msra.mxu0 %v3726_v16  ;;  %v770_v16 = vrot.slane %v761_v4, %v769_v7 }
 0x185   : > { %2702 = vmatpush2.bf16.msra.mxu1 %v3729_v18  ;;  %2662 = vmatprep.subr.bf16.mxu0 %v3734_v19  ;;  %v774_v18 = vrot.slane %v761_v4, %v773_v9  ;;  %v778_v19 = vrot.slane %v761_v4, %v777_v11 }
 0x186   : > { %2703 = vmatprep.subr.bf16.mxu1 %v3737_v23  ;;  %v783_v23 = vunpack.c.0.s8 %v782_v13 }
 0x188   : > { %2663 = vmatpush2.bf16.msra.mxu0 %v3732_v14 }
 0x189   : > { %2704 = vmatpush2.bf16.msra.mxu1 %v3735_v25  ;;  %2664 = vmatprep.subr.bf16.mxu0 %v3740_v26 }
 0x18a   : > { %2705 = vmatprep.subr.bf16.mxu1 %v3743_v28 }
 0x18c   : > { %2665 = vmatpush2.bf16.msra.mxu0 %v3738_v29  ;;  %v779_v29 = vcombine.low %v766_v15, %v770_v16 }
 0x18d   : > { %2706 = vmatpush2.bf16.msra.mxu1 %v3741_v30  ;;  %2666 = vmatprep.subr.bf16.mxu0 %v3746_v32  ;;  %v780_v30 = vcombine.low %v774_v18, %v778_v19 }
 0x18e   : > { %2707 = vmatprep.subr.bf16.mxu1 %v3749_v33 }
 0x190   : > { %2667 = vmatpush2.bf16.msra.mxu0 %v3744_v35  ;;  %v4733_v35 = vsub.s32 %v783_v23, %v4394_v3 }
 0x191   : > { %2708 = vmatpush2.bf16.msra.mxu1 %v3747_v36  ;;  %2668 = vmatprep.subr.bf16.mxu0 %v3752_v8 }
 0x192   : > { %2709 = vmatprep.subr.bf16.mxu1 %v3755_v37 }
 0x194   : > { %2669 = vmatpush2.bf16.msra.mxu0 %v3750_v38 }
 0x195   : > { %2710 = vmatpush2.bf16.msra.mxu1 %v3753_v39  ;;  %2670 = vmatprep.subr.bf16.mxu0 %v3758_v40  ;;  %v787_v39 = vrot.slane %v779_v29, %v4733_v35  ;;  %v794_v40 = vrot.slane %v780_v30, %v4733_v35 }
 0x196   : > { %2711 = vmatprep.subr.bf16.mxu1 %v3761_v41 }
 0x198   : > { %2671 = vmatpush2.bf16.msra.mxu0 %v3756_v42 }
 0x199   : > { %2712 = vmatpush2.bf16.msra.mxu1 %v3759_v43 }
 0x19b   : > { %v2428_v44 = vpop.f32.mrf.mxu0  ;;  %2673 = vmatmul.mubr.bf16.vlgmr.msra.gmra.mxu0 %v4577_v31 }
 0x19c   : > { %v2469_v45 = vpop.f32.mrf.mxu1  ;;  %2714 = vmatmul.mubr.bf16.vlgmr.msra.gmra.mxu1 %v4583_v34 }
 0x19d   : > { %v2470_v46 = vadd.f32 %v2469_v45, %v2428_v44  ;;  %v2430_v47 = vpop.f32.mrf.mxu0 }
 0x19e   : > { %v2471_v22 = vpop.f32.mrf.mxu1 }
 0x19f   : > { %v2472_v24 = vadd.f32 %v2471_v22, %v2430_v47  ;;  %v2432_v17 = vpop.f32.mrf.mxu0 }
 0x1a0   : > { %v2473_v21 = vpop.f32.mrf.mxu1 }
 0x1a1   : > { %v2433_v48 = vpop.f32.mrf.mxu0 }
 0x1a2   : > { %v2474_v49 = vpop.f32.mrf.mxu1 }
 0x1db   : > { %v2510_v50 = vpop.f32.mrf.mxu0 }
 0x1dc   : > { %v2551_v20 = vpop.f32.mrf.mxu1  ;;  %v2511_v27 = vadd.f32 %v2510_v50, %v2470_v46  ;;  %v795_v46 = vcombine.low %v787_v39, %v794_v40 }
 0x1dd   : > { %v2512_v51 = vpop.f32.mrf.mxu0 }
 0x1de   : > { %v2553_v52 = vpop.f32.mrf.mxu1  ;;  %v2552_v53 = vadd.f32 %v2551_v20, %v2511_v27  ;;  %v2513_v54 = vadd.f32 %v2512_v51, %v2472_v24 }
 0x1df   : > { %v2514_v55 = vpop.f32.mrf.mxu0 }
 0x1e0   : > { %v2555_v31 = vpop.f32.mrf.mxu1  ;;  %v2554_v56 = vadd.f32 %v2553_v52, %v2513_v54 }
 0x1e1   : > { %v2515_v34 = vpop.f32.mrf.mxu0 }
 0x1e2   : > { %v2556_v57 = vpop.f32.mrf.mxu1  ;;  %v2726_v58 = vcombine.low %v2552_v53, %v2554_v56 }
 0x1e4   : > { %v2734_v45 = vrot.slane %v2726_v58, %v4733_v35 }
 0x21b   : > { %v2592_v59 = vpop.f32.mrf.mxu0 }
 0x21c   : > { %v2633_v60 = vpop.f32.mrf.mxu1 }
 0x21d   : > { %v2634_v61 = vadd.f32 %v2633_v60, %v2592_v59  ;;  %v2594_v62 = vpop.f32.mrf.mxu0 }
 0x21e   : > { %v2635_v63 = vpop.f32.mrf.mxu1 }
 0x21f   : > { %v2596_v0 = vpop.f32.mrf.mxu0  ;;  %v2636_v26 = vadd.f32 %v2635_v63, %v2594_v62 }
 0x220   : > { %v2637_v1 = vpop.f32.mrf.mxu1 }
 0x221   : > { %v2597_v2 = vpop.f32.mrf.mxu0 }
 0x222   : > { %v2638_v5 = vpop.f32.mrf.mxu1 }
 0x25b   : > { %v2674_v14 = vpop.f32.mrf.mxu0 }
 0x25c   : > { %v2715_v25 = vpop.f32.mrf.mxu1  ;;  %v2675_v28 = vadd.f32 %v2674_v14, %v2634_v61 }
 0x25d   : > { %v2676_v32 = vpop.f32.mrf.mxu0 }
 0x25e   : > { %v2717_v33 = vpop.f32.mrf.mxu1  ;;  %v2677_v36 = vadd.f32 %v2676_v32, %v2636_v26  ;;  %v2716_v38 = vadd.f32 %v2715_v25, %v2675_v28 }
 0x25f   : > { %v2678_v8 = vpop.f32.mrf.mxu0 }
 0x260   : > { %v2719_v37 = vpop.f32.mrf.mxu1  ;;  %v2718_v41 = vadd.f32 %v2717_v33, %v2677_v36 }
 0x261   : > { %v2679_v42 = vpop.f32.mrf.mxu0 }
 0x262   : > { %v2720_v43 = vpop.f32.mrf.mxu1  ;;  %v2727_v44 = vcombine.low %v2716_v38, %v2718_v41 }
 0x264   : > { %v2741_v47 = vrot.slane %v2727_v44, %v4733_v35 }
 0x266   : > { %v2742_v22 = vcombine.low %v2734_v45, %v2741_v47 }
 0x268   : > { %v2744_v3 = vadd.f32 %v2742_v22, %v795_v46 }
 0x26a   : > { %v2751_v24 = vcombine.high %v2744_v3, %v2744_v3  ;;  %v2758_v17 = vrot.slane %v2744_v3, %v4733_v35 }
 0x26c   : > { %v2765_v21 = vrot.slane %v2751_v24, %v4733_v35  ;;  %v2766_v48 = vcombine.high %v2758_v17, %v2758_v17  ;;  %v2773_v49 = vsel %vm2772_vm0, %v2758_v17, 0.0 }
 0x26d   : > { %v2774_v50 = vrot.slane %v2773_v49, 4 }
 0x26e   : > { %v2767_v20 = vcombine.high %v2765_v21, %v2765_v21  ;;  %v2780_v27 = vsel %vm2772_vm0, %v2766_v48, 0.0  ;;  %v2787_v51 = vsel %vm2772_vm0, %v2765_v21, 0.0 }
 0x26f   : > { %v2775_v52 = vadd.f32 %v2774_v50, %v2773_v49  ;;  %v2781_v53 = vrot.slane %v2780_v27, 4  ;;  %v2788_v54 = vrot.slane %v2787_v51, 4 }
 0x270   : > { %v2794_v55 = vsel %vm2772_vm0, %v2767_v20, 0.0 }
 0x271   : > { %v2776_v31 = vrot.slane %v2775_v52, 2  ;;  %v2782_v56 = vadd.f32 %v2781_v53, %v2780_v27  ;;  %v2789_v34 = vadd.f32 %v2788_v54, %v2787_v51  ;;  %v2795_v57 = vrot.slane %v2794_v55, 4 }
 0x273   : > { %v2777_v58 = vadd.f32 %v2776_v31, %v2775_v52  ;;  %v2783_v59 = vrot.slane %v2782_v56, 2  ;;  %v2790_v60 = vrot.slane %v2789_v34, 2  ;;  %v2796_v61 = vadd.f32 %v2795_v57, %v2794_v55 }
 0x275   : > { %v2778_v62 = vrot.slane %v2777_v58, 1  ;;  %v2784_v63 = vadd.f32 %v2783_v59, %v2782_v56  ;;  %v2791_v0 = vadd.f32 %v2790_v60, %v2789_v34  ;;  %v2797_v1 = vrot.slane %v2796_v61, 2 }
 0x277   : > { %v2779_v2 = vadd.f32 %v2778_v62, %v2777_v58  ;;  %v2785_v5 = vrot.slane %v2784_v63, 1  ;;  %v2792_v6 = vrot.slane %v2791_v0, 1  ;;  %v2798_v7 = vadd.f32 %v2797_v1, %v2796_v61 }
 0x279   : > { %v2786_v9 = vadd.f32 %v2785_v5, %v2784_v63  ;;  %v2793_v11 = vadd.f32 %v2792_v6, %v2791_v0  ;;  %v2799_v4 = vrot.slane %v2798_v7, 1  ;;  %v2802_v13 = vmul.f32 0.5, %v2779_v2 }
 0x27b   : > { %v2800_v12 = vadd.f32 %v2799_v4, %v2798_v7  ;;  %v2803_v15 = vmul.f32 0.5, %v2786_v9  ;;  %v2804_v16 = vmul.f32 0.5, %v2793_v11 }
 0x27d   : > { %v2805_v18 = vmul.f32 0.5, %v2800_v12  ;;  %v2810_v19 = vcombine.low %v2802_v13, %v2803_v15 }
 0x27f   : > { %v2811_v23 = vcombine.low %v2804_v16, %v2805_v18  ;;  %v2818_v14 = vrot.slane %v2810_v19, %v4733_v35 }
 0x281   : > { %v2825_v25 = vrot.slane %v2811_v23, %v4733_v35 }
 0x283   : > { %v2826_v26 = vcombine.low %v2818_v14, %v2825_v25 }
 0x285   : > { %v2828_v28 = vsub.f32 %v2744_v3, %v2826_v26 }
 0x287   : > { %v2829_v29 = vmul.f32 %v2828_v28, %v2828_v28 }
 0x289   : > { %v2831_v30 = vcombine.high %v2829_v29, %v2829_v29  ;;  %v2838_v32 = vrot.slane %v2829_v29, %v4733_v35 }
 0x28b   : > { %v2845_v33 = vrot.slane %v2831_v30, %v4733_v35  ;;  %v2846_v36 = vcombine.high %v2838_v32, %v2838_v32  ;;  %v2852_v8 = vsel %vm2772_vm0, %v2838_v32, 0.0 }
 0x28c   : > { %v2853_v37 = vrot.slane %v2852_v8, 4 }
 0x28d   : > { %v2847_v38 = vcombine.high %v2845_v33, %v2845_v33  ;;  %v2859_v39 = vsel %vm2772_vm0, %v2846_v36, 0.0  ;;  %v2866_v40 = vsel %vm2772_vm0, %v2845_v33, 0.0 }
 0x28e   : > { %v2854_v41 = vadd.f32 %v2853_v37, %v2852_v8  ;;  %v2860_v42 = vrot.slane %v2859_v39, 4  ;;  %v2867_v43 = vrot.slane %v2866_v40, 4 }
 0x28f   : > { %v2873_v44 = vsel %vm2772_vm0, %v2847_v38, 0.0 }
 0x290   : > { %v2855_v45 = vrot.slane %v2854_v41, 2  ;;  %v2861_v46 = vadd.f32 %v2860_v42, %v2859_v39  ;;  %v2868_v47 = vadd.f32 %v2867_v43, %v2866_v40  ;;  %v2874_v22 = vrot.slane %v2873_v44, 4 }
 0x292   : > { %v2856_v3 = vadd.f32 %v2855_v45, %v2854_v41  ;;  %v2862_v24 = vrot.slane %v2861_v46, 2  ;;  %v2869_v17 = vrot.slane %v2868_v47, 2  ;;  %v2875_v21 = vadd.f32 %v2874_v22, %v2873_v44 }
 0x294   : > { %v2857_v48 = vrot.slane %v2856_v3, 1  ;;  %v2863_v49 = vadd.f32 %v2862_v24, %v2861_v46  ;;  %v2870_v50 = vadd.f32 %v2869_v17, %v2868_v47  ;;  %v2876_v20 = vrot.slane %v2875_v21, 2 }
 0x296   : > { %v2858_v27 = vadd.f32 %v2857_v48, %v2856_v3  ;;  %v2864_v51 = vrot.slane %v2863_v49, 1  ;;  %v2871_v52 = vrot.slane %v2870_v50, 1  ;;  %v2877_v53 = vadd.f32 %v2876_v20, %v2875_v21 }
 0x298   : > { %v2865_v54 = vadd.f32 %v2864_v51, %v2863_v49  ;;  %v2872_v55 = vadd.f32 %v2871_v52, %v2870_v50  ;;  %v2878_v31 = vrot.slane %v2877_v53, 1  ;;  %v2880_v56 = vmul.f32 0.5, %v2858_v27 }
 0x29a   : > { %v2879_v34 = vadd.f32 %v2878_v31, %v2877_v53  ;;  %v2881_v57 = vmul.f32 0.5, %v2865_v54  ;;  %v2882_v58 = vmul.f32 0.5, %v2872_v55  ;;  %v2884_v59 = vadd.f32 1e-05, %v2880_v56 }
 0x29c   : > { %v2883_v60 = vmul.f32 0.5, %v2879_v34  ;;  %v2885_v61 = vadd.f32 1e-05, %v2881_v57  ;;  %v2886_v62 = vadd.f32 1e-05, %v2882_v58  ;;  %3762 = vrsqrt.f32 %v2884_v59 }
 0x29e   : > { %v2887_v63 = vadd.f32 1e-05, %v2883_v60  ;;  %3764 = vrsqrt.f32 %v2885_v61 }
 0x29f   : > { %3766 = vrsqrt.f32 %v2886_v62 }
 0x2a0   : > { %3768 = vrsqrt.f32 %v2887_v63 }
 0x2a9   : > { %v3763_v0 = vpop.eup %3762 }
 0x2ab   : > { %v3765_v1 = vpop.eup %3764 }
 0x2ac   : > { %v3767_v2 = vpop.eup %3766  ;;  %v2896_v5 = vcombine.low %v3763_v0, %v3765_v1 }
 0x2ad   : > { %v3769_v6 = vpop.eup %3768 }
 0x2ae   : > { %v2897_v7 = vcombine.low %v3767_v2, %v3769_v6  ;;  %v2904_v9 = vrot.slane %v2896_v5, %v4733_v35 }
 0x2b0   : > { %v2911_v11 = vrot.slane %v2897_v7, %v4733_v35 }
 0x2b2   : > { %v2912_v4 = vcombine.low %v2904_v9, %v2911_v11 }
 0x2b4   : > { %v2914_v12 = vmul.f32 %v2912_v4, %v2828_v28 }
 0x2b6   : > { %v2915_v13 = vmax.f32 %v2914_v12, 0.0 }
 0x2b8   : > { %v2917_v15 = vcombine.high %v2915_v13, %v2915_v13  ;;  %v2924_v16 = vrot.slane %v2915_v13, %v4733_v35 }
 0x2ba   : > { %v2931_v18 = vrot.slane %v2917_v15, %v4733_v35  ;;  %v2932_v19 = vcombine.high %v2924_v16, %v2924_v16 }
 0x2bc   : > { %v2933_v23 = vcombine.high %v2931_v18, %v2931_v18  ;;  %v3329_v14 = vpack.c.bf16 %v2932_v19, %v2924_v16 }
 0x2be   : > { %v3330_v25 = vpack.c.bf16 %v2933_v23, %v2931_v18  ;;  %v2954_v26 = vrot.slane %v3329_v14, %v4408_v10 }
 0x2c0   : > { %v2961_v29 = vrot.slane %v3330_v25, %v4408_v10 }
 0x2c2   : > { %v2962_v30 = vcombine.low %v2954_v26, %v2961_v29 }
 0x2c4   : > { %3331 = vst.sshfl [vmem:[%s755_s12] sm:$0x55 pattern:$0x73625140] %v2962_v30 }
 0x2c5 PF: > { %s13_s16 = sadd.s32 1, %s3808_s16   ;;  %s4782_s12 = smov %s3796_s13 }
 0x2c6   : > { %p10_p10 = scmp.ge.s32.totalorder %s13_s16, 6   ;;  %s4783_s13 = smov %s3867_s20 }
 0x2c7   : > { %s4784_s14 = smov %s3804_s15  ;;  %s4785_s15 = smov %s4787_s17 }
 0x2c8   :  { %12 = sbr.rel (!%p10_p10) target bundleno = 3 (0x3), region = 104 }

// kernel: conv_ae_forward.18
= control target key start
LH: loop header
LB: loop body
LE: loop exit
PB: predicated region body
PF: predicated region fallthrough
CT: control target
= control target key end

     0   :  { %v28_v0 = vlaneseq  ;;  %s164_s0 = inlined_call_operand.vmem [shape: bf16[32,256], index: 0, kind: input, shape index: {}]   ;;  %s165_s1 = inlined_call_operand.vmem [shape: f32[1,256], index: 1, kind: input, shape index: {}]   ;;  %s166_s2 = inlined_call_operand.vmem [shape: f32[1,256], index: 2, kind: input, shape index: {}]   ;;  %s167_s3 = inlined_call_operand.vmem [shape: bf16[32,256], index: 3, kind: output, shape index: {}]  }
   0x1   :  { %v14_v1 = vld [vmem:[%s164_s0] sm:$0xff]  ;;  %v15_v3 = vld [vmem:[%s164_s0 + $0x8] sm:$0xff]  ;;  %v16_v4 = vld [vmem:[%s164_s0 + $0x10] sm:$0xff] }
   0x2   :  { %v29_v2 = vshrl.u32 %v28_v0, 7  ;;  %v17_v5 = vld [vmem:[%s164_s0 + $0x18] sm:$0xff]  ;;  %v18_v6 = vunpack.c.l.bf16 %v14_v1  ;;  %v19_v7 = vunpack.c.h.bf16 %v14_v1  ;;  %v26_v8 = vld [vmem:[%s165_s1] sm:$0x3]  ;;  %v20_v12 = vunpack.c.l.bf16 %v15_v3 }
   0x3   :  { %v46_v9 = vld [vmem:[%s166_s2] sm:$0x3]  ;;  %v21_v13 = vunpack.c.h.bf16 %v15_v3  ;;  %v22_v14 = vunpack.c.l.bf16 %v16_v4  ;;  %v23_v15 = vunpack.c.h.bf16 %v16_v4  ;;  %v24_v16 = vunpack.c.l.bf16 %v17_v5 }
   0x4   :  { %v30_v10 = vsub.s32 0, %v29_v2  ;;  %v34_v11 = vsub.s32 1, %v29_v2  ;;  %v25_v17 = vunpack.c.h.bf16 %v17_v5 }
   0x6   :  { %v31_v18 = vrot.slane %v26_v8, %v30_v10  ;;  %v35_v19 = vrot.slane %v26_v8, %v34_v11  ;;  %v51_v20 = vrot.slane %v46_v9, %v30_v10  ;;  %v55_v21 = vrot.slane %v46_v9, %v34_v11 }
   0x8   :  { %v38_v22 = vsub.f32 %v18_v6, %v31_v18  ;;  %v39_v23 = vsub.f32 %v19_v7, %v35_v19  ;;  %v40_v24 = vsub.f32 %v20_v12, %v31_v18  ;;  %v41_v25 = vsub.f32 %v21_v13, %v35_v19 }
   0x9   :  { %v42_v26 = vsub.f32 %v22_v14, %v31_v18  ;;  %v43_v27 = vsub.f32 %v23_v15, %v35_v19  ;;  %v44_v28 = vsub.f32 %v24_v16, %v31_v18  ;;  %v45_v29 = vsub.f32 %v25_v17, %v35_v19 }
   0xa   :  { %v58_v30 = vmul.f32 %v51_v20, %v38_v22  ;;  %v59_v31 = vmul.f32 %v55_v21, %v39_v23  ;;  %v60_v32 = vmul.f32 %v51_v20, %v40_v24  ;;  %v61_v33 = vmul.f32 %v55_v21, %v41_v25 }
   0xb   :  { %v62_v34 = vmul.f32 %v51_v20, %v42_v26  ;;  %v63_v35 = vmul.f32 %v55_v21, %v43_v27  ;;  %v64_v36 = vmul.f32 %v51_v20, %v44_v28  ;;  %v65_v37 = vmul.f32 %v55_v21, %v45_v29 }
   0xc   :  { %v66_v38 = vmax.f32 %v58_v30, 0.0  ;;  %v67_v39 = vmax.f32 %v59_v31, 0.0  ;;  %v68_v40 = vmax.f32 %v60_v32, 0.0  ;;  %v69_v41 = vmax.f32 %v61_v33, 0.0 }
   0xd   :  { %v70_v42 = vmax.f32 %v62_v34, 0.0  ;;  %v71_v43 = vmax.f32 %v63_v35, 0.0  ;;  %v72_v44 = vmax.f32 %v64_v36, 0.0  ;;  %v73_v45 = vmax.f32 %v65_v37, 0.0 }
   0xe   :  { %v110_v46 = vpack.c.bf16 %v67_v39, %v66_v38  ;;  %v111_v47 = vpack.c.bf16 %v69_v41, %v68_v40 }
   0xf   :  { %v112_v48 = vpack.c.bf16 %v71_v43, %v70_v42  ;;  %v113_v49 = vpack.c.bf16 %v73_v45, %v72_v44 }
  0x10   :  { %98 = vst [vmem:[%s167_s3] sm:$0xff] %v110_v46  ;;  %99 = vst [vmem:[%s167_s3 + $0x8] sm:$0xff] %v111_v47 }
  0x11   :  { %100 = vst [vmem:[%s167_s3 + $0x10] sm:$0xff] %v112_v48  ;;  %101 = vst [vmem:[%s167_s3 + $0x18] sm:$0xff] %v113_v49 }

// kernel: conv_ae_forward.19
= control target key start
LH: loop header
LB: loop body
LE: loop exit
PB: predicated region body
PF: predicated region fallthrough
CT: control target
= control target key end

     0   :  { %v616_v4 = vmov 0   ;;  %v617_v22 = vmov 1983009808   ;;  %v101_v24 = vlaneseq  ;;  %v618_v41 = vmov 0.0   ;;  %s760_s1 = inlined_call_operand.vmem [shape: bf16[576,128], index: 1, kind: input, shape index: {}]   ;;  %s761_s0 = inlined_call_operand.vmem [shape: bf16[4,576], index: 0, kind: input, shape index: {}]   ;;  %s762_s2 = inlined_call_operand.vmem [shape: f32[4,1], index: 2, kind: input, shape index: {}]   ;;  %s763_s3 = inlined_call_operand.vmem [shape: f32[4,128], index: 3, kind: output, shape index: {}]  }
   0x1   :  { %v577_v0 = vld [vmem:[%s760_s1 + $0x78] sm:$0xff]   ;;  %576 = vset.pattern.permute.xlu0 %v616_v4  ;;  %v581_v5 = vld [vmem:[%s760_s1 + $0x70] sm:$0xff]   ;;  %v585_v9 = vld [vmem:[%s760_s1 + $0x68] sm:$0xff]   ;;  %v99_v23 = vunpack.c.l.s4 %v617_v22  ;;  %vm619_vm0 = vmmov 0   ;;  %vm341_vm1 = vcmask 523264  }
   0x2   :  { %v578_v1 = vld [vmem:[%s760_s1 + $0x38] sm:$0xff]   ;;  %511 = vmatprep.subr.bf16.mxu0 %v577_v0  ;;  %v582_v6 = vld [vmem:[%s760_s1 + $0x30] sm:$0xff]   ;;  %v586_v10 = vld [vmem:[%s760_s1 + $0x28] sm:$0xff]   ;;  %v102_v30 = vshrl.u32 %v101_v24, 7 }
   0x3   :  { %v579_v2 = vld [vmem:[%s760_s1 + $0xf8] sm:$0xff]   ;;  %512 = vmatpush3.bf16.msra.mxu0 %v578_v1  ;;  %v583_v7 = vld [vmem:[%s760_s1 + $0xf0] sm:$0xff]   ;;  %v587_v11 = vld [vmem:[%s760_s1 + $0xe8] sm:$0xff]   ;;  %v100_v29 = vunpack.c.0.s8 %v99_v23 }
   0x4   :  { %v580_v3 = vld [vmem:[%s760_s1 + $0xb8] sm:$0xff]   ;;  %533 = vmatprep.subr.bf16.mxu1 %v579_v2  ;;  %513 = vmatprep.subr.bf16.mxu0 %v581_v5  ;;  %v584_v8 = vld [vmem:[%s760_s1 + $0xb0] sm:$0xff]   ;;  %v588_v12 = vld [vmem:[%s760_s1 + $0xa8] sm:$0xff]  }
   0x5   :  { %534 = vmatpush3.bf16.msra.mxu1 %v580_v3  ;;  %v589_v13 = vld [vmem:[%s760_s1 + $0x60] sm:$0xff]   ;;  %v593_v17 = vld [vmem:[%s760_s1 + $0x58] sm:$0xff]   ;;  %v597_v21 = vld [vmem:[%s760_s1 + $0x50] sm:$0xff]   ;;  %v103_v35 = vsub.s32 %v100_v29, %v102_v30 }
   0x6   :  { %535 = vmatprep.subr.bf16.mxu1 %v583_v7  ;;  %v590_v14 = vld [vmem:[%s760_s1 + $0x20] sm:$0xff]   ;;  %v594_v18 = vld [vmem:[%s760_s1 + $0x18] sm:$0xff]   ;;  %v598_v25 = vld [vmem:[%s760_s1 + $0x10] sm:$0xff]  }
   0x7   :  { %514 = vmatpush3.bf16.msra.mxu0 %v582_v6  ;;  %v591_v15 = vld [vmem:[%s760_s1 + $0xe0] sm:$0xff]   ;;  %v595_v19 = vld [vmem:[%s760_s1 + $0xd8] sm:$0xff]   ;;  %v599_v26 = vld [vmem:[%s760_s1 + $0xd0] sm:$0xff]  }
   0x8   :  { %515 = vmatprep.subr.bf16.mxu0 %v585_v9  ;;  %v592_v16 = vld [vmem:[%s760_s1 + $0xa0] sm:$0xff]   ;;  %v596_v20 = vld [vmem:[%s760_s1 + $0x98] sm:$0xff]   ;;  %v600_v27 = vld [vmem:[%s760_s1 + $0x90] sm:$0xff]  }
   0x9   :  { %536 = vmatpush3.bf16.msra.mxu1 %v584_v8  ;;  %v601_v28 = vld [vmem:[%s760_s1 + $0x48] sm:$0xff]   ;;  %v605_v34 = vld [vmem:[%s760_s1 + $0x40] sm:$0xff]   ;;  %v610_v45 = vld [vmem:[%s760_s1 + $0x118] sm:$0xff]  }
   0xa   :  { %537 = vmatprep.subr.bf16.mxu1 %v587_v11  ;;  %v602_v31 = vld [vmem:[%s760_s1 + $0x8] sm:$0xff]   ;;  %v606_v36 = vld [vmem:[%s760_s1] sm:$0xff]   ;;  %v611_v48 = vld [vmem:[%s760_s1 + $0x110] sm:$0xff]  }
   0xb   :  { %516 = vmatpush3.bf16.msra.mxu0 %v586_v10  ;;  %v603_v32 = vld [vmem:[%s760_s1 + $0xc8] sm:$0xff]   ;;  %v607_v37 = vld [vmem:[%s760_s1 + $0xc0] sm:$0xff]  }
   0xc   :  { %517 = vmatprep.subr.bf16.mxu0 %v589_v13  ;;  %v604_v33 = vld [vmem:[%s760_s1 + $0x88] sm:$0xff]   ;;  %v15_v38 = vld [vmem:[%s761_s0] sm:$0xff] }
   0xd   :  { %538 = vmatpush3.bf16.msra.mxu1 %v588_v12  ;;  %v608_v39 = vld [vmem:[%s760_s1 + $0x80] sm:$0xff]   ;;  %v104_v40 = vrot.slane %v15_v38, %v103_v35  ;;  %v97_v42 = vcombine.high %v15_v38, %v15_v38  ;;  %v612_v49 = vld [vmem:[%s760_s1 + $0x108] sm:$0xff]  }
   0xe   :  { %539 = vmatprep.subr.bf16.mxu1 %v591_v15  ;;  %v89_v47 = vld [vmem:[%s762_s2] sm:$0xf]  ;;  %v473_v51 = vld.sshfl [vmem:[%s761_s0 + $0x8] sm:$0x3 pattern:$0x76325410] }
   0xf   :  { %518 = vmatpush3.bf16.msra.mxu0 %v590_v14  ;;  %v112_v43 = vcombine.high %v104_v40, %v104_v40  ;;  %v111_v44 = vrot.slane %v97_v42, %v103_v35  ;;  %92 = vperm.xlu0 %576, %v89_v47   ;;  %v613_v50 = vld [vmem:[%s760_s1 + $0x100] sm:$0xff]  }
  0x10   :  { %519 = vmatprep.subr.bf16.mxu0 %v593_v17 }
  0x11   :  { %540 = vmatpush3.bf16.msra.mxu1 %v592_v16  ;;  %377 = vmatprep.mubr.bf16.mxu0 %v112_v43  ;;  %v113_v46 = vcombine.high %v111_v44, %v111_v44 }
  0x12   :  { %541 = vmatprep.subr.bf16.mxu1 %v595_v19 }
  0x13   :  { %520 = vmatpush3.bf16.msra.mxu0 %v594_v18  ;;  %417 = vmatprep.mubr.bf16.mxu1 %v113_v46 }
  0x14   :  { %521 = vmatprep.subr.bf16.mxu0 %v597_v21 }
  0x15   :  { %542 = vmatpush3.bf16.msra.mxu1 %v596_v20 }
  0x16   :  { %543 = vmatprep.subr.bf16.mxu1 %v599_v26 }
  0x17   :  { %522 = vmatpush3.bf16.msra.mxu0 %v598_v25 }
  0x18   :  { %523 = vmatprep.subr.bf16.mxu0 %v601_v28 }
  0x19   :  { %544 = vmatpush3.bf16.msra.mxu1 %v600_v27 }
  0x1a   :  { %545 = vmatprep.subr.bf16.mxu1 %v603_v32 }
  0x1b   :  { %524 = vmatpush3.bf16.msra.mxu0 %v602_v31 }
  0x1c   :  { %525 = vmatprep.subr.bf16.mxu0 %v605_v34 }
  0x1d   :  { %546 = vmatpush3.bf16.msra.mxu1 %v604_v33 }
  0x1e   :  { %547 = vmatprep.subr.bf16.mxu1 %v607_v37 }
  0x1f   :  { %526 = vmatpush3.bf16.msra.mxu0 %v606_v36 }
  0x20   :  { %560 = vmatprep.subr.bf16.mxu0 %v618_v41 }
  0x21   :  { %548 = vmatpush3.bf16.msra.mxu1 %v608_v39 }
  0x22   :  { %378 = vmatmul.mubr.bf16.vlgmr.msra.gmra.mxu0 %v104_v40 }
  0x23   :  { %561 = vmatpush3.bf16.msra.mxu0 %v610_v45  ;;  %568 = vmatprep.mubr.msk.bf16.mxu0 %vm619_vm0, %v618_v41 }
  0x24   :  { %418 = vmatmul.mubr.bf16.vlgmr.msra.gmra.mxu1 %v111_v44  ;;  %562 = vmatprep.subr.bf16.mxu0 %v618_v41 }
  0x27   :  { %563 = vmatpush3.bf16.msra.mxu0 %v611_v48 }
  0x28   :  { %564 = vmatprep.subr.bf16.mxu0 %v618_v41 }
  0x2b   :  { %565 = vmatpush3.bf16.msra.mxu0 %v612_v49 }
  0x2c   :  { %566 = vmatprep.subr.bf16.mxu0 %v618_v41 }
  0x2f   :  { %567 = vmatpush3.bf16.msra.mxu0 %v613_v50 }
  0x32   :  { %569 = vmatmul.mubr.msk.bf16.vlgmr.msra.gmra.mxu0 %vm341_vm1, %v473_v51 }
  0x8a   :  { %v93_v60 = vpop.permute.xlu0 %92 }
  0xe2   :  { %v527_v52 = vpop.f32.mrf.mxu0 }
  0xe4   :  { %v528_v53 = vpop.f32.mrf.mxu0  ;;  %v549_v54 = vpop.f32.mrf.mxu1 }
  0xe5   :  { %v529_v59 = vadd.f32 %v528_v53, %v527_v52 }
  0xe6   :  { %v530_v55 = vpop.f32.mrf.mxu0  ;;  %v550_v56 = vpop.f32.mrf.mxu1 }
  0xe7   :  { %v380_v62 = vadd.f32 %v529_v59, %v93_v60  ;;  %v551_v63 = vadd.f32 %v550_v56, %v549_v54 }
  0xe8   :  { %v531_v57 = vpop.f32.mrf.mxu0  ;;  %v552_v58 = vpop.f32.mrf.mxu1 }
  0xe9   :  { %v420_v0 = vadd.f32 %v551_v63, %v380_v62 }
  0xea   :  { %v553_v61 = vpop.f32.mrf.mxu1 }
  0xf2   :  { %v459_v1 = vpop.f32.mrf.mxu0 }
  0xf3   :  { %v460_v2 = vadd.f32 %v459_v1, %v420_v0 }
  0xf4   :  { %v570_v3 = vpop.f32.mrf.mxu0 }
  0xf5   :  { %614 = vtanh.f32 %v460_v2 }
  0xf6   :  { %v462_v4 = vpop.f32.mrf.mxu0 }
  0xf8   :  { %v571_v5 = vpop.f32.mrf.mxu0 }
 0x102   :  { %v615_v6 = vpop.eup %614 }
 0x103   :  { %v466_v7 = vmul.f32 0.5, %v615_v6 }
 0x105   :  { %v467_v8 = vadd.f32 0.5, %v466_v7 }
 0x107   :  { %468 = vst [vmem:[%s763_s3] sm:$0xf] %v467_v8 }

</bundles_post_ra>
